<compile_context>
chip_gen: v7x
topology: tpu7x:2x2x1
jax: 0.10.0
libtpu: 0.0.40
codegen_flags: <defaults>
</compile_context>

<pallas_src>
import jax
import jax.numpy as jnp
from jax import lax
from jax.experimental import pallas as pl
from jax.experimental.pallas import tpu as pltpu


# Real image columns live at sublane offset WOFF inside the padded bf16 VMEM
# scratches so every interior STORE is aligned to the bf16 (16,128) tiling.
WOFF = 16


def _conv3x3_same(pad_ref, w_ref, *, B, H, W, Cin, pad, dil):
    """'same' 3x3 conv from a zero-haloed bf16 scratch.

    pad_ref : (B, H + 2*pad, Wp, Cin) bf16; real image at
              [:, pad:pad+H, WOFF:WOFF+W, :], zeros in the read halo.
    w_ref   : (3, 3*Cin, Cout) bf16, laid out (ky, kx*Cin + cin, cout).
    Returns (B*H*W, Cout) float32 = sum over ky of (M, 3*Cin) @ (3*Cin, Cout).
    Per-ky grouping keeps the lane-axis concat inside one 128-lane tile.
    """
    M = B * H * W
    base = WOFF - pad
    acc = None
    for ky in range(3):                                   # static unroll
        r0 = ky * dil
        pieces = [
            pad_ref[:, r0:r0 + H, base + kx * dil:base + kx * dil + W, :]
            for kx in range(3)
        ]
        cols = jnp.concatenate(pieces, axis=3).reshape(M, 3 * Cin)   # bf16
        term = jnp.dot(cols, w_ref[ky], preferred_element_type=jnp.float32)
        acc = term if acc is None else acc + term
    return acc


def _make_ffn2_kernel(B, H, W, Cin, C, Cout, Cpad):
    f32 = jnp.float32
    bf16 = jnp.bfloat16
    HW = H * W
    W1P = WOFF + W + 2     # conv1 padded width (pad=2)
    WCP = WOFF + W + 1     # conv2/conv4 padded width (pad=1)

    def kernel(x_ref, w1_ref, b1_ref, w2_ref, b2_ref, a_ref,
               w3_ref, b3_ref, w4_ref, b4_ref, o_ref,
               pad1_ref, padc_ref):
        # ---- halo-only zeroing (interiors fully overwritten below) --------
        pad1_ref[:, 0:2, :, :] = jnp.zeros((B, 2, W1P, Cin), bf16)
        pad1_ref[:, H + 2:H + 4, :, :] = jnp.zeros((B, 2, W1P, Cin), bf16)
        pad1_ref[:, 2:2 + H, WOFF - 2:WOFF, :] = jnp.zeros((B, H, 2, Cin), bf16)
        pad1_ref[:, 2:2 + H, WOFF + W:WOFF + W + 2, :] = (
            jnp.zeros((B, H, 2, Cin), bf16))

        padc_ref[:, 0:1, :, :] = jnp.zeros((B, 1, WCP, C), bf16)
        padc_ref[:, H + 1:H + 2, :, :] = jnp.zeros((B, 1, WCP, C), bf16)
        padc_ref[:, 1:1 + H, WOFF - 1:WOFF, :] = jnp.zeros((B, H, 1, C), bf16)
        padc_ref[:, 1:1 + H, WOFF + W:WOFF + W + 1, :] = (
            jnp.zeros((B, H, 1, C), bf16))

        # ---- conv1: 3x3, dilation=2, padding=2 -----------------------------
        pad1_ref[:, 2:2 + H, WOFF:WOFF + W, :] = x_ref[...].astype(bf16)
        rs1 = _conv3x3_same(pad1_ref, w1_ref, B=B, H=H, W=W, Cin=Cin,
                            pad=2, dil=2) + b1_ref[...]          # (M, C) f32

        # conv2 input goes to the padded scratch (bf16);
        # the f32 rs1 value stays LIVE for the conv3 residual.
        padc_ref[:, 1:1 + H, WOFF:WOFF + W, :] = (
            rs1.reshape(B, H, W, C).astype(bf16))

        # ---- conv2: 3x3, padding=1, fused PReLU ----------------------------
        y2 = _conv3x3_same(padc_ref, w2_ref, B=B, H=H, W=W, Cin=C,
                           pad=1, dil=1) + b2_ref[...]
        alpha = a_ref[...]
        rs2 = jnp.where(y2 >= 0.0, y2, alpha * y2)

        # ---- conv3: 1x1, + residual (live f32 rs1, no VMEM round-trip) -----
        y3 = jnp.dot(rs2.astype(bf16), w3_ref[...],
                     preferred_element_type=f32) + b3_ref[...]
        rs3 = y3 + rs1

        # reuse the same padded scratch for conv4's input (halo still zero)
        padc_ref[:, 1:1 + H, WOFF:WOFF + W, :] = (
            rs3.reshape(B, H, W, C).astype(bf16))

        # ---- conv4: 3x3, padding=1 ------------------------------------------
        rs4 = _conv3x3_same(padc_ref, w4_ref, B=B, H=H, W=W, Cin=C,
                            pad=1, dil=1) + b4_ref[...]          # (M, Cpad)

        # Lane-dense output: (B, Cpad, HW) transpose (8-channel aligned),
        # then drop the zero-padded channels and store (B, Cout, HW).
        t = jnp.transpose(rs4.reshape(B, HW, Cpad), (0, 2, 1))
        o_ref[...] = t[:, :Cout, :].astype(o_ref.dtype)

    return kernel


def ffn2_pallas(x_nchw, p, images_per_step=None):
    """Fused FFN_2 forward. Takes / returns PyTorch-style NCHW."""
    N, Cin, H, W = x_nchw.shape
    C = p["w2"].shape[-1]
    Cout = p["w4"].shape[-1]
    bf16, f32 = jnp.bfloat16, jnp.float32

    # >=2 grid steps by default (feeds both v7x TensorCores; the extra step is
    # ~0.35us of overhead on single-TC v5e/v6e).
    if images_per_step is None:
        B = N // 2 if (N >= 2 and N % 2 == 0) else 1
    else:
        B = images_per_step
    assert N % B == 0, "images_per_step must divide the batch"
    steps = N // B

    HW = H * W
    Cpad = max(8, ((Cout + 7) // 8) * 8)   # 8-aligned conv4 output channels

    x_nhwc = jnp.transpose(x_nchw, (0, 2, 3, 1))

    # Weights pre-reshaped to (ky, 3*Cin, Cout) and pre-cast to bf16.
    w1 = p["w1"].reshape(3, 3 * Cin, C).astype(bf16)
    w2 = p["w2"].reshape(3, 3 * C, C).astype(bf16)
    w3 = p["w3"].reshape(C, C).astype(bf16)
    w4 = jnp.zeros((3, 3 * C, Cpad), bf16).at[:, :, :Cout].set(
        p["w4"].reshape(3, 3 * C, Cout).astype(bf16))
    b1 = p["b1"].reshape(1, C).astype(f32)
    b2 = p["b2"].reshape(1, C).astype(f32)
    b3 = p["b3"].reshape(1, C).astype(f32)
    b4 = jnp.zeros((1, Cpad), f32).at[:, :Cout].set(
        p["b4"].reshape(1, Cout).astype(f32))
    alpha = p["alpha"].reshape(1, C).astype(f32)

    kernel = _make_ffn2_kernel(B, H, W, Cin, C, Cout, Cpad)

    def _resident(shape):
        nd = len(shape)
        return pl.BlockSpec(shape, lambda n: (0,) * nd)   # VMEM-resident

    out = pl.pallas_call(
        kernel,
        out_shape=jax.ShapeDtypeStruct((N, Cout, HW), x_nchw.dtype),
        grid=(steps,),
        in_specs=[
            pl.BlockSpec((B, H, W, Cin), lambda n: (n, 0, 0, 0)),   # images
            _resident(w1.shape), _resident(b1.shape),
            _resident(w2.shape), _resident(b2.shape), _resident(alpha.shape),
            _resident(w3.shape), _resident(b3.shape),
            _resident(w4.shape), _resident(b4.shape),
        ],
        out_specs=pl.BlockSpec((B, Cout, HW), lambda n: (n, 0, 0)),
        scratch_shapes=[
            pltpu.VMEM((B, H + 4, WOFF + W + 2, Cin), bf16),   # conv1 pad
            pltpu.VMEM((B, H + 2, WOFF + W + 1, C), bf16),     # rs1/rs3 pad
        ],
        compiler_params=pltpu.CompilerParams(
            dimension_semantics=("parallel",)),
    )(x_nhwc, w1, b1, w2, b2, alpha, w3, b3, w4, b4)

    return out.reshape(N, Cout, H, W)    # NCHW, free reshape (no transpose)


# ---------------- pure-JAX reference (for correctness check) -----------------
def _conv_ref(x_nchw, w_hwio, b, pad, dil):
    w_oihw = jnp.transpose(w_hwio, (3, 2, 0, 1))
    y = lax.conv_general_dilated(
        x_nchw, w_oihw, window_strides=(1, 1),
        padding=[(pad, pad), (pad, pad)], rhs_dilation=(dil, dil),
        dimension_numbers=("NCHW", "OIHW", "NCHW"),
        precision=jax.lax.Precision.HIGHEST)
    return y + b[None, :, None, None]


def ffn2_ref(x_nchw, p):
    rs1 = _conv_ref(x_nchw, p["w1"], p["b1"], 2, 2)
    y = _conv_ref(rs1, p["w2"], p["b2"], 1, 1)
    a = p["alpha"][None, :, None, None]
    rs2 = jnp.where(y >= 0, y, a * y)
    rs3 = _conv_ref(rs2, p["w3"], p["b3"], 0, 1) + rs1
    rs4 = _conv_ref(rs3, p["w4"], p["b4"], 1, 1)
    return rs4


def init_params(key, in_ch, ffn_ch, out_ch):
    ks = jax.random.split(key, 8)
    s = 0.1
    return {
        "w1": jax.random.normal(ks[0], (3, 3, in_ch, ffn_ch), jnp.float32) * s,
        "b1": jax.random.normal(ks[1], (ffn_ch,), jnp.float32) * s,
        "w2": jax.random.normal(ks[2], (3, 3, ffn_ch, ffn_ch), jnp.float32) * s,
        "b2": jax.random.normal(ks[3], (ffn_ch,), jnp.float32) * s,
        "w3": jax.random.normal(ks[4], (1, 1, ffn_ch, ffn_ch), jnp.float32) * s,
        "b3": jax.random.normal(ks[5], (ffn_ch,), jnp.float32) * s,
        "w4": jax.random.normal(ks[6], (3, 3, ffn_ch, out_ch), jnp.float32) * s,
        "b4": jax.random.normal(ks[7], (out_ch,), jnp.float32) * s,
        "alpha": jnp.full((ffn_ch,), 0.01, jnp.float32),  # nn.PReLU(init=0.01)
    }


if __name__ == "__main__":
    key = jax.random.PRNGKey(0)
    kx, kp = jax.random.split(key)

    N, in_ch, ffn_ch, out_ch, H, W = 2, 4, 32, 4, 16, 16
    x_nchw = jax.random.normal(kx, (N, in_ch, H, W), jnp.float32)  # PyTorch NCHW
    params = init_params(kp, in_ch, ffn_ch, out_ch)

    out_nchw = jax.jit(ffn2_pallas)(x_nchw, params)
    out_nchw = jax.block_until_ready(out_nchw)

    ref = ffn2_ref(x_nchw, params)
    assert out_nchw.shape == (N, out_ch, H, W)
    # Kernel uses bf16 MXU matmuls (f32 accumulate); reference is f32 HIGHEST,
    # so the tolerance is loosened accordingly (outputs are O(1)).
    err = float(jnp.max(jnp.abs(out_nchw - ref)))
    assert jnp.allclose(out_nchw, ref, atol=1e-1, rtol=5e-2), err

    print("KERNEL_OK")
</pallas_src>

<mosaic_0001>
module attributes {stable_mosaic.version = 11 : i64} {
  func.func @kernel(%arg0: i32, %arg1: memref<1x16x16x4xf32, #tpu.memory_space<vmem>>, %arg2: memref<3x12x32xbf16, #tpu.memory_space<vmem>>, %arg3: memref<1x32xf32, #tpu.memory_space<vmem>>, %arg4: memref<3x96x32xbf16, #tpu.memory_space<vmem>>, %arg5: memref<1x32xf32, #tpu.memory_space<vmem>>, %arg6: memref<1x32xf32, #tpu.memory_space<vmem>>, %arg7: memref<32x32xbf16, #tpu.memory_space<vmem>>, %arg8: memref<1x32xf32, #tpu.memory_space<vmem>>, %arg9: memref<3x96x8xbf16, #tpu.memory_space<vmem>>, %arg10: memref<1x8xf32, #tpu.memory_space<vmem>>, %arg11: memref<1x4x256xf32, #tpu.memory_space<vmem>>, %arg12: memref<1x20x34x4xbf16, #tpu.memory_space<vmem>>, %arg13: memref<1x18x33x32xbf16, #tpu.memory_space<vmem>>) attributes {dimension_semantics = [#tpu.dimension_semantics<parallel>], iteration_bounds = array<i64: 2>, scalar_prefetch = 0 : i64, scratch_operands = 2 : i64, tpu.core_type = #tpu.core_type<tc>, window_params = [{transform_indices = @transform_0, window_bounds = array<i64: 1, 16, 16, 4>}, {pipeline_mode = #tpu.pipeline_mode<synchronous>, transform_indices = @transform_1, window_bounds = array<i64: 3, 12, 32>}, {pipeline_mode = #tpu.pipeline_mode<synchronous>, transform_indices = @transform_2, window_bounds = array<i64: 1, 32>}, {pipeline_mode = #tpu.pipeline_mode<synchronous>, transform_indices = @transform_3, window_bounds = array<i64: 3, 96, 32>}, {pipeline_mode = #tpu.pipeline_mode<synchronous>, transform_indices = @transform_4, window_bounds = array<i64: 1, 32>}, {pipeline_mode = #tpu.pipeline_mode<synchronous>, transform_indices = @transform_5, window_bounds = array<i64: 1, 32>}, {pipeline_mode = #tpu.pipeline_mode<synchronous>, transform_indices = @transform_6, window_bounds = array<i64: 32, 32>}, {pipeline_mode = #tpu.pipeline_mode<synchronous>, transform_indices = @transform_7, window_bounds = array<i64: 1, 32>}, {pipeline_mode = #tpu.pipeline_mode<synchronous>, transform_indices = @transform_8, window_bounds = array<i64: 3, 96, 8>}, {pipeline_mode = #tpu.pipeline_mode<synchronous>, transform_indices = @transform_9, window_bounds = array<i64: 1, 8>}, {transform_indices = @transform_10, window_bounds = array<i64: 1, 4, 256>}]} {
    %cst = arith.constant 0.000000e+00 : bf16
    %0 = vector.broadcast %cst : bf16 to vector<1x2x34x4xbf16>
    %c0 = arith.constant 0 : index
    %c0_0 = arith.constant 0 : index
    %c0_1 = arith.constant 0 : index
    %c0_2 = arith.constant 0 : index
    %1 = vector.load %arg12[%c0, %c0_0, %c0_1, %c0_2] : memref<1x20x34x4xbf16, #tpu.memory_space<vmem>>, vector<1x2x34x4xbf16>
    tpu.vector_store %arg12[%c0, %c0_0, %c0_1, %c0_2], %0 {strides = array<i32>} : memref<1x20x34x4xbf16, #tpu.memory_space<vmem>>, vector<1x2x34x4xbf16>,
    %cst_3 = arith.constant 0.000000e+00 : bf16
    %2 = vector.broadcast %cst_3 : bf16 to vector<1x2x34x4xbf16>
    %c0_4 = arith.constant 0 : index
    %c18 = arith.constant 18 : index
    %c0_5 = arith.constant 0 : index
    %c0_6 = arith.constant 0 : index
    %3 = vector.load %arg12[%c0_4, %c18, %c0_5, %c0_6] : memref<1x20x34x4xbf16, #tpu.memory_space<vmem>>, vector<1x2x34x4xbf16>
    tpu.vector_store %arg12[%c0_4, %c18, %c0_5, %c0_6], %2 {strides = array<i32>} : memref<1x20x34x4xbf16, #tpu.memory_space<vmem>>, vector<1x2x34x4xbf16>,
    %cst_7 = arith.constant 0.000000e+00 : bf16
    %4 = vector.broadcast %cst_7 : bf16 to vector<1x16x2x4xbf16>
    %c0_8 = arith.constant 0 : index
    %c2 = arith.constant 2 : index
    %c14 = arith.constant 14 : index
    %c0_9 = arith.constant 0 : index
    %5 = vector.load %arg12[%c0_8, %c2, %c14, %c0_9] : memref<1x20x34x4xbf16, #tpu.memory_space<vmem>>, vector<1x16x2x4xbf16>
    tpu.vector_store %arg12[%c0_8, %c2, %c14, %c0_9], %4 {strides = array<i32>} : memref<1x20x34x4xbf16, #tpu.memory_space<vmem>>, vector<1x16x2x4xbf16>,
    %cst_10 = arith.constant 0.000000e+00 : bf16
    %6 = vector.broadcast %cst_10 : bf16 to vector<1x16x2x4xbf16>
    %c0_11 = arith.constant 0 : index
    %c2_12 = arith.constant 2 : index
    %c32 = arith.constant 32 : index
    %c0_13 = arith.constant 0 : index
    %7 = vector.load %arg12[%c0_11, %c2_12, %c32, %c0_13] : memref<1x20x34x4xbf16, #tpu.memory_space<vmem>>, vector<1x16x2x4xbf16>
    tpu.vector_store %arg12[%c0_11, %c2_12, %c32, %c0_13], %6 {strides = array<i32>} : memref<1x20x34x4xbf16, #tpu.memory_space<vmem>>, vector<1x16x2x4xbf16>,
    %cst_14 = arith.constant 0.000000e+00 : bf16
    %8 = vector.broadcast %cst_14 : bf16 to vector<1x1x33x32xbf16>
    %c0_15 = arith.constant 0 : index
    %c0_16 = arith.constant 0 : index
    %c0_17 = arith.constant 0 : index
    %c0_18 = arith.constant 0 : index
    %9 = vector.load %arg13[%c0_15, %c0_16, %c0_17, %c0_18] : memref<1x18x33x32xbf16, #tpu.memory_space<vmem>>, vector<1x1x33x32xbf16>
    tpu.vector_store %arg13[%c0_15, %c0_16, %c0_17, %c0_18], %8 {strides = array<i32>} : memref<1x18x33x32xbf16, #tpu.memory_space<vmem>>, vector<1x1x33x32xbf16>,
    %cst_19 = arith.constant 0.000000e+00 : bf16
    %10 = vector.broadcast %cst_19 : bf16 to vector<1x1x33x32xbf16>
    %c0_20 = arith.constant 0 : index
    %c17 = arith.constant 17 : index
    %c0_21 = arith.constant 0 : index
    %c0_22 = arith.constant 0 : index
    %11 = vector.load %arg13[%c0_20, %c17, %c0_21, %c0_22] : memref<1x18x33x32xbf16, #tpu.memory_space<vmem>>, vector<1x1x33x32xbf16>
    tpu.vector_store %arg13[%c0_20, %c17, %c0_21, %c0_22], %10 {strides = array<i32>} : memref<1x18x33x32xbf16, #tpu.memory_space<vmem>>, vector<1x1x33x32xbf16>,
    %cst_23 = arith.constant 0.000000e+00 : bf16
    %12 = vector.broadcast %cst_23 : bf16 to vector<1x16x1x32xbf16>
    %c0_24 = arith.constant 0 : index
    %c1 = arith.constant 1 : index
    %c15 = arith.constant 15 : index
    %c0_25 = arith.constant 0 : index
    %13 = vector.load %arg13[%c0_24, %c1, %c15, %c0_25] : memref<1x18x33x32xbf16, #tpu.memory_space<vmem>>, vector<1x16x1x32xbf16>
    tpu.vector_store %arg13[%c0_24, %c1, %c15, %c0_25], %12 {strides = array<i32>} : memref<1x18x33x32xbf16, #tpu.memory_space<vmem>>, vector<1x16x1x32xbf16>,
    %cst_26 = arith.constant 0.000000e+00 : bf16
    %14 = vector.broadcast %cst_26 : bf16 to vector<1x16x1x32xbf16>
    %c0_27 = arith.constant 0 : index
    %c1_28 = arith.constant 1 : index
    %c32_29 = arith.constant 32 : index
    %c0_30 = arith.constant 0 : index
    %15 = vector.load %arg13[%c0_27, %c1_28, %c32_29, %c0_30] : memref<1x18x33x32xbf16, #tpu.memory_space<vmem>>, vector<1x16x1x32xbf16>
    tpu.vector_store %arg13[%c0_27, %c1_28, %c32_29, %c0_30], %14 {strides = array<i32>} : memref<1x18x33x32xbf16, #tpu.memory_space<vmem>>, vector<1x16x1x32xbf16>,
    %c0_31 = arith.constant 0 : index
    %c0_32 = arith.constant 0 : index
    %c0_33 = arith.constant 0 : index
    %c0_34 = arith.constant 0 : index
    %16 = vector.load %arg1[%c0_31, %c0_32, %c0_33, %c0_34] : memref<1x16x16x4xf32, #tpu.memory_space<vmem>>, vector<1x16x16x4xf32>
    %17 = arith.truncf %16 : vector<1x16x16x4xf32> to vector<1x16x16x4xbf16>
    %c0_35 = arith.constant 0 : index
    %c2_36 = arith.constant 2 : index
    %c16 = arith.constant 16 : index
    %c0_37 = arith.constant 0 : index
    %18 = vector.load %arg12[%c0_35, %c2_36, %c16, %c0_37] : memref<1x20x34x4xbf16, #tpu.memory_space<vmem>>, vector<1x16x16x4xbf16>
    tpu.vector_store %arg12[%c0_35, %c2_36, %c16, %c0_37], %17 {strides = array<i32>} : memref<1x20x34x4xbf16, #tpu.memory_space<vmem>>, vector<1x16x16x4xbf16>,
    %c0_38 = arith.constant 0 : index
    %c0_39 = arith.constant 0 : index
    %c14_40 = arith.constant 14 : index
    %c0_41 = arith.constant 0 : index
    %19 = vector.load %arg12[%c0_38, %c0_39, %c14_40, %c0_41] : memref<1x20x34x4xbf16, #tpu.memory_space<vmem>>, vector<1x16x16x4xbf16>
    %c0_42 = arith.constant 0 : index
    %c0_43 = arith.constant 0 : index
    %c16_44 = arith.constant 16 : index
    %c0_45 = arith.constant 0 : index
    %20 = vector.load %arg12[%c0_42, %c0_43, %c16_44, %c0_45] : memref<1x20x34x4xbf16, #tpu.memory_space<vmem>>, vector<1x16x16x4xbf16>
    %c0_46 = arith.constant 0 : index
    %c0_47 = arith.constant 0 : index
    %c18_48 = arith.constant 18 : index
    %c0_49 = arith.constant 0 : index
    %21 = vector.load %arg12[%c0_46, %c0_47, %c18_48, %c0_49] : memref<1x20x34x4xbf16, #tpu.memory_space<vmem>>, vector<1x16x16x4xbf16>
    %22 = tpu.concatenate %19, %20, %21 in 3 : vector<1x16x16x4xbf16>, vector<1x16x16x4xbf16>, vector<1x16x16x4xbf16> -> vector<1x16x16x12xbf16>
    %23 = vector.shape_cast %22 : vector<1x16x16x12xbf16> to vector<256x12xbf16>
    %c0_50 = arith.constant 0 : index
    %c0_51 = arith.constant 0 : index
    %c0_52 = arith.constant 0 : index
    %24 = vector.load %arg2[%c0_50, %c0_51, %c0_52] : memref<3x12x32xbf16, #tpu.memory_space<vmem>>, vector<1x12x32xbf16>
    %25 = vector.shape_cast %24 : vector<1x12x32xbf16> to vector<12x32xbf16>
    %cst_53 = arith.constant dense<0.000000e+00> : vector<256x32xf32>
    %26 = tpu.matmul %23, %25, %cst_53 {dimension_numbers = #tpu.dot_dimension_numbers<[1], [0], [0], [1], [0, 0, 1, 1], [], []>} : vector<256x12xbf16>, vector<12x32xbf16>, vector<256x32xf32> -> vector<256x32xf32>
    %c0_54 = arith.constant 0 : index
    %c2_55 = arith.constant 2 : index
    %c14_56 = arith.constant 14 : index
    %c0_57 = arith.constant 0 : index
    %27 = vector.load %arg12[%c0_54, %c2_55, %c14_56, %c0_57] : memref<1x20x34x4xbf16, #tpu.memory_space<vmem>>, vector<1x16x16x4xbf16>
    %c0_58 = arith.constant 0 : index
    %c2_59 = arith.constant 2 : index
    %c16_60 = arith.constant 16 : index
    %c0_61 = arith.constant 0 : index
    %28 = vector.load %arg12[%c0_58, %c2_59, %c16_60, %c0_61] : memref<1x20x34x4xbf16, #tpu.memory_space<vmem>>, vector<1x16x16x4xbf16>
    %c0_62 = arith.constant 0 : index
    %c2_63 = arith.constant 2 : index
    %c18_64 = arith.constant 18 : index
    %c0_65 = arith.constant 0 : index
    %29 = vector.load %arg12[%c0_62, %c2_63, %c18_64, %c0_65] : memref<1x20x34x4xbf16, #tpu.memory_space<vmem>>, vector<1x16x16x4xbf16>
    %30 = tpu.concatenate %27, %28, %29 in 3 : vector<1x16x16x4xbf16>, vector<1x16x16x4xbf16>, vector<1x16x16x4xbf16> -> vector<1x16x16x12xbf16>
    %31 = vector.shape_cast %30 : vector<1x16x16x12xbf16> to vector<256x12xbf16>
    %c1_66 = arith.constant 1 : index
    %c0_67 = arith.constant 0 : index
    %c0_68 = arith.constant 0 : index
    %32 = vector.load %arg2[%c1_66, %c0_67, %c0_68] : memref<3x12x32xbf16, #tpu.memory_space<vmem>>, vector<1x12x32xbf16>
    %33 = vector.shape_cast %32 : vector<1x12x32xbf16> to vector<12x32xbf16>
    %cst_69 = arith.constant dense<0.000000e+00> : vector<256x32xf32>
    %34 = tpu.matmul %31, %33, %cst_69 {dimension_numbers = #tpu.dot_dimension_numbers<[1], [0], [0], [1], [0, 0, 1, 1], [], []>} : vector<256x12xbf16>, vector<12x32xbf16>, vector<256x32xf32> -> vector<256x32xf32>
    %35 = arith.addf %26, %34 : vector<256x32xf32>
    %c0_70 = arith.constant 0 : index
    %c4 = arith.constant 4 : index
    %c14_71 = arith.constant 14 : index
    %c0_72 = arith.constant 0 : index
    %36 = vector.load %arg12[%c0_70, %c4, %c14_71, %c0_72] : memref<1x20x34x4xbf16, #tpu.memory_space<vmem>>, vector<1x16x16x4xbf16>
    %c0_73 = arith.constant 0 : index
    %c4_74 = arith.constant 4 : index
    %c16_75 = arith.constant 16 : index
    %c0_76 = arith.constant 0 : index
    %37 = vector.load %arg12[%c0_73, %c4_74, %c16_75, %c0_76] : memref<1x20x34x4xbf16, #tpu.memory_space<vmem>>, vector<1x16x16x4xbf16>
    %c0_77 = arith.constant 0 : index
    %c4_78 = arith.constant 4 : index
    %c18_79 = arith.constant 18 : index
    %c0_80 = arith.constant 0 : index
    %38 = vector.load %arg12[%c0_77, %c4_78, %c18_79, %c0_80] : memref<1x20x34x4xbf16, #tpu.memory_space<vmem>>, vector<1x16x16x4xbf16>
    %39 = tpu.concatenate %36, %37, %38 in 3 : vector<1x16x16x4xbf16>, vector<1x16x16x4xbf16>, vector<1x16x16x4xbf16> -> vector<1x16x16x12xbf16>
    %40 = vector.shape_cast %39 : vector<1x16x16x12xbf16> to vector<256x12xbf16>
    %c2_81 = arith.constant 2 : index
    %c0_82 = arith.constant 0 : index
    %c0_83 = arith.constant 0 : index
    %41 = vector.load %arg2[%c2_81, %c0_82, %c0_83] : memref<3x12x32xbf16, #tpu.memory_space<vmem>>, vector<1x12x32xbf16>
    %42 = vector.shape_cast %41 : vector<1x12x32xbf16> to vector<12x32xbf16>
    %cst_84 = arith.constant dense<0.000000e+00> : vector<256x32xf32>
    %43 = tpu.matmul %40, %42, %cst_84 {dimension_numbers = #tpu.dot_dimension_numbers<[1], [0], [0], [1], [0, 0, 1, 1], [], []>} : vector<256x12xbf16>, vector<12x32xbf16>, vector<256x32xf32> -> vector<256x32xf32>
    %44 = arith.addf %35, %43 : vector<256x32xf32>
    %c0_85 = arith.constant 0 : index
    %c0_86 = arith.constant 0 : index
    %45 = vector.load %arg3[%c0_85, %c0_86] : memref<1x32xf32, #tpu.memory_space<vmem>>, vector<1x32xf32>
    %46 = vector.broadcast %45 : vector<1x32xf32> to vector<256x32xf32>
    %47 = arith.addf %44, %46 : vector<256x32xf32>
    %48 = vector.shape_cast %47 : vector<256x32xf32> to vector<1x16x16x32xf32>
    %49 = arith.truncf %48 : vector<1x16x16x32xf32> to vector<1x16x16x32xbf16>
    %c0_87 = arith.constant 0 : index
    %c1_88 = arith.constant 1 : index
    %c16_89 = arith.constant 16 : index
    %c0_90 = arith.constant 0 : index
    %50 = vector.load %arg13[%c0_87, %c1_88, %c16_89, %c0_90] : memref<1x18x33x32xbf16, #tpu.memory_space<vmem>>, vector<1x16x16x32xbf16>
    tpu.vector_store %arg13[%c0_87, %c1_88, %c16_89, %c0_90], %49 {strides = array<i32>} : memref<1x18x33x32xbf16, #tpu.memory_space<vmem>>, vector<1x16x16x32xbf16>,
    %c0_91 = arith.constant 0 : index
    %c0_92 = arith.constant 0 : index
    %c15_93 = arith.constant 15 : index
    %c0_94 = arith.constant 0 : index
    %51 = vector.load %arg13[%c0_91, %c0_92, %c15_93, %c0_94] : memref<1x18x33x32xbf16, #tpu.memory_space<vmem>>, vector<1x16x16x32xbf16>
    %c0_95 = arith.constant 0 : index
    %c0_96 = arith.constant 0 : index
    %c16_97 = arith.constant 16 : index
    %c0_98 = arith.constant 0 : index
    %52 = vector.load %arg13[%c0_95, %c0_96, %c16_97, %c0_98] : memref<1x18x33x32xbf16, #tpu.memory_space<vmem>>, vector<1x16x16x32xbf16>
    %c0_99 = arith.constant 0 : index
    %c0_100 = arith.constant 0 : index
    %c17_101 = arith.constant 17 : index
    %c0_102 = arith.constant 0 : index
    %53 = vector.load %arg13[%c0_99, %c0_100, %c17_101, %c0_102] : memref<1x18x33x32xbf16, #tpu.memory_space<vmem>>, vector<1x16x16x32xbf16>
    %54 = tpu.concatenate %51, %52, %53 in 3 : vector<1x16x16x32xbf16>, vector<1x16x16x32xbf16>, vector<1x16x16x32xbf16> -> vector<1x16x16x96xbf16>
    %55 = vector.shape_cast %54 : vector<1x16x16x96xbf16> to vector<256x96xbf16>
    %c0_103 = arith.constant 0 : index
    %c0_104 = arith.constant 0 : index
    %c0_105 = arith.constant 0 : index
    %56 = vector.load %arg4[%c0_103, %c0_104, %c0_105] : memref<3x96x32xbf16, #tpu.memory_space<vmem>>, vector<1x96x32xbf16>
    %57 = vector.shape_cast %56 : vector<1x96x32xbf16> to vector<96x32xbf16>
    %cst_106 = arith.constant dense<0.000000e+00> : vector<256x32xf32>
    %58 = tpu.matmul %55, %57, %cst_106 {dimension_numbers = #tpu.dot_dimension_numbers<[1], [0], [0], [1], [0, 0, 1, 1], [], []>} : vector<256x96xbf16>, vector<96x32xbf16>, vector<256x32xf32> -> vector<256x32xf32>
    %c0_107 = arith.constant 0 : index
    %c1_108 = arith.constant 1 : index
    %c15_109 = arith.constant 15 : index
    %c0_110 = arith.constant 0 : index
    %59 = vector.load %arg13[%c0_107, %c1_108, %c15_109, %c0_110] : memref<1x18x33x32xbf16, #tpu.memory_space<vmem>>, vector<1x16x16x32xbf16>
    %c0_111 = arith.constant 0 : index
    %c1_112 = arith.constant 1 : index
    %c16_113 = arith.constant 16 : index
    %c0_114 = arith.constant 0 : index
    %60 = vector.load %arg13[%c0_111, %c1_112, %c16_113, %c0_114] : memref<1x18x33x32xbf16, #tpu.memory_space<vmem>>, vector<1x16x16x32xbf16>
    %c0_115 = arith.constant 0 : index
    %c1_116 = arith.constant 1 : index
    %c17_117 = arith.constant 17 : index
    %c0_118 = arith.constant 0 : index
    %61 = vector.load %arg13[%c0_115, %c1_116, %c17_117, %c0_118] : memref<1x18x33x32xbf16, #tpu.memory_space<vmem>>, vector<1x16x16x32xbf16>
    %62 = tpu.concatenate %59, %60, %61 in 3 : vector<1x16x16x32xbf16>, vector<1x16x16x32xbf16>, vector<1x16x16x32xbf16> -> vector<1x16x16x96xbf16>
    %63 = vector.shape_cast %62 : vector<1x16x16x96xbf16> to vector<256x96xbf16>
    %c1_119 = arith.constant 1 : index
    %c0_120 = arith.constant 0 : index
    %c0_121 = arith.constant 0 : index
    %64 = vector.load %arg4[%c1_119, %c0_120, %c0_121] : memref<3x96x32xbf16, #tpu.memory_space<vmem>>, vector<1x96x32xbf16>
    %65 = vector.shape_cast %64 : vector<1x96x32xbf16> to vector<96x32xbf16>
    %cst_122 = arith.constant dense<0.000000e+00> : vector<256x32xf32>
    %66 = tpu.matmul %63, %65, %cst_122 {dimension_numbers = #tpu.dot_dimension_numbers<[1], [0], [0], [1], [0, 0, 1, 1], [], []>} : vector<256x96xbf16>, vector<96x32xbf16>, vector<256x32xf32> -> vector<256x32xf32>
    %67 = arith.addf %58, %66 : vector<256x32xf32>
    %c0_123 = arith.constant 0 : index
    %c2_124 = arith.constant 2 : index
    %c15_125 = arith.constant 15 : index
    %c0_126 = arith.constant 0 : index
    %68 = vector.load %arg13[%c0_123, %c2_124, %c15_125, %c0_126] : memref<1x18x33x32xbf16, #tpu.memory_space<vmem>>, vector<1x16x16x32xbf16>
    %c0_127 = arith.constant 0 : index
    %c2_128 = arith.constant 2 : index
    %c16_129 = arith.constant 16 : index
    %c0_130 = arith.constant 0 : index
    %69 = vector.load %arg13[%c0_127, %c2_128, %c16_129, %c0_130] : memref<1x18x33x32xbf16, #tpu.memory_space<vmem>>, vector<1x16x16x32xbf16>
    %c0_131 = arith.constant 0 : index
    %c2_132 = arith.constant 2 : index
    %c17_133 = arith.constant 17 : index
    %c0_134 = arith.constant 0 : index
    %70 = vector.load %arg13[%c0_131, %c2_132, %c17_133, %c0_134] : memref<1x18x33x32xbf16, #tpu.memory_space<vmem>>, vector<1x16x16x32xbf16>
    %71 = tpu.concatenate %68, %69, %70 in 3 : vector<1x16x16x32xbf16>, vector<1x16x16x32xbf16>, vector<1x16x16x32xbf16> -> vector<1x16x16x96xbf16>
    %72 = vector.shape_cast %71 : vector<1x16x16x96xbf16> to vector<256x96xbf16>
    %c2_135 = arith.constant 2 : index
    %c0_136 = arith.constant 0 : index
    %c0_137 = arith.constant 0 : index
    %73 = vector.load %arg4[%c2_135, %c0_136, %c0_137] : memref<3x96x32xbf16, #tpu.memory_space<vmem>>, vector<1x96x32xbf16>
    %74 = vector.shape_cast %73 : vector<1x96x32xbf16> to vector<96x32xbf16>
    %cst_138 = arith.constant dense<0.000000e+00> : vector<256x32xf32>
    %75 = tpu.matmul %72, %74, %cst_138 {dimension_numbers = #tpu.dot_dimension_numbers<[1], [0], [0], [1], [0, 0, 1, 1], [], []>} : vector<256x96xbf16>, vector<96x32xbf16>, vector<256x32xf32> -> vector<256x32xf32>
    %76 = arith.addf %67, %75 : vector<256x32xf32>
    %c0_139 = arith.constant 0 : index
    %c0_140 = arith.constant 0 : index
    %77 = vector.load %arg5[%c0_139, %c0_140] : memref<1x32xf32, #tpu.memory_space<vmem>>, vector<1x32xf32>
    %78 = vector.broadcast %77 : vector<1x32xf32> to vector<256x32xf32>
    %79 = arith.addf %76, %78 : vector<256x32xf32>
    %c0_141 = arith.constant 0 : index
    %c0_142 = arith.constant 0 : index
    %80 = vector.load %arg6[%c0_141, %c0_142] : memref<1x32xf32, #tpu.memory_space<vmem>>, vector<1x32xf32>
    %cst_143 = arith.constant 0.000000e+00 : f32
    %81 = vector.broadcast %cst_143 : f32 to vector<256x32xf32>
    %82 = arith.cmpf oge, %79, %81 : vector<256x32xf32>
    %83 = vector.broadcast %80 : vector<1x32xf32> to vector<256x32xf32>
    %84 = arith.mulf %83, %79 : vector<256x32xf32>
    %85 = arith.select %82, %79, %84 : vector<256x32xi1>, vector<256x32xf32>
    %86 = arith.truncf %85 : vector<256x32xf32> to vector<256x32xbf16>
    %c0_144 = arith.constant 0 : index
    %c0_145 = arith.constant 0 : index
    %87 = vector.load %arg7[%c0_144, %c0_145] : memref<32x32xbf16, #tpu.memory_space<vmem>>, vector<32x32xbf16>
    %cst_146 = arith.constant dense<0.000000e+00> : vector<256x32xf32>
    %88 = tpu.matmul %86, %87, %cst_146 {dimension_numbers = #tpu.dot_dimension_numbers<[1], [0], [0], [1], [0, 0, 1, 1], [], []>} : vector<256x32xbf16>, vector<32x32xbf16>, vector<256x32xf32> -> vector<256x32xf32>
    %c0_147 = arith.constant 0 : index
    %c0_148 = arith.constant 0 : index
    %89 = vector.load %arg8[%c0_147, %c0_148] : memref<1x32xf32, #tpu.memory_space<vmem>>, vector<1x32xf32>
    %90 = vector.broadcast %89 : vector<1x32xf32> to vector<256x32xf32>
    %91 = arith.addf %88, %90 : vector<256x32xf32>
    %92 = arith.addf %91, %47 : vector<256x32xf32>
    %93 = vector.shape_cast %92 : vector<256x32xf32> to vector<1x16x16x32xf32>
    %94 = arith.truncf %93 : vector<1x16x16x32xf32> to vector<1x16x16x32xbf16>
    %c0_149 = arith.constant 0 : index
    %c1_150 = arith.constant 1 : index
    %c16_151 = arith.constant 16 : index
    %c0_152 = arith.constant 0 : index
    %95 = vector.load %arg13[%c0_149, %c1_150, %c16_151, %c0_152] : memref<1x18x33x32xbf16, #tpu.memory_space<vmem>>, vector<1x16x16x32xbf16>
    tpu.vector_store %arg13[%c0_149, %c1_150, %c16_151, %c0_152], %94 {strides = array<i32>} : memref<1x18x33x32xbf16, #tpu.memory_space<vmem>>, vector<1x16x16x32xbf16>,
    %c0_153 = arith.constant 0 : index
    %c0_154 = arith.constant 0 : index
    %c15_155 = arith.constant 15 : index
    %c0_156 = arith.constant 0 : index
    %96 = vector.load %arg13[%c0_153, %c0_154, %c15_155, %c0_156] : memref<1x18x33x32xbf16, #tpu.memory_space<vmem>>, vector<1x16x16x32xbf16>
    %c0_157 = arith.constant 0 : index
    %c0_158 = arith.constant 0 : index
    %c16_159 = arith.constant 16 : index
    %c0_160 = arith.constant 0 : index
    %97 = vector.load %arg13[%c0_157, %c0_158, %c16_159, %c0_160] : memref<1x18x33x32xbf16, #tpu.memory_space<vmem>>, vector<1x16x16x32xbf16>
    %c0_161 = arith.constant 0 : index
    %c0_162 = arith.constant 0 : index
    %c17_163 = arith.constant 17 : index
    %c0_164 = arith.constant 0 : index
    %98 = vector.load %arg13[%c0_161, %c0_162, %c17_163, %c0_164] : memref<1x18x33x32xbf16, #tpu.memory_space<vmem>>, vector<1x16x16x32xbf16>
    %99 = tpu.concatenate %96, %97, %98 in 3 : vector<1x16x16x32xbf16>, vector<1x16x16x32xbf16>, vector<1x16x16x32xbf16> -> vector<1x16x16x96xbf16>
    %100 = vector.shape_cast %99 : vector<1x16x16x96xbf16> to vector<256x96xbf16>
    %c0_165 = arith.constant 0 : index
    %c0_166 = arith.constant 0 : index
    %c0_167 = arith.constant 0 : index
    %101 = vector.load %arg9[%c0_165, %c0_166, %c0_167] : memref<3x96x8xbf16, #tpu.memory_space<vmem>>, vector<1x96x8xbf16>
    %102 = vector.shape_cast %101 : vector<1x96x8xbf16> to vector<96x8xbf16>
    %cst_168 = arith.constant dense<0.000000e+00> : vector<256x8xf32>
    %103 = tpu.matmul %100, %102, %cst_168 {dimension_numbers = #tpu.dot_dimension_numbers<[1], [0], [0], [1], [0, 0, 1, 1], [], []>} : vector<256x96xbf16>, vector<96x8xbf16>, vector<256x8xf32> -> vector<256x8xf32>
    %c0_169 = arith.constant 0 : index
    %c1_170 = arith.constant 1 : index
    %c15_171 = arith.constant 15 : index
    %c0_172 = arith.constant 0 : index
    %104 = vector.load %arg13[%c0_169, %c1_170, %c15_171, %c0_172] : memref<1x18x33x32xbf16, #tpu.memory_space<vmem>>, vector<1x16x16x32xbf16>
    %c0_173 = arith.constant 0 : index
    %c1_174 = arith.constant 1 : index
    %c16_175 = arith.constant 16 : index
    %c0_176 = arith.constant 0 : index
    %105 = vector.load %arg13[%c0_173, %c1_174, %c16_175, %c0_176] : memref<1x18x33x32xbf16, #tpu.memory_space<vmem>>, vector<1x16x16x32xbf16>
    %c0_177 = arith.constant 0 : index
    %c1_178 = arith.constant 1 : index
    %c17_179 = arith.constant 17 : index
    %c0_180 = arith.constant 0 : index
    %106 = vector.load %arg13[%c0_177, %c1_178, %c17_179, %c0_180] : memref<1x18x33x32xbf16, #tpu.memory_space<vmem>>, vector<1x16x16x32xbf16>
    %107 = tpu.concatenate %104, %105, %106 in 3 : vector<1x16x16x32xbf16>, vector<1x16x16x32xbf16>, vector<1x16x16x32xbf16> -> vector<1x16x16x96xbf16>
    %108 = vector.shape_cast %107 : vector<1x16x16x96xbf16> to vector<256x96xbf16>
    %c1_181 = arith.constant 1 : index
    %c0_182 = arith.constant 0 : index
    %c0_183 = arith.constant 0 : index
    %109 = vector.load %arg9[%c1_181, %c0_182, %c0_183] : memref<3x96x8xbf16, #tpu.memory_space<vmem>>, vector<1x96x8xbf16>
    %110 = vector.shape_cast %109 : vector<1x96x8xbf16> to vector<96x8xbf16>
    %cst_184 = arith.constant dense<0.000000e+00> : vector<256x8xf32>
    %111 = tpu.matmul %108, %110, %cst_184 {dimension_numbers = #tpu.dot_dimension_numbers<[1], [0], [0], [1], [0, 0, 1, 1], [], []>} : vector<256x96xbf16>, vector<96x8xbf16>, vector<256x8xf32> -> vector<256x8xf32>
    %112 = arith.addf %103, %111 : vector<256x8xf32>
    %c0_185 = arith.constant 0 : index
    %c2_186 = arith.constant 2 : index
    %c15_187 = arith.constant 15 : index
    %c0_188 = arith.constant 0 : index
    %113 = vector.load %arg13[%c0_185, %c2_186, %c15_187, %c0_188] : memref<1x18x33x32xbf16, #tpu.memory_space<vmem>>, vector<1x16x16x32xbf16>
    %c0_189 = arith.constant 0 : index
    %c2_190 = arith.constant 2 : index
    %c16_191 = arith.constant 16 : index
    %c0_192 = arith.constant 0 : index
    %114 = vector.load %arg13[%c0_189, %c2_190, %c16_191, %c0_192] : memref<1x18x33x32xbf16, #tpu.memory_space<vmem>>, vector<1x16x16x32xbf16>
    %c0_193 = arith.constant 0 : index
    %c2_194 = arith.constant 2 : index
    %c17_195 = arith.constant 17 : index
    %c0_196 = arith.constant 0 : index
    %115 = vector.load %arg13[%c0_193, %c2_194, %c17_195, %c0_196] : memref<1x18x33x32xbf16, #tpu.memory_space<vmem>>, vector<1x16x16x32xbf16>
    %116 = tpu.concatenate %113, %114, %115 in 3 : vector<1x16x16x32xbf16>, vector<1x16x16x32xbf16>, vector<1x16x16x32xbf16> -> vector<1x16x16x96xbf16>
    %117 = vector.shape_cast %116 : vector<1x16x16x96xbf16> to vector<256x96xbf16>
    %c2_197 = arith.constant 2 : index
    %c0_198 = arith.constant 0 : index
    %c0_199 = arith.constant 0 : index
    %118 = vector.load %arg9[%c2_197, %c0_198, %c0_199] : memref<3x96x8xbf16, #tpu.memory_space<vmem>>, vector<1x96x8xbf16>
    %119 = vector.shape_cast %118 : vector<1x96x8xbf16> to vector<96x8xbf16>
    %cst_200 = arith.constant dense<0.000000e+00> : vector<256x8xf32>
    %120 = tpu.matmul %117, %119, %cst_200 {dimension_numbers = #tpu.dot_dimension_numbers<[1], [0], [0], [1], [0, 0, 1, 1], [], []>} : vector<256x96xbf16>, vector<96x8xbf16>, vector<256x8xf32> -> vector<256x8xf32>
    %121 = arith.addf %112, %120 : vector<256x8xf32>
    %c0_201 = arith.constant 0 : index
    %c0_202 = arith.constant 0 : index
    %122 = vector.load %arg10[%c0_201, %c0_202] : memref<1x8xf32, #tpu.memory_space<vmem>>, vector<1x8xf32>
    %123 = vector.broadcast %122 : vector<1x8xf32> to vector<256x8xf32>
    %124 = arith.addf %121, %123 : vector<256x8xf32>
    %125 = vector.shape_cast %124 : vector<256x8xf32> to vector<1x256x8xf32>
    %126 = tpu.transpose %125, [0, 2, 1] : vector<1x256x8xf32> -> vector<1x8x256xf32>
    %127 = vector.extract_strided_slice %126 {offsets = [0, 0, 0], sizes = [1, 4, 256], strides = [1, 1, 1]} : vector<1x8x256xf32> to vector<1x4x256xf32>
    %c0_203 = arith.constant 0 : index
    %c0_204 = arith.constant 0 : index
    %c0_205 = arith.constant 0 : index
    %128 = vector.load %arg11[%c0_203, %c0_204, %c0_205] : memref<1x4x256xf32, #tpu.memory_space<vmem>>, vector<1x4x256xf32>
    tpu.vector_store %arg11[%c0_203, %c0_204, %c0_205], %127 {strides = array<i32>} : memref<1x4x256xf32, #tpu.memory_space<vmem>>, vector<1x4x256xf32>,
    return
  }
  func.func @transform_0(%arg0: i32) -> (i32, i32, i32, i32) {
    %c0_i32 = arith.constant 0 : i32
    %c0_i32_0 = arith.constant 0 : i32
    %c0_i32_1 = arith.constant 0 : i32
    %c0_i32_2 = arith.constant 0 : i32
    return %arg0, %c0_i32, %c0_i32_0, %c0_i32_1 : i32, i32, i32, i32
  }
  func.func @transform_1(%arg0: i32) -> (i32, i32, i32) {
    %c0_i32 = arith.constant 0 : i32
    %c0_i32_0 = arith.constant 0 : i32
    %c0_i32_1 = arith.constant 0 : i32
    %c0_i32_2 = arith.constant 0 : i32
    return %c0_i32, %c0_i32_0, %c0_i32_1 : i32, i32, i32
  }
  func.func @transform_2(%arg0: i32) -> (i32, i32) {
    %c0_i32 = arith.constant 0 : i32
    %c0_i32_0 = arith.constant 0 : i32
    %c0_i32_1 = arith.constant 0 : i32
    return %c0_i32, %c0_i32_0 : i32, i32
  }
  func.func @transform_3(%arg0: i32) -> (i32, i32, i32) {
    %c0_i32 = arith.constant 0 : i32
    %c0_i32_0 = arith.constant 0 : i32
    %c0_i32_1 = arith.constant 0 : i32
    %c0_i32_2 = arith.constant 0 : i32
    return %c0_i32, %c0_i32_0, %c0_i32_1 : i32, i32, i32
  }
  func.func @transform_4(%arg0: i32) -> (i32, i32) {
    %c0_i32 = arith.constant 0 : i32
    %c0_i32_0 = arith.constant 0 : i32
    %c0_i32_1 = arith.constant 0 : i32
    return %c0_i32, %c0_i32_0 : i32, i32
  }
  func.func @transform_5(%arg0: i32) -> (i32, i32) {
    %c0_i32 = arith.constant 0 : i32
    %c0_i32_0 = arith.constant 0 : i32
    %c0_i32_1 = arith.constant 0 : i32
    return %c0_i32, %c0_i32_0 : i32, i32
  }
  func.func @transform_6(%arg0: i32) -> (i32, i32) {
    %c0_i32 = arith.constant 0 : i32
    %c0_i32_0 = arith.constant 0 : i32
    %c0_i32_1 = arith.constant 0 : i32
    return %c0_i32, %c0_i32_0 : i32, i32
  }
  func.func @transform_7(%arg0: i32) -> (i32, i32) {
    %c0_i32 = arith.constant 0 : i32
    %c0_i32_0 = arith.constant 0 : i32
    %c0_i32_1 = arith.constant 0 : i32
    return %c0_i32, %c0_i32_0 : i32, i32
  }
  func.func @transform_8(%arg0: i32) -> (i32, i32, i32) {
    %c0_i32 = arith.constant 0 : i32
    %c0_i32_0 = arith.constant 0 : i32
    %c0_i32_1 = arith.constant 0 : i32
    %c0_i32_2 = arith.constant 0 : i32
    return %c0_i32, %c0_i32_0, %c0_i32_1 : i32, i32, i32
  }
  func.func @transform_9(%arg0: i32) -> (i32, i32) {
    %c0_i32 = arith.constant 0 : i32
    %c0_i32_0 = arith.constant 0 : i32
    %c0_i32_1 = arith.constant 0 : i32
    return %c0_i32, %c0_i32_0 : i32, i32
  }
  func.func @transform_10(%arg0: i32) -> (i32, i32, i32) {
    %c0_i32 = arith.constant 0 : i32
    %c0_i32_0 = arith.constant 0 : i32
    %c0_i32_1 = arith.constant 0 : i32
    return %arg0, %c0_i32, %c0_i32_0 : i32, i32, i32
  }
}

</mosaic_0001>

<bundles_post_ra>
// kernel: ffn2_pallas.1
= control target key start
LH: loop header
LB: loop body
LE: loop exit
PB: predicated region body
PF: predicated region fallthrough
CT: control target
= control target key end

     0   :  { %s14468_s13 = smov 0   ;;  %s19446_s0 = inlined_call_operand.vmem [shape: f32[2,16,16,4], index: 0, kind: input, shape index: {}]   ;;  %s19447_s1 = inlined_call_operand.vmem [shape: bf16[3,12,32], index: 1, kind: input, shape index: {}]   ;;  %s19448_s2 = inlined_call_operand.vmem [shape: f32[1,32], index: 2, kind: input, shape index: {}]   ;;  %s19449_s3 = inlined_call_operand.vmem [shape: bf16[3,96,32], index: 3, kind: input, shape index: {}]   ;;  %s19450_s4 = inlined_call_operand.vmem [shape: f32[1,32], index: 4, kind: input, shape index: {}]   ;;  %s19451_s5 = inlined_call_operand.vmem [shape: f32[1,32], index: 5, kind: input, shape index: {}]   ;;  %s19452_s6 = inlined_call_operand.vmem [shape: bf16[32,32], index: 6, kind: input, shape index: {}]   ;;  %s19453_s7 = inlined_call_operand.vmem [shape: f32[1,32], index: 7, kind: input, shape index: {}]   ;;  %s19454_s8 = inlined_call_operand.vmem [shape: bf16[3,96,8], index: 8, kind: input, shape index: {}]   ;;  %s19455_s9 = inlined_call_operand.vmem [shape: f32[1,8], index: 9, kind: input, shape index: {}]   ;;  %s19456_s10 = inlined_call_operand.vmem [shape: f32[2,4,256], index: 10, kind: output, shape index: {}]  }
   0x1 LB: > { %s11715_s14 = sadd.s32 4294967295, %s14406_s13   ;;  %p11719_p0 = scmp.ge.s32.totalorder %s14406_s13, 1  ;;  %s14406_s13 = sphi %s14468_s13, %s20_s13  }
   0x2   : > { %p312_p1 = scmp.lt.s32.totalorder %s14406_s13, 3 }
   0x4   : > { %p313_p2 = pnand %p11719_p0, %p312_p1 }
   0x6   : > { %316 = sbr.rel (%p313_p2) target bundleno = 2155 (0x86b), region = 60 }
   0xd   : > { %p14478_p3 = scmp.lt.s32.totalorder %s11715_s14, 1  ;;  %vm361_vm0 = vcmask 27648   ;;  %vm385_vm1 = vcmask 27651   ;;  %vm366_vm2 = vcmask 24576   ;;  %v14408_v0 = vmov 0   ;;  %s14409_s20 = smov 8  }
   0xe   : > { %386 = vst.msk [vmem:[#allocation2 + $0x2c] sm:$0x8] %vm385_vm1, %v14408_v0  ;;  %387 = vst.msk [vmem:[#allocation2 + $0x40] sm:$0x8] %vm385_vm1, %v14408_v0  ;;  %s14410_s21 = smov 4   ;;  %vm1145_vm3 = vcmask 1041408  }
   0xf   : > { %363 = vst.msk [vmem:[#allocation2 + $0x4] sm:$0xf] %vm361_vm0, %v14408_v0  ;;  %364 = vst.msk [vmem:[#allocation2 + $0x8] sm:$0xf] %vm361_vm0, %v14408_v0  ;;  %s19944_s14 = smov (!%p14478_p3, %s11715_s14), 1  ;;  %vm2296_vm4 = vcmask 1045504  }
  0x10   : > { %365 = vst.msk [vmem:[#allocation2 + $0xc] sm:$0xf] %vm361_vm0, %v14408_v0  ;;  %369 = vst.msk [vmem:[#allocation2 + $0x18] sm:$0xf] %vm361_vm0, %v14408_v0  ;;  %s12704_s16 = sshll.u32 %s19944_s14, 8  ;;  %vm1258_vm5 = vcmask 31744  }
  0x11   : > { %370 = vst.msk [vmem:[#allocation2 + $0x1c] sm:$0xf] %vm361_vm0, %v14408_v0  ;;  %371 = vst.msk [vmem:[#allocation2 + $0x20] sm:$0xf] %vm361_vm0, %v14408_v0  ;;  %s14588_s19 = scalar_lea.vmem %s19446_s0, %s12704_s16  ;;  %vm1339_vm6 = vcmask 64512   ;;  %vm1436_vm7 = vcmask 1044480  }
  0x12   : > { %375 = vst.msk [vmem:[#allocation2 + $0x16c] sm:$0xf] %vm361_vm0, %v14408_v0  ;;  %376 = vst.msk [vmem:[#allocation2 + $0x170] sm:$0xf] %vm361_vm0, %v14408_v0  ;;  %v537_v1 = vld [vmem:[%s14588_s19] sm:$0xff]  ;;  %v538_v2 = vld [vmem:[%s14588_s19 + $0x8] sm:$0xff] }
  0x13   : > { %377 = vst.msk [vmem:[#allocation2 + $0x174] sm:$0xf] %vm361_vm0, %v14408_v0  ;;  %380 = vst.msk [vmem:[#allocation2 + $0x180] sm:$0xf] %vm361_vm0, %v14408_v0  ;;  %v543_v3 = vld [vmem:[%s14588_s19 + $0x30] sm:$0xff]  ;;  %v12706_v4 = vpack.c.bf16 %v537_v1, %v537_v1  ;;  %v12707_v5 = vpack.c.bf16 %v538_v2, %v538_v2  ;;  %v544_v6 = vld [vmem:[%s14588_s19 + $0x38] sm:$0xff] }
  0x14   : > { %381 = vst.msk [vmem:[#allocation2 + $0x184] sm:$0xf] %vm361_vm0, %v14408_v0  ;;  %382 = vst.msk [vmem:[#allocation2 + $0x188] sm:$0xf] %vm361_vm0, %v14408_v0  ;;  %v12712_v7 = vpack.c.bf16 %v543_v3, %v543_v3  ;;  %v539_v8 = vld [vmem:[%s14588_s19 + $0x10] sm:$0xff]  ;;  %v540_v9 = vld [vmem:[%s14588_s19 + $0x18] sm:$0xff]  ;;  %v12713_v10 = vpack.c.bf16 %v544_v6, %v544_v6 }
  0x15   : > { %388 = vst.msk [vmem:[#allocation2 + $0x54] sm:$0x8] %vm385_vm1, %v14408_v0  ;;  %389 = vst.msk [vmem:[#allocation2 + $0x68] sm:$0x8] %vm385_vm1, %v14408_v0  ;;  %v12708_v11 = vpack.c.bf16 %v539_v8, %v539_v8  ;;  %v12709_v12 = vpack.c.bf16 %v540_v9, %v540_v9  ;;  %v541_v13 = vld [vmem:[%s14588_s19 + $0x20] sm:$0xff]  ;;  %v542_v14 = vld [vmem:[%s14588_s19 + $0x28] sm:$0xff] }
  0x16   : > { %390 = vst.msk [vmem:[#allocation2 + $0x7c] sm:$0x8] %vm385_vm1, %v14408_v0  ;;  %391 = vst.msk [vmem:[#allocation2 + $0x90] sm:$0x8] %vm385_vm1, %v14408_v0  ;;  %v12710_v15 = vpack.c.bf16 %v541_v13, %v541_v13  ;;  %v12711_v16 = vpack.c.bf16 %v542_v14, %v542_v14  ;;  %v547_v17 = vld [vmem:[%s14588_s19 + $0x50] sm:$0xff]  ;;  %v548_v19 = vld [vmem:[%s14588_s19 + $0x58] sm:$0xff] }
  0x17   : > { %392 = vst.msk [vmem:[#allocation2 + $0xa4] sm:$0x8] %vm385_vm1, %v14408_v0  ;;  %393 = vst.msk [vmem:[#allocation2 + $0xb8] sm:$0x8] %vm385_vm1, %v14408_v0  ;;  %v12716_v18 = vpack.c.bf16 %v547_v17, %v547_v17  ;;  %v12717_v20 = vpack.c.bf16 %v548_v19, %v548_v19  ;;  %v545_v21 = vld [vmem:[%s14588_s19 + $0x40] sm:$0xff]  ;;  %v546_v22 = vld [vmem:[%s14588_s19 + $0x48] sm:$0xff] }
  0x18   : > { %394 = vst.msk [vmem:[#allocation2 + $0xcc] sm:$0x8] %vm385_vm1, %v14408_v0  ;;  %395 = vst.msk [vmem:[#allocation2 + $0xe0] sm:$0x8] %vm385_vm1, %v14408_v0  ;;  %v12714_v23 = vpack.c.bf16 %v545_v21, %v545_v21  ;;  %v12715_v24 = vpack.c.bf16 %v546_v22, %v546_v22  ;;  %v551_v44 = vld [vmem:[%s14588_s19 + $0x70] sm:$0xff]  ;;  %v552_v48 = vld [vmem:[%s14588_s19 + $0x78] sm:$0xff] }
  0x19   : > { %396 = vst.msk [vmem:[#allocation2 + $0xf4] sm:$0x8] %vm385_vm1, %v14408_v0  ;;  %397 = vst.msk [vmem:[#allocation2 + $0x108] sm:$0x8] %vm385_vm1, %v14408_v0  ;;  %v12720_v50 = vpack.c.bf16 %v551_v44, %v551_v44  ;;  %v12721_v51 = vpack.c.bf16 %v552_v48, %v552_v48  ;;  %v549_v56 = vld [vmem:[%s14588_s19 + $0x60] sm:$0xff]  ;;  %v550_v57 = vld [vmem:[%s14588_s19 + $0x68] sm:$0xff] }
  0x1a   : > { %398 = vst.msk [vmem:[#allocation2 + $0x11c] sm:$0x8] %vm385_vm1, %v14408_v0  ;;  %399 = vst.msk [vmem:[#allocation2 + $0x130] sm:$0x8] %vm385_vm1, %v14408_v0  ;;  %v12718_v61 = vpack.c.bf16 %v549_v56, %v549_v56  ;;  %v12719_v62 = vpack.c.bf16 %v550_v57, %v550_v57  ;;  %v555_v63 = vld [vmem:[%s14588_s19 + $0x90] sm:$0xff]  ;;  %v556_v1 = vld [vmem:[%s14588_s19 + $0x98] sm:$0xff] }
  0x1b   : > { %400 = vst.msk [vmem:[#allocation2 + $0x144] sm:$0x8] %vm385_vm1, %v14408_v0  ;;  %401 = vst.msk [vmem:[#allocation2 + $0x158] sm:$0x8] %vm385_vm1, %v14408_v0  ;;  %v12724_v3 = vpack.c.bf16 %v555_v63, %v555_v63  ;;  %v553_v8 = vld [vmem:[%s14588_s19 + $0x80] sm:$0xff]  ;;  %v554_v9 = vld [vmem:[%s14588_s19 + $0x88] sm:$0xff] }
  0x1c   : > { %402 = vst.msk [vmem:[#allocation2 + $0x38] sm:$0x1] %vm366_vm2, %v14408_v0  ;;  %367 = vst.msk [vmem:[#allocation2 + $0x10] sm:$0x1] %vm366_vm2, %v14408_v0  ;;  %v12723_v13 = vpack.c.bf16 %v554_v9, %v554_v9  ;;  %v559_v14 = vld [vmem:[%s14588_s19 + $0xb0] sm:$0xff]  ;;  %v557_v21 = vld [vmem:[%s14588_s19 + $0xa0] sm:$0xff] }
  0x1d   : > { %372 = vst.msk [vmem:[#allocation2 + $0x24] sm:$0x1] %vm366_vm2, %v14408_v0  ;;  %378 = vst.msk [vmem:[#allocation2 + $0x178] sm:$0x1] %vm366_vm2, %v14408_v0  ;;  %v12728_v17 = vpack.c.bf16 %v559_v14, %v559_v14  ;;  %v562_v48 = vld [vmem:[%s14588_s19 + $0xc8] sm:$0xff]  ;;  %vm2247_vm8 = vcmask 97280  }
  0x1e   : > { %383 = vst.msk [vmem:[#allocation2 + $0x18c] sm:$0x1] %vm366_vm2, %v14408_v0  ;;  %403 = vst.msk [vmem:[#allocation2 + $0x4c] sm:$0x1] %vm366_vm2, %v14408_v0  ;;  %vm418_vm9 = vcmask 257024   ;;  %vm423_vm10 = vcmask 253952  }
  0x1f   : > { %404 = vst.msk [vmem:[#allocation2 + $0x60] sm:$0x1] %vm366_vm2, %v14408_v0  ;;  %405 = vst.msk [vmem:[#allocation2 + $0x74] sm:$0x1] %vm366_vm2, %v14408_v0  ;;  %vm424_vm11 = vsmask.f32 256 }
  0x20   : > { %406 = vst.msk [vmem:[#allocation2 + $0x88] sm:$0x1] %vm366_vm2, %v14408_v0  ;;  %407 = vst.msk [vmem:[#allocation2 + $0x9c] sm:$0x1] %vm366_vm2, %v14408_v0  ;;  %s14411_s30 = smov 32   ;;  %vm4298_vm13 = vcmask 1042432  }
  0x21   : > { %408 = vst.msk [vmem:[#allocation2 + $0xb0] sm:$0x1] %vm366_vm2, %v14408_v0  ;;  %409 = vst.msk [vmem:[#allocation2 + $0xc4] sm:$0x1] %vm366_vm2, %v14408_v0  ;;  %vm438_vm14 = vcmask 257027   ;;  %s14412_s11 = smov 64  }
  0x22   : > { %410 = vst.msk [vmem:[#allocation2 + $0xd8] sm:$0x1] %vm366_vm2, %v14408_v0  ;;  %411 = vst.msk [vmem:[#allocation2 + $0xec] sm:$0x1] %vm366_vm2, %v14408_v0  ;;  %vm439_vm15 = vsmask.f32 7950 }
  0x23   : > { %412 = vst.msk [vmem:[#allocation2 + $0x100] sm:$0x1] %vm366_vm2, %v14408_v0  ;;  %413 = vst.msk [vmem:[#allocation2 + $0x114] sm:$0x1] %vm366_vm2, %v14408_v0  ;;  %vm4411_vm1 = vcmask 261120   ;;  %s12705_s28 = sshll.u32 %s19944_s14, 3 }
  0x24   : > { %414 = vst.msk [vmem:[#allocation2 + $0x128] sm:$0x1] %vm366_vm2, %v14408_v0  ;;  %415 = vst.msk [vmem:[#allocation2 + $0x13c] sm:$0x1] %vm366_vm2, %v14408_v0  ;;  %s359_s15 = scalar_lea.vmem %s19456_s10, %s12705_s28 }
  0x25   : > { %416 = vst.msk [vmem:[#allocation2 + $0x150] sm:$0x1] %vm366_vm2, %v14408_v0  ;;  %417 = vst.msk [vmem:[#allocation2 + $0x164] sm:$0x1] %vm366_vm2, %v14408_v0  ;;  %vm4492_vm2 = vcmask 523264  }
  0x26   : > { %697 = vst.msk [vmem:[#allocation2 + $0x30] sm:$0xf] %vm361_vm0, %v12706_v4  ;;  %698 = vst.msk [vmem:[#allocation2 + $0x34] sm:$0xf] %vm361_vm0, %v12707_v5  ;;  %v12725_v4 = vpack.c.bf16 %v556_v1, %v556_v1 }
  0x27   : > { %703 = vst.msk [vmem:[#allocation2 + $0x6c] sm:$0xf] %vm361_vm0, %v12712_v7  ;;  %704 = vst.msk [vmem:[#allocation2 + $0x70] sm:$0xf] %vm361_vm0, %v12713_v10 }
  0x28   : > { %699 = vst.msk [vmem:[#allocation2 + $0x44] sm:$0xf] %vm361_vm0, %v12708_v11  ;;  %700 = vst.msk [vmem:[#allocation2 + $0x48] sm:$0xf] %vm361_vm0, %v12709_v12  ;;  %v12722_v12 = vpack.c.bf16 %v553_v8, %v553_v8 }
  0x29   : > { %701 = vst.msk [vmem:[#allocation2 + $0x58] sm:$0xf] %vm361_vm0, %v12710_v15  ;;  %702 = vst.msk [vmem:[#allocation2 + $0x5c] sm:$0xf] %vm361_vm0, %v12711_v16 }
  0x2a   : > { %707 = vst.msk [vmem:[#allocation2 + $0x94] sm:$0xf] %vm361_vm0, %v12716_v18  ;;  %v13632_v28 = vld [vmem:[#allocation2 + $0x38] ss:$0 sps:$4 sm:$0x11]   ;;  %vm15286_vm12 = vmand %vm423_vm10, %vm424_vm11 }
  0x2b   : > { %708 = vst.msk [vmem:[#allocation2 + $0x98] sm:$0xf] %vm361_vm0, %v12717_v20  ;;  %705 = vst.msk [vmem:[#allocation2 + $0x80] sm:$0xf] %vm361_vm0, %v12714_v23  ;;  %v1904_v45 = vrot.slane %v13632_v28, 6  ;;  %v560_v20 = vld [vmem:[%s14588_s19 + $0xb8] sm:$0xff]  ;;  %v12726_v28 = vpack.c.bf16 %v557_v21, %v557_v21 }
  0x2c   : > { %706 = vst.msk [vmem:[#allocation2 + $0x84] sm:$0xf] %vm361_vm0, %v12715_v24  ;;  %v13633_v40 = vld [vmem:[#allocation2 + $0x4c] ss:$0 sps:$4 sm:$0x11]  }
  0x2d   : > { %v1535_v25 = vld [vmem:[#allocation2 + $0x34] sm:$0xf]  ;;  %v1551_v26 = vld [vmem:[#allocation2 + $0x30] sm:$0xe]  ;;  %v1907_v52 = vrot.slane %v13633_v40, 6 }
  0x2e   : > { %v14611_v27 = vld [vmem:[#allocation2 + $0x30] sm:$0xf]  ;;  %v11884_v29 = vcombine.low %v1551_v26, %v1535_v25  ;;  %v14615_v31 = vld [vmem:[#allocation2 + $0x6c] sm:$0xf]  ;;  %711 = vst.msk [vmem:[#allocation2 + $0xbc] sm:$0xf] %vm361_vm0, %v12720_v50 }
  0x2f   : > { %v11868_v30 = vcombine.low %v14611_v27, %v1535_v25  ;;  %v14617_v32 = vld [vmem:[#allocation2 + $0x70] sm:$0xf]  ;;  %v14623_v34 = vld [vmem:[#allocation2 + $0x44] sm:$0xf]  ;;  %v1536_v35 = vld [vmem:[#allocation2 + $0x48] sm:$0xf]  ;;  %v12729_v25 = vpack.c.bf16 %v560_v20, %v560_v20 }
  0x30   : > { %v11871_v33 = vcombine.low %v14615_v31, %v14617_v32  ;;  %v1553_v36 = vld [vmem:[#allocation2 + $0x44] sm:$0xe]  ;;  %v1903_v37 = vrot.slane %v11884_v29, 6  ;;  %v11869_v39 = vcombine.low %v14623_v34, %v1536_v35  ;;  %v14629_v46 = vld [vmem:[#allocation2 + $0x58] sm:$0xf]  ;;  %v558_v26 = vld [vmem:[%s14588_s19 + $0xa8] sm:$0xff] }
  0x31   : > { %v1759_v38 = vrot.slane %v11868_v30, 5  ;;  %v11886_v43 = vcombine.low %v1553_v36, %v1536_v35  ;;  %v1537_v47 = vld [vmem:[#allocation2 + $0x5c] sm:$0xf]  ;;  %v1555_v49 = vld [vmem:[#allocation2 + $0x58] sm:$0xe]  ;;  %v12727_v30 = vpack.c.bf16 %v558_v26, %v558_v26 }
  0x32   : > { %1951 = vrot.lane.b32.xlu1 %v1903_v37, %s14409_s20  ;;  %v1762_v41 = vrot.slane %v11871_v33, 5  ;;  %v1760_v42 = vrot.slane %v11869_v39, 5  ;;  %v11870_v54 = vcombine.low %v14629_v46, %v1537_v47  ;;  %v13637_v55 = vld [vmem:[#allocation2 + $0x60] ss:$0 sps:$4 sm:$0x11]   ;;  %v1905_v59 = vsel %vm1145_vm3, %v1903_v37, %v1904_v45 }
  0x33   : > { %1775 = vrot.lane.b32.xlu0 %v1759_v38, %s14410_s21  ;;  %v1906_v53 = vrot.slane %v11886_v43, 6  ;;  %712 = vst.msk [vmem:[#allocation2 + $0xc0] sm:$0xf] %vm361_vm0, %v12721_v51  ;;  %v1557_v58 = vld [vmem:[#allocation2 + $0x6c] sm:$0xe]  ;;  %v11888_v60 = vcombine.low %v1555_v49, %v1537_v47  ;;  %v1910_v7 = vrot.slane %v13637_v55, 6 }
  0x34   : > { %v13638_v2 = vld [vmem:[#allocation2 + $0x74] ss:$0 sps:$4 sm:$0x11]   ;;  %709 = vst.msk [vmem:[#allocation2 + $0xa8] sm:$0xf] %vm361_vm0, %v12718_v61  ;;  %v11890_v5 = vcombine.low %v1557_v58, %v14617_v32  ;;  %v1761_v6 = vrot.slane %v11870_v54, 5  ;;  %v12731_v54 = vpack.c.bf16 %v562_v48, %v562_v48 }
  0x35   : > { %710 = vst.msk [vmem:[#allocation2 + $0xac] sm:$0xf] %vm361_vm0, %v12719_v62  ;;  %v1908_v10 = vsel %vm1145_vm3, %v1906_v53, %v1907_v52  ;;  %v1909_v11 = vrot.slane %v11888_v60, 6  ;;  %715 = vst.msk [vmem:[#allocation2 + $0xe4] sm:$0xf] %vm361_vm0, %v12724_v3  ;;  %v1913_v18 = vrot.slane %v13638_v2, 6 }
  0x36   : > { %1781 = vrot.lane.b32.xlu1 %v1762_v41, %s14410_s21  ;;  %716 = vst.msk [vmem:[#allocation2 + $0xe8] sm:$0xf] %vm361_vm0, %v12725_v4  ;;  %v14653_v15 = vld [vmem:[#allocation2 + $0x94] sm:$0xf]  ;;  %v14655_v16 = vld [vmem:[#allocation2 + $0x98] sm:$0xf] }
  0x37   : > { %1777 = vrot.lane.b32.xlu0 %v1760_v42, %s14410_s21  ;;  %713 = vst.msk [vmem:[#allocation2 + $0xd0] sm:$0xf] %vm361_vm0, %v12722_v12  ;;  %714 = vst.msk [vmem:[#allocation2 + $0xd4] sm:$0xf] %vm361_vm0, %v12723_v13  ;;  %v14661_v19 = vld [vmem:[#allocation2 + $0x80] sm:$0xf]  ;;  %v1911_v22 = vsel %vm1145_vm3, %v1909_v11, %v1910_v7  ;;  %v11873_v33 = vcombine.low %v14653_v15, %v14655_v16 }
  0x38   : > { %v1912_v23 = vrot.slane %v11890_v5, 6  ;;  %v1539_v24 = vld [vmem:[#allocation2 + $0x84] sm:$0xf]  ;;  %719 = vst.msk [vmem:[#allocation2 + $0x10c] sm:$0xf] %vm361_vm0, %v12728_v17  ;;  %v563_v32 = vld [vmem:[%s14588_s19 + $0xd0] sm:$0xff] }
  0x39   : > { %v1559_v29 = vld [vmem:[#allocation2 + $0x80] sm:$0xe]  ;;  %720 = vst.msk [vmem:[#allocation2 + $0x110] sm:$0xf] %vm361_vm0, %v12729_v25  ;;  %717 = vst.msk [vmem:[#allocation2 + $0xf8] sm:$0xf] %vm361_vm0, %v12726_v28  ;;  %v11872_v35 = vcombine.low %v14661_v19, %v1539_v24  ;;  %v12732_v40 = vpack.c.bf16 %v563_v32, %v563_v32 }
  0x3a   : > { %1953 = vrot.lane.b32.xlu1 %v1905_v59, %s14409_s20  ;;  %718 = vst.msk [vmem:[#allocation2 + $0xfc] sm:$0xf] %vm361_vm0, %v12727_v30  ;;  %v1914_v36 = vsel %vm1145_vm3, %v1912_v23, %v1913_v18  ;;  %v11892_v37 = vcombine.low %v1559_v29, %v1539_v24  ;;  %v13645_v38 = vld [vmem:[#allocation2 + $0x88] ss:$0 sps:$4 sm:$0x11]   ;;  %v564_v41 = vld [vmem:[%s14588_s19 + $0xd8] sm:$0xff] }
  0x3b   : > { %1955 = vrot.lane.b32.xlu0 %v1906_v53, %s14409_s20  ;;  %v1561_v39 = vld [vmem:[#allocation2 + $0x94] sm:$0xe]  ;;  %v561_v42 = vld [vmem:[%s14588_s19 + $0xc0] sm:$0xff]  ;;  %v1764_v43 = vrot.slane %v11873_v33, 5  ;;  %v1763_v44 = vrot.slane %v11872_v35, 5  ;;  %v12733_v47 = vpack.c.bf16 %v564_v41, %v564_v41  ;;  %v1916_v51 = vrot.slane %v13645_v38, 6 }
  0x3c   : > { %v13646_v45 = vld [vmem:[#allocation2 + $0x9c] ss:$0 sps:$4 sm:$0x11]   ;;  %723 = vst.msk [vmem:[#allocation2 + $0x134] sm:$0xf] %vm361_vm0, %v12732_v40  ;;  %v11894_v49 = vcombine.low %v1561_v39, %v14655_v16  ;;  %v1915_v50 = vrot.slane %v11892_v37, 6  ;;  %v12730_v52 = vpack.c.bf16 %v561_v42, %v561_v42 }
  0x3d   : > { %v567_v53 = vld [vmem:[%s14588_s19 + $0xf0] sm:$0xff]  ;;  %724 = vst.msk [vmem:[#allocation2 + $0x138] sm:$0xf] %vm361_vm0, %v12733_v47  ;;  %v568_v55 = vld [vmem:[%s14588_s19 + $0xf8] sm:$0xff]  ;;  %v1919_v59 = vrot.slane %v13646_v45, 6  ;;  %v565_v61 = vld [vmem:[%s14588_s19 + $0xe0] sm:$0xff] }
  0x3e   : > { %1957 = vrot.lane.b32.xlu1 %v1908_v10, %s14409_s20  ;;  %v12736_v56 = vpack.c.bf16 %v567_v53, %v567_v53  ;;  %v14688_v57 = vld [vmem:[#allocation2 + $0xbc] sm:$0xf]  ;;  %721 = vst.msk [vmem:[#allocation2 + $0x120] sm:$0xf] %vm361_vm0, %v12730_v52  ;;  %v12737_v58 = vpack.c.bf16 %v568_v55, %v568_v55  ;;  %v1542_v60 = vld [vmem:[#allocation2 + $0xc0] sm:$0xf]  ;;  %v1917_v62 = vsel %vm1145_vm3, %v1915_v50, %v1916_v51 }
  0x3f   : > { %1779 = vrot.lane.b32.xlu0 %v1761_v6, %s14410_s21  ;;  %722 = vst.msk [vmem:[#allocation2 + $0x124] sm:$0xf] %vm361_vm0, %v12731_v54  ;;  %v1918_v63 = vrot.slane %v11894_v49, 6  ;;  %v14697_v1 = vld [vmem:[#allocation2 + $0xa8] sm:$0xf]  ;;  %v12734_v4 = vpack.c.bf16 %v565_v61, %v565_v61  ;;  %v11875_v7 = vcombine.low %v14688_v57, %v1542_v60 }
  0x40   : > { %727 = vst.msk [vmem:[#allocation2 + $0x15c] sm:$0xf] %vm361_vm0, %v12736_v56  ;;  %v1541_v2 = vld [vmem:[#allocation2 + $0xac] sm:$0xf]  ;;  %728 = vst.msk [vmem:[#allocation2 + $0x160] sm:$0xf] %vm361_vm0, %v12737_v58 }
  0x41   : > { %v566_v3 = vld [vmem:[%s14588_s19 + $0xe8] sm:$0xff]  ;;  %725 = vst.msk [vmem:[#allocation2 + $0x148] sm:$0xf] %vm361_vm0, %v12734_v4  ;;  %v11874_v8 = vcombine.low %v14697_v1, %v1541_v2  ;;  %v1920_v9 = vsel %vm1145_vm3, %v1918_v63, %v1919_v59  ;;  %v1565_v10 = vld [vmem:[#allocation2 + $0xbc] sm:$0xe]  ;;  %v1766_v13 = vrot.slane %v11875_v7, 5 }
  0x42   : > { %1961 = vrot.lane.b32.xlu1 %v1911_v22, %s14409_s20  ;;  %v1563_v5 = vld [vmem:[#allocation2 + $0xa8] sm:$0xe]  ;;  %v12735_v6 = vpack.c.bf16 %v566_v3, %v566_v3  ;;  %v13653_v12 = vld [vmem:[#allocation2 + $0xb0] ss:$0 sps:$4 sm:$0x11]   ;;  %v11898_v14 = vcombine.low %v1565_v10, %v1542_v60 }
  0x43   : > { %1959 = vrot.lane.b32.xlu0 %v1909_v11, %s14409_s20  ;;  %v11896_v11 = vcombine.low %v1563_v5, %v1541_v2  ;;  %v1765_v16 = vrot.slane %v11874_v8, 5  ;;  %v13654_v17 = vld [vmem:[#allocation2 + $0xc4] ss:$0 sps:$4 sm:$0x11]   ;;  %v1922_v20 = vrot.slane %v13653_v12, 6 }
  0x44   : > { %726 = vst.msk [vmem:[#allocation2 + $0x14c] sm:$0xf] %vm361_vm0, %v12735_v6  ;;  %v1924_v21 = vrot.slane %v11898_v14, 6  ;;  %v1925_v22 = vrot.slane %v13654_v17, 6  ;;  %v1544_v24 = vld [vmem:[#allocation2 + $0xe8] sm:$0xf]  ;;  %vm15300_vm0 = vmand %vm438_vm14, %vm439_vm15 }
  0x45   : > { %v1921_v18 = vrot.slane %v11896_v11, 6  ;;  %v14713_v26 = vld [vmem:[#allocation2 + $0xd0] sm:$0xf]  ;;  %v1543_v28 = vld [vmem:[#allocation2 + $0xd4] sm:$0xf] }
  0x46   : > { %1965 = vrot.lane.b32.xlu1 %v1914_v36, %s14409_s20  ;;  %v1567_v29 = vld [vmem:[#allocation2 + $0xd0] sm:$0xe]  ;;  %v11876_v32 = vcombine.low %v14713_v26, %v1543_v28  ;;  %v1926_v33 = vsel %vm1145_vm3, %v1924_v21, %v1925_v22  ;;  %v1569_v35 = vld [vmem:[#allocation2 + $0xe4] sm:$0xe]  ;;  %v1521_v47 = vld [vmem:[#allocation2 + $0x10c] sm:$0xf] }
  0x47   : > { %1963 = vrot.lane.b32.xlu0 %v1912_v23, %s14409_s20  ;;  %v1515_v23 = vld [vmem:[#allocation2 + $0xe4] sm:$0xf]  ;;  %v1923_v25 = vsel %vm1145_vm3, %v1921_v18, %v1922_v20  ;;  %v11900_v36 = vcombine.low %v1567_v29, %v1543_v28  ;;  %v13661_v37 = vld [vmem:[#allocation2 + $0xd8] ss:$0 sps:$4 sm:$0x11]   ;;  %v11902_v40 = vcombine.low %v1569_v35, %v1544_v24 }
  0x48   : > { %v11877_v30 = vcombine.low %v1515_v23, %v1544_v24  ;;  %v13662_v38 = vld [vmem:[#allocation2 + $0xec] ss:$0 sps:$4 sm:$0x11]   ;;  %v1767_v41 = vrot.slane %v11876_v32, 5  ;;  %v1546_v49 = vld [vmem:[#allocation2 + $0x110] sm:$0xf] }
  0x49   : > { %v1927_v42 = vrot.slane %v11900_v36, 6  ;;  %v1931_v45 = vrot.slane %v13662_v38, 6  ;;  %v1545_v51 = vld [vmem:[#allocation2 + $0xfc] sm:$0xf]  ;;  %v1571_v52 = vld [vmem:[#allocation2 + $0xf8] sm:$0xe]  ;;  %v11879_v53 = vcombine.low %v1521_v47, %v1546_v49 }
  0x4a   : > { %1785 = vrot.lane.b32.xlu1 %v1764_v43, %s14410_s21  ;;  %v1768_v39 = vrot.slane %v11877_v30, 5  ;;  %v1928_v43 = vrot.slane %v13661_v37, 6  ;;  %v13669_v55 = vld [vmem:[#allocation2 + $0x100] ss:$0 sps:$4 sm:$0x11]   ;;  %v11904_v59 = vcombine.low %v1571_v52, %v1545_v51 }
  0x4b   : > { %1783 = vrot.lane.b32.xlu0 %v1763_v44, %s14410_s21  ;;  %v1930_v44 = vrot.slane %v11902_v40, 6  ;;  %v1573_v58 = vld [vmem:[#allocation2 + $0x10c] sm:$0xe]  ;;  %v13670_v3 = vld [vmem:[#allocation2 + $0x114] ss:$0 sps:$4 sm:$0x11]  }
  0x4c   : > { %v1929_v48 = vsel %vm1145_vm3, %v1927_v42, %v1928_v43  ;;  %v13714_v60 = vld [vmem:[%s19447_s1 + $0x8] sm:$0x3f]   ;;  %v1933_v4 = vrot.slane %v11904_v59, 6  ;;  %v1934_v5 = vrot.slane %v13669_v55, 6  ;;  %v1937_v7 = vrot.slane %v13670_v3, 6 }
  0x4d   : > { %v1932_v56 = vsel %vm1145_vm3, %v1930_v44, %v1931_v45  ;;  %13609 = vmatprep.subr.msk.bf16.mxu0 %vm2296_vm4, %v13714_v60  ;;  %v2298_v61 = vsel %vm2296_vm4, %v13714_v60, 0  ;;  %v1527_v8 = vld [vmem:[#allocation2 + $0x134] sm:$0xf]  ;;  %v1548_v10 = vld [vmem:[#allocation2 + $0x138] sm:$0xf] }
  0x4e   : > { %1969 = vrot.lane.b32.xlu1 %v1917_v62, %s14409_s20  ;;  %v1770_v62 = vrot.slane %v11879_v53, 5  ;;  %13004 = vmatpush3.bf16.msra.mxu0 %v2298_v61  ;;  %v1524_v11 = vld [vmem:[#allocation2 + $0x120] sm:$0xf]  ;;  %v1547_v12 = vld [vmem:[#allocation2 + $0x124] sm:$0xf]  ;;  %v11881_v14 = vcombine.low %v1527_v8, %v1548_v10 }
  0x4f   : > { %1967 = vrot.lane.b32.xlu0 %v1915_v50, %s14409_s20  ;;  %v1518_v50 = vld [vmem:[#allocation2 + $0xf8] sm:$0xf]  ;;  %v13678_v22 = vld [vmem:[#allocation2 + $0x13c] ss:$0 sps:$4 sm:$0x11]  }
  0x50   : > { %v11878_v54 = vcombine.low %v1518_v50, %v1545_v51  ;;  %v1772_v23 = vrot.slane %v11881_v14, 5  ;;  %v1533_v30 = vld [vmem:[#allocation2 + $0x15c] sm:$0xf]  ;;  %v1550_v35 = vld [vmem:[#allocation2 + $0x160] sm:$0xf] }
  0x51   : > { %v1530_v36 = vld [vmem:[#allocation2 + $0x148] sm:$0xf]  ;;  %v1549_v38 = vld [vmem:[#allocation2 + $0x14c] sm:$0xf]  ;;  %v11883_v40 = vcombine.low %v1533_v30, %v1550_v35  ;;  %v1581_v45 = vld [vmem:[#allocation2 + $0x15c] sm:$0xe] }
  0x52   : > { %1973 = vrot.lane.b32.xlu1 %v1920_v9, %s14409_s20  ;;  %v1769_v2 = vrot.slane %v11878_v54, 5  ;;  %v1935_v9 = vsel %vm1145_vm3, %v1933_v4, %v1934_v5  ;;  %v11914_v50 = vcombine.low %v1581_v45, %v1550_v35  ;;  %v13686_v52 = vld [vmem:[#allocation2 + $0x164] ss:$0 sps:$4 sm:$0x11]   ;;  %v733_v53 = vld [vmem:[#allocation2 + $0x1c] sm:$0xf] }
  0x53   : > { %1971 = vrot.lane.b32.xlu0 %v1918_v63, %s14409_s20  ;;  %v11906_v63 = vcombine.low %v1573_v58, %v1546_v49  ;;  %v1774_v47 = vrot.slane %v11883_v40, 5  ;;  %v778_v54 = vld [vmem:[#allocation2 + $0x20] sm:$0xf]  ;;  %v1949_v58 = vrot.slane %v13686_v52, 6  ;;  %v730_v59 = vld [vmem:[#allocation2 + $0x8] sm:$0xf] }
  0x54   : > { %v777_v60 = vld [vmem:[#allocation2 + $0xc] sm:$0xf]  ;;  %v793_v61 = vld [vmem:[#allocation2 + $0x8] sm:$0xe]  ;;  %v14759_v8 = vld [vmem:[%s19447_s1] sm:$0x3f]  }
  0x55   : > { %v1936_v6 = vrot.slane %v11906_v63, 6  ;;  %v11789_v63 = vcombine.low %v733_v53, %v778_v54  ;;  %v13693_v5 = vld [vmem:[#allocation2 + $0x10] ss:$0 sps:$4 sm:$0x11]   ;;  %13610 = vmatprep.subr.msk.bf16.mxu0 %vm2296_vm4, %v14759_v8  ;;  %v781_v45 = vld [vmem:[#allocation2 + $0x5c] sm:$0xf] }
  0x56   : > { %1789 = vrot.lane.b32.xlu1 %v1766_v13, %s14410_s21  ;;  %v1575_v13 = vld [vmem:[#allocation2 + $0x120] sm:$0xe]  ;;  %v13701_v30 = vld [vmem:[#allocation2 + $0x38] ss:$0 sps:$4 sm:$0x11]  }
  0x57   : > { %1787 = vrot.lane.b32.xlu0 %v1765_v16, %s14410_s21  ;;  %v11880_v16 = vcombine.low %v1524_v11, %v1547_v12  ;;  %v1938_v17 = vsel %vm1145_vm3, %v1936_v6, %v1937_v7  ;;  %v11908_v20 = vcombine.low %v1575_v13, %v1547_v12  ;;  %v13694_v7 = vld [vmem:[#allocation2 + $0x24] ss:$0 sps:$4 sm:$0x11]   ;;  %v1147_v12 = vrot.slane %v13693_v5, 6  ;;  %420 = vst.msk [vmem:[#allocation3 + $0x4] sm:$0xf] %vm418_vm9, %v14408_v0 }
  0x58   : > { %v1150_v14 = vrot.slane %v13694_v7, 6  ;;  %v13712_v53 = vld [vmem:[#allocation2 + $0x60] ss:$0 sps:$4 sm:$0x11]   ;;  %421 = vst.msk [vmem:[#allocation3 + $0x8] sm:$0xf] %vm418_vm9, %v14408_v0 }
  0x59   : > { %v1939_v28 = vrot.slane %v11908_v20, 6  ;;  %v736_v20 = vld [vmem:[#allocation2 + $0x30] sm:$0xf]  ;;  %422 = vst.msk [vmem:[#allocation3 + $0xc] sm:$0xf] %vm418_vm9, %v14408_v0 }
  0x5a   : > { %1977 = vrot.lane.b32.xlu1 %v1923_v25, %s14409_s20  ;;  %v1771_v25 = vrot.slane %v11880_v16, 5  ;;  %v739_v16 = vld [vmem:[#allocation2 + $0x44] sm:$0xf]  ;;  %431 = vst.msk [vmem:[#allocation3 + $0x158] sm:$0xf] %vm418_vm9, %v14408_v0 }
  0x5b   : > { %1975 = vrot.lane.b32.xlu0 %v1921_v18, %s14409_s20  ;;  %v1577_v18 = vld [vmem:[#allocation2 + $0x134] sm:$0xe]  ;;  %432 = vst.msk [vmem:[#allocation3 + $0x15c] sm:$0xf] %vm418_vm9, %v14408_v0  ;;  %433 = vst.msk [vmem:[#allocation3 + $0x160] sm:$0xf] %vm418_vm9, %v14408_v0 }
  0x5c   : > { %v11910_v24 = vcombine.low %v1577_v18, %v1548_v10 }
  0x5e   : > { %1981 = vrot.lane.b32.xlu1 %v1926_v33, %s14409_s20  ;;  %v1942_v32 = vrot.slane %v11910_v24, 6  ;;  %v1943_v33 = vrot.slane %v13678_v22, 6  ;;  %v797_v22 = vld [vmem:[#allocation2 + $0x30] sm:$0xe] }
  0x5f   : > { %1979 = vrot.lane.b32.xlu0 %v1924_v21, %s14409_s20  ;;  %v13677_v21 = vld [vmem:[#allocation2 + $0x128] ss:$0 sps:$4 sm:$0x11]  }
  0x60   : > { %v1940_v29 = vrot.slane %v13677_v21, 6  ;;  %v1944_v43 = vsel %vm1145_vm3, %v1942_v32, %v1943_v33  ;;  %v779_v21 = vld [vmem:[#allocation2 + $0x34] sm:$0xf]  ;;  %v13703_v33 = vld [vmem:[#allocation2 + $0x4c] ss:$0 sps:$4 sm:$0x11]  }
  0x61   : > { %v1156_v40 = vrot.slane %v13703_v33, 6 }
  0x62   : > { %1793 = vrot.lane.b32.xlu1 %v1768_v39, %s14410_s21  ;;  %v1941_v37 = vsel %vm1145_vm3, %v1939_v28, %v1940_v29  ;;  %v1579_v39 = vld [vmem:[#allocation2 + $0x148] sm:$0xe]  ;;  %v11808_v29 = vcombine.low %v797_v22, %v779_v21  ;;  %v805_v22 = vld [vmem:[#allocation2 + $0x80] sm:$0xe] }
  0x63   : > { %1791 = vrot.lane.b32.xlu0 %v1767_v41, %s14410_s21  ;;  %v11882_v41 = vcombine.low %v1530_v36, %v1549_v38 }
  0x66   : > { %1985 = vrot.lane.b32.xlu1 %v1929_v48, %s14409_s20  ;;  %v1773_v48 = vrot.slane %v11882_v41, 5  ;;  %v745_v41 = vld [vmem:[#allocation2 + $0x6c] sm:$0xf] }
  0x67   : > { %1983 = vrot.lane.b32.xlu0 %v1927_v42, %s14409_s20  ;;  %v13685_v42 = vld [vmem:[#allocation2 + $0x150] ss:$0 sps:$4 sm:$0x11]  }
  0x68   : > { %v1946_v49 = vrot.slane %v13685_v42, 6  ;;  %v782_v42 = vld [vmem:[#allocation2 + $0x70] sm:$0xf] }
  0x6a   : > { %1989 = vrot.lane.b32.xlu1 %v1932_v56, %s14409_s20  ;;  %v1948_v56 = vrot.slane %v11914_v50, 6 }
  0x6b   : > { %1987 = vrot.lane.b32.xlu0 %v1930_v44, %s14409_s20  ;;  %v11912_v44 = vcombine.low %v1579_v39, %v1549_v38  ;;  %v1153_v38 = vrot.slane %v13701_v30, 6 }
  0x6c   : > { %v1950_v3 = vsel %vm1145_vm3, %v1948_v56, %v1949_v58  ;;  %v803_v58 = vld [vmem:[#allocation2 + $0x6c] sm:$0xe] }
  0x6d   : > { %v1945_v51 = vrot.slane %v11912_v44, 6 }
  0x6e   : > { %1797 = vrot.lane.b32.xlu1 %v1770_v62, %s14410_s21  ;;  %v795_v62 = vld [vmem:[#allocation2 + $0x1c] sm:$0xe] }
  0x6f   : > { %1795 = vrot.lane.b32.xlu0 %v1769_v2, %s14410_s21  ;;  %v1947_v55 = vsel %vm1145_vm3, %v1945_v51, %v1946_v49  ;;  %v11788_v2 = vcombine.low %v730_v59, %v777_v60  ;;  %v11793_v49 = vcombine.low %v745_v41, %v782_v42  ;;  %v1490_v59 = vld [vmem:[#allocation2 + $0x40] sm:$0x8] }
  0x70   : > { %v11838_v7 = vcombine.low %v1490_v59, %v14623_v34 }
  0x71   : > { %v1001_v10 = vrot.slane %v11788_v2, 5  ;;  %v1159_v2 = vrot.slane %v13712_v53, 6 }
  0x72   : > { %1993 = vrot.lane.b32.xlu1 %v1935_v9, %s14409_s20  ;;  %v1002_v9 = vrot.slane %v11789_v63, 5  ;;  %v11814_v63 = vcombine.low %v803_v58, %v782_v42 }
  0x73   : > { %1991 = vrot.lane.b32.xlu0 %v1933_v4, %s14409_s20  ;;  %v11804_v4 = vcombine.low %v793_v61, %v777_v60  ;;  %v1006_v60 = vrot.slane %v11793_v49, 5 }
  0x75   : > { %v1146_v11 = vrot.slane %v11804_v4, 6  ;;  %v13702_v4 = vld [vmem:[#allocation2 + $0x34] ss:$0 sps:$4 sm:$0x77]  }
  0x76   : > { %1997 = vrot.lane.b32.xlu1 %v1938_v17, %s14409_s20  ;;  %v780_v17 = vld [vmem:[#allocation2 + $0x48] sm:$0xf] }
  0x77   : > { %1995 = vrot.lane.b32.xlu0 %v1936_v6, %s14409_s20  ;;  %v11806_v6 = vcombine.low %v795_v62, %v778_v54  ;;  %v1148_v18 = vsel %vm1145_vm3, %v1146_v11, %v1147_v12  ;;  %v11791_v24 = vcombine.low %v739_v16, %v780_v17  ;;  %v748_v16 = vld [vmem:[#allocation2 + $0x80] sm:$0xf] }
  0x79   : > { %v1149_v13 = vrot.slane %v11806_v6, 6  ;;  %v1004_v35 = vrot.slane %v11791_v24, 5 }
  0x7a   : > { %1801 = vrot.lane.b32.xlu1 %v1772_v23, %s14410_s21  ;;  %v799_v23 = vld [vmem:[#allocation2 + $0x44] sm:$0xe] }
  0x7b   : > { %1799 = vrot.lane.b32.xlu0 %v1771_v25, %s14410_s21  ;;  %v11790_v25 = vcombine.low %v736_v20, %v779_v21  ;;  %v13705_v20 = vld [vmem:[#allocation2 + $0x48] ss:$0 sps:$4 sm:$0x77]  }
  0x7d   : > { %v1003_v36 = vrot.slane %v11790_v25, 5 }
  0x7e   : > { %2001 = vrot.lane.b32.xlu1 %v1941_v37, %s14409_s20  ;;  %v1152_v37 = vrot.slane %v11808_v29, 6 }
  0x7f   : > { %1999 = vrot.lane.b32.xlu0 %v1939_v28, %s14409_s20  ;;  %v1151_v28 = vsel %vm1145_vm3, %v1149_v13, %v1150_v14 }
  0x80   : > { %v1154_v44 = vsel %vm1145_vm3, %v1152_v37, %v1153_v38 }
  0x82   : > { %2005 = vrot.lane.b32.xlu1 %v1944_v43, %s14409_s20  ;;  %v742_v43 = vld [vmem:[#allocation2 + $0x58] sm:$0xf] }
  0x83   : > { %2003 = vrot.lane.b32.xlu0 %v1942_v32, %s14409_s20  ;;  %v11810_v32 = vcombine.low %v799_v23, %v780_v17  ;;  %v11792_v50 = vcombine.low %v742_v43, %v781_v45  ;;  %v783_v17 = vld [vmem:[#allocation2 + $0x84] sm:$0xf]  ;;  %v1493_v23 = vld [vmem:[#allocation2 + $0x54] sm:$0x8] }
  0x84   : > { %v11794_v33 = vcombine.low %v748_v16, %v783_v17  ;;  %v11816_v38 = vcombine.low %v805_v22, %v783_v17  ;;  %v13713_v43 = vld [vmem:[#allocation2 + $0x5c] ss:$0 sps:$4 sm:$0x77]  }
  0x85   : > { %v1155_v39 = vrot.slane %v11810_v32, 6  ;;  %v1005_v61 = vrot.slane %v11792_v50, 5 }
  0x86   : > { %1805 = vrot.lane.b32.xlu1 %v1774_v47, %s14410_s21  ;;  %v801_v47 = vld [vmem:[#allocation2 + $0x58] sm:$0xe] }
  0x87   : > { %1803 = vrot.lane.b32.xlu0 %v1773_v48, %s14410_s21  ;;  %v1487_v48 = vld [vmem:[#allocation2 + $0x2c] sm:$0x8]  ;;  %v1157_v52 = vsel %vm1145_vm3, %v1155_v39, %v1156_v40  ;;  %v11840_v40 = vcombine.low %v1493_v23, %v14629_v46 }
  0x88   : > { %v11836_v54 = vcombine.low %v1487_v48, %v14611_v27 }
  0x8a   : > { %2009 = vrot.lane.b32.xlu1 %v1947_v55, %s14409_s20 }
  0x8b   : > { %2007 = vrot.lane.b32.xlu0 %v1945_v51, %s14409_s20  ;;  %v11812_v51 = vcombine.low %v801_v47, %v781_v45 }
  0x8d   : > { %v1158_v62 = vrot.slane %v11812_v51, 6  ;;  %v1007_v51 = vrot.slane %v11794_v33, 5  ;;  %v13732_v33 = vld [vmem:[#allocation2 + $0xb0] ss:$0 sps:$4 sm:$0x11]  }
  0x8e   : > { %2013 = vrot.lane.b32.xlu1 %v1950_v3, %s14409_s20  ;;  %v13715_v3 = vld [vmem:[#allocation2 + $0x74] ss:$0 sps:$4 sm:$0x11]  }
  0x8f   : > { %2011 = vrot.lane.b32.xlu0 %v1948_v56, %s14409_s20  ;;  %v1162_v14 = vrot.slane %v13715_v3, 6 }
  0x92   : > { %1019 = vrot.lane.b32.xlu1 %v1002_v9, %s14410_s21  ;;  %v751_v9 = vld [vmem:[#allocation2 + $0x94] sm:$0xf] }
  0x93   : > { %1017 = vrot.lane.b32.xlu0 %v1001_v10, %s14410_s21  ;;  %v14788_v10 = vld [vmem:[#allocation2 + $0x98] sm:$0xf] }
  0x94   : > { %v11795_v25 = vcombine.low %v751_v9, %v14788_v10 }
  0x96   : > { %1196 = vrot.lane.b32.xlu1 %v1148_v18, %s14409_s20  ;;  %v1008_v48 = vrot.slane %v11795_v25, 5 }
  0x97   : > { %1194 = vrot.lane.b32.xlu0 %v1146_v11, %s14409_s20  ;;  %v1160_v11 = vsel %vm1145_vm3, %v1158_v62, %v1159_v2  ;;  %v13811_v2 = vld [vmem:[%s19447_s1 + $0x10] sm:$0x3f]  }
  0x9a   : > { %1200 = vrot.lane.b32.xlu1 %v1151_v28, %s14409_s20  ;;  %v1496_v28 = vld [vmem:[#allocation2 + $0x68] sm:$0x8] }
  0x9b   : > { %1198 = vrot.lane.b32.xlu0 %v1149_v13, %s14409_s20  ;;  %v1161_v13 = vrot.slane %v11814_v63, 6  ;;  %v11842_v53 = vcombine.low %v1496_v28, %v14615_v31  ;;  %v2515_v63 = vsel %vm2296_vm4, %v14759_v8, 0 }
  0x9e   : > { %1023 = vrot.lane.b32.xlu1 %v1004_v35, %s14410_s21 }
  0x9f   : > { %1021 = vrot.lane.b32.xlu0 %v1003_v36, %s14410_s21  ;;  %v1163_v36 = vsel %vm1145_vm3, %v1161_v13, %v1162_v14 }
  0xa2   : > { %1204 = vrot.lane.b32.xlu1 %v1154_v44, %s14409_s20 }
  0xa3   : > { %1202 = vrot.lane.b32.xlu0 %v1152_v37, %s14409_s20  ;;  %v807_v37 = vld [vmem:[#allocation2 + $0x94] sm:$0xe] }
  0xa4   : > { %v1952_v55 = vpop.permute.xlu1 %1951  ;;  %v11818_v46 = vcombine.low %v807_v37, %v14788_v10 }
  0xa5   : > { %v1776_v56 = vpop.permute.xlu0 %1775 }
  0xa6   : > { %1208 = vrot.lane.b32.xlu1 %v1157_v52, %s14409_s20  ;;  %v2017_v5 = vsel %vm1258_vm5, %v11836_v54, %v1776_v56  ;;  %v2019_v18 = vsel %vm1258_vm5, %v13702_v4, %v1776_v56  ;;  %v13725_v52 = vld [vmem:[#allocation2 + $0x9c] ss:$0 sps:$4 sm:$0x11]   ;;  %v13704_v54 = vld [vmem:[#allocation2 + $0x70] ss:$0 sps:$4 sm:$0x77]  }
  0xa7   : > { %1206 = vrot.lane.b32.xlu0 %v1155_v39, %s14409_s20  ;;  %v2096_v12 = vsel %vm1339_vm6, %v2017_v5, %v1952_v55  ;;  %v13722_v39 = vld [vmem:[#allocation2 + $0x88] ss:$0 sps:$4 sm:$0x11]   ;;  %v1164_v55 = vrot.slane %v11816_v38, 6  ;;  %v757_v4 = vld [vmem:[#allocation2 + $0xbc] sm:$0xf] }
  0xa8   : > { %v14783_v6 = vpop.permute.xlu1 %1781  ;;  %v2191_v32 = vrot.slane %v2096_v12, 3  ;;  %v1165_v56 = vrot.slane %v13722_v39, 6  ;;  %v786_v5 = vld [vmem:[#allocation2 + $0xc0] sm:$0xf]  ;;  %v1167_v9 = vrot.slane %v11818_v46, 6  ;;  %v1168_v8 = vrot.slane %v13725_v52, 6 }
  0xa9   : > { %v1778_v27 = vpop.permute.xlu0 %1777  ;;  %v785_v12 = vld [vmem:[#allocation2 + $0xac] sm:$0xf]  ;;  %v2034_v14 = vsel %vm1258_vm5, %v13704_v54, %v14783_v6  ;;  %v11797_v25 = vcombine.low %v757_v4, %v786_v5  ;;  %v1502_v39 = vld [vmem:[#allocation2 + $0x90] sm:$0x8]  ;;  %v788_v54 = vld [vmem:[#allocation2 + $0xe8] sm:$0xf] }
  0xaa   : > { %1027 = vrot.lane.b32.xlu1 %v1006_v60, %s14410_s21  ;;  %v2022_v29 = vsel %vm1258_vm5, %v11838_v7, %v1778_v27  ;;  %v2024_v41 = vsel %vm1258_vm5, %v13705_v20, %v1778_v27  ;;  %v1166_v10 = vsel %vm1145_vm3, %v1164_v55, %v1165_v56  ;;  %v809_v20 = vld [vmem:[#allocation2 + $0xa8] sm:$0xe] }
  0xab   : > { %1025 = vrot.lane.b32.xlu0 %v1005_v61, %s14410_s21 }
  0xac   : > { %v1954_v21 = vpop.permute.xlu1 %1953 }
  0xad   : > { %v1956_v34 = vpop.permute.xlu0 %1955  ;;  %v2098_v24 = vsel %vm1339_vm6, %v2019_v18, %v1954_v21  ;;  %v1499_v21 = vld [vmem:[#allocation2 + $0x7c] sm:$0x8] }
  0xae   : > { %v2192_v30 = vrot.slane %v2098_v24, 3  ;;  %1212 = vrot.lane.b32.xlu1 %v1160_v11, %s14409_s20  ;;  %v2100_v35 = vsel %vm1339_vm6, %v2022_v29, %v1956_v34  ;;  %v754_v11 = vld [vmem:[#allocation2 + $0xa8] sm:$0xf]  ;;  %v1169_v29 = vsel %vm1145_vm3, %v1167_v9, %v1168_v8  ;;  %v13742_v8 = vld [vmem:[#allocation2 + $0xd8] ss:$0 sps:$4 sm:$0x11]  }
  0xaf   : > { %1210 = vrot.lane.b32.xlu0 %v1158_v62, %s14409_s20  ;;  %v2194_v49 = vrot.slane %v2100_v35, 3  ;;  %v11796_v28 = vcombine.low %v754_v11, %v785_v12  ;;  %v11844_v35 = vcombine.low %v1499_v21, %v14661_v19  ;;  %v13723_v19 = vld [vmem:[#allocation2 + $0x98] ss:$0 sps:$4 sm:$0x77]  }
  0xb0   : > { %v1958_v42 = vpop.permute.xlu1 %1957  ;;  %v2193_v45 = vsel %vm1436_vm7, %v2191_v32, %v2192_v30  ;;  %v811_v30 = vld [vmem:[#allocation2 + $0xbc] sm:$0xe]  ;;  %v11820_v32 = vcombine.low %v809_v20, %v785_v12  ;;  %v13734_v12 = vld [vmem:[#allocation2 + $0xac] ss:$0 sps:$4 sm:$0x77]  }
  0xb1   : > { %v1780_v44 = vpop.permute.xlu0 %1779  ;;  %v2102_v47 = vsel %vm1339_vm6, %v2024_v41, %v1958_v42  ;;  %13005 = vmatprep.mubr.msk.bf16.mxu0 %vm2247_vm8, %v2193_v45  ;;  %v11822_v41 = vcombine.low %v811_v30, %v786_v5  ;;  %v1009_v42 = vrot.slane %v11796_v28, 5  ;;  %v1171_v45 = vrot.slane %v13732_v33, 6 }
  0xb2   : > { %v2195_v50 = vrot.slane %v2102_v47, 3  ;;  %1216 = vrot.lane.b32.xlu1 %v1163_v36, %s14409_s20  ;;  %v2027_v58 = vsel %vm1258_vm5, %v11840_v40, %v1780_v44  ;;  %v2029_v59 = vsel %vm1258_vm5, %v13713_v43, %v1780_v44  ;;  %v1010_v40 = vrot.slane %v11797_v25, 5  ;;  %v13735_v43 = vld [vmem:[#allocation2 + $0xc4] ss:$0 sps:$4 sm:$0x11]  }
  0xb3   : > { %1214 = vrot.lane.b32.xlu0 %v1161_v13, %s14409_s20  ;;  %v2032_v13 = vsel %vm1258_vm5, %v11842_v53, %v14783_v6  ;;  %v13724_v6 = vld [vmem:[#allocation2 + $0x84] ss:$0 sps:$4 sm:$0x77]   ;;  %v1170_v44 = vrot.slane %v11820_v32, 6  ;;  %v11846_v47 = vcombine.low %v1502_v39, %v14653_v15  ;;  %v1173_v15 = vrot.slane %v11822_v41, 6 }
  0xb4   : > { %v1962_v60 = vpop.permute.xlu1 %1961  ;;  %v2196_v62 = vsel %vm1436_vm7, %v2194_v49, %v2195_v50  ;;  %v763_v53 = vld [vmem:[#allocation2 + $0xe4] sm:$0xf]  ;;  %v1177_v32 = vrot.slane %v13742_v8, 6  ;;  %v769_v41 = vld [vmem:[#allocation2 + $0x10c] sm:$0xf] }
  0xb5   : > { %v1960_v61 = vpop.permute.xlu0 %1959  ;;  %v2106_v31 = vsel %vm1339_vm6, %v2029_v59, %v1962_v60  ;;  %13006 = vmatmul.mubr.msk.bf16.vlgmr.msra.gmra.mrb[0].mxu0 %vm2247_vm8, %v2196_v62  ;;  %v760_v59 = vld [vmem:[#allocation2 + $0xd0] sm:$0xf]  ;;  %v1505_v60 = vld [vmem:[#allocation2 + $0xa4] sm:$0x8] }
  0xb6   : > { %v2104_v3 = vsel %vm1339_vm6, %v2027_v58, %v1960_v61  ;;  %v2198_v27 = vrot.slane %v2106_v31, 3  ;;  %1031 = vrot.lane.b32.xlu1 %v1008_v48, %s14410_s21  ;;  %13038 = vmatpush3.bf16.msra.mxu0 %v2515_v63  ;;  %v1174_v58 = vrot.slane %v13735_v43, 6  ;;  %v1172_v61 = vsel %vm1145_vm3, %v1170_v44, %v1171_v45  ;;  %v815_v62 = vld [vmem:[#allocation2 + $0xe4] sm:$0xe]  ;;  %v787_v63 = vld [vmem:[#allocation2 + $0xd4] sm:$0xf] }
  0xb7   : > { %v2197_v7 = vrot.slane %v2104_v3, 3  ;;  %1029 = vrot.lane.b32.xlu0 %v1007_v51, %s14410_s21  ;;  %13611 = vmatprep.subr.msk.bf16.mxu0 %vm2296_vm4, %v13811_v2  ;;  %v11848_v20 = vcombine.low %v1505_v60, %v14697_v1  ;;  %v766_v43 = vld [vmem:[#allocation2 + $0xf8] sm:$0xf]  ;;  %v13744_v60 = vld [vmem:[#allocation2 + $0xd4] ss:$0 sps:$4 sm:$0x77]  }
  0xb8   : > { %v1966_v16 = vpop.permute.xlu1 %1965 }
  0xb9   : > { %v1964_v17 = vpop.permute.xlu0 %1963  ;;  %v2199_v18 = vsel %vm1436_vm7, %v2197_v7, %v2198_v27  ;;  %v2110_v34 = vsel %vm1339_vm6, %v2034_v14, %v1966_v16  ;;  %v813_v27 = vld [vmem:[#allocation2 + $0xd0] sm:$0xe]  ;;  %v11798_v14 = vcombine.low %v760_v59, %v787_v63  ;;  %v1508_v16 = vld [vmem:[#allocation2 + $0xb8] sm:$0x8] }
  0xba   : > { %v2108_v22 = vsel %vm1339_vm6, %v2032_v13, %v1964_v17  ;;  %13009 = vmatprep.mubr.msk.bf16.mxu0 %vm2247_vm8, %v2199_v18  ;;  %v2201_v23 = vrot.slane %v2110_v34, 3  ;;  %1220 = vrot.lane.b32.xlu1 %v1166_v10, %s14409_s20  ;;  %v11799_v13 = vcombine.low %v763_v53, %v788_v54  ;;  %v1175_v17 = vsel %vm1145_vm3, %v1173_v15, %v1174_v58 }
  0xbb   : > { %v2200_v24 = vrot.slane %v2108_v22, 3  ;;  %1218 = vrot.lane.b32.xlu0 %v1164_v55, %s14409_s20  ;;  %v11824_v18 = vcombine.low %v813_v27, %v787_v63  ;;  %v1011_v28 = vrot.slane %v11798_v14, 5  ;;  %v1514_v63 = vld [vmem:[#allocation2 + $0xe0] sm:$0x8] }
  0xbc   : > { %v1786_v36 = vpop.permute.xlu1 %1785  ;;  %v1012_v25 = vrot.slane %v11799_v13, 5 }
  0xbd   : > { %v1784_v37 = vpop.permute.xlu0 %1783  ;;  %v2202_v38 = vsel %vm1436_vm7, %v2200_v24, %v2201_v23  ;;  %v2042_v2 = vsel %vm1258_vm5, %v11846_v47, %v1786_v36  ;;  %v2044_v31 = vsel %vm1258_vm5, %v13723_v19, %v1786_v36  ;;  %v11826_v23 = vcombine.low %v815_v62, %v788_v54  ;;  %v13745_v24 = vld [vmem:[#allocation2 + $0xec] ss:$0 sps:$4 sm:$0x11]   ;;  %v819_v47 = vld [vmem:[#allocation2 + $0x10c] sm:$0xe] }
  0xbe   : > { %13010 = vmatmul.mubr.msk.bf16.gmra.mrb[4].mxu0 %vm2247_vm8, %v2202_v38  ;;  %1224 = vrot.lane.b32.xlu1 %v1169_v29, %s14409_s20  ;;  %v2037_v48 = vsel %vm1258_vm5, %v11844_v35, %v1784_v37  ;;  %v2039_v49 = vsel %vm1258_vm5, %v13724_v6, %v1784_v37  ;;  %v13733_v6 = vld [vmem:[#allocation2 + $0xc0] ss:$0 sps:$4 sm:$0x77]   ;;  %v11850_v29 = vcombine.low %v1508_v16, %v14688_v57  ;;  %v1176_v30 = vrot.slane %v11824_v18, 6  ;;  %v817_v19 = vld [vmem:[#allocation2 + $0xf8] sm:$0xe] }
  0xbf   : > { %1222 = vrot.lane.b32.xlu0 %v1167_v9, %s14409_s20  ;;  %v1179_v37 = vrot.slane %v11826_v23, 6  ;;  %v1180_v38 = vrot.slane %v13745_v24, 6  ;;  %v14202_v16 = vld [vmem:[#allocation2 + $0xe4] sm:$0xf]  ;;  %v775_v23 = vld [vmem:[#allocation2 + $0x134] sm:$0xf] }
  0xc0   : > { %v1970_v50 = vpop.permute.xlu1 %1969  ;;  %v792_v24 = vld [vmem:[#allocation2 + $0x138] sm:$0xf] }
  0xc1   : > { %v1968_v46 = vpop.permute.xlu0 %1967  ;;  %v2114_v51 = vsel %vm1339_vm6, %v2039_v49, %v1970_v50  ;;  %v1178_v49 = vsel %vm1145_vm3, %v1176_v30, %v1177_v32  ;;  %v821_v32 = vld [vmem:[#allocation2 + $0x120] sm:$0xe] }
  0xc2   : > { %v2112_v52 = vsel %vm1339_vm6, %v2037_v48, %v1968_v46  ;;  %v2204_v55 = vrot.slane %v2114_v51, 3  ;;  %1035 = vrot.lane.b32.xlu1 %v1010_v40, %s14410_s21  ;;  %v1511_v48 = vld [vmem:[#allocation2 + $0xcc] sm:$0x8] }
  0xc3   : > { %v2203_v56 = vrot.slane %v2112_v52, 3  ;;  %1033 = vrot.lane.b32.xlu0 %v1009_v42, %s14410_s21  ;;  %v790_v42 = vld [vmem:[#allocation2 + $0x110] sm:$0xf] }
  0xc4   : > { %v1974_v3 = vpop.permute.xlu1 %1973 }
  0xc5   : > { %v1972_v4 = vpop.permute.xlu0 %1971  ;;  %v2205_v5 = vsel %vm1436_vm7, %v2203_v56, %v2204_v55  ;;  %v2118_v7 = vsel %vm1339_vm6, %v2044_v31, %v1974_v3  ;;  %v13752_v56 = vld [vmem:[#allocation2 + $0x100] ss:$0 sps:$4 sm:$0x11]   ;;  %v11830_v31 = vcombine.low %v819_v47, %v790_v42  ;;  %v11803_v47 = vcombine.low %v775_v23, %v792_v24 }
  0xc6   : > { %v2116_v9 = vsel %vm1339_vm6, %v2042_v2, %v1972_v4  ;;  %13013 = vmatprep.mubr.msk.bf16.mxu0 %vm2247_vm8, %v2205_v5  ;;  %v2207_v10 = vrot.slane %v2118_v7, 3  ;;  %1228 = vrot.lane.b32.xlu1 %v1172_v61, %s14409_s20  ;;  %v11801_v61 = vcombine.low %v769_v41, %v790_v42  ;;  %v1181_v2 = vsel %vm1145_vm3, %v1179_v37, %v1180_v38  ;;  %v13762_v42 = vld [vmem:[#allocation2 + $0x128] ss:$0 sps:$4 sm:$0x11]  }
  0xc7   : > { %v2206_v11 = vrot.slane %v2116_v9, 3  ;;  %1226 = vrot.lane.b32.xlu0 %v1170_v44, %s14409_s20  ;;  %v789_v44 = vld [vmem:[#allocation2 + $0xfc] sm:$0xf]  ;;  %v11852_v4 = vcombine.low %v1511_v48, %v14713_v26  ;;  %v13743_v9 = vld [vmem:[#allocation2 + $0xe8] ss:$0 sps:$4 sm:$0x77]   ;;  %v11854_v26 = vcombine.low %v1514_v63, %v14202_v16 }
  0xc8   : > { %v1790_v21 = vpop.permute.xlu1 %1789  ;;  %v11800_v62 = vcombine.low %v766_v43, %v789_v44  ;;  %v11828_v3 = vcombine.low %v817_v19, %v789_v44  ;;  %v1014_v8 = vrot.slane %v11801_v61, 5  ;;  %v1185_v13 = vrot.slane %v11830_v31, 6  ;;  %v14900_v43 = vld [vmem:[#allocation2 + $0x13c] ss:$0 sps:$4 sm:$0x11]  }
  0xc9   : > { %v1788_v34 = vpop.permute.xlu0 %1787  ;;  %v2208_v22 = vsel %vm1436_vm7, %v2206_v11, %v2207_v10  ;;  %v2052_v50 = vsel %vm1258_vm5, %v11850_v29, %v1790_v21  ;;  %v2054_v46 = vsel %vm1258_vm5, %v13733_v6, %v1790_v21  ;;  %v772_v6 = vld [vmem:[#allocation2 + $0x120] sm:$0xf]  ;;  %v1520_v48 = vld [vmem:[#allocation2 + $0x108] sm:$0x8]  ;;  %v14204_v63 = vld [vmem:[#allocation2 + $0x10c] sm:$0xf] }
  0xca   : > { %13014 = vmatmul.mubr.msk.bf16.gmra.mrb[8].mxu0 %vm2247_vm8, %v2208_v22  ;;  %1232 = vrot.lane.b32.xlu1 %v1175_v17, %s14409_s20  ;;  %v2047_v1 = vsel %vm1258_vm5, %v11848_v20, %v1788_v34  ;;  %v2049_v33 = vsel %vm1258_vm5, %v13734_v12, %v1788_v34  ;;  %v1013_v10 = vrot.slane %v11800_v62, 5  ;;  %v1182_v11 = vrot.slane %v11828_v3, 6  ;;  %v1523_v16 = vld [vmem:[#allocation2 + $0x11c] sm:$0x8] }
  0xcb   : > { %1230 = vrot.lane.b32.xlu0 %v1173_v15, %s14409_s20  ;;  %v14876_v15 = vld [vmem:[#allocation2 + $0x114] ss:$0 sps:$4 sm:$0x11]   ;;  %v1183_v12 = vrot.slane %v13752_v56, 6  ;;  %v1192_v62 = vrot.slane %v14900_v43, 6 }
  0xcc   : > { %v1978_v35 = vpop.permute.xlu1 %1977  ;;  %v1186_v14 = vrot.slane %v14876_v15, 6  ;;  %v13753_v56 = vld [vmem:[#allocation2 + $0x110] ss:$0 sps:$4 sm:$0x77]   ;;  %v1016_v15 = vrot.slane %v11803_v47, 5 }
  0xcd   : > { %v1976_v36 = vpop.permute.xlu0 %1975  ;;  %v2122_v39 = vsel %vm1339_vm6, %v2049_v33, %v1978_v35  ;;  %v1184_v33 = vsel %vm1145_vm3, %v1182_v11, %v1183_v12  ;;  %v14206_v47 = vld [vmem:[#allocation2 + $0x134] sm:$0xf] }
  0xce   : > { %v2120_v40 = vsel %vm1339_vm6, %v2047_v1, %v1976_v36  ;;  %v2210_v45 = vrot.slane %v2122_v39, 3  ;;  %1039 = vrot.lane.b32.xlu1 %v1012_v25, %s14410_s21  ;;  %v791_v25 = vld [vmem:[#allocation2 + $0x124] sm:$0xf]  ;;  %v1517_v1 = vld [vmem:[#allocation2 + $0xf4] sm:$0x8] }
  0xcf   : > { %v2209_v57 = vrot.slane %v2120_v40, 3  ;;  %1037 = vrot.lane.b32.xlu0 %v1011_v28, %s14410_s21  ;;  %v11802_v19 = vcombine.low %v772_v6, %v791_v25 }
  0xd0   : > { %v1982_v51 = vpop.permute.xlu1 %1981 }
  0xd1   : > { %v1980_v52 = vpop.permute.xlu0 %1979  ;;  %v2211_v53 = vsel %vm1436_vm7, %v2209_v57, %v2210_v45  ;;  %v2126_v54 = vsel %vm1339_vm6, %v2054_v46, %v1982_v51  ;;  %v13754_v57 = vld [vmem:[#allocation2 + $0xfc] ss:$0 sps:$4 sm:$0x77]   ;;  %v11832_v46 = vcombine.low %v821_v32, %v791_v25  ;;  %v14203_v51 = vld [vmem:[#allocation2 + $0xf8] sm:$0xf] }
  0xd2   : > { %v2124_v55 = vsel %vm1339_vm6, %v2052_v50, %v1980_v52  ;;  %13017 = vmatprep.mubr.msk.bf16.mxu0 %vm2247_vm8, %v2211_v53  ;;  %v2213_v58 = vrot.slane %v2126_v54, 3  ;;  %1236 = vrot.lane.b32.xlu1 %v1178_v49, %s14409_s20  ;;  %v1187_v49 = vsel %vm1145_vm3, %v1185_v13, %v1186_v14  ;;  %v11856_v52 = vcombine.low %v1517_v1, %v14203_v51  ;;  %v2743_v14 = vld [vmem:[#allocation2 + $0x58] sm:$0xe]  ;;  %v14205_v1 = vld [vmem:[#allocation2 + $0x120] sm:$0xf] }
  0xd3   : > { %v2212_v59 = vrot.slane %v2124_v55, 3  ;;  %1234 = vrot.lane.b32.xlu0 %v1176_v30, %s14409_s20  ;;  %v823_v30 = vld [vmem:[#allocation2 + $0x134] sm:$0xe] }
  0xd4   : > { %v1794_v5 = vpop.permute.xlu1 %1793  ;;  %v11834_v50 = vcombine.low %v823_v30, %v792_v24  ;;  %v13773_v24 = vld [vmem:[#allocation2 + $0x60] ss:$0 sps:$4 sm:$0x11]  }
  0xd5   : > { %v1792_v27 = vpop.permute.xlu0 %1791  ;;  %v2214_v7 = vsel %vm1436_vm7, %v2212_v59, %v2213_v58  ;;  %v2062_v35 = vsel %vm1258_vm5, %v11854_v26, %v1794_v5  ;;  %v2064_v36 = vsel %vm1258_vm5, %v13743_v9, %v1794_v5  ;;  %v1015_v58 = vrot.slane %v11802_v19, 5  ;;  %v2683_v9 = vld [vmem:[#allocation2 + $0x6c] sm:$0xf] }
  0xd6   : > { %13018 = vmatmul.mubr.msk.bf16.gmra.mrb[12].mxu0 %vm2247_vm8, %v2214_v7  ;;  %1240 = vrot.lane.b32.xlu1 %v1181_v2, %s14409_s20  ;;  %v2057_v17 = vsel %vm1258_vm5, %v11852_v4, %v1792_v27  ;;  %v2059_v18 = vsel %vm1258_vm5, %v13744_v60, %v1792_v27  ;;  %v1188_v59 = vrot.slane %v11832_v46, 6  ;;  %v1189_v60 = vrot.slane %v13762_v42, 6 }
  0xd7   : > { %1238 = vrot.lane.b32.xlu0 %v1179_v37, %s14409_s20  ;;  %v1191_v61 = vrot.slane %v11834_v50, 6  ;;  %v11858_v2 = vcombine.low %v1520_v48, %v14204_v63  ;;  %v13763_v48 = vld [vmem:[#allocation2 + $0x138] ss:$0 sps:$4 sm:$0x77]  }
  0xd8   : > { %v1986_v20 = vpop.permute.xlu1 %1985  ;;  %v1190_v26 = vsel %vm1145_vm3, %v1188_v59, %v1189_v60 }
  0xd9   : > { %v1984_v21 = vpop.permute.xlu0 %1983  ;;  %v2130_v34 = vsel %vm1339_vm6, %v2059_v18, %v1986_v20  ;;  %v1193_v30 = vsel %vm1145_vm3, %v1191_v61, %v1192_v62  ;;  %v2729_v62 = vld [vmem:[#allocation2 + $0x84] sm:$0xf] }
  0xda   : > { %v2128_v22 = vsel %vm1339_vm6, %v2057_v17, %v1984_v21  ;;  %v2216_v28 = vrot.slane %v2130_v34, 3  ;;  %1043 = vrot.lane.b32.xlu1 %v1014_v8, %s14410_s21  ;;  %v2728_v8 = vld [vmem:[#allocation2 + $0x70] sm:$0xf] }
  0xdb   : > { %v2215_v29 = vrot.slane %v2128_v22, 3  ;;  %1041 = vrot.lane.b32.xlu0 %v1013_v10, %s14410_s21  ;;  %v2680_v10 = vld [vmem:[#allocation2 + $0x58] sm:$0xf] }
  0xdc   : > { %v1990_v37 = vpop.permute.xlu1 %1989 }
  0xdd   : > { %v1988_v38 = vpop.permute.xlu0 %1987  ;;  %v2217_v39 = vsel %vm1436_vm7, %v2215_v29, %v2216_v28  ;;  %v2134_v40 = vsel %vm1339_vm6, %v2064_v36, %v1990_v37  ;;  %v11985_v28 = vcombine.low %v2683_v9, %v2728_v8  ;;  %v13764_v36 = vld [vmem:[#allocation2 + $0x124] ss:$0 sps:$4 sm:$0x77]  }
  0xde   : > { %v2132_v41 = vsel %vm1339_vm6, %v2062_v35, %v1988_v38  ;;  %13021 = vmatprep.mubr.msk.bf16.mxu0 %vm2247_vm8, %v2217_v39  ;;  %v2219_v44 = vrot.slane %v2134_v40, 3  ;;  %1244 = vrot.lane.b32.xlu1 %v1184_v33, %s14409_s20  ;;  %v11860_v33 = vcombine.low %v1523_v16, %v14205_v1  ;;  %v2745_v39 = vld [vmem:[#allocation2 + $0x6c] sm:$0xe]  ;;  %v1526_v40 = vld [vmem:[#allocation2 + $0x130] sm:$0x8] }
  0xdf   : > { %v2218_v45 = vrot.slane %v2132_v41, 3  ;;  %1242 = vrot.lane.b32.xlu0 %v1182_v11, %s14409_s20  ;;  %v2727_v11 = vld [vmem:[#allocation2 + $0x5c] sm:$0xf]  ;;  %v2952_v41 = vrot.slane %v11985_v28, 5  ;;  %v12002_v43 = vcombine.low %v2745_v39, %v2728_v8  ;;  %v11862_v19 = vcombine.low %v1526_v40, %v14206_v47 }
  0xe0   : > { %v1798_v53 = vpop.permute.xlu1 %1797  ;;  %v11984_v29 = vcombine.low %v2680_v10, %v2727_v11  ;;  %v12000_v32 = vcombine.low %v2743_v14, %v2727_v11  ;;  %v13780_v16 = vld [vmem:[#allocation2 + $0x88] ss:$0 sps:$4 sm:$0x11]  }
  0xe1   : > { %v1796_v54 = vpop.permute.xlu0 %1795  ;;  %v2220_v55 = vsel %vm1436_vm7, %v2218_v45, %v2219_v44  ;;  %v2072_v17 = vsel %vm1258_vm5, %v11858_v2, %v1798_v53  ;;  %v2074_v18 = vsel %vm1258_vm5, %v13753_v56, %v1798_v53  ;;  %v3096_v45 = vrot.slane %v13773_v24, 6  ;;  %v14936_v56 = vld [vmem:[#allocation2 + $0x94] sm:$0xf] }
  0xe2   : > { %13022 = vmatmul.mubr.msk.bf16.gmra.mrb[16].mxu0 %vm2247_vm8, %v2220_v55  ;;  %1248 = vrot.lane.b32.xlu1 %v1187_v49, %s14409_s20  ;;  %v2067_v31 = vsel %vm1258_vm5, %v11856_v52, %v1796_v54  ;;  %v2069_v3 = vsel %vm1258_vm5, %v13754_v57, %v1796_v54  ;;  %v2951_v42 = vrot.slane %v11984_v29, 5  ;;  %v3095_v44 = vrot.slane %v12000_v32, 6  ;;  %v13776_v57 = vld [vmem:[#allocation2 + $0x74] ss:$0 sps:$4 sm:$0x11]  }
  0xe3   : > { %1246 = vrot.lane.b32.xlu0 %v1185_v13, %s14409_s20  ;;  %v3099_v60 = vrot.slane %v13776_v57, 6  ;;  %v3102_v28 = vrot.slane %v13780_v16, 6  ;;  %v14208_v32 = vld [vmem:[#allocation2 + $0x15c] sm:$0xf] }
  0xe4   : > { %v1994_v4 = vpop.permute.xlu1 %1993 }
  0xe5   : > { %v1992_v5 = vpop.permute.xlu0 %1991  ;;  %v2138_v27 = vsel %vm1339_vm6, %v2069_v3, %v1994_v4 }
  0xe6   : > { %v2136_v7 = vsel %vm1339_vm6, %v2067_v31, %v1992_v5  ;;  %v2222_v12 = vrot.slane %v2138_v27, 3  ;;  %1047 = vrot.lane.b32.xlu1 %v1016_v15, %s14410_s21  ;;  %v2730_v15 = vld [vmem:[#allocation2 + $0x98] sm:$0xf]  ;;  %v2747_v5 = vld [vmem:[#allocation2 + $0x80] sm:$0xe] }
  0xe7   : > { %v2221_v13 = vrot.slane %v2136_v7, 3  ;;  %1045 = vrot.lane.b32.xlu0 %v1015_v58, %s14410_s21  ;;  %v3098_v58 = vrot.slane %v12002_v43, 6  ;;  %v1529_v27 = vld [vmem:[#allocation2 + $0x144] sm:$0x8]  ;;  %v11987_v11 = vcombine.low %v14936_v56, %v2730_v15  ;;  %v12004_v14 = vcombine.low %v2747_v5, %v2729_v62  ;;  %v14962_v43 = vld [vmem:[#allocation2 + $0xbc] sm:$0xf] }
  0xe8   : > { %v1998_v20 = vpop.permute.xlu1 %1997 }
  0xe9   : > { %v1996_v21 = vpop.permute.xlu0 %1995  ;;  %v2223_v34 = vsel %vm1436_vm7, %v2221_v13, %v2222_v12  ;;  %v2142_v22 = vsel %vm1339_vm6, %v2074_v18, %v1998_v20  ;;  %v3100_v13 = vsel %vm1145_vm3, %v3098_v58, %v3099_v60  ;;  %v13775_v20 = vld [vmem:[#allocation2 + $0x14c] ss:$0 sps:$4 sm:$0x77]   ;;  %v2954_v24 = vrot.slane %v11987_v11, 5 }
  0xea   : > { %v2140_v23 = vsel %vm1339_vm6, %v2072_v17, %v1996_v21  ;;  %13025 = vmatprep.mubr.msk.bf16.mxu0 %vm2247_vm8, %v2223_v34  ;;  %v2225_v6 = vrot.slane %v2142_v22, 3  ;;  %1252 = vrot.lane.b32.xlu1 %v1190_v26, %s14409_s20  ;;  %v14207_v26 = vld [vmem:[#allocation2 + $0x148] sm:$0xf]  ;;  %v2749_v22 = vld [vmem:[#allocation2 + $0x94] sm:$0xe] }
  0xeb   : > { %v2224_v25 = vrot.slane %v2140_v23, 3  ;;  %1250 = vrot.lane.b32.xlu0 %v1188_v59, %s14409_s20  ;;  %v3097_v59 = vsel %vm1145_vm3, %v3095_v44, %v3096_v45  ;;  %v11864_v17 = vcombine.low %v1529_v27, %v14207_v26  ;;  %v1532_v23 = vld [vmem:[#allocation2 + $0x158] sm:$0x8]  ;;  %v12006_v29 = vcombine.low %v2749_v22, %v2730_v15  ;;  %v13782_v27 = vld [vmem:[#allocation2 + $0xc] ss:$0 sps:$4 sm:$0x77]  }
  0xec   : > { %v1802_v35 = vpop.permute.xlu1 %1801  ;;  %v11866_v1 = vcombine.low %v1532_v23, %v14208_v32  ;;  %v13792_v26 = vld [vmem:[#allocation2 + $0xc4] ss:$0 sps:$4 sm:$0x11]  }
  0xed   : > { %v1800_v37 = vpop.permute.xlu0 %1799  ;;  %v2226_v38 = vsel %vm1436_vm7, %v2224_v25, %v2225_v6  ;;  %v2082_v63 = vsel %vm1258_vm5, %v11862_v19, %v1802_v35  ;;  %v2084_v2 = vsel %vm1258_vm5, %v13763_v48, %v1802_v35  ;;  %v3101_v25 = vrot.slane %v12004_v14, 6  ;;  %v14965_v19 = vld [vmem:[#allocation2 + $0xa8] sm:$0xf]  ;;  %v2731_v48 = vld [vmem:[#allocation2 + $0xac] sm:$0xf] }
  0xee   : > { %13026 = vmatmul.mubr.msk.bf16.gmra.mrb[20].mxu0 %vm2247_vm8, %v2226_v38  ;;  %1256 = vrot.lane.b32.xlu1 %v1193_v30, %s14409_s20  ;;  %v2077_v49 = vsel %vm1258_vm5, %v11860_v33, %v1800_v37  ;;  %v2079_v50 = vsel %vm1258_vm5, %v13764_v36, %v1800_v37  ;;  %v13784_v30 = vld [vmem:[#allocation2 + $0x9c] ss:$0 sps:$4 sm:$0x11]   ;;  %v13774_v33 = vld [vmem:[#allocation2 + $0x160] ss:$0 sps:$4 sm:$0x77]  }
  0xef   : > { %1254 = vrot.lane.b32.xlu0 %v1191_v61, %s14409_s20  ;;  %v14939_v61 = vld [vmem:[#allocation2 + $0x80] sm:$0xf]  ;;  %v3103_v45 = vsel %vm1145_vm3, %v3101_v25, %v3102_v28  ;;  %v3104_v57 = vrot.slane %v12006_v29, 6  ;;  %v3105_v47 = vrot.slane %v13784_v30, 6  ;;  %v14988_v29 = vld [vmem:[#allocation2 + $0xe4] sm:$0xf] }
  0xf0   : > { %v2002_v46 = vpop.permute.xlu1 %2001  ;;  %v11986_v12 = vcombine.low %v14939_v61, %v2729_v62  ;;  %v11988_v62 = vcombine.low %v14965_v19, %v2731_v48  ;;  %v2734_v30 = vld [vmem:[#allocation2 + $0xe8] sm:$0xf] }
  0xf1   : > { %v2000_v51 = vpop.permute.xlu0 %1999  ;;  %v2146_v52 = vsel %vm1339_vm6, %v2079_v50, %v2002_v46 }
  0xf2   : > { %v2144_v53 = vsel %vm1339_vm6, %v2077_v49, %v2000_v51  ;;  %v2228_v54 = vrot.slane %v2146_v52, 3  ;;  %2969 = vrot.lane.b32.xlu1 %v2952_v41, %s14410_s21  ;;  %v2953_v6 = vrot.slane %v11986_v12, 5  ;;  %v2955_v12 = vrot.slane %v11988_v62, 5  ;;  %v14212_v62 = vld [vmem:[%s19447_s1 + $0x10] sm:$0x3f]  }
  0xf3   : > { %v2227_v55 = vrot.slane %v2144_v53, 3  ;;  %2967 = vrot.lane.b32.xlu0 %v2951_v42, %s14410_s21  ;;  %v2751_v53 = vld [vmem:[#allocation2 + $0xa8] sm:$0xe] }
  0xf4   : > { %v2006_v31 = vpop.permute.xlu1 %2005 }
  0xf5   : > { %v2004_v3 = vpop.permute.xlu0 %2003  ;;  %v2229_v4 = vsel %vm1436_vm7, %v2227_v55, %v2228_v54  ;;  %v2150_v7 = vsel %vm1339_vm6, %v2084_v2, %v2006_v31  ;;  %v729_v54 = vld [vmem:[#allocation2 + $0x4] sm:$0x8]  ;;  %v12008_v2 = vcombine.low %v2751_v53, %v2731_v48  ;;  %v13788_v31 = vld [vmem:[#allocation2 + $0xb0] ss:$0 sps:$4 sm:$0x11]  }
  0xf6   : > { %v2148_v9 = vsel %vm1339_vm6, %v2082_v63, %v2004_v3  ;;  %13029 = vmatprep.mubr.msk.bf16.mxu0 %vm2247_vm8, %v2229_v4  ;;  %v2231_v8 = vrot.slane %v2150_v7, 3  ;;  %3145 = vrot.lane.b32.xlu1 %v3097_v59, %s14409_s20  ;;  %v3106_v63 = vsel %vm1145_vm3, %v3104_v57, %v3105_v47  ;;  %v14209_v3 = vld [vmem:[#allocation2 + $0x8] sm:$0xf]  ;;  %v3108_v14 = vrot.slane %v13788_v31, 6  ;;  %v14211_v53 = vld [vmem:[#allocation2 + $0x30] sm:$0xf] }
  0xf7   : > { %v2230_v10 = vrot.slane %v2148_v9, 3  ;;  %3143 = vrot.lane.b32.xlu0 %v3095_v44, %s14409_s20  ;;  %v2732_v44 = vld [vmem:[#allocation2 + $0xc0] sm:$0xf]  ;;  %v11756_v4 = vcombine.low %v729_v54, %v14209_v3 }
  0xf8   : > { %v1806_v18 = vpop.permute.xlu1 %1805  ;;  %v11989_v60 = vcombine.low %v14962_v43, %v2732_v44 }
  0xf9   : > { %v1804_v21 = vpop.permute.xlu0 %1803  ;;  %v2232_v34 = vsel %vm1436_vm7, %v2230_v10, %v2231_v8  ;;  %v2092_v49 = vsel %vm1258_vm5, %v11866_v1, %v1806_v18  ;;  %v2094_v50 = vsel %vm1258_vm5, %v13774_v33, %v1806_v18  ;;  %v2753_v8 = vld [vmem:[#allocation2 + $0xbc] sm:$0xe]  ;;  %v732_v10 = vld [vmem:[#allocation2 + $0x18] sm:$0x8]  ;;  %v3111_v33 = vrot.slane %v13792_v26, 6 }
  0xfa   : > { %13030 = vmatmul.mubr.msk.bf16.gmra.mrb[24].mxu0 %vm2247_vm8, %v2232_v34  ;;  %3149 = vrot.lane.b32.xlu1 %v3100_v13, %s14409_s20  ;;  %v2087_v35 = vsel %vm1258_vm5, %v11864_v17, %v1804_v21  ;;  %v2089_v36 = vsel %vm1258_vm5, %v13775_v20, %v1804_v21  ;;  %v2956_v11 = vrot.slane %v11989_v60, 5  ;;  %v3107_v13 = vrot.slane %v12008_v2, 6  ;;  %v14210_v17 = vld [vmem:[#allocation2 + $0x1c] sm:$0xf]  ;;  %v2757_v60 = vld [vmem:[#allocation2 + $0xe4] sm:$0xe] }
  0xfb   : > { %3147 = vrot.lane.b32.xlu0 %v3098_v58, %s14409_s20  ;;  %v12010_v16 = vcombine.low %v2753_v8, %v2732_v44  ;;  %v11758_v18 = vcombine.low %v732_v10, %v14210_v17  ;;  %v13781_v20 = vld [vmem:[#allocation2 + $0x20] ss:$0 sps:$4 sm:$0x77]   ;;  %v735_v44 = vld [vmem:[#allocation2 + $0x2c] sm:$0x8] }
  0xfc   : > { %v2010_v37 = vpop.permute.xlu1 %2009  ;;  %v3109_v32 = vsel %vm1145_vm3, %v3107_v13, %v3108_v14  ;;  %v11760_v54 = vcombine.low %v735_v44, %v14211_v53  ;;  %v738_v2 = vld [vmem:[#allocation2 + $0x40] sm:$0x8]  ;;  %v13789_v10 = vld [vmem:[#allocation2 + $0x48] ss:$0 sps:$4 sm:$0x77]  }
  0xfd   : > { %v2008_v38 = vpop.permute.xlu0 %2007  ;;  %v2154_v39 = vsel %vm1339_vm6, %v2089_v36, %v2010_v37  ;;  %v3110_v1 = vrot.slane %v12010_v16, 6  ;;  %v2733_v36 = vld [vmem:[#allocation2 + $0xd4] sm:$0xf]  ;;  %v744_v53 = vld [vmem:[#allocation2 + $0x68] sm:$0x8] }
  0xfe   : > { %v2152_v40 = vsel %vm1339_vm6, %v2087_v35, %v2008_v38  ;;  %v2234_v41 = vrot.slane %v2154_v39, 3  ;;  %2973 = vrot.lane.b32.xlu1 %v2954_v24, %s14410_s21  ;;  %v14991_v35 = vld [vmem:[#allocation2 + $0xd0] sm:$0xf] }
  0xff   : > { %v2233_v42 = vrot.slane %v2152_v40, 3  ;;  %2971 = vrot.lane.b32.xlu0 %v2953_v6, %s14410_s21 }
 0x100   : > { %v2014_v46 = vpop.permute.xlu1 %2013 }
 0x101   : > { %v2012_v51 = vpop.permute.xlu0 %2011  ;;  %v2235_v52 = vsel %vm1436_vm7, %v2233_v42, %v2234_v41  ;;  %v2158_v55 = vsel %vm1339_vm6, %v2094_v50, %v2014_v46  ;;  %v2755_v42 = vld [vmem:[#allocation2 + $0xd0] sm:$0xe]  ;;  %v11990_v50 = vcombine.low %v14991_v35, %v2733_v36  ;;  %v3112_v46 = vsel %vm1145_vm3, %v3110_v1, %v3111_v33  ;;  %v2759_v33 = vld [vmem:[#allocation2 + $0xf8] sm:$0xe] }
 0x102   : > { %v2156_v15 = vsel %vm1339_vm6, %v2092_v49, %v2012_v51  ;;  %13033 = vmatprep.mubr.msk.bf16.mxu0 %vm2247_vm8, %v2235_v52  ;;  %v2237_v58 = vrot.slane %v2158_v55, 3  ;;  %3153 = vrot.lane.b32.xlu1 %v3103_v45, %s14409_s20  ;;  %v11991_v49 = vcombine.low %v14988_v29, %v2734_v30  ;;  %v12012_v51 = vcombine.low %v2755_v42, %v2733_v36  ;;  %v13796_v52 = vld [vmem:[#allocation2 + $0xd8] ss:$0 sps:$4 sm:$0x11]   ;;  %v741_v36 = vld [vmem:[#allocation2 + $0x54] sm:$0x8] }
 0x103   : > { %v2236_v59 = vrot.slane %v2156_v15, 3  ;;  %3151 = vrot.lane.b32.xlu0 %v3101_v25, %s14409_s20  ;;  %v2957_v3 = vrot.slane %v11990_v50, 5  ;;  %v13798_v50 = vld [vmem:[#allocation2 + $0x5c] ss:$0 sps:$4 sm:$0x77]  }
 0x104   : > { %v1020_v5 = vpop.permute.xlu1 %1019  ;;  %v2958_v31 = vrot.slane %v11991_v49, 5 }
 0x105   : > { %v1018_v7 = vpop.permute.xlu0 %1017  ;;  %v2238_v9 = vsel %vm1436_vm7, %v2236_v59, %v2237_v58  ;;  %v1266_v37 = vsel %vm1258_vm5, %v11758_v18, %v1020_v5  ;;  %v1268_v38 = vsel %vm1258_vm5, %v13781_v20, %v1020_v5  ;;  %v13790_v58 = vld [vmem:[#allocation2 + $0x34] ss:$0 sps:$4 sm:$0x77]   ;;  %v3114_v5 = vrot.slane %v13796_v52, 6  ;;  %v15018_v20 = vld [vmem:[#allocation2 + $0x10c] sm:$0xf] }
 0x106   : > { %13034 = vmatmul.mubr.msk.bf16.gmra.mrb[28].mxu0 %vm2247_vm8, %v2238_v9  ;;  %3157 = vrot.lane.b32.xlu1 %v3106_v63, %s14409_s20  ;;  %v1261_v21 = vsel %vm1258_vm5, %v11756_v4, %v1018_v7  ;;  %v1263_v34 = vsel %vm1258_vm5, %v13782_v27, %v1018_v7  ;;  %v3488_v63 = vsel %vm2296_vm4, %v14212_v62, 0  ;;  %v3113_v4 = vrot.slane %v12012_v51, 6  ;;  %v13800_v7 = vld [vmem:[#allocation2 + $0xec] ss:$0 sps:$4 sm:$0x11]  }
 0x107   : > { %3155 = vrot.lane.b32.xlu0 %v3104_v57, %s14409_s20  ;;  %v12014_v27 = vcombine.low %v2757_v60, %v2734_v30  ;;  %v14213_v9 = vld [vmem:[#allocation2 + $0x44] sm:$0xf]  ;;  %v2761_v52 = vld [vmem:[#allocation2 + $0x10c] sm:$0xe]  ;;  %vm4557_vm4 = vsmask.f32 4352 }
 0x108   : > { %v1197_v22 = vpop.permute.xlu1 %1196  ;;  %v11762_v8 = vcombine.low %v738_v2, %v14213_v9  ;;  %v13808_v60 = vld [vmem:[#allocation2 + $0x114] ss:$0 sps:$4 sm:$0x11]   ;;  %v14215_v62 = vld [vmem:[#allocation2 + $0x6c] sm:$0xf] }
 0x109   : > { %v1195_v23 = vpop.permute.xlu0 %1194  ;;  %v1343_v24 = vsel %vm1339_vm6, %v1263_v34, %v1197_v22  ;;  %v3115_v34 = vsel %vm1145_vm3, %v3113_v4, %v3114_v5  ;;  %v3116_v22 = vrot.slane %v12014_v27, 6  ;;  %v13797_v2 = vld [vmem:[#allocation2 + $0x70] ss:$0 sps:$4 sm:$0x77]  }
 0x10a   : > { %v1341_v6 = vsel %vm1339_vm6, %v1261_v21, %v1195_v23  ;;  %v1438_v25 = vrot.slane %v1343_v24, 3  ;;  %2977 = vrot.lane.b32.xlu1 %v2956_v11, %s14410_s21  ;;  %v2736_v21 = vld [vmem:[#allocation2 + $0x110] sm:$0xf]  ;;  %v3117_v23 = vrot.slane %v13800_v7, 6  ;;  %v15021_v24 = vld [vmem:[#allocation2 + $0xf8] sm:$0xf] }
 0x10b   : > { %v1437_v28 = vrot.slane %v1341_v6, 3  ;;  %2975 = vrot.lane.b32.xlu0 %v2955_v12, %s14410_s21  ;;  %v2735_v6 = vld [vmem:[#allocation2 + $0xfc] sm:$0xf] }
 0x10c   : > { %v1201_v39 = vpop.permute.xlu1 %1200  ;;  %v11992_v42 = vcombine.low %v15021_v24, %v2735_v6  ;;  %v3118_v44 = vsel %vm1145_vm3, %v3116_v22, %v3117_v23  ;;  %v2763_v23 = vld [vmem:[#allocation2 + $0x120] sm:$0xe] }
 0x10d   : > { %v1199_v40 = vpop.permute.xlu0 %1198  ;;  %v1439_v41 = vsel %vm1436_vm7, %v1437_v28, %v1438_v25  ;;  %v1347_v45 = vsel %vm1339_vm6, %v1268_v38, %v1201_v39 }
 0x10e   : > { %v1345_v57 = vsel %vm1339_vm6, %v1266_v37, %v1199_v40  ;;  %13039 = vmatprep.mubr.msk.bf16.mxu0 %vm2247_vm8, %v1439_v41  ;;  %v1441_v47 = vrot.slane %v1347_v45, 3  ;;  %3161 = vrot.lane.b32.xlu1 %v3109_v32, %s14409_s20  ;;  %v11993_v41 = vcombine.low %v15018_v20, %v2736_v21  ;;  %v12016_v45 = vcombine.low %v2759_v33, %v2735_v6  ;;  %v747_v6 = vld [vmem:[#allocation2 + $0x7c] sm:$0x8] }
 0x10f   : > { %v1440_v48 = vrot.slane %v1345_v57, 3  ;;  %3159 = vrot.lane.b32.xlu0 %v3107_v13, %s14409_s20  ;;  %v13804_v57 = vld [vmem:[#allocation2 + $0x100] ss:$0 sps:$4 sm:$0x11]  }
 0x110   : > { %v1024_v15 = vpop.permute.xlu1 %1023 }
 0x111   : > { %v1442_v55 = vsel %vm1436_vm7, %v1440_v48, %v1441_v47  ;;  %v1022_v59 = vpop.permute.xlu0 %1021  ;;  %v1276_v25 = vsel %vm1258_vm5, %v11762_v8, %v1024_v15  ;;  %v1278_v28 = vsel %vm1258_vm5, %v13789_v10, %v1024_v15  ;;  %v14214_v47 = vld [vmem:[#allocation2 + $0x58] sm:$0xf]  ;;  %v3119_v15 = vrot.slane %v12016_v45, 6  ;;  %v15044_v10 = vld [vmem:[#allocation2 + $0x134] sm:$0xf] }
 0x112   : > { %13040 = vmatmul.mubr.msk.bf16.vlgmr.msra.gmra.mrb[0].mxu0 %vm2247_vm8, %v1442_v55  ;;  %3165 = vrot.lane.b32.xlu1 %v3112_v46, %s14409_s20  ;;  %v1271_v11 = vsel %vm1258_vm5, %v11760_v54, %v1022_v59  ;;  %v1273_v12 = vsel %vm1258_vm5, %v13790_v58, %v1022_v59  ;;  %v11764_v48 = vcombine.low %v741_v36, %v14214_v47  ;;  %v2960_v54 = vrot.slane %v11993_v41, 5  ;;  %v750_v47 = vld [vmem:[#allocation2 + $0x90] sm:$0x8] }
 0x113   : > { %3163 = vrot.lane.b32.xlu0 %v3110_v1, %s14409_s20  ;;  %13072 = vmatpush3.bf16.msra.mxu0 %v3488_v63  ;;  %v2959_v55 = vrot.slane %v11992_v42, 5  ;;  %v3120_v58 = vrot.slane %v13804_v57, 6  ;;  %v12018_v59 = vcombine.low %v2761_v52, %v2736_v21  ;;  %v11766_v63 = vcombine.low %v744_v53, %v14215_v62  ;;  %v13806_v42 = vld [vmem:[#allocation2 + $0x84] ss:$0 sps:$4 sm:$0x77]  }
 0x114   : > { %v1205_v13 = vpop.permute.xlu1 %1204  ;;  %v2765_v57 = vld [vmem:[#allocation2 + $0x134] sm:$0xe]  ;;  %v13817_v52 = vld [vmem:[#allocation2 + $0x13c] ss:$0 sps:$4 sm:$0x11]  }
 0x115   : > { %v1203_v14 = vpop.permute.xlu0 %1202  ;;  %v1351_v16 = vsel %vm1339_vm6, %v1273_v12, %v1205_v13  ;;  %v3121_v12 = vsel %vm1145_vm3, %v3119_v15, %v3120_v58  ;;  %v3122_v13 = vrot.slane %v12018_v59, 6  ;;  %v14217_v53 = vld [vmem:[#allocation2 + $0x94] sm:$0xf] }
 0x116   : > { %v1349_v26 = vsel %vm1339_vm6, %v1271_v11, %v1203_v14  ;;  %v1444_v17 = vrot.slane %v1351_v16, 3  ;;  %2981 = vrot.lane.b32.xlu1 %v2958_v31, %s14410_s21  ;;  %v2738_v11 = vld [vmem:[#allocation2 + $0x138] sm:$0xf]  ;;  %v3123_v14 = vrot.slane %v13808_v60, 6  ;;  %v15047_v16 = vld [vmem:[#allocation2 + $0x120] sm:$0xf] }
 0x117   : > { %v1443_v18 = vrot.slane %v1349_v26, 3  ;;  %2979 = vrot.lane.b32.xlu0 %v2957_v3, %s14410_s21  ;;  %v2737_v26 = vld [vmem:[#allocation2 + $0x124] sm:$0xf] }
 0x118   : > { %v1209_v30 = vpop.permute.xlu1 %1208  ;;  %v11994_v33 = vcombine.low %v15047_v16, %v2737_v26  ;;  %v3124_v36 = vsel %vm1145_vm3, %v3122_v13, %v3123_v14 }
 0x119   : > { %v1207_v32 = vpop.permute.xlu0 %1206  ;;  %v1445_v1 = vsel %vm1436_vm7, %v1443_v18, %v1444_v17  ;;  %v1355_v37 = vsel %vm1339_vm6, %v1278_v28, %v1209_v30 }
 0x11a   : > { %v1353_v38 = vsel %vm1339_vm6, %v1276_v25, %v1207_v32  ;;  %13043 = vmatprep.mubr.msk.bf16.mxu0 %vm2247_vm8, %v1445_v1  ;;  %v1447_v39 = vrot.slane %v1355_v37, 3  ;;  %3169 = vrot.lane.b32.xlu1 %v3115_v34, %s14409_s20  ;;  %v11995_v1 = vcombine.low %v15044_v10, %v2738_v11  ;;  %v12020_v37 = vcombine.low %v2763_v23, %v2737_v26 }
 0x11b   : > { %v1446_v40 = vrot.slane %v1353_v38, 3  ;;  %3167 = vrot.lane.b32.xlu0 %v3113_v4, %s14409_s20  ;;  %v13813_v38 = vld [vmem:[#allocation2 + $0x128] ss:$0 sps:$4 sm:$0x11]  }
 0x11c   : > { %v1028_v49 = vpop.permute.xlu1 %1027 }
 0x11d   : > { %v1026_v46 = vpop.permute.xlu0 %1025  ;;  %v1448_v51 = vsel %vm1436_vm7, %v1446_v40, %v1447_v39  ;;  %v1286_v17 = vsel %vm1258_vm5, %v11766_v63, %v1028_v49  ;;  %v1288_v18 = vsel %vm1258_vm5, %v13797_v2, %v1028_v49  ;;  %v14216_v39 = vld [vmem:[#allocation2 + $0x80] sm:$0xf]  ;;  %v2961_v49 = vrot.slane %v11994_v33, 5 }
 0x11e   : > { %13044 = vmatmul.mubr.msk.bf16.gmra.mrb[4].mxu0 %vm2247_vm8, %v1448_v51  ;;  %3173 = vrot.lane.b32.xlu1 %v3118_v44, %s14409_s20  ;;  %v1281_v31 = vsel %vm1258_vm5, %v11764_v48, %v1026_v46  ;;  %v1283_v3 = vsel %vm1258_vm5, %v13798_v50, %v1026_v46  ;;  %v11768_v40 = vcombine.low %v747_v6, %v14216_v39  ;;  %v2962_v48 = vrot.slane %v11995_v1, 5  ;;  %v14218_v1 = vld [vmem:[#allocation2 + $0xa8] sm:$0xf] }
 0x11f   : > { %3171 = vrot.lane.b32.xlu0 %v3116_v22, %s14409_s20  ;;  %v3125_v50 = vrot.slane %v12020_v37, 6  ;;  %v3126_v46 = vrot.slane %v13813_v38, 6  ;;  %v12022_v51 = vcombine.low %v2765_v57, %v2738_v11  ;;  %v13815_v37 = vld [vmem:[#allocation2 + $0xac] ss:$0 sps:$4 sm:$0x77]  }
 0x120   : > { %v1213_v4 = vpop.permute.xlu1 %1212 }
 0x121   : > { %v1211_v5 = vpop.permute.xlu0 %1210  ;;  %v1359_v27 = vsel %vm1339_vm6, %v1283_v3, %v1213_v4  ;;  %v15070_v3 = vld [vmem:[#allocation2 + $0x15c] sm:$0xf]  ;;  %v2740_v4 = vld [vmem:[#allocation2 + $0x160] sm:$0xf] }
 0x122   : > { %v1357_v7 = vsel %vm1339_vm6, %v1281_v31, %v1211_v5  ;;  %v1450_v9 = vrot.slane %v1359_v27, 3  ;;  %2985 = vrot.lane.b32.xlu1 %v2960_v54, %s14410_s21  ;;  %v11770_v54 = vcombine.low %v750_v47, %v14217_v53  ;;  %v3127_v5 = vsel %vm1145_vm3, %v3125_v50, %v3126_v46  ;;  %v13814_v46 = vld [vmem:[#allocation2 + $0xc0] ss:$0 sps:$4 sm:$0x77]  }
 0x123   : > { %v1449_v8 = vrot.slane %v1357_v7, 3  ;;  %2983 = vrot.lane.b32.xlu0 %v2959_v55, %s14410_s21  ;;  %v13805_v55 = vld [vmem:[#allocation2 + $0x98] ss:$0 sps:$4 sm:$0x77]   ;;  %v3128_v27 = vrot.slane %v12022_v51, 6  ;;  %v3129_v7 = vrot.slane %v13817_v52, 6  ;;  %v11997_v6 = vcombine.low %v15070_v3, %v2740_v4 }
 0x124   : > { %v1217_v21 = vpop.permute.xlu1 %1216 }
 0x125   : > { %v1215_v34 = vpop.permute.xlu0 %1214  ;;  %v1451_v22 = vsel %vm1436_vm7, %v1449_v8, %v1450_v9  ;;  %v1363_v25 = vsel %vm1339_vm6, %v1288_v18, %v1217_v21  ;;  %v15073_v9 = vld [vmem:[#allocation2 + $0x148] sm:$0xf]  ;;  %v2739_v8 = vld [vmem:[#allocation2 + $0x14c] sm:$0xf]  ;;  %v753_v18 = vld [vmem:[#allocation2 + $0xa4] sm:$0x8] }
 0x126   : > { %v1361_v28 = vsel %vm1339_vm6, %v1286_v17, %v1215_v34  ;;  %13047 = vmatprep.mubr.msk.bf16.mxu0 %vm2247_vm8, %v1451_v22  ;;  %v1453_v30 = vrot.slane %v1363_v25, 3  ;;  %3177 = vrot.lane.b32.xlu1 %v3121_v12, %s14409_s20  ;;  %v2767_v17 = vld [vmem:[#allocation2 + $0x148] sm:$0xe]  ;;  %v11996_v25 = vcombine.low %v15073_v9, %v2739_v8  ;;  %v11772_v33 = vcombine.low %v753_v18, %v14218_v1  ;;  %v13823_v1 = vld [vmem:[#allocation2 + $0xd4] ss:$0 sps:$4 sm:$0x77]  }
 0x127   : > { %v1452_v32 = vrot.slane %v1361_v28, 3  ;;  %3175 = vrot.lane.b32.xlu0 %v3119_v15, %s14409_s20  ;;  %v3130_v28 = vsel %vm1145_vm3, %v3128_v27, %v3129_v7 }
 0x128   : > { %v1032_v41 = vpop.permute.xlu1 %1031 }
 0x129   : > { %v1030_v44 = vpop.permute.xlu0 %1029  ;;  %v1454_v45 = vsel %vm1436_vm7, %v1452_v32, %v1453_v30  ;;  %v1296_v11 = vsel %vm1258_vm5, %v11770_v54, %v1032_v41  ;;  %v1298_v12 = vsel %vm1258_vm5, %v13805_v55, %v1032_v41  ;;  %v12024_v30 = vcombine.low %v2767_v17, %v2739_v8  ;;  %v13821_v32 = vld [vmem:[#allocation2 + $0x150] ss:$0 sps:$4 sm:$0x11]   ;;  %v756_v41 = vld [vmem:[#allocation2 + $0xb8] sm:$0x8] }
 0x12a   : > { %13048 = vmatmul.mubr.msk.bf16.gmra.mrb[8].mxu0 %vm2247_vm8, %v1454_v45  ;;  %3181 = vrot.lane.b32.xlu1 %v3124_v36, %s14409_s20  ;;  %v1291_v15 = vsel %vm1258_vm5, %v11768_v40, %v1030_v44  ;;  %v1293_v58 = vsel %vm1258_vm5, %v13806_v42, %v1030_v44  ;;  %v2769_v40 = vld [vmem:[#allocation2 + $0x15c] sm:$0xe]  ;;  %v2964_v42 = vrot.slane %v11997_v6, 5  ;;  %v2963_v44 = vrot.slane %v11996_v25, 5 }
 0x12b   : > { %3179 = vrot.lane.b32.xlu0 %v3122_v13, %s14409_s20  ;;  %v3131_v45 = vrot.slane %v12024_v30, 6  ;;  %v3132_v57 = vrot.slane %v13821_v32, 6  ;;  %v12026_v47 = vcombine.low %v2769_v40, %v2740_v4  ;;  %v15101_v4 = vld [vmem:[#allocation2 + $0x170] sm:$0xf] }
 0x12c   : > { %v1221_v59 = vpop.permute.xlu1 %1220  ;;  %v13829_v25 = vld [vmem:[#allocation2 + $0x178] ss:$0 sps:$4 sm:$0x11]  }
 0x12d   : > { %v1219_v60 = vpop.permute.xlu0 %1218  ;;  %v1367_v62 = vsel %vm1339_vm6, %v1293_v58, %v1221_v59 }
 0x12e   : > { %v1365_v63 = vsel %vm1339_vm6, %v1291_v15, %v1219_v60  ;;  %v1456_v2 = vrot.slane %v1367_v62, 3  ;;  %2989 = vrot.lane.b32.xlu1 %v2962_v48, %s14410_s21  ;;  %v13825_v48 = vld [vmem:[#allocation2 + $0x164] ss:$0 sps:$4 sm:$0x11]   ;;  %v15098_v62 = vld [vmem:[#allocation2 + $0x188] sm:$0xf] }
 0x12f   : > { %v1455_v31 = vrot.slane %v1365_v63, 3  ;;  %2987 = vrot.lane.b32.xlu0 %v2961_v49, %s14410_s21  ;;  %v14219_v49 = vld [vmem:[#allocation2 + $0xbc] sm:$0xf]  ;;  %v15096_v60 = vld [vmem:[#allocation2 + $0x184] sm:$0xf]  ;;  %v3133_v63 = vsel %vm1145_vm3, %v3131_v45, %v3132_v57 }
 0x130   : > { %v1225_v13 = vpop.permute.xlu1 %1224  ;;  %v14221_v57 = vld [vmem:[#allocation2 + $0xe4] sm:$0xf] }
 0x131   : > { %v1223_v14 = vpop.permute.xlu0 %1222  ;;  %v1457_v26 = vsel %vm1436_vm7, %v1455_v31, %v1456_v2  ;;  %v1371_v21 = vsel %vm1339_vm6, %v1298_v12, %v1225_v13  ;;  %v3134_v2 = vrot.slane %v12026_v47, 6  ;;  %v3135_v31 = vrot.slane %v13825_v48, 6  ;;  %v2771_v13 = vld [vmem:[#allocation2 + $0x170] sm:$0xe] }
 0x132   : > { %v1369_v34 = vsel %vm1339_vm6, %v1296_v11, %v1223_v14  ;;  %13051 = vmatprep.mubr.msk.bf16.mxu0 %vm2247_vm8, %v1457_v26  ;;  %v1459_v22 = vrot.slane %v1371_v21, 3  ;;  %3185 = vrot.lane.b32.xlu1 %v3127_v5, %s14409_s20  ;;  %v2741_v5 = vld [vmem:[#allocation2 + $0x174] sm:$0xf]  ;;  %v759_v14 = vld [vmem:[#allocation2 + $0xcc] sm:$0x8] }
 0x133   : > { %v1458_v23 = vrot.slane %v1369_v34, 3  ;;  %3183 = vrot.lane.b32.xlu0 %v3125_v50, %s14409_s20  ;;  %v11774_v50 = vcombine.low %v756_v41, %v14219_v49  ;;  %v11999_v34 = vcombine.low %v15096_v60, %v15098_v62  ;;  %v12028_v6 = vcombine.low %v2771_v13, %v2741_v5  ;;  %v13822_v48 = vld [vmem:[#allocation2 + $0xe8] ss:$0 sps:$4 sm:$0x77]   ;;  %v14222_v13 = vld [vmem:[#allocation2 + $0xf8] sm:$0xf] }
 0x134   : > { %v1036_v36 = vpop.permute.xlu1 %1035 }
 0x135   : > { %v1034_v38 = vpop.permute.xlu0 %1033  ;;  %v1460_v39 = vsel %vm1436_vm7, %v1458_v23, %v1459_v22  ;;  %v1308_v7 = vsel %vm1258_vm5, %v13814_v46, %v1036_v36  ;;  %v11998_v22 = vcombine.low %v15101_v4, %v2741_v5  ;;  %v3136_v23 = vsel %vm1145_vm3, %v3134_v2, %v3135_v31 }
 0x136   : > { %13052 = vmatmul.mubr.msk.bf16.gmra.mrb[12].mxu0 %vm2247_vm8, %v1460_v39  ;;  %3189 = vrot.lane.b32.xlu1 %v3130_v28, %s14409_s20  ;;  %v1301_v51 = vsel %vm1258_vm5, %v11772_v33, %v1034_v38  ;;  %v1303_v52 = vsel %vm1258_vm5, %v13815_v37, %v1034_v38  ;;  %v14220_v28 = vld [vmem:[#allocation2 + $0xd0] sm:$0xf]  ;;  %v2773_v37 = vld [vmem:[#allocation2 + $0x184] sm:$0xe]  ;;  %v762_v38 = vld [vmem:[#allocation2 + $0xe0] sm:$0x8] }
 0x137   : > { %3187 = vrot.lane.b32.xlu0 %v3128_v27, %s14409_s20  ;;  %v1306_v27 = vsel %vm1258_vm5, %v11774_v50, %v1036_v36  ;;  %v11776_v30 = vcombine.low %v759_v14, %v14220_v28  ;;  %v2966_v39 = vrot.slane %v11999_v34, 5  ;;  %v2965_v40 = vrot.slane %v11998_v22, 5  ;;  %v768_v34 = vld [vmem:[#allocation2 + $0x108] sm:$0x8]  ;;  %v14223_v22 = vld [vmem:[#allocation2 + $0x10c] sm:$0xf] }
 0x138   : > { %v1229_v53 = vpop.permute.xlu1 %1228  ;;  %v3137_v41 = vrot.slane %v12028_v6, 6  ;;  %v11778_v47 = vcombine.low %v762_v38, %v14221_v57  ;;  %v13830_v6 = vld [vmem:[#allocation2 + $0x110] ss:$0 sps:$4 sm:$0x77]  }
 0x139   : > { %v1227_v54 = vpop.permute.xlu0 %1226  ;;  %v1375_v55 = vsel %vm1339_vm6, %v1303_v52, %v1229_v53 }
 0x13a   : > { %v1373_v15 = vsel %vm1339_vm6, %v1301_v51, %v1227_v54  ;;  %v1462_v58 = vrot.slane %v1375_v55, 3  ;;  %2993 = vrot.lane.b32.xlu1 %v2964_v42, %s14410_s21  ;;  %v3138_v42 = vrot.slane %v13829_v25, 6 }
 0x13b   : > { %v1461_v59 = vrot.slane %v1373_v15, 3  ;;  %2991 = vrot.lane.b32.xlu0 %v2963_v44, %s14410_s21  ;;  %v12030_v44 = vcombine.low %v2773_v37, %v15098_v62 }
 0x13c   : > { %v1233_v8 = vpop.permute.xlu1 %1232  ;;  %v3139_v15 = vsel %vm1145_vm3, %v3137_v41, %v3138_v42 }
 0x13d   : > { %v1231_v11 = vpop.permute.xlu0 %1230  ;;  %v1463_v12 = vsel %vm1436_vm7, %v1461_v59, %v1462_v58  ;;  %v1379_v26 = vsel %vm1339_vm6, %v1308_v7, %v1233_v8  ;;  %v3140_v58 = vrot.slane %v12030_v44, 6  ;;  %v771_v44 = vld [vmem:[#allocation2 + $0x11c] sm:$0x8] }
 0x13e   : > { %v1377_v17 = vsel %vm1339_vm6, %v1306_v27, %v1231_v11  ;;  %13055 = vmatprep.mubr.msk.bf16.mxu0 %vm2247_vm8, %v1463_v12  ;;  %v1465_v18 = vrot.slane %v1379_v26, 3  ;;  %3193 = vrot.lane.b32.xlu1 %v3133_v63, %s14409_s20  ;;  %v765_v27 = vld [vmem:[#allocation2 + $0xf4] sm:$0x8] }
 0x13f   : > { %v1464_v21 = vrot.slane %v1377_v17, 3  ;;  %3191 = vrot.lane.b32.xlu0 %v3131_v45, %s14409_s20  ;;  %v13833_v45 = vld [vmem:[#allocation2 + $0x18c] ss:$0 sps:$4 sm:$0x11]   ;;  %v11780_v14 = vcombine.low %v765_v27, %v14222_v13 }
 0x140   : > { %v1040_v32 = vpop.permute.xlu1 %1039  ;;  %v3141_v59 = vrot.slane %v13833_v45, 6  ;;  %v13831_v17 = vld [vmem:[#allocation2 + $0xfc] ss:$0 sps:$4 sm:$0x77]  }
 0x141   : > { %v1038_v33 = vpop.permute.xlu0 %1037  ;;  %v1466_v36 = vsel %vm1436_vm7, %v1464_v21, %v1465_v18  ;;  %v1316_v62 = vsel %vm1258_vm5, %v11778_v47, %v1040_v32  ;;  %v1318_v63 = vsel %vm1258_vm5, %v13822_v48, %v1040_v32 }
 0x142   : > { %13056 = vmatmul.mubr.msk.bf16.gmra.mrb[16].mxu0 %vm2247_vm8, %v1466_v36  ;;  %3197 = vrot.lane.b32.xlu1 %v3136_v23, %s14409_s20  ;;  %v1311_v49 = vsel %vm1258_vm5, %v11776_v30, %v1038_v33  ;;  %v1313_v50 = vsel %vm1258_vm5, %v13823_v1, %v1038_v33  ;;  %v3142_v12 = vsel %vm1145_vm3, %v3140_v58, %v3141_v59  ;;  %vm5771_vm3 = vcmask 785408  }
 0x143   : > { %3195 = vrot.lane.b32.xlu0 %v3134_v2, %s14409_s20  ;;  %v11782_v23 = vcombine.low %v768_v34, %v14223_v22  ;;  %v14226_v34 = vld [vmem:[#allocation2 + $0x58] sm:$0xf] }
 0x144   : > { %v1237_v46 = vpop.permute.xlu1 %1236 }
 0x145   : > { %v1235_v51 = vpop.permute.xlu0 %1234  ;;  %v1383_v52 = vsel %vm1339_vm6, %v1313_v50, %v1237_v46 }
 0x146   : > { %v1381_v53 = vsel %vm1339_vm6, %v1311_v49, %v1235_v51  ;;  %v1468_v54 = vrot.slane %v1383_v52, 3  ;;  %2997 = vrot.lane.b32.xlu1 %v2966_v39, %s14410_s21  ;;  %v14224_v49 = vld [vmem:[#allocation2 + $0x120] sm:$0xf]  ;;  %v13835_v51 = vld [vmem:[#allocation2 + $0x124] ss:$0 sps:$4 sm:$0x77]  }
 0x147   : > { %v1467_v55 = vrot.slane %v1381_v53, 3  ;;  %2995 = vrot.lane.b32.xlu0 %v2965_v40, %s14410_s21  ;;  %v11784_v50 = vcombine.low %v771_v44, %v14224_v49 }
 0x148   : > { %v1241_v2 = vpop.permute.xlu1 %1240 }
 0x149   : > { %v1239_v31 = vpop.permute.xlu0 %1238  ;;  %v1469_v5 = vsel %vm1436_vm7, %v1467_v55, %v1468_v54  ;;  %v1387_v7 = vsel %vm1339_vm6, %v1318_v63, %v1241_v2  ;;  %v774_v54 = vld [vmem:[#allocation2 + $0x130] sm:$0x8]  ;;  %v14225_v55 = vld [vmem:[#allocation2 + $0x134] sm:$0xf] }
 0x14a   : > { %v1385_v8 = vsel %vm1339_vm6, %v1316_v62, %v1239_v31  ;;  %13059 = vmatprep.mubr.msk.bf16.mxu0 %vm2247_vm8, %v1469_v5  ;;  %v1471_v0 = vrot.slane %v1387_v7, 3  ;;  %3201 = vrot.lane.b32.xlu1 %v3139_v15, %s14409_s20  ;;  %v11786_v15 = vcombine.low %v774_v54, %v14225_v55  ;;  %v13841_v55 = vld [vmem:[#allocation2 + $0x84] ss:$0 sps:$4 sm:$0x77]  }
 0x14b   : > { %v1470_v11 = vrot.slane %v1385_v8, 3  ;;  %3199 = vrot.lane.b32.xlu0 %v3137_v41, %s14409_s20 }
 0x14c   : > { %v1044_v26 = vpop.permute.xlu1 %1043 }
 0x14d   : > { %v1042_v18 = vpop.permute.xlu0 %1041  ;;  %v1472_v21 = vsel %vm1436_vm7, %v1470_v11, %v1471_v0  ;;  %v1326_v38 = vsel %vm1258_vm5, %v11782_v23, %v1044_v26  ;;  %v1328_v39 = vsel %vm1258_vm5, %v13830_v6, %v1044_v26  ;;  %v13837_v6 = vld [vmem:[#allocation2 + $0x5c] ss:$0 sps:$4 sm:$0x77]  }
 0x14e   : > { %13060 = vmatmul.mubr.msk.bf16.gmra.mrb[20].mxu0 %vm2247_vm8, %v1472_v21  ;;  %3205 = vrot.lane.b32.xlu1 %v3142_v12, %s14409_s20  ;;  %v1321_v25 = vsel %vm1258_vm5, %v11780_v14, %v1042_v18  ;;  %v1323_v28 = vsel %vm1258_vm5, %v13831_v17, %v1042_v18  ;;  %v2679_v14 = vld [vmem:[#allocation2 + $0x54] sm:$0x8] }
 0x14f   : > { %3203 = vrot.lane.b32.xlu0 %v3140_v58, %s14409_s20  ;;  %v13834_v58 = vld [vmem:[#allocation2 + $0x138] ss:$0 sps:$4 sm:$0x77]   ;;  %v11952_v22 = vcombine.low %v2679_v14, %v14226_v34  ;;  %v2691_v14 = vld [vmem:[#allocation2 + $0xa4] sm:$0x8] }
 0x150   : > { %v1245_v30 = vpop.permute.xlu1 %1244 }
 0x151   : > { %v1243_v32 = vpop.permute.xlu0 %1242  ;;  %v1391_v1 = vsel %vm1339_vm6, %v1323_v28, %v1245_v30  ;;  %v2682_v30 = vld [vmem:[#allocation2 + $0x68] sm:$0x8] }
 0x152   : > { %v1389_v33 = vsel %vm1339_vm6, %v1321_v25, %v1243_v32  ;;  %v1474_v36 = vrot.slane %v1391_v1, 3  ;;  %v14227_v32 = vld [vmem:[#allocation2 + $0x6c] sm:$0xf] }
 0x153   : > { %v1473_v37 = vrot.slane %v1389_v33, 3  ;;  %v11954_v1 = vcombine.low %v2682_v30, %v14227_v32  ;;  %v13836_v33 = vld [vmem:[#allocation2 + $0x70] ss:$0 sps:$4 sm:$0x77]  }
 0x154   : > { %v1249_v40 = vpop.permute.xlu1 %1248 }
 0x155   : > { %v1247_v41 = vpop.permute.xlu0 %1246  ;;  %v1475_v42 = vsel %vm1436_vm7, %v1473_v37, %v1474_v36  ;;  %v1395_v45 = vsel %vm1339_vm6, %v1328_v39, %v1249_v40 }
 0x156   : > { %v1393_v57 = vsel %vm1339_vm6, %v1326_v38, %v1247_v41  ;;  %13063 = vmatprep.mubr.msk.bf16.mxu0 %vm2247_vm8, %v1475_v42  ;;  %v1477_v47 = vrot.slane %v1395_v45, 3  ;;  %v2685_v45 = vld [vmem:[#allocation2 + $0x7c] sm:$0x8] }
 0x157   : > { %v1476_v48 = vrot.slane %v1393_v57, 3  ;;  %v11956_v54 = vcombine.low %v2685_v45, %v14939_v61 }
 0x158   : > { %v1048_v46 = vpop.permute.xlu1 %1047 }
 0x159   : > { %v1046_v52 = vpop.permute.xlu0 %1045  ;;  %v1478_v53 = vsel %vm1436_vm7, %v1476_v48, %v1477_v47  ;;  %v1336_v8 = vsel %vm1258_vm5, %v11786_v15, %v1048_v46  ;;  %v1338_v0 = vsel %vm1258_vm5, %v13834_v58, %v1048_v46  ;;  %v2688_v15 = vld [vmem:[#allocation2 + $0x90] sm:$0x8] }
 0x15a   : > { %13064 = vmatmul.mubr.msk.bf16.gmra.mrb[24].mxu0 %vm2247_vm8, %v1478_v53  ;;  %v1331_v59 = vsel %vm1258_vm5, %v11784_v50, %v1046_v52  ;;  %v1333_v62 = vsel %vm1258_vm5, %v13835_v51, %v1046_v52 }
 0x15c   : > { %v1253_v63 = vpop.permute.xlu1 %1252 }
 0x15d   : > { %v1251_v2 = vpop.permute.xlu0 %1250  ;;  %v1399_v31 = vsel %vm1339_vm6, %v1333_v62, %v1253_v63  ;;  %v11958_v63 = vcombine.low %v2688_v15, %v14936_v56 }
 0x15e   : > { %v1397_v5 = vsel %vm1339_vm6, %v1331_v59, %v1251_v2  ;;  %v1480_v27 = vrot.slane %v1399_v31, 3  ;;  %v13839_v2 = vld [vmem:[#allocation2 + $0x98] ss:$0 sps:$4 sm:$0x77]  }
 0x15f   : > { %v1479_v7 = vrot.slane %v1397_v5, 3 }
 0x160   : > { %v1257_v11 = vpop.permute.xlu1 %1256 }
 0x161   : > { %v1255_v12 = vpop.permute.xlu0 %1254  ;;  %v1481_v13 = vsel %vm1436_vm7, %v1479_v7, %v1480_v27  ;;  %v1403_v26 = vsel %vm1339_vm6, %v1338_v0, %v1257_v11 }
 0x162   : > { %v1401_v17 = vsel %vm1339_vm6, %v1336_v8, %v1255_v12  ;;  %13067 = vmatprep.mubr.msk.bf16.mxu0 %vm2247_vm8, %v1481_v13  ;;  %v1483_v18 = vrot.slane %v1403_v26, 3 }
 0x163   : > { %v1482_v21 = vrot.slane %v1401_v17, 3 }
 0x164   : > { %v2970_v23 = vpop.permute.xlu1 %2969 }
 0x165   : > { %v2968_v25 = vpop.permute.xlu0 %2967  ;;  %v1484_v28 = vsel %vm1436_vm7, %v1482_v21, %v1483_v18  ;;  %v3214_v57 = vsel %vm1258_vm5, %v11954_v1, %v2970_v23  ;;  %v3216_v47 = vsel %vm1258_vm5, %v13836_v33, %v2970_v23  ;;  %v11960_v23 = vcombine.low %v2691_v14, %v14965_v19  ;;  %v13843_v33 = vld [vmem:[#allocation2 + $0xc0] ss:$0 sps:$4 sm:$0x77]  }
 0x166   : > { %13068 = vmatmul.mubr.msk.bf16.gmra.mrb[28].mxu0 %vm2247_vm8, %v1484_v28  ;;  %v3209_v36 = vsel %vm1258_vm5, %v11952_v22, %v2968_v25  ;;  %v3211_v37 = vsel %vm1258_vm5, %v13837_v6, %v2968_v25  ;;  %v13845_v6 = vld [vmem:[#allocation2 + $0xac] ss:$0 sps:$4 sm:$0x77]   ;;  %v2694_v25 = vld [vmem:[#allocation2 + $0xb8] sm:$0x8] }
 0x167   : > { %v11962_v1 = vcombine.low %v2694_v25, %v14962_v43 }
 0x168   : > { %v3146_v38 = vpop.permute.xlu1 %3145 }
 0x169   : > { %v3144_v39 = vpop.permute.xlu0 %3143  ;;  %v3290_v40 = vsel %vm1339_vm6, %v3211_v37, %v3146_v38 }
 0x16a   : > { %v3288_v41 = vsel %vm1339_vm6, %v3209_v36, %v3144_v39  ;;  %v3384_v42 = vrot.slane %v3290_v40, 3 }
 0x16b   : > { %v3383_v44 = vrot.slane %v3288_v41, 3 }
 0x16c   : > { %v3150_v48 = vpop.permute.xlu1 %3149 }
 0x16d   : > { %v3148_v49 = vpop.permute.xlu0 %3147  ;;  %v3385_v50 = vsel %vm1436_vm7, %v3383_v44, %v3384_v42  ;;  %v3294_v46 = vsel %vm1339_vm6, %v3216_v47, %v3150_v48 }
 0x16e   : > { %v3292_v51 = vsel %vm1339_vm6, %v3214_v57, %v3148_v49  ;;  %13073 = vmatprep.mubr.msk.bf16.mxu0 %vm2247_vm8, %v3385_v50  ;;  %v3387_v52 = vrot.slane %v3294_v46, 3  ;;  %v2697_v57 = vld [vmem:[#allocation2 + $0xcc] sm:$0x8] }
 0x16f   : > { %v3386_v53 = vrot.slane %v3292_v51, 3 }
 0x170   : > { %v2974_v59 = vpop.permute.xlu1 %2973 }
 0x171   : > { %v3388_v58 = vsel %vm1436_vm7, %v3386_v53, %v3387_v52  ;;  %v2972_v62 = vpop.permute.xlu0 %2971  ;;  %v3224_v0 = vsel %vm1258_vm5, %v11958_v63, %v2974_v59  ;;  %v3226_v11 = vsel %vm1258_vm5, %v13839_v2, %v2974_v59  ;;  %v11964_v52 = vcombine.low %v2697_v57, %v14991_v35  ;;  %v13849_v53 = vld [vmem:[#allocation2 + $0xd4] ss:$0 sps:$4 sm:$0x77]  }
 0x172   : > { %13074 = vmatmul.mubr.msk.bf16.vlgmr.msra.gmra.mrb[0].mxu0 %vm2247_vm8, %v3388_v58  ;;  %v3219_v31 = vsel %vm1258_vm5, %v11956_v54, %v2972_v62  ;;  %v3221_v5 = vsel %vm1258_vm5, %v13841_v55, %v2972_v62  ;;  %v2700_v54 = vld [vmem:[#allocation2 + $0xe0] sm:$0x8]  ;;  %v13847_v62 = vld [vmem:[#allocation2 + $0xe8] ss:$0 sps:$4 sm:$0x77]  }
 0x173   : > { %v11966_v59 = vcombine.low %v2700_v54, %v14988_v29 }
 0x174   : > { %v3154_v27 = vpop.permute.xlu1 %3153 }
 0x175   : > { %v3152_v7 = vpop.permute.xlu0 %3151  ;;  %v3298_v8 = vsel %vm1339_vm6, %v3221_v5, %v3154_v27 }
 0x176   : > { %v3296_v61 = vsel %vm1339_vm6, %v3219_v31, %v3152_v7  ;;  %v3390_v12 = vrot.slane %v3298_v8, 3 }
 0x177   : > { %v3389_v13 = vrot.slane %v3296_v61, 3 }
 0x178   : > { %v3158_v26 = vpop.permute.xlu1 %3157 }
 0x179   : > { %v3156_v56 = vpop.permute.xlu0 %3155  ;;  %v3391_v17 = vsel %vm1436_vm7, %v3389_v13, %v3390_v12  ;;  %v3302_v18 = vsel %vm1339_vm6, %v3226_v11, %v3158_v26  ;;  %v2703_v11 = vld [vmem:[#allocation2 + $0xf4] sm:$0x8] }
 0x17a   : > { %v3300_v21 = vsel %vm1339_vm6, %v3224_v0, %v3156_v56  ;;  %13077 = vmatprep.mubr.msk.bf16.mxu0 %vm2247_vm8, %v3391_v17  ;;  %v3393_v34 = vrot.slane %v3302_v18, 3  ;;  %v11968_v18 = vcombine.low %v2703_v11, %v15021_v24 }
 0x17b   : > { %v3392_v22 = vrot.slane %v3300_v21, 3  ;;  %v13853_v21 = vld [vmem:[#allocation2 + $0xfc] ss:$0 sps:$4 sm:$0x77]  }
 0x17c   : > { %v2978_v28 = vpop.permute.xlu1 %2977 }
 0x17d   : > { %v2976_v30 = vpop.permute.xlu0 %2975  ;;  %v3394_v32 = vsel %vm1436_vm7, %v3392_v22, %v3393_v34  ;;  %v3234_v41 = vsel %vm1258_vm5, %v11962_v1, %v2978_v28  ;;  %v3236_v42 = vsel %vm1258_vm5, %v13843_v33, %v2978_v28  ;;  %v2706_v34 = vld [vmem:[#allocation2 + $0x108] sm:$0x8]  ;;  %v13851_v28 = vld [vmem:[#allocation2 + $0x110] ss:$0 sps:$4 sm:$0x77]  }
 0x17e   : > { %13078 = vmatmul.mubr.msk.bf16.gmra.mrb[4].mxu0 %vm2247_vm8, %v3394_v32  ;;  %v3229_v36 = vsel %vm1258_vm5, %v11960_v23, %v2976_v30  ;;  %v3231_v37 = vsel %vm1258_vm5, %v13845_v6, %v2976_v30  ;;  %v11970_v25 = vcombine.low %v2706_v34, %v15018_v20 }
 0x180   : > { %v3162_v38 = vpop.permute.xlu1 %3161 }
 0x181   : > { %v3160_v39 = vpop.permute.xlu0 %3159  ;;  %v3306_v40 = vsel %vm1339_vm6, %v3231_v37, %v3162_v38 }
 0x182   : > { %v3304_v19 = vsel %vm1339_vm6, %v3229_v36, %v3160_v39  ;;  %v3396_v44 = vrot.slane %v3306_v40, 3 }
 0x183   : > { %v3395_v45 = vrot.slane %v3304_v19, 3  ;;  %v2709_v19 = vld [vmem:[#allocation2 + $0x11c] sm:$0x8] }
 0x184   : > { %v3166_v47 = vpop.permute.xlu1 %3165 }
 0x185   : > { %v3164_v43 = vpop.permute.xlu0 %3163  ;;  %v3397_v48 = vsel %vm1436_vm7, %v3395_v45, %v3396_v44  ;;  %v3310_v49 = vsel %vm1339_vm6, %v3236_v42, %v3166_v47 }
 0x186   : > { %v3308_v50 = vsel %vm1339_vm6, %v3234_v41, %v3164_v43  ;;  %13081 = vmatprep.mubr.msk.bf16.mxu0 %vm2247_vm8, %v3397_v48  ;;  %v3399_v46 = vrot.slane %v3310_v49, 3  ;;  %v11972_v43 = vcombine.low %v2709_v19, %v15047_v16  ;;  %v13857_v48 = vld [vmem:[#allocation2 + $0x124] ss:$0 sps:$4 sm:$0x77]   ;;  %v2712_v49 = vld [vmem:[#allocation2 + $0x130] sm:$0x8] }
 0x187   : > { %v3398_v51 = vrot.slane %v3308_v50, 3  ;;  %v2724_v19 = vld [vmem:[#allocation2 + $0x180] sm:$0x8] }
 0x188   : > { %v2982_v55 = vpop.permute.xlu1 %2981 }
 0x189   : > { %v2980_v15 = vpop.permute.xlu0 %2979  ;;  %v3400_v58 = vsel %vm1436_vm7, %v3398_v51, %v3399_v46  ;;  %v3244_v7 = vsel %vm1258_vm5, %v11966_v59, %v2982_v55  ;;  %v3246_v8 = vsel %vm1258_vm5, %v13847_v62, %v2982_v55 }
 0x18a   : > { %13082 = vmatmul.mubr.msk.bf16.gmra.mrb[8].mxu0 %vm2247_vm8, %v3400_v58  ;;  %v3239_v63 = vsel %vm1258_vm5, %v11964_v52, %v2980_v15  ;;  %v3241_v2 = vsel %vm1258_vm5, %v13849_v53, %v2980_v15  ;;  %v11974_v52 = vcombine.low %v2712_v49, %v15044_v10  ;;  %v13855_v53 = vld [vmem:[#allocation2 + $0x138] ss:$0 sps:$4 sm:$0x77]  }
 0x18c   : > { %v3170_v31 = vpop.permute.xlu1 %3169 }
 0x18d   : > { %v3168_v5 = vpop.permute.xlu0 %3167  ;;  %v3314_v27 = vsel %vm1339_vm6, %v3241_v2, %v3170_v31 }
 0x18e   : > { %v3312_v35 = vsel %vm1339_vm6, %v3239_v63, %v3168_v5  ;;  %v3402_v61 = vrot.slane %v3314_v27, 3  ;;  %v2715_v5 = vld [vmem:[#allocation2 + $0x144] sm:$0x8] }
 0x18f   : > { %v3401_v0 = vrot.slane %v3312_v35, 3  ;;  %v11976_v11 = vcombine.low %v2715_v5, %v15073_v9 }
 0x190   : > { %v3174_v12 = vpop.permute.xlu1 %3173 }
 0x191   : > { %v3172_v29 = vpop.permute.xlu0 %3171  ;;  %v3403_v13 = vsel %vm1436_vm7, %v3401_v0, %v3402_v61  ;;  %v3318_v14 = vsel %vm1339_vm6, %v3246_v8, %v3174_v12  ;;  %v13861_v12 = vld [vmem:[#allocation2 + $0x14c] ss:$0 sps:$4 sm:$0x77]  }
 0x192   : > { %v3316_v26 = vsel %vm1339_vm6, %v3244_v7, %v3172_v29  ;;  %13085 = vmatprep.mubr.msk.bf16.mxu0 %vm2247_vm8, %v3403_v13  ;;  %v3405_v56 = vrot.slane %v3318_v14, 3  ;;  %v2718_v29 = vld [vmem:[#allocation2 + $0x158] sm:$0x8] }
 0x193   : > { %v3404_v17 = vrot.slane %v3316_v26, 3 }
 0x194   : > { %v2986_v22 = vpop.permute.xlu1 %2985 }
 0x195   : > { %v2984_v23 = vpop.permute.xlu0 %2983  ;;  %v3406_v6 = vsel %vm1436_vm7, %v3404_v17, %v3405_v56  ;;  %v3254_v37 = vsel %vm1258_vm5, %v11970_v25, %v2986_v22  ;;  %v3256_v38 = vsel %vm1258_vm5, %v13851_v28, %v2986_v22  ;;  %v11978_v56 = vcombine.low %v2718_v29, %v15070_v3  ;;  %v13859_v17 = vld [vmem:[#allocation2 + $0x160] ss:$0 sps:$4 sm:$0x77]  }
 0x196   : > { %13086 = vmatmul.mubr.msk.bf16.gmra.mrb[12].mxu0 %vm2247_vm8, %v3406_v6  ;;  %v3249_v30 = vsel %vm1258_vm5, %v11968_v18, %v2984_v23  ;;  %v3251_v32 = vsel %vm1258_vm5, %v13853_v21, %v2984_v23 }
 0x198   : > { %v3178_v1 = vpop.permute.xlu1 %3177 }
 0x199   : > { %v3176_v33 = vpop.permute.xlu0 %3175  ;;  %v3322_v36 = vsel %vm1339_vm6, %v3251_v32, %v3178_v1  ;;  %v2721_v32 = vld [vmem:[#allocation2 + $0x16c] sm:$0x8] }
 0x19a   : > { %v3320_v24 = vsel %vm1339_vm6, %v3249_v30, %v3176_v33  ;;  %v3408_v39 = vrot.slane %v3322_v36, 3 }
 0x19b   : > { %v3407_v40 = vrot.slane %v3320_v24, 3 }
 0x19c   : > { %v3182_v41 = vpop.permute.xlu1 %3181 }
 0x19d   : > { %v3180_v20 = vpop.permute.xlu0 %3179  ;;  %v3409_v42 = vsel %vm1436_vm7, %v3407_v40, %v3408_v39  ;;  %v3326_v44 = vsel %vm1339_vm6, %v3256_v38, %v3182_v41  ;;  %v11980_v39 = vcombine.low %v2721_v32, %v15101_v4  ;;  %v13865_v40 = vld [vmem:[#allocation2 + $0x174] ss:$0 sps:$4 sm:$0x77]   ;;  %v510_v32 = vld [vmem:[#allocation3 + $0xb0] sm:$0x1] }
 0x19e   : > { %v3324_v45 = vsel %vm1339_vm6, %v3254_v37, %v3180_v20  ;;  %13089 = vmatprep.mubr.msk.bf16.mxu0 %vm2247_vm8, %v3409_v42  ;;  %v3411_v57 = vrot.slane %v3326_v44, 3  ;;  %v11982_v44 = vcombine.low %v2724_v19, %v15096_v60  ;;  %v450_v19 = vld [vmem:[#allocation3 + $0x54] sm:$0x8] }
 0x19f   : > { %v3410_v47 = vrot.slane %v3324_v45, 3  ;;  %v13863_v45 = vld [vmem:[#allocation2 + $0x188] ss:$0 sps:$4 sm:$0x77]  }
 0x1a0   : > { %v2990_v50 = vpop.permute.xlu1 %2989 }
 0x1a1   : > { %v2988_v46 = vpop.permute.xlu0 %2987  ;;  %v3412_v51 = vsel %vm1436_vm7, %v3410_v47, %v3411_v57  ;;  %v3264_v62 = vsel %vm1258_vm5, %v11974_v52, %v2990_v50  ;;  %v3266_v63 = vsel %vm1258_vm5, %v13855_v53, %v2990_v50 }
 0x1a2   : > { %13090 = vmatmul.mubr.msk.bf16.gmra.mrb[16].mxu0 %vm2247_vm8, %v3412_v51  ;;  %v3259_v54 = vsel %vm1258_vm5, %v11972_v43, %v2988_v46  ;;  %v3261_v55 = vsel %vm1258_vm5, %v13857_v48, %v2988_v46 }
 0x1a4   : > { %v3186_v15 = vpop.permute.xlu1 %3185 }
 0x1a5   : > { %v3184_v58 = vpop.permute.xlu0 %3183  ;;  %v3330_v59 = vsel %vm1339_vm6, %v3261_v55, %v3186_v15 }
 0x1a6   : > { %v3328_v16 = vsel %vm1339_vm6, %v3259_v54, %v3184_v58  ;;  %v3414_v2 = vrot.slane %v3330_v59, 3 }
 0x1a7   : > { %v3413_v31 = vrot.slane %v3328_v16, 3 }
 0x1a8   : > { %v3190_v27 = vpop.permute.xlu1 %3189 }
 0x1a9   : > { %v3188_v10 = vpop.permute.xlu0 %3187  ;;  %v3415_v35 = vsel %vm1436_vm7, %v3413_v31, %v3414_v2  ;;  %v3334_v7 = vsel %vm1339_vm6, %v3266_v63, %v3190_v27  ;;  %v426_v63 = vld [vmem:[#allocation3 + $0x10] sm:$0x1]  ;;  %v3883_v2 = vld [vmem:[#allocation3 + $0x8] sm:$0xf]  ;;  %v3884_v31 = vld [vmem:[#allocation3 + $0xc] sm:$0xf] }
 0x1aa   : > { %v3332_v8 = vsel %vm1339_vm6, %v3264_v62, %v3188_v10  ;;  %13093 = vmatprep.mubr.msk.bf16.mxu0 %vm2247_vm8, %v3415_v35  ;;  %v3417_v61 = vrot.slane %v3334_v7, 3  ;;  %v427_v5 = vsel %vm15286_vm12, 0, %v426_v63  ;;  %v12116_v27 = vcombine.low %v3883_v2, %v3884_v31 }
 0x1ab   : > { %v3416_v0 = vrot.slane %v3332_v8, 3  ;;  %428 = vst [vmem:[#allocation3 + $0x10] sm:$0x1] %v427_v5 }
 0x1ac   : > { %v2994_v13 = vpop.permute.xlu1 %2993  ;;  %v4091_v10 = vshrl.u32 %v12116_v27, 16  ;;  %v4094_v35 = vshll.u32 %v12116_v27, 16 }
 0x1ad   : > { %v2992_v14 = vpop.permute.xlu0 %2991  ;;  %v3418_v26 = vsel %vm1436_vm7, %v3416_v0, %v3417_v61  ;;  %v3274_v6 = vsel %vm1258_vm5, %v11978_v56, %v2994_v13  ;;  %v3276_v25 = vsel %vm1258_vm5, %v13859_v17, %v2994_v13  ;;  %v492_v61 = vld [vmem:[#allocation3 + $0x38] sm:$0x1] }
 0x1ae   : > { %13094 = vmatmul.mubr.msk.bf16.gmra.mrb[20].mxu0 %vm2247_vm8, %v3418_v26  ;;  %v3269_v18 = vsel %vm1258_vm5, %v11976_v11, %v2992_v14  ;;  %v3271_v21 = vsel %vm1258_vm5, %v13861_v12, %v2992_v14  ;;  %v4093_v7 = vrot.slane %v4091_v10, 4  ;;  %v4096_v8 = vrot.slane %v4094_v35, 5  ;;  %v489_v11 = vld [vmem:[#allocation3 + $0x24] sm:$0x1] }
 0x1af   : > { %v493_v0 = vsel %vm15286_vm12, 0, %v492_v61  ;;  %v490_v29 = vsel %vm15286_vm12, 0, %v489_v11  ;;  %v4299_v14 = vrot.slane %v12116_v27, 5 }
 0x1b0   : > { %v3194_v34 = vpop.permute.xlu1 %3193  ;;  %v4097_v12 = vor.u32 %v4096_v8, %v4093_v7  ;;  %494 = vst [vmem:[#allocation3 + $0x38] sm:$0x1] %v493_v0  ;;  %491 = vst [vmem:[#allocation3 + $0x24] sm:$0x1] %v490_v29 }
 0x1b1   : > { %v3192_v22 = vpop.permute.xlu0 %3191  ;;  %v3338_v23 = vsel %vm1339_vm6, %v3271_v21, %v3194_v34  ;;  %4347 = vrot.lane.b32.xlu1 %v4299_v14, %s14412_s11  ;;  %v498_v34 = vld [vmem:[#allocation3 + $0x60] sm:$0x1] }
 0x1b2   : > { %v3336_v9 = vsel %vm1339_vm6, %v3269_v18, %v3192_v22  ;;  %v3420_v28 = vrot.slane %v3338_v23, 3  ;;  %v13867_v13 = vld [vmem:[#allocation3 + $0x10] ss:$0 sps:$4 sm:$0x11]   ;;  %4218 = vrot.lane.b32.xlu0 %v4097_v12, %s14411_s30  ;;  %v444_v18 = vld [vmem:[#allocation3 + $0x2c] sm:$0x8] }
 0x1b3   : > { %v3419_v30 = vrot.slane %v3336_v9, 3  ;;  %v4300_v26 = vrot.slane %v13867_v13, 5  ;;  %v445_v21 = vsel %vm15300_vm0, 0, %v444_v18  ;;  %v499_v22 = vsel %vm15286_vm12, 0, %v498_v34  ;;  %v495_v23 = vld [vmem:[#allocation3 + $0x4c] sm:$0x1] }
 0x1b4   : > { %v3198_v1 = vpop.permute.xlu1 %3197  ;;  %446 = vst [vmem:[#allocation3 + $0x2c] sm:$0x8] %v445_v21  ;;  %500 = vst [vmem:[#allocation3 + $0x60] sm:$0x1] %v499_v22  ;;  %v496_v9 = vsel %vm15286_vm12, 0, %v495_v23 }
 0x1b5   : > { %v3196_v3 = vpop.permute.xlu0 %3195  ;;  %v3421_v33 = vsel %vm1436_vm7, %v3419_v30, %v3420_v28  ;;  %v3342_v36 = vsel %vm1339_vm6, %v3276_v25, %v3198_v1  ;;  %v4301_v56 = vsel %vm4298_vm13, %v4299_v14, %v4300_v26  ;;  %497 = vst [vmem:[#allocation3 + $0x4c] sm:$0x1] %v496_v9  ;;  %v501_v28 = vld [vmem:[#allocation3 + $0x74] sm:$0x1]  ;;  %v507_v1 = vld [vmem:[#allocation3 + $0x9c] sm:$0x1] }
 0x1b6   : > { %v3340_v24 = vsel %vm1339_vm6, %v3274_v6, %v3196_v3  ;;  %13097 = vmatprep.mubr.msk.bf16.mxu0 %vm2247_vm8, %v3421_v33  ;;  %v3423_v37 = vrot.slane %v3342_v36, 3  ;;  %4349 = vrot.lane.b32.xlu0 %v4301_v56, %s14412_s11  ;;  %v504_v6 = vld [vmem:[#allocation3 + $0x88] sm:$0x1]  ;;  %v502_v30 = vsel %vm15286_vm12, 0, %v501_v28  ;;  %v511_v3 = vsel %vm15286_vm12, 0, %v510_v32 }
 0x1b7   : > { %v3422_v38 = vrot.slane %v3340_v24, 3  ;;  %v505_v25 = vsel %vm15286_vm12, 0, %v504_v6  ;;  %503 = vst [vmem:[#allocation3 + $0x74] sm:$0x1] %v502_v30  ;;  %v508_v33 = vsel %vm15286_vm12, 0, %v507_v1 }
 0x1b8   : > { %v2998_v41 = vpop.permute.xlu1 %2997  ;;  %506 = vst [vmem:[#allocation3 + $0x88] sm:$0x1] %v505_v25  ;;  %512 = vst [vmem:[#allocation3 + $0xb0] sm:$0x1] %v511_v3  ;;  %v441_v36 = vld [vmem:[#allocation3 + $0x18] sm:$0x8] }
 0x1b9   : > { %v2996_v20 = vpop.permute.xlu0 %2995  ;;  %v3424_v42 = vsel %vm1436_vm7, %v3422_v38, %v3423_v37  ;;  %v3284_v50 = vsel %vm1258_vm5, %v11982_v44, %v2998_v41  ;;  %v3286_v46 = vsel %vm1258_vm5, %v13863_v45, %v2998_v41  ;;  %509 = vst [vmem:[#allocation3 + $0x9c] sm:$0x1] %v508_v33  ;;  %v442_v24 = vsel %vm15300_vm0, 0, %v441_v36  ;;  %v516_v37 = vld [vmem:[#allocation3 + $0xd8] sm:$0x1]  ;;  %v13912_v25 = vld [vmem:[%s19449_s3 + $0x30] sm:$0xff]  }
 0x1ba   : > { %13098 = vmatmul.mubr.msk.bf16.gmra.mrb[24].mxu0 %vm2247_vm8, %v3424_v42  ;;  %v3279_v57 = vsel %vm1258_vm5, %v11980_v39, %v2996_v20  ;;  %v3281_v47 = vsel %vm1258_vm5, %v13865_v40, %v2996_v20  ;;  %443 = vst [vmem:[#allocation3 + $0x18] sm:$0x8] %v442_v24  ;;  %v513_v38 = vld [vmem:[#allocation3 + $0xc4] sm:$0x1]  ;;  %v517_v39 = vsel %vm15286_vm12, 0, %v516_v37  ;;  %v451_v41 = vsel %vm15300_vm0, 0, %v450_v19  ;;  %13105 = vmatprep.subr.bf16.mxu0 %v13912_v25 }
 0x1bb   : > { %v514_v40 = vsel %vm15286_vm12, 0, %v513_v38  ;;  %518 = vst [vmem:[#allocation3 + $0xd8] sm:$0x1] %v517_v39  ;;  %452 = vst [vmem:[#allocation3 + $0x54] sm:$0x8] %v451_v41  ;;  %13106 = vmatpush3.bf16.msra.mxu0 %v13912_v25 }
 0x1bc   : > { %v3202_v43 = vpop.permute.xlu1 %3201  ;;  %515 = vst [vmem:[#allocation3 + $0xc4] sm:$0x1] %v514_v40  ;;  %v447_v20 = vld [vmem:[#allocation3 + $0x40] sm:$0x8]  ;;  %v456_v44 = vld [vmem:[#allocation3 + $0x7c] sm:$0x8] }
 0x1bd   : > { %v3200_v48 = vpop.permute.xlu0 %3199  ;;  %v3346_v49 = vsel %vm1339_vm6, %v3281_v47, %v3202_v43  ;;  %v448_v42 = vsel %vm15300_vm0, 0, %v447_v20  ;;  %v457_v45 = vsel %vm15300_vm0, 0, %v456_v44  ;;  %v462_v43 = vld [vmem:[#allocation3 + $0xa4] sm:$0x8]  ;;  %v13915_v40 = vld [vmem:[%s19449_s3 + $0x38] sm:$0xff]  }
 0x1be   : > { %v3344_v4 = vsel %vm1339_vm6, %v3279_v57, %v3200_v48  ;;  %v3426_v51 = vrot.slane %v3346_v49, 3  ;;  %449 = vst [vmem:[#allocation3 + $0x40] sm:$0x8] %v448_v42  ;;  %v453_v57 = vld [vmem:[#allocation3 + $0x68] sm:$0x8]  ;;  %v463_v48 = vsel %vm15300_vm0, 0, %v462_v43  ;;  %13107 = vmatprep.subr.bf16.mxu0 %v13915_v40 }
 0x1bf   : > { %v3425_v52 = vrot.slane %v3344_v4, 3  ;;  %458 = vst [vmem:[#allocation3 + $0x7c] sm:$0x8] %v457_v45  ;;  %v454_v47 = vsel %vm15300_vm0, 0, %v453_v57  ;;  %v459_v49 = vld [vmem:[#allocation3 + $0x90] sm:$0x8]  ;;  %13108 = vmatpush3.bf16.msra.mxu0 %v13915_v40 }
 0x1c0   : > { %v3206_v53 = vpop.permute.xlu1 %3205  ;;  %455 = vst [vmem:[#allocation3 + $0x68] sm:$0x8] %v454_v47  ;;  %464 = vst [vmem:[#allocation3 + $0xa4] sm:$0x8] %v463_v48  ;;  %v460_v4 = vsel %vm15300_vm0, 0, %v459_v49  ;;  %v13918_v43 = vld [vmem:[%s19449_s3 + $0x40] sm:$0xff]  }
 0x1c1   : > { %v3204_v54 = vpop.permute.xlu0 %3203  ;;  %v3427_v60 = vsel %vm1436_vm7, %v3425_v52, %v3426_v51  ;;  %v3350_v55 = vsel %vm1339_vm6, %v3286_v46, %v3206_v53  ;;  %461 = vst [vmem:[#allocation3 + $0x90] sm:$0x8] %v460_v4  ;;  %v522_v46 = vld [vmem:[#allocation3 + $0x100] sm:$0x1]  ;;  %v465_v52 = vld [vmem:[#allocation3 + $0xb8] sm:$0x8]  ;;  %13109 = vmatprep.subr.bf16.mxu0 %v13918_v43 }
 0x1c2   : > { %v3348_v15 = vsel %vm1339_vm6, %v3284_v50, %v3204_v54  ;;  %13101 = vmatprep.mubr.msk.bf16.mxu0 %vm2247_vm8, %v3427_v60  ;;  %v3429_v58 = vrot.slane %v3350_v55, 3  ;;  %v468_v50 = vld [vmem:[#allocation3 + $0xcc] sm:$0x8]  ;;  %v523_v53 = vsel %vm15286_vm12, 0, %v522_v46  ;;  %v519_v54 = vld [vmem:[#allocation3 + $0xec] sm:$0x1] }
 0x1c3   : > { %v3428_v59 = vrot.slane %v3348_v15, 3  ;;  %v469_v51 = vsel %vm15300_vm0, 0, %v468_v50  ;;  %v466_v60 = vsel %vm15300_vm0, 0, %v465_v52  ;;  %v15345_v55 = vld [vmem:[%s19448_s2] ss:$0 sm:$0xff]  ;;  %v520_v15 = vsel %vm15286_vm12, 0, %v519_v54  ;;  %13110 = vmatpush3.bf16.msra.mxu0 %v13918_v43 }
 0x1c4   : > { %470 = vst [vmem:[#allocation3 + $0xcc] sm:$0x8] %v469_v51  ;;  %524 = vst [vmem:[#allocation3 + $0x100] sm:$0x1] %v523_v53  ;;  %v528_v4 = vld [vmem:[#allocation3 + $0x128] sm:$0x1] }
 0x1c5   : > { %v3430_v16 = vsel %vm1436_vm7, %v3428_v59, %v3429_v58  ;;  %467 = vst [vmem:[#allocation3 + $0xb8] sm:$0x8] %v466_v60  ;;  %521 = vst [vmem:[#allocation3 + $0xec] sm:$0x1] %v520_v15  ;;  %v15971_v62 = vld [vmem:[#allocation3 + $0x54] sm:$0x8] }
 0x1c6   : > { %13102 = vmatmul.mubr.msk.bf16.gmra.mrb[28].mxu0 %vm2247_vm8, %v3430_v16  ;;  %v13871_v0 = vld [vmem:[#allocation3 + $0x38] ss:$0 sps:$4 sm:$0x11]   ;;  %v13875_v44 = vld [vmem:[#allocation3 + $0x24] ss:$0 sps:$4 sm:$0x11]  }
 0x1c7   : > { %v5230_v37 = vrot.slane %v13871_v0, 5  ;;  %v13872_v38 = vld [vmem:[#allocation3 + $0x38] ss:$0 sps:$4 sm:$0x11]   ;;  %v5227_v53 = vrot.slane %v13875_v44, 5 }
 0x1c8   : > { %v13874_v41 = vld [vmem:[#allocation3 + $0x38] ss:$0 sps:$4 sm:$0x11]   ;;  %v6644_v57 = vrot.slane %v13872_v38, 5 }
 0x1c9   : > { %v13877_v49 = vld [vmem:[#allocation3 + $0x24] ss:$0 sps:$4 sm:$0x11]   ;;  %v4306_v52 = vrot.slane %v13874_v41, 5 }
 0x245   : > { %v13075_v58 = vpop.f32.mrb[0].mxu0 }
 0x246   : > { %v15350_v59 = vadd.f32 %v13075_v58, %v15345_v55  ;;  %v3524_v16 = vpop.f32.mrb[1].mxu0 }
 0x247   : > { %v15353_v63 = vadd.f32 %v15345_v55, %v3524_v16  ;;  %v13076_v2 = vpop.f32.mrb[2].mxu0 }
 0x248   : > { %19565 = vst [vmem:[#allocation4_spill] sm:$0xff] %v15350_v59  ;;  %v12740_v31 = vpack.c.bf16 %v15350_v59, %v15350_v59  ;;  %v15358_v5 = vadd.f32 %v13076_v2, %v15345_v55  ;;  %v3527_v27 = vpop.f32.mrb[3].mxu0 }
 0x249   : > { %19566 = vst [vmem:[#allocation5_spill] sm:$0xff] %v15353_v63  ;;  %v12738_v10 = vpack.c.bf16 %v15353_v63, %v15353_v63  ;;  %v15363_v35 = vadd.f32 %v15345_v55, %v3527_v27 }
 0x24a   : > { %19567 = vst [vmem:[#allocation6_spill] sm:$0xff] %v15358_v5  ;;  %3852 = vst.msk [vmem:[#allocation3 + $0x30] sm:$0xf] %vm418_vm9, %v12740_v31  ;;  %v12741_v7 = vpack.c.bf16 %v15358_v5, %v15358_v5 }
 0x24b   : > { %19568 = vst [vmem:[#allocation7_spill] sm:$0xff] %v15363_v35  ;;  %3850 = vst.msk [vmem:[#allocation3 + $0x1c] sm:$0xf] %vm418_vm9, %v12738_v10  ;;  %v12739_v8 = vpack.c.bf16 %v15363_v35, %v15363_v35 }
 0x24c   : > { %3853 = vst.msk [vmem:[#allocation3 + $0x34] sm:$0xf] %vm418_vm9, %v12741_v7 }
 0x24d   : > { %3851 = vst.msk [vmem:[#allocation3 + $0x20] sm:$0xf] %vm418_vm9, %v12739_v8  ;;  %v529_v8 = vsel %vm15286_vm12, 0, %v528_v4 }
 0x24e   : > { %530 = vst [vmem:[#allocation3 + $0x128] sm:$0x1] %v529_v8 }
 0x251   : > { %v13079_v61 = vpop.f32.mrb[4].mxu0  ;;  %v4814_v29 = vld [vmem:[#allocation3 + $0x30] sm:$0xf] }
 0x252   : > { %v15374_v11 = vadd.f32 %v13079_v61, %v15345_v55  ;;  %v3540_v12 = vpop.f32.mrb[5].mxu0  ;;  %v3889_v13 = vld [vmem:[#allocation3 + $0x30] sm:$0xf]  ;;  %v4811_v19 = vld [vmem:[#allocation3 + $0x1c] sm:$0xf] }
 0x253   : > { %v15377_v14 = vadd.f32 %v15345_v55, %v3540_v12  ;;  %v13080_v26 = vpop.f32.mrb[6].mxu0  ;;  %v4815_v56 = vld [vmem:[#allocation3 + $0x34] sm:$0xf]  ;;  %v6228_v32 = vld [vmem:[#allocation3 + $0x30] sm:$0xf] }
 0x254   : > { %19569 = vst [vmem:[#allocation8_spill] sm:$0xff] %v15374_v11  ;;  %v3890_v18 = vld [vmem:[#allocation3 + $0x34] sm:$0xf]  ;;  %v12744_v21 = vpack.c.bf16 %v15374_v11, %v15374_v11  ;;  %v15382_v34 = vadd.f32 %v13080_v26, %v15345_v55  ;;  %v3543_v22 = vpop.f32.mrb[7].mxu0  ;;  %v15384_v23 = vcombine.low %v4814_v29, %v4815_v56  ;;  %v4812_v39 = vld [vmem:[#allocation3 + $0x20] sm:$0xf] }
 0x255   : > { %19570 = vst [vmem:[#allocation9_spill] sm:$0xff] %v15377_v14  ;;  %v15386_v9 = vcombine.low %v3889_v13, %v3890_v18  ;;  %v6229_v6 = vld [vmem:[#allocation3 + $0x34] sm:$0xf]  ;;  %v12742_v28 = vpack.c.bf16 %v15377_v14, %v15377_v14  ;;  %v15394_v30 = vadd.f32 %v15345_v55, %v3543_v22  ;;  %v15414_v42 = vcombine.low %v4811_v19, %v4812_v39  ;;  %v3887_v47 = vld [vmem:[#allocation3 + $0x20] sm:$0xf] }
 0x256   : > { %19571 = vst [vmem:[#allocation10_spill] sm:$0xff] %v15382_v34  ;;  %3856 = vst.msk [vmem:[#allocation3 + $0x58] sm:$0xf] %vm418_vm9, %v12744_v21  ;;  %v12745_v1 = vpack.c.bf16 %v15382_v34, %v15382_v34  ;;  %v5229_v3 = vrot.slane %v15384_v23, 5  ;;  %v15401_v36 = vcombine.low %v6228_v32, %v6229_v6  ;;  %v3886_v54 = vld [vmem:[#allocation3 + $0x1c] sm:$0xf] }
 0x257   : > { %19572 = vst [vmem:[#allocation11_spill] sm:$0xff] %v15394_v30  ;;  %v4305_v33 = vrot.slane %v15386_v9, 5  ;;  %3854 = vst.msk [vmem:[#allocation3 + $0x44] sm:$0xf] %vm418_vm9, %v12742_v28  ;;  %v12743_v24 = vpack.c.bf16 %v15394_v30, %v15394_v30  ;;  %v5226_v51 = vrot.slane %v15414_v42, 5  ;;  %v15430_v16 = vcombine.low %v3886_v54, %v3887_v47 }
 0x258   : > { %3857 = vst.msk [vmem:[#allocation3 + $0x5c] sm:$0xf] %vm418_vm9, %v12745_v1  ;;  %5278 = vrot.lane.b32.xlu0 %v5229_v3, %s14412_s11  ;;  %v6643_v20 = vrot.slane %v15401_v36, 5  ;;  %v5231_v45 = vsel %vm4298_vm13, %v5229_v3, %v5230_v37  ;;  %v4107_v2 = vshrl.u32 %v15386_v9, 16  ;;  %v4110_v7 = vshll.u32 %v15386_v9, 16 }
 0x259   : > { %4355 = vrot.lane.b32.xlu1 %v4305_v33, %s14412_s11  ;;  %3855 = vst.msk [vmem:[#allocation3 + $0x48] sm:$0xf] %vm418_vm9, %v12743_v24  ;;  %v4303_v29 = vrot.slane %v13877_v49, 5  ;;  %v5027_v13 = vshrl.u32 %v15384_v23, 16  ;;  %v5030_v26 = vshll.u32 %v15384_v23, 16  ;;  %v4307_v18 = vsel %vm4298_vm13, %v4305_v33, %v4306_v52  ;;  %v13921_v33 = vld [vmem:[%s19449_s3 + $0x48] sm:$0xff]  }
 0x25a   : > { %v6645_v58 = vsel %vm4298_vm13, %v6643_v20, %v6644_v57  ;;  %v5228_v21 = vsel %vm4298_vm13, %v5226_v51, %v5227_v53  ;;  %v4302_v22 = vrot.slane %v15430_v16, 5  ;;  %v4109_v9 = vrot.slane %v4107_v2, 4  ;;  %13111 = vmatprep.subr.bf16.mxu0 %v13921_v33 }
 0x25b   : > { %v4112_v6 = vrot.slane %v4110_v7, 5  ;;  %v5019_v23 = vshrl.u32 %v15414_v42, 16  ;;  %v5022_v25 = vshll.u32 %v15414_v42, 16  ;;  %v6436_v28 = vshrl.u32 %v15401_v36, 16  ;;  %13112 = vmatpush3.bf16.msra.mxu0 %v13921_v33 }
 0x25c   : > { %6691 = vrot.lane.b32.xlu0 %v6643_v20, %s14412_s11  ;;  %v5029_v32 = vrot.slane %v5027_v13, 4  ;;  %v5032_v1 = vrot.slane %v5030_v26, 5  ;;  %v6439_v3 = vshll.u32 %v15401_v36, 16  ;;  %v4304_v24 = vsel %vm4298_vm13, %v4302_v22, %v4303_v29  ;;  %v13882_v13 = vld [vmem:[#allocation3 + $0x60] ss:$0 sps:$4 sm:$0x11]  }
 0x25d   : > { %5280 = vrot.lane.b32.xlu1 %v5231_v45, %s14412_s11  ;;  %v13083_v48 = vpop.f32.mrb[8].mxu0  ;;  %v4113_v37 = vor.u32 %v4112_v6, %v4109_v9  ;;  %v5021_v39 = vrot.slane %v5019_v23, 4  ;;  %v5024_v40 = vrot.slane %v5022_v25, 5  ;;  %v6438_v19 = vrot.slane %v6436_v28, 4  ;;  %v4820_v7 = vld [vmem:[#allocation3 + $0x58] sm:$0xf] }
 0x25e   : > { %v15423_v50 = vadd.f32 %v13083_v48, %v15345_v55  ;;  %v3556_v46 = vpop.f32.mrb[9].mxu0  ;;  %v4099_v41 = vshrl.u32 %v15430_v16, 16  ;;  %v5033_v42 = vor.u32 %v5032_v1, %v5029_v32  ;;  %v6441_v44 = vrot.slane %v6439_v3, 5  ;;  %v13922_v48 = vld [vmem:[%s19449_s3 + $0x50] sm:$0xff]  }
 0x25f   : > { %v15427_v60 = vadd.f32 %v15345_v55, %v3556_v46  ;;  %v13084_v15 = vpop.f32.mrb[10].mxu0  ;;  %v4102_v45 = vshll.u32 %v15430_v16, 16  ;;  %v3896_v43 = vld [vmem:[#allocation3 + $0x5c] sm:$0xf]  ;;  %v5025_v54 = vor.u32 %v5024_v40, %v5021_v39  ;;  %13113 = vmatprep.subr.bf16.mxu0 %v13922_v48  ;;  %v6650_v3 = vrot.slane %v13882_v13, 5 }
 0x260   : > { %19573 = vst [vmem:[#allocation12_spill] sm:$0xff] %v15423_v50  ;;  %v12748_v31 = vpack.c.bf16 %v15423_v50, %v15423_v50  ;;  %v15436_v27 = vadd.f32 %v13084_v15, %v15345_v55  ;;  %5274 = vrot.lane.b32.xlu0 %v5226_v51, %s14412_s11  ;;  %v3559_v10 = vpop.f32.mrb[11].mxu0  ;;  %v4821_v51 = vld [vmem:[#allocation3 + $0x5c] sm:$0xf]  ;;  %v4101_v15 = vrot.slane %v4099_v41, 4  ;;  %v6442_v2 = vor.u32 %v6441_v44, %v6438_v19 }
 0x261   : > { %19574 = vst [vmem:[#allocation13_spill] sm:$0xff] %v15427_v60  ;;  %6693 = vrot.lane.b32.xlu1 %v6645_v58, %s14412_s11  ;;  %v12746_v61 = vpack.c.bf16 %v15427_v60, %v15427_v60  ;;  %v15446_v0 = vadd.f32 %v15345_v55, %v3559_v10  ;;  %v3895_v58 = vld [vmem:[#allocation3 + $0x58] sm:$0xf]  ;;  %13114 = vmatpush3.bf16.msra.mxu0 %v13922_v48  ;;  %v6235_v29 = vld [vmem:[#allocation3 + $0x5c] sm:$0xf] }
 0x262   : > { %19575 = vst [vmem:[#allocation14_spill] sm:$0xff] %v15436_v27  ;;  %3860 = vst.msk [vmem:[#allocation3 + $0x80] sm:$0xf] %vm418_vm9, %v12748_v31  ;;  %v12749_v12 = vpack.c.bf16 %v15436_v27, %v15436_v27  ;;  %v4104_v31 = vrot.slane %v4102_v45, 5  ;;  %v15499_v10 = vcombine.low %v3895_v58, %v3896_v43  ;;  %v4818_v23 = vld [vmem:[#allocation3 + $0x48] sm:$0xf] }
 0x263   : > { %19576 = vst [vmem:[#allocation15_spill] sm:$0xff] %v15446_v0  ;;  %3858 = vst.msk [vmem:[#allocation3 + $0x6c] sm:$0xf] %vm418_vm9, %v12746_v61  ;;  %v12747_v56 = vpack.c.bf16 %v15446_v0, %v15446_v0  ;;  %v15504_v61 = vcombine.low %v4820_v7, %v4821_v51  ;;  %v13884_v28 = vld [vmem:[#allocation3 + $0x4c] ss:$0 sps:$4 sm:$0x11]  }
 0x264   : > { %3861 = vst.msk [vmem:[#allocation3 + $0x84] sm:$0xf] %vm418_vm9, %v12749_v12  ;;  %4357 = vrot.lane.b32.xlu0 %v4307_v18, %s14412_s11  ;;  %v13880_v12 = vld [vmem:[#allocation3 + $0x60] ss:$0 sps:$4 sm:$0x11]   ;;  %v4105_v26 = vor.u32 %v4104_v31, %v4101_v15  ;;  %v5233_v43 = vrot.slane %v13884_v28, 5 }
 0x265   : > { %5276 = vrot.lane.b32.xlu1 %v5228_v21, %s14412_s11  ;;  %3859 = vst.msk [vmem:[#allocation3 + $0x70] sm:$0xf] %vm418_vm9, %v12747_v56  ;;  %v4311_v56 = vrot.slane %v15499_v10, 5  ;;  %v6234_v18 = vld [vmem:[#allocation3 + $0x58] sm:$0xf]  ;;  %v13923_v21 = vld [vmem:[%s19449_s3 + $0x58] sm:$0xff]  }
 0x266   : > { %v5236_v9 = vrot.slane %v13880_v12, 5  ;;  %v15515_v6 = vcombine.low %v6234_v18, %v6235_v29  ;;  %13115 = vmatprep.subr.bf16.mxu0 %v13923_v21  ;;  %v4817_v33 = vld [vmem:[#allocation3 + $0x44] sm:$0xf]  ;;  %v13886_v15 = vld [vmem:[#allocation3 + $0x4c] ss:$0 sps:$4 sm:$0x11]  }
 0x267   : > { %13116 = vmatpush3.bf16.msra.mxu0 %v13923_v21  ;;  %v15529_v40 = vcombine.low %v4817_v33, %v4818_v23  ;;  %v3892_v48 = vld [vmem:[#allocation3 + $0x44] sm:$0xf]  ;;  %v13887_v58 = vld [vmem:[#allocation3 + $0x60] ss:$0 sps:$4 sm:$0x11]   ;;  %v4309_v12 = vrot.slane %v13886_v15, 5 }
 0x268   : > { %4351 = vrot.lane.b32.xlu0 %v4302_v22, %s14412_s11  ;;  %v5235_v22 = vrot.slane %v15504_v61, 5  ;;  %v6649_v39 = vrot.slane %v15515_v6, 5  ;;  %v6231_v31 = vld [vmem:[#allocation3 + $0x44] sm:$0xf]  ;;  %v5046_v23 = vshll.u32 %v15504_v61, 16  ;;  %v4123_v33 = vshrl.u32 %v15499_v10, 16 }
 0x269   : > { %4353 = vrot.lane.b32.xlu1 %v4304_v24, %s14412_s11  ;;  %v13087_v38 = vpop.f32.mrb[12].mxu0  ;;  %v14242_v14 = vld [vmem:[#allocation3 + $0x44] sm:$0xf] }
 0x26a   : > { %v15475_v36 = vadd.f32 %v13087_v38, %v15345_v55  ;;  %v3572_v20 = vpop.f32.mrb[13].mxu0  ;;  %v5237_v38 = vsel %vm4298_vm13, %v5235_v22, %v5236_v9  ;;  %v6651_v51 = vsel %vm4298_vm13, %v6649_v39, %v6650_v3  ;;  %v5043_v9 = vshrl.u32 %v15504_v61, 16 }
 0x26b   : > { %v15479_v57 = vadd.f32 %v15345_v55, %v3572_v20  ;;  %v13088_v47 = vpop.f32.mrb[14].mxu0 }
 0x26c   : > { %19577 = vst [vmem:[#allocation16_spill] sm:$0xff] %v15475_v36  ;;  %v12752_v49 = vpack.c.bf16 %v15475_v36, %v15475_v36  ;;  %v15487_v4 = vadd.f32 %v13088_v47, %v15345_v55  ;;  %4222 = vrot.lane.b32.xlu0 %v4113_v37, %s14411_s30  ;;  %v3575_v46 = vpop.f32.mrb[15].mxu0 }
 0x26d   : > { %19578 = vst [vmem:[#allocation17_spill] sm:$0xff] %v15479_v57  ;;  %5148 = vrot.lane.b32.xlu1 %v5033_v42, %s14411_s30  ;;  %v12750_v52 = vpack.c.bf16 %v15479_v57, %v15479_v57  ;;  %v15494_v53 = vadd.f32 %v15345_v55, %v3575_v46  ;;  %v3893_v42 = vld [vmem:[#allocation3 + $0x48] sm:$0xf] }
 0x26e   : > { %19579 = vst [vmem:[#allocation18_spill] sm:$0xff] %v15487_v4  ;;  %3864 = vst.msk [vmem:[#allocation3 + $0xa8] sm:$0xf] %vm418_vm9, %v12752_v49  ;;  %v12753_v16 = vpack.c.bf16 %v15487_v4, %v15487_v4  ;;  %v13932_v49 = vld [vmem:[%s19449_s3] sm:$0xff]   ;;  %v4810_v4 = vld [vmem:[#allocation3 + $0x18] sm:$0x8] }
 0x26f   : > { %19580 = vst [vmem:[#allocation19_spill] sm:$0xff] %v15494_v53  ;;  %3862 = vst.msk [vmem:[#allocation3 + $0x94] sm:$0xf] %vm418_vm9, %v12750_v52  ;;  %v12751_v8 = vpack.c.bf16 %v15494_v53, %v15494_v53  ;;  %v5232_v52 = vrot.slane %v15529_v40, 5  ;;  %13405 = vmatprep.subr.bf16.mxu1 %v13932_v49  ;;  %13149 = vmatprep.subr.bf16.mxu0 %v13932_v49 }
 0x270   : > { %3865 = vst.msk [vmem:[#allocation3 + $0xac] sm:$0xf] %vm418_vm9, %v12753_v16  ;;  %5146 = vrot.lane.b32.xlu0 %v5025_v54, %s14411_s30  ;;  %v15554_v54 = vcombine.low %v3892_v48, %v3893_v42  ;;  %v6232_v16 = vld [vmem:[#allocation3 + $0x48] sm:$0xf]  ;;  %13411 = vmatpush3.bf16.msra.mxu1 %v13932_v49  ;;  %v5045_v48 = vrot.slane %v5043_v9, 4  ;;  %v5048_v49 = vrot.slane %v5046_v23, 5 }
 0x271   : > { %6563 = vrot.lane.b32.xlu1 %v6442_v2, %s14411_s30  ;;  %3863 = vst.msk [vmem:[#allocation3 + $0x98] sm:$0xf] %vm418_vm9, %v12751_v8  ;;  %v13889_v2 = vld [vmem:[#allocation3 + $0x4c] ss:$0 sps:$4 sm:$0x11]   ;;  %v5234_v7 = vsel %vm4298_vm13, %v5232_v52, %v5233_v43  ;;  %v12301_v29 = vcombine.low %v6231_v31, %v6232_v16  ;;  %v6452_v16 = vshrl.u32 %v15515_v6, 16 }
 0x272   : > { %v4308_v8 = vrot.slane %v15554_v54, 5 }
 0x273   : > { %v6646_v3 = vrot.slane %v12301_v29, 5  ;;  %v6444_v31 = vshrl.u32 %v12301_v29, 16 }
 0x274   : > { %4220 = vrot.lane.b32.xlu0 %v4105_v26, %s14411_s30  ;;  %v4312_v26 = vrot.slane %v13887_v58, 5 }
 0x275   : > { %4363 = vrot.lane.b32.xlu1 %v4311_v56, %s14412_s11  ;;  %v13091_v25 = vpop.f32.mrb[16].mxu0 }
 0x276   : > { %v15522_v32 = vadd.f32 %v13091_v25, %v15345_v55  ;;  %v3588_v1 = vpop.f32.mrb[17].mxu0 }
 0x277   : > { %v15525_v24 = vadd.f32 %v15345_v55, %v3588_v1  ;;  %v13092_v37 = vpop.f32.mrb[18].mxu0  ;;  %v4310_v1 = vsel %vm4298_vm13, %v4308_v8, %v4309_v12  ;;  %v6454_v12 = vrot.slane %v6452_v16, 4 }
 0x278   : > { %19581 = vst [vmem:[#allocation20_spill] sm:$0xff] %v15522_v32  ;;  %v12756_v19 = vpack.c.bf16 %v15522_v32, %v15522_v32  ;;  %v15534_v41 = vadd.f32 %v13092_v37, %v15345_v55  ;;  %5286 = vrot.lane.b32.xlu0 %v5235_v22, %s14412_s11  ;;  %v3591_v20 = vpop.f32.mrb[19].mxu0  ;;  %v6647_v22 = vrot.slane %v13889_v2, 5  ;;  %v15577_v37 = vld [vmem:[%s19449_s3 + $0x8] sm:$0xff]   ;;  %v14232_v32 = vld [vmem:[#allocation3 + $0x34] sm:$0xf] }
 0x279   : > { %19582 = vst [vmem:[#allocation21_spill] sm:$0xff] %v15525_v24  ;;  %5288 = vrot.lane.b32.xlu1 %v5237_v38, %s14412_s11  ;;  %v12754_v44 = vpack.c.bf16 %v15525_v24, %v15525_v24  ;;  %v15541_v45 = vadd.f32 %v15345_v55, %v3591_v20  ;;  %v5035_v20 = vshrl.u32 %v15529_v40, 16  ;;  %13406 = vmatprep.subr.bf16.mxu1 %v15577_v37  ;;  %v14231_v24 = vld [vmem:[#allocation3 + $0x30] sm:$0xf] }
 0x27a   : > { %19583 = vst [vmem:[#allocation22_spill] sm:$0xff] %v15534_v41  ;;  %3868 = vst.msk [vmem:[#allocation3 + $0xd0] sm:$0xf] %vm418_vm9, %v12756_v19  ;;  %v12757_v47 = vpack.c.bf16 %v15534_v41, %v15534_v41  ;;  %v4126_v19 = vshll.u32 %v15499_v10, 16  ;;  %13412 = vmatpush3.bf16.msra.mxu1 %v15577_v37  ;;  %v6455_v10 = vshll.u32 %v15515_v6, 16  ;;  %v6446_v6 = vrot.slane %v6444_v31, 4 }
 0x27b   : > { %19584 = vst [vmem:[#allocation23_spill] sm:$0xff] %v15541_v45  ;;  %3866 = vst.msk [vmem:[#allocation3 + $0xbc] sm:$0xf] %vm418_vm9, %v12754_v44  ;;  %v12755_v46 = vpack.c.bf16 %v15541_v45, %v15541_v45  ;;  %v5037_v58 = vrot.slane %v5035_v20, 4  ;;  %v4824_v31 = vld [vmem:[#allocation3 + $0x70] sm:$0xf]  ;;  %v12151_v53 = vcombine.low %v14232_v32, %v14232_v32 }
 0x27c   : > { %3869 = vst.msk [vmem:[#allocation3 + $0xd4] sm:$0xf] %vm418_vm9, %v12757_v47  ;;  %6699 = vrot.lane.b32.xlu0 %v6649_v39, %s14412_s11  ;;  %v5038_v47 = vshll.u32 %v15529_v40, 16  ;;  %v4313_v40 = vsel %vm4298_vm13, %v4311_v56, %v4312_v26  ;;  %v4128_v15 = vrot.slane %v4126_v19, 5  ;;  %v15615_v56 = vld [vmem:[%s19449_s3 + $0x10] sm:$0xff]  }
 0x27d   : > { %6701 = vrot.lane.b32.xlu1 %v6651_v51, %s14412_s11  ;;  %3867 = vst.msk [vmem:[#allocation3 + $0xc0] sm:$0xf] %vm418_vm9, %v12755_v46  ;;  %v6648_v51 = vsel %vm4298_vm13, %v6646_v3, %v6647_v22  ;;  %13407 = vmatprep.subr.bf16.mxu1 %v15615_v56  ;;  %v6457_v22 = vrot.slane %v6455_v10, 5  ;;  %v13892_v10 = vld [vmem:[#allocation3 + $0x88] ss:$0 sps:$4 sm:$0x11]  }
 0x27e   : > { %v5040_v2 = vrot.slane %v5038_v47, 5  ;;  %13413 = vmatpush3.bf16.msra.mxu1 %v15615_v56  ;;  %v4827_v47 = vld [vmem:[#allocation3 + $0x84] sm:$0xf]  ;;  %v14230_v45 = vld [vmem:[#allocation3 + $0x34] sm:$0xf] }
 0x27f   : > { %v12089_v41 = vcombine.low %v14230_v45, %v14230_v45 }
 0x280   : > { %5282 = vrot.lane.b32.xlu0 %v5232_v52, %s14412_s11  ;;  %v4125_v52 = vrot.slane %v4123_v33, 4 }
 0x281   : > { %5284 = vrot.lane.b32.xlu1 %v5234_v7, %s14412_s11  ;;  %v13095_v13 = vpop.f32.mrb[20].mxu0  ;;  %v5049_v7 = vor.u32 %v5048_v49, %v5045_v48  ;;  %v6458_v48 = vor.u32 %v6457_v22, %v6454_v12 }
 0x282   : > { %v15565_v18 = vadd.f32 %v13095_v13, %v15345_v55  ;;  %v3604_v21 = vpop.f32.mrb[21].mxu0  ;;  %v4129_v26 = vor.u32 %v4128_v15, %v4125_v52  ;;  %v3910_v17 = vld [vmem:[#allocation3 + $0xbc] sm:$0xf] }
 0x283   : > { %v15570_v25 = vadd.f32 %v15345_v55, %v3604_v21  ;;  %v13096_v28 = vpop.f32.mrb[22].mxu0  ;;  %v5041_v21 = vor.u32 %v5040_v2, %v5037_v58  ;;  %v4826_v58 = vld [vmem:[#allocation3 + $0x80] sm:$0xf] }
 0x284   : > { %19585 = vst [vmem:[#allocation24_spill] sm:$0xff] %v15565_v18  ;;  %v12760_v38 = vpack.c.bf16 %v15565_v18, %v15565_v18  ;;  %v15582_v39 = vadd.f32 %v13096_v28, %v15345_v55  ;;  %4359 = vrot.lane.b32.xlu0 %v4308_v8, %s14412_s11  ;;  %v3607_v61 = vpop.f32.mrb[23].mxu0  ;;  %v6447_v8 = vshll.u32 %v12301_v29, 16  ;;  %v4115_v29 = vshrl.u32 %v15554_v54, 16 }
 0x285   : > { %19586 = vst [vmem:[#allocation25_spill] sm:$0xff] %v15570_v25  ;;  %4361 = vrot.lane.b32.xlu1 %v4310_v1, %s14412_s11  ;;  %v12758_v42 = vpack.c.bf16 %v15570_v25, %v15570_v25  ;;  %v15591_v44 = vadd.f32 %v15345_v55, %v3607_v61  ;;  %v4118_v1 = vshll.u32 %v15554_v54, 16  ;;  %v15654_v2 = vcombine.low %v4826_v58, %v4827_v47  ;;  %v6238_v58 = vld [vmem:[#allocation3 + $0x70] sm:$0xf] }
 0x286   : > { %19587 = vst [vmem:[#allocation26_spill] sm:$0xff] %v15582_v39  ;;  %3872 = vst.msk [vmem:[#allocation3 + $0xf8] sm:$0xf] %vm418_vm9, %v12760_v38  ;;  %v12761_v43 = vpack.c.bf16 %v15582_v39, %v15582_v39  ;;  %v6449_v28 = vrot.slane %v6447_v8, 5  ;;  %v4117_v52 = vrot.slane %v4115_v29, 4 }
 0x287   : > { %19588 = vst [vmem:[#allocation27_spill] sm:$0xff] %v15591_v44  ;;  %3870 = vst.msk [vmem:[#allocation3 + $0xe4] sm:$0xf] %vm418_vm9, %v12758_v42  ;;  %v12759_v46 = vpack.c.bf16 %v15591_v44, %v15591_v44  ;;  %v3901_v42 = vld [vmem:[#allocation3 + $0x80] sm:$0xf]  ;;  %v4120_v15 = vrot.slane %v4118_v1, 5 }
 0x288   : > { %3873 = vst.msk [vmem:[#allocation3 + $0xfc] sm:$0xf] %vm418_vm9, %v12761_v43  ;;  %4365 = vrot.lane.b32.xlu0 %v4313_v40, %s14412_s11  ;;  %v13894_v8 = vld [vmem:[#allocation3 + $0x74] ss:$0 sps:$4 sm:$0x11]   ;;  %v5241_v22 = vrot.slane %v15654_v2, 5 }
 0x289   : > { %6697 = vrot.lane.b32.xlu1 %v6648_v51, %s14412_s11  ;;  %3871 = vst.msk [vmem:[#allocation3 + $0xe8] sm:$0xf] %vm418_vm9, %v12759_v46  ;;  %v15646_v46 = vld [vmem:[%s19449_s3 + $0x18] sm:$0xff]   ;;  %v6450_v51 = vor.u32 %v6449_v28, %v6446_v6  ;;  %v4121_v12 = vor.u32 %v4120_v15, %v4117_v52  ;;  %v5242_v6 = vrot.slane %v13892_v10, 5  ;;  %v3899_v28 = vld [vmem:[#allocation3 + $0x70] sm:$0xf] }
 0x28a   : > { %13408 = vmatprep.subr.bf16.mxu1 %v15646_v46  ;;  %v13896_v1 = vld [vmem:[#allocation3 + $0x74] ss:$0 sps:$4 sm:$0x11]  }
 0x28b   : > { %13414 = vmatpush3.bf16.msra.mxu1 %v15646_v46 }
 0x28c   : > { %6695 = vrot.lane.b32.xlu0 %v6646_v3, %s14412_s11  ;;  %v3902_v3 = vld [vmem:[#allocation3 + $0x84] sm:$0xf] }
 0x28d   : > { %5152 = vrot.lane.b32.xlu1 %v5049_v7, %s14411_s30  ;;  %v13099_v13 = vpop.f32.mrb[24].mxu0  ;;  %v15641_v49 = vcombine.low %v3901_v42, %v3902_v3  ;;  %v15663_v7 = vld [vmem:[%s19449_s3 + $0x20] sm:$0xff]  }
 0x28e   : > { %v15622_v9 = vadd.f32 %v13099_v13, %v15345_v55  ;;  %v3620_v23 = vpop.f32.mrb[25].mxu0  ;;  %13409 = vmatprep.subr.bf16.mxu1 %v15663_v7 }
 0x28f   : > { %v15627_v33 = vadd.f32 %v15345_v55, %v3620_v23  ;;  %v13100_v38 = vpop.f32.mrb[26].mxu0  ;;  %v4317_v13 = vrot.slane %v15641_v49, 5  ;;  %13415 = vmatpush3.bf16.msra.mxu1 %v15663_v7  ;;  %v3920_v60 = vld [vmem:[#allocation3 + $0xfc] sm:$0xf] }
 0x290   : > { %19589 = vst [vmem:[#allocation28_spill] sm:$0xff] %v15622_v9  ;;  %v12764_v61 = vpack.c.bf16 %v15622_v9, %v15622_v9  ;;  %v15632_v19 = vadd.f32 %v13100_v38, %v15345_v55  ;;  %4226 = vrot.lane.b32.xlu0 %v4129_v26, %s14411_s30  ;;  %v3623_v20 = vpop.f32.mrb[27].mxu0  ;;  %v4823_v26 = vld [vmem:[#allocation3 + $0x6c] sm:$0xf] }
 0x291   : > { %19590 = vst [vmem:[#allocation29_spill] sm:$0xff] %v15627_v33  ;;  %5150 = vrot.lane.b32.xlu1 %v5041_v21, %s14411_s30  ;;  %v12762_v54 = vpack.c.bf16 %v15627_v33, %v15627_v33  ;;  %v15639_v43 = vadd.f32 %v15345_v55, %v3623_v20  ;;  %v13943_v21 = vld [vmem:[%s19449_s3 + $0x28] sm:$0xff]   ;;  %v15673_v23 = vcombine.low %v4823_v26, %v4824_v31  ;;  %v3898_v20 = vld [vmem:[#allocation3 + $0x6c] sm:$0xf] }
 0x292   : > { %19591 = vst [vmem:[#allocation30_spill] sm:$0xff] %v15632_v19  ;;  %3876 = vst.msk [vmem:[#allocation3 + $0x120] sm:$0xf] %vm418_vm9, %v12764_v61  ;;  %v12765_v40 = vpack.c.bf16 %v15632_v19, %v15632_v19  ;;  %v5239_v61 = vrot.slane %v13894_v8, 5  ;;  %13410 = vmatprep.subr.bf16.mxu1 %v13943_v21  ;;  %v4315_v8 = vrot.slane %v13896_v1, 5 }
 0x293   : > { %19592 = vst [vmem:[#allocation31_spill] sm:$0xff] %v15639_v43  ;;  %3874 = vst.msk [vmem:[#allocation3 + $0x10c] sm:$0xf] %vm418_vm9, %v12762_v54  ;;  %v12763_v16 = vpack.c.bf16 %v15639_v43, %v15639_v43  ;;  %v5243_v54 = vsel %vm4298_vm13, %v5241_v22, %v5242_v6  ;;  %13416 = vmatpush3.bf16.msra.mxu1 %v13943_v21  ;;  %v6237_v26 = vld [vmem:[#allocation3 + $0x6c] sm:$0xf] }
 0x294   : > { %3877 = vst.msk [vmem:[#allocation3 + $0x124] sm:$0xf] %vm418_vm9, %v12765_v40  ;;  %6567 = vrot.lane.b32.xlu0 %v6458_v48, %s14411_s30  ;;  %v5238_v48 = vrot.slane %v15673_v23, 5  ;;  %v15688_v40 = vcombine.low %v3898_v20, %v3899_v28  ;;  %v525_v21 = vld [vmem:[#allocation3 + $0x114] sm:$0x1]  ;;  %v5062_v20 = vshll.u32 %v15654_v2, 16 }
 0x295   : > { %6565 = vrot.lane.b32.xlu1 %v6450_v51, %s14411_s30  ;;  %3875 = vst.msk [vmem:[#allocation3 + $0x110] sm:$0xf] %vm418_vm9, %v12763_v16  ;;  %v4813_v33 = vld [vmem:[#allocation3 + $0x2c] sm:$0x8] }
 0x296   : > { %v5240_v6 = vsel %vm4298_vm13, %v5238_v48, %v5239_v61  ;;  %v4314_v28 = vrot.slane %v15688_v40, 5  ;;  %v12150_v44 = vcombine.low %v4813_v33, %v14231_v24 }
 0x298   : > { %4224 = vrot.lane.b32.xlu0 %v4121_v12, %s14411_s30  ;;  %v13897_v12 = vld [vmem:[#allocation3 + $0x88] ss:$0 sps:$4 sm:$0x11]   ;;  %v4316_v61 = vsel %vm4298_vm13, %v4314_v28, %v4315_v8 }
 0x299   : > { %4371 = vrot.lane.b32.xlu1 %v4317_v13, %s14412_s11  ;;  %v13103_v29 = vpop.f32.mrb[28].mxu0  ;;  %v4318_v1 = vrot.slane %v13897_v12, 5 }
 0x29a   : > { %v15681_v3 = vadd.f32 %v13103_v29, %v15345_v55  ;;  %v3636_v38 = vpop.f32.mrb[29].mxu0  ;;  %v13899_v29 = vld [vmem:[#allocation3 + $0x74] ss:$0 sps:$4 sm:$0x11]  }
 0x29b   : > { %v15684_v42 = vadd.f32 %v15345_v55, %v3636_v38  ;;  %v13104_v47 = vpop.f32.mrb[30].mxu0  ;;  %v5059_v38 = vshrl.u32 %v15654_v2, 16  ;;  %v5054_v2 = vshll.u32 %v15673_v23, 16 }
 0x29c   : > { %19593 = vst [vmem:[#allocation32_spill] sm:$0xff] %v15681_v3  ;;  %v12768_v51 = vpack.c.bf16 %v15681_v3, %v15681_v3  ;;  %v15693_v52 = vadd.f32 %v13104_v47, %v15345_v55  ;;  %5294 = vrot.lane.b32.xlu0 %v5241_v22, %s14412_s11  ;;  %v3639_v15 = vpop.f32.mrb[31].mxu0  ;;  %v6241_v47 = vld [vmem:[#allocation3 + $0x84] sm:$0xf]  ;;  %v3888_v3 = vld [vmem:[#allocation3 + $0x2c] sm:$0x8] }
 0x29d   : > { %19594 = vst [vmem:[#allocation33_spill] sm:$0xff] %v15684_v42  ;;  %5296 = vrot.lane.b32.xlu1 %v5243_v54, %s14412_s11  ;;  %v12766_v16 = vpack.c.bf16 %v15684_v42, %v15684_v42  ;;  %v15700_v10 = vadd.f32 %v15345_v55, %v3639_v15  ;;  %v12303_v55 = vcombine.low %v6237_v26, %v6238_v58  ;;  %v526_v15 = vsel %vm15286_vm12, 0, %v525_v21  ;;  %v4836_v42 = vld [vmem:[#allocation3 + $0xc0] sm:$0xf] }
 0x29e   : > { %19595 = vst [vmem:[#allocation34_spill] sm:$0xff] %v15693_v52  ;;  %3880 = vst.msk [vmem:[#allocation3 + $0x148] sm:$0xf] %vm418_vm9, %v12768_v51  ;;  %v12769_v31 = vpack.c.bf16 %v15693_v52, %v15693_v52  ;;  %v6653_v51 = vrot.slane %v13899_v29, 5  ;;  %v4142_v58 = vshll.u32 %v15641_v49, 16  ;;  %v5061_v12 = vrot.slane %v5059_v38, 4 }
 0x29f   : > { %19596 = vst [vmem:[#allocation35_spill] sm:$0xff] %v15700_v10  ;;  %3878 = vst.msk [vmem:[#allocation3 + $0x134] sm:$0xf] %vm418_vm9, %v12766_v16  ;;  %v12767_v22 = vpack.c.bf16 %v15700_v10, %v15700_v10  ;;  %v6652_v54 = vrot.slane %v12303_v55, 5  ;;  %v5051_v16 = vshrl.u32 %v15673_v23, 16  ;;  %v5064_v26 = vrot.slane %v5062_v20, 5 }
 0x2a0   : > { %3881 = vst.msk [vmem:[#allocation3 + $0x14c] sm:$0xf] %vm418_vm9, %v12769_v31  ;;  %5290 = vrot.lane.b32.xlu0 %v5238_v48, %s14412_s11  ;;  %v4139_v48 = vshrl.u32 %v15641_v49, 16  ;;  %v6240_v31 = vld [vmem:[#allocation3 + $0x80] sm:$0xf]  ;;  %v4144_v21 = vrot.slane %v4142_v58, 5 }
 0x2a1   : > { %5292 = vrot.lane.b32.xlu1 %v5240_v6, %s14412_s11  ;;  %3879 = vst.msk [vmem:[#allocation3 + $0x138] sm:$0xf] %vm418_vm9, %v12767_v22  ;;  %527 = vst [vmem:[#allocation3 + $0x114] sm:$0x1] %v526_v15  ;;  %v15725_v8 = vcombine.low %v6240_v31, %v6241_v47  ;;  %v534_v22 = vld [vmem:[#allocation3 + $0x150] sm:$0x1]  ;;  %v4319_v6 = vsel %vm4298_vm13, %v4317_v13, %v4318_v1  ;;  %v5065_v20 = vor.u32 %v5064_v26, %v5061_v12 }
 0x2a2   : > { %v4141_v29 = vrot.slane %v4139_v48, 4  ;;  %v531_v15 = vld [vmem:[#allocation3 + $0x13c] sm:$0x1]  ;;  %v5056_v23 = vrot.slane %v5054_v2, 5  ;;  %v535_v49 = vsel %vm15286_vm12, 0, %v534_v22  ;;  %v6460_v13 = vshrl.u32 %v12303_v55, 16 }
 0x2a3   : > { %v6468_v47 = vshrl.u32 %v15725_v8, 16  ;;  %v6471_v38 = vshll.u32 %v15725_v8, 16  ;;  %v6463_v1 = vshll.u32 %v12303_v55, 16  ;;  %536 = vst [vmem:[#allocation3 + $0x150] sm:$0x1] %v535_v49  ;;  %v4131_v22 = vshrl.u32 %v15688_v40, 16 }
 0x2a4   : > { %4367 = vrot.lane.b32.xlu0 %v4314_v28, %s14412_s11  ;;  %v6654_v28 = vsel %vm4298_vm13, %v6652_v54, %v6653_v51  ;;  %v532_v51 = vsel %vm15286_vm12, 0, %v531_v15  ;;  %v4145_v48 = vor.u32 %v4144_v21, %v4141_v29  ;;  %v6462_v2 = vrot.slane %v6460_v13, 4  ;;  %v3908_v55 = vld [vmem:[#allocation3 + $0xac] sm:$0xf]  ;;  %v3907_v26 = vld [vmem:[#allocation3 + $0xa8] sm:$0xf] }
 0x2a5   : > { %4369 = vrot.lane.b32.xlu1 %v4316_v61, %s14412_s11  ;;  %v5053_v61 = vrot.slane %v5051_v16, 4  ;;  %533 = vst [vmem:[#allocation3 + $0x13c] sm:$0x1] %v532_v51  ;;  %v6470_v16 = vrot.slane %v6468_v47, 4  ;;  %v6473_v31 = vrot.slane %v6471_v38, 5  ;;  %v4134_v12 = vshll.u32 %v15688_v40, 16 }
 0x2a6   : > { %v4133_v21 = vrot.slane %v4131_v22, 4  ;;  %v13903_v38 = vld [vmem:[#allocation3 + $0xb0] ss:$0 sps:$4 sm:$0x11]   ;;  %v4830_v40 = vld [vmem:[#allocation3 + $0x98] sm:$0xf] }
 0x2a7   : > { %v5057_v58 = vor.u32 %v5056_v23, %v5053_v61  ;;  %v6474_v15 = vor.u32 %v6473_v31, %v6470_v16  ;;  %v4136_v61 = vrot.slane %v4134_v12, 5  ;;  %v4832_v23 = vld [vmem:[#allocation3 + $0xa8] sm:$0xf]  ;;  %v13905_v49 = vld [vmem:[#allocation3 + $0x9c] ss:$0 sps:$4 sm:$0x11]  }
 0x2a8   : > { %4373 = vrot.lane.b32.xlu0 %v4319_v6, %s14412_s11  ;;  %v6465_v6 = vrot.slane %v6463_v1, 5  ;;  %v4829_v1 = vld [vmem:[#allocation3 + $0x94] sm:$0xf]  ;;  %v3905_v16 = vld [vmem:[#allocation3 + $0x98] sm:$0xf]  ;;  %v5245_v22 = vrot.slane %v13905_v49, 5 }
 0x2a9   : > { %6705 = vrot.lane.b32.xlu1 %v6654_v28, %s14412_s11  ;;  %v15745_v28 = vcombine.low %v3907_v26, %v3908_v55  ;;  %v3904_v31 = vld [vmem:[#allocation3 + $0x94] sm:$0xf]  ;;  %v13907_v55 = vld [vmem:[#allocation3 + $0x9c] ss:$0 sps:$4 sm:$0x11]  }
 0x2aa   : > { %v6466_v29 = vor.u32 %v6465_v6, %v6462_v2  ;;  %v12123_v12 = vcombine.low %v3904_v31, %v3905_v16  ;;  %v4839_v52 = vld [vmem:[#allocation3 + $0xd4] sm:$0xf] }
 0x2ab   : > { %v4323_v13 = vrot.slane %v15745_v28, 5  ;;  %v4155_v49 = vshrl.u32 %v15745_v28, 16 }
 0x2ac   : > { %6703 = vrot.lane.b32.xlu0 %v6652_v54, %s14412_s11  ;;  %v4833_v54 = vld [vmem:[#allocation3 + $0xac] sm:$0xf] }
 0x2ad   : > { %5156 = vrot.lane.b32.xlu1 %v5065_v20, %s14411_s30  ;;  %v12187_v47 = vcombine.low %v4832_v23, %v4833_v54  ;;  %v4137_v20 = vor.u32 %v4136_v61, %v4133_v21  ;;  %v4320_v61 = vrot.slane %v12123_v12, 5  ;;  %v4321_v23 = vrot.slane %v13907_v55, 5 }
 0x2ae   : > { %v4157_v55 = vrot.slane %v4155_v49, 4 }
 0x2af   : > { %v5247_v51 = vrot.slane %v12187_v47, 5  ;;  %v5075_v26 = vshrl.u32 %v12187_v47, 16  ;;  %v5078_v54 = vshll.u32 %v12187_v47, 16  ;;  %v4322_v31 = vsel %vm4298_vm13, %v4320_v61, %v4321_v23 }
 0x2b0   : > { %4230 = vrot.lane.b32.xlu0 %v4145_v48, %s14411_s30  ;;  %v5248_v48 = vrot.slane %v13903_v38, 5  ;;  %v6244_v38 = vld [vmem:[#allocation3 + $0x98] sm:$0xf]  ;;  %v4150_v23 = vshll.u32 %v12123_v12, 16 }
 0x2b1   : > { %5154 = vrot.lane.b32.xlu1 %v5057_v58, %s14411_s30  ;;  %v12186_v58 = vcombine.low %v4829_v1, %v4830_v40  ;;  %v5077_v40 = vrot.slane %v5075_v26, 4  ;;  %v4158_v1 = vshll.u32 %v15745_v28, 16 }
 0x2b2   : > { %v5249_v2 = vsel %vm4298_vm13, %v5247_v51, %v5248_v48  ;;  %v6243_v48 = vld [vmem:[#allocation3 + $0x94] sm:$0xf] }
 0x2b3   : > { %v5244_v6 = vrot.slane %v12186_v58, 5  ;;  %v5070_v47 = vshll.u32 %v12186_v58, 16  ;;  %v15762_v16 = vcombine.low %v6243_v48, %v6244_v38  ;;  %v4147_v48 = vshrl.u32 %v12123_v12, 16 }
 0x2b4   : > { %6571 = vrot.lane.b32.xlu0 %v6474_v15, %s14411_s30  ;;  %v15755_v15 = vpop.permute.xlu0 %4218  ;;  %v4152_v12 = vrot.slane %v4150_v23, 5 }
 0x2b5   : > { %6569 = vrot.lane.b32.xlu1 %v6466_v29, %s14411_s30  ;;  %v13908_v29 = vld [vmem:[#allocation3 + $0xb0] ss:$0 sps:$4 sm:$0x11]   ;;  %v5246_v21 = vsel %vm4298_vm13, %v5244_v6, %v5245_v22  ;;  %v6479_v38 = vshll.u32 %v15762_v16, 16 }
 0x2b8   : > { %4228 = vrot.lane.b32.xlu0 %v4137_v20, %s14411_s30  ;;  %v5080_v20 = vrot.slane %v5078_v54, 5  ;;  %v15769_v22 = vpop.permute.xlu0 %4349  ;;  %v4160_v54 = vrot.slane %v4158_v1, 5 }
 0x2b9   : > { %4379 = vrot.lane.b32.xlu1 %v4323_v13, %s14412_s11 }
 0x2ba   : > { %v5081_v26 = vor.u32 %v5080_v20, %v5077_v40 }
 0x2bc   : > { %5302 = vrot.lane.b32.xlu0 %v5247_v51, %s14412_s11  ;;  %v5067_v51 = vshrl.u32 %v12186_v58, 16  ;;  %v6476_v58 = vshrl.u32 %v15762_v16, 16 }
 0x2bd   : > { %5304 = vrot.lane.b32.xlu1 %v5249_v2, %s14412_s11  ;;  %v4324_v2 = vrot.slane %v13908_v29, 5  ;;  %v474_v29 = vld [vmem:[#allocation3 + $0xf4] sm:$0x8] }
 0x2be   : > { %v5069_v28 = vrot.slane %v5067_v51, 4  ;;  %v475_v40 = vsel %vm15300_vm0, 0, %v474_v29  ;;  %v6478_v1 = vrot.slane %v6476_v58, 4  ;;  %v6481_v51 = vrot.slane %v6479_v38, 5 }
 0x2bf   : > { %476 = vst [vmem:[#allocation3 + $0xf4] sm:$0x8] %v475_v40  ;;  %v483_v40 = vld [vmem:[#allocation3 + $0x130] sm:$0x8] }
 0x2c0   : > { %5298 = vrot.lane.b32.xlu0 %v5244_v6, %s14412_s11  ;;  %v15767_v6 = vpop.permute.xlu1 %4347  ;;  %v6482_v38 = vor.u32 %v6481_v51, %v6478_v1  ;;  %v4835_v51 = vld [vmem:[#allocation3 + $0xbc] sm:$0xf] }
 0x2c1   : > { %5300 = vrot.lane.b32.xlu1 %v5246_v21, %s14412_s11  ;;  %v5072_v21 = vrot.slane %v5070_v47, 5  ;;  %v4149_v47 = vrot.slane %v4147_v48, 4 }
 0x2c3   : > { %v5073_v10 = vor.u32 %v5072_v21, %v5069_v28  ;;  %v3913_v28 = vld [vmem:[#allocation3 + $0xd0] sm:$0xf]  ;;  %v477_v21 = vld [vmem:[#allocation3 + $0x108] sm:$0x8]  ;;  %v4153_v48 = vor.u32 %v4152_v12, %v4149_v47  ;;  %v484_v12 = vsel %vm15300_vm0, 0, %v483_v40 }
 0x2c4   : > { %4375 = vrot.lane.b32.xlu0 %v4320_v61, %s14412_s11  ;;  %v4325_v61 = vsel %vm4298_vm13, %v4323_v13, %v4324_v2  ;;  %v3914_v13 = vld [vmem:[#allocation3 + $0xd4] sm:$0xf]  ;;  %v471_v2 = vld [vmem:[#allocation3 + $0xe0] sm:$0x8]  ;;  %v478_v1 = vsel %vm15300_vm0, 0, %v477_v21 }
 0x2c5   : > { %4377 = vrot.lane.b32.xlu1 %v4322_v31, %s14412_s11  ;;  %v4161_v31 = vor.u32 %v4160_v54, %v4157_v55  ;;  %v4838_v55 = vld [vmem:[#allocation3 + $0xd0] sm:$0xf]  ;;  %v15790_v23 = vcombine.low %v3913_v28, %v3914_v13  ;;  %479 = vst [vmem:[#allocation3 + $0x108] sm:$0x8] %v478_v1  ;;  %v15810_v28 = vcombine.low %v4835_v51, %v4836_v42  ;;  %485 = vst [vmem:[#allocation3 + $0x130] sm:$0x8] %v484_v12 }
 0x2c6   : > { %v15784_v54 = vcombine.low %v4838_v55, %v4839_v52  ;;  %v13920_v40 = vld [vmem:[#allocation3 + $0xc4] ss:$0 sps:$4 sm:$0x11]   ;;  %v15820_v12 = vld [vmem:[#allocation3 + $0x4] sm:$0x8] }
 0x2c7   : > { %v5250_v42 = vrot.slane %v15810_v28, 5  ;;  %v4171_v9 = vshrl.u32 %v15790_v23, 16 }
 0x2c8   : > { %4381 = vrot.lane.b32.xlu0 %v4325_v61, %s14412_s11  ;;  %v472_v61 = vsel %vm15300_vm0, 0, %v471_v2  ;;  %v5253_v55 = vrot.slane %v15784_v54, 5 }
 0x2c9   : > { %5160 = vrot.lane.b32.xlu1 %v5081_v26, %s14411_s30  ;;  %v480_v26 = vld [vmem:[#allocation3 + $0x11c] sm:$0x8]  ;;  %473 = vst [vmem:[#allocation3 + $0xe0] sm:$0x8] %v472_v61  ;;  %v4173_v57 = vrot.slane %v4171_v9, 4 }
 0x2ca   : > { %v15778_v49 = vpop.permute.xlu0 %5278  ;;  %v481_v52 = vsel %vm15300_vm0, 0, %v480_v26  ;;  %v4329_v26 = vrot.slane %v15790_v23, 5 }
 0x2cb   : > { %v15780_v20 = vpop.permute.xlu1 %4355  ;;  %482 = vst [vmem:[#allocation3 + $0x11c] sm:$0x8] %v481_v52 }
 0x2cc   : > { %4234 = vrot.lane.b32.xlu0 %v4161_v31, %s14411_s30  ;;  %v486_v31 = vld [vmem:[#allocation3 + $0x144] sm:$0x8] }
 0x2cd   : > { %5158 = vrot.lane.b32.xlu1 %v5073_v10, %s14411_s30  ;;  %v13913_v10 = vld [vmem:[#allocation3 + $0xd8] ss:$0 sps:$4 sm:$0x11]   ;;  %v487_v47 = vsel %vm15300_vm0, 0, %v486_v31 }
 0x2ce   : > { %v15786_v29 = vpop.permute.xlu0 %6691  ;;  %488 = vst [vmem:[#allocation3 + $0x144] sm:$0x8] %v487_v47  ;;  %v5254_v21 = vrot.slane %v13913_v10, 5  ;;  %v13919_v31 = vld [vmem:[#allocation3 + $0xd8] ss:$0 sps:$4 sm:$0x11]  }
 0x2cf   : > { %v15788_v58 = vpop.permute.xlu1 %5280 }
 0x2d0   : > { %4232 = vrot.lane.b32.xlu0 %v4153_v48, %s14411_s30  ;;  %v13916_v48 = vld [vmem:[#allocation3 + $0xc4] ss:$0 sps:$4 sm:$0x11]   ;;  %v5255_v51 = vsel %vm4298_vm13, %v5253_v55, %v5254_v21  ;;  %v5091_v21 = vshrl.u32 %v15784_v54, 16 }
 0x2d1   : > { %6573 = vrot.lane.b32.xlu1 %v6482_v38, %s14411_s30  ;;  %v3911_v38 = vld [vmem:[#allocation3 + $0xc0] sm:$0xf]  ;;  %v5251_v47 = vrot.slane %v13916_v48, 5  ;;  %v5094_v48 = vshll.u32 %v15784_v54, 16  ;;  %v14229_v54 = vld [vmem:[#allocation3 + $0x30] sm:$0xf] }
 0x2d2   : > { %v15806_v2 = vpop.permute.xlu0 %5274  ;;  %v12125_v61 = vcombine.low %v3910_v17, %v3911_v38  ;;  %v4330_v38 = vrot.slane %v13919_v31, 5  ;;  %v4327_v17 = vrot.slane %v13920_v40, 5  ;;  %v5083_v40 = vshrl.u32 %v15810_v28, 16 }
 0x2d3   : > { %v15804_v13 = vpop.permute.xlu1 %6693  ;;  %v5252_v31 = vsel %vm4298_vm13, %v5250_v42, %v5251_v47  ;;  %v12088_v18 = vcombine.low %v3888_v3, %v14229_v54  ;;  %v5096_v0 = vrot.slane %v5094_v48, 5  ;;  %v4845_v54 = vld [vmem:[#allocation3 + $0xfc] sm:$0xf] }
 0x2d4   : > { %5310 = vrot.lane.b32.xlu0 %v5253_v55, %s14412_s11  ;;  %v4326_v10 = vrot.slane %v12125_v61, 5  ;;  %v4174_v55 = vshll.u32 %v15790_v23, 16  ;;  %v5086_v23 = vshll.u32 %v15810_v28, 16  ;;  %v4163_v39 = vshrl.u32 %v12125_v61, 16 }
 0x2d5   : > { %4387 = vrot.lane.b32.xlu1 %v4329_v26, %s14412_s11  ;;  %v4166_v25 = vshll.u32 %v12125_v61, 16  ;;  %v4331_v28 = vsel %vm4298_vm13, %v4329_v26, %v4330_v38  ;;  %v5085_v3 = vrot.slane %v5083_v40, 4  ;;  %v14234_v38 = vld [vmem:[#allocation3 + $0x20] sm:$0xf] }
 0x2d6   : > { %v15814_v52 = vpop.permute.xlu0 %4357  ;;  %v4176_v36 = vrot.slane %v4174_v55, 5  ;;  %v4328_v61 = vsel %vm4298_vm13, %v4326_v10, %v4327_v17  ;;  %v5088_v32 = vrot.slane %v5086_v23, 5  ;;  %v4165_v24 = vrot.slane %v4163_v39, 4  ;;  %v4844_v17 = vld [vmem:[#allocation3 + $0xf8] sm:$0xf] }
 0x2d7   : > { %v15816_v1 = vpop.permute.xlu1 %5276  ;;  %v4168_v33 = vrot.slane %v4166_v25, 5  ;;  %v15853_v40 = vcombine.low %v4844_v17, %v4845_v54 }
 0x2d8   : > { %5306 = vrot.lane.b32.xlu0 %v5250_v42, %s14412_s11  ;;  %v4177_v39 = vor.u32 %v4176_v36, %v4173_v57 }
 0x2d9   : > { %5312 = vrot.lane.b32.xlu1 %v5255_v51, %s14412_s11  ;;  %v15832_v51 = vld [vmem:[#allocation3 + $0x8] sm:$0xf]  ;;  %v4169_v36 = vor.u32 %v4168_v33, %v4165_v24 }
 0x2da   : > { %v15824_v43 = vpop.permute.xlu0 %4351 }
 0x2db   : > { %v15826_v19 = vpop.permute.xlu1 %4353 }
 0x2dc   : > { %4383 = vrot.lane.b32.xlu0 %v4326_v10, %s14412_s11  ;;  %v12149_v10 = vcombine.low %v14234_v38, %v14234_v38 }
 0x2dd   : > { %5308 = vrot.lane.b32.xlu1 %v5252_v31, %s14412_s11  ;;  %v5093_v31 = vrot.slane %v5091_v21, 4 }
 0x2de   : > { %v4223_v42 = vpop.permute.xlu0 %4222 }
 0x2df   : > { %v5149_v47 = vpop.permute.xlu1 %5148  ;;  %v4424_v9 = vsel %vm4411_vm1, %v12088_v18, %v4223_v42  ;;  %v4426_v55 = vsel %vm4411_vm1, %v12089_v41, %v4223_v42  ;;  %v5097_v25 = vor.u32 %v5096_v0, %v5093_v31  ;;  %v3919_v18 = vld [vmem:[#allocation3 + $0xf8] sm:$0xf]  ;;  %v5089_v0 = vor.u32 %v5088_v32, %v5085_v3 }
 0x2e0   : > { %v5345_v27 = vsel %vm4411_vm1, %v12150_v44, %v5149_v47  ;;  %v5347_v45 = vsel %vm4411_vm1, %v12151_v53, %v5149_v47  ;;  %4389 = vrot.lane.b32.xlu0 %v4331_v28, %s14412_s11  ;;  %v14233_v44 = vld [vmem:[#allocation3 + $0x1c] sm:$0xf]  ;;  %v15859_v42 = vcombine.low %v3919_v18, %v3920_v60  ;;  %v4842_v60 = vld [vmem:[#allocation3 + $0xe8] sm:$0xf] }
 0x2e1   : > { %4385 = vrot.lane.b32.xlu1 %v4328_v61, %s14412_s11  ;;  %v12148_v26 = vcombine.low %v4810_v4, %v14233_v44  ;;  %v5423_v53 = vsel %vm4492_vm2, %v5345_v27, %v15778_v49  ;;  %v5425_v41 = vsel %vm4492_vm2, %v5347_v45, %v15788_v58  ;;  %v4502_v27 = vsel %vm4492_vm2, %v4424_v9, %v15780_v20  ;;  %v4841_v9 = vld [vmem:[#allocation3 + $0xe4] sm:$0xf] }
 0x2e2   : > { %v5147_v21 = vpop.permute.xlu0 %5146  ;;  %v4504_v49 = vsel %vm4492_vm2, %v4426_v55, %v15814_v52  ;;  %v5497_v57 = vshrl.u32 %v5423_v53, 16  ;;  %v5500_v47 = vshll.u32 %v5423_v53, 16  ;;  %v5504_v28 = vshrl.u32 %v5425_v41, 16 }
 0x2e3   : > { %v15851_v48 = vpop.permute.xlu1 %6563  ;;  %v5340_v23 = vsel %vm4411_vm1, %v12148_v26, %v5147_v21  ;;  %v5342_v4 = vsel %vm4411_vm1, %v12149_v10, %v5147_v21  ;;  %v5507_v20 = vshll.u32 %v5425_v41, 16  ;;  %v4588_v3 = vshrl.u32 %v4502_v27, 16  ;;  %v13926_v26 = vld [vmem:[#allocation3 + $0x100] ss:$0 sps:$4 sm:$0x11]  }
 0x2e4   : > { %4238 = vrot.lane.b32.xlu0 %v4177_v39, %s14411_s30  ;;  %v5419_v58 = vsel %vm4492_vm2, %v5340_v23, %v15806_v2  ;;  %v5421_v31 = vsel %vm4492_vm2, %v5342_v4, %v15816_v1  ;;  %v4591_v32 = vshll.u32 %v4502_v27, 16  ;;  %v19597_v2 = vcombine.low %v15820_v12, %v15832_v51 }
 0x2e5   : > { %5164 = vrot.lane.b32.xlu1 %v5097_v25, %s14411_s30  ;;  %v5482_v61 = vshrl.u32 %v5419_v58, 16  ;;  %v5485_v54 = vshll.u32 %v5419_v58, 16  ;;  %v5489_v24 = vshrl.u32 %v5421_v31, 16  ;;  %v5492_v33 = vshll.u32 %v5421_v31, 16  ;;  %v3917_v58 = vld [vmem:[#allocation3 + $0xe8] sm:$0xf] }
 0x2e6   : > { %v15871_v52 = vpop.permute.xlu0 %4220  ;;  %v4414_v1 = vsel %vm4411_vm1, %v19597_v2, %v15755_v15  ;;  %v5259_v55 = vrot.slane %v15853_v40, 5  ;;  %v4335_v44 = vrot.slane %v15859_v42, 5  ;;  %v15883_v38 = vcombine.low %v4841_v9, %v4842_v60  ;;  %v13930_v9 = vld [vmem:[#allocation3 + $0x100] ss:$0 sps:$4 sm:$0x11]  }
 0x2e7   : > { %v15873_v45 = vpop.permute.xlu1 %4363  ;;  %v4595_v10 = vshrl.u32 %v4504_v49, 16  ;;  %v4598_v17 = vshll.u32 %v4504_v49, 16  ;;  %v5484_v53 = vrot.slane %v5482_v61, 3  ;;  %v5487_v21 = vrot.slane %v5485_v54, 4 }
 0x2e8   : > { %4236 = vrot.lane.b32.xlu0 %v4169_v36, %s14411_s30  ;;  %v5499_v39 = vrot.slane %v5497_v57, 3  ;;  %v5502_v25 = vrot.slane %v5500_v47, 4  ;;  %v5506_v12 = vrot.slane %v5504_v28, 3  ;;  %v5509_v51 = vrot.slane %v5507_v20, 4  ;;  %v3916_v20 = vld [vmem:[#allocation3 + $0xe4] sm:$0xf] }
 0x2e9   : > { %5162 = vrot.lane.b32.xlu1 %v5089_v0, %s14411_s30  ;;  %v5491_v23 = vrot.slane %v5489_v24, 3  ;;  %v5494_v4 = vrot.slane %v5492_v33, 4  ;;  %v4590_v27 = vrot.slane %v4588_v3, 3  ;;  %v4593_v36 = vrot.slane %v4591_v32, 4 }
 0x2ea   : > { %v15886_v18 = vpop.permute.xlu0 %5286  ;;  %v15892_v49 = vsel %vm4492_vm2, %v4414_v1, %v15767_v6  ;;  %v5260_v0 = vrot.slane %v13926_v26, 5  ;;  %v13928_v57 = vld [vmem:[#allocation3 + $0xec] ss:$0 sps:$4 sm:$0x11]   ;;  %v4597_v31 = vrot.slane %v4595_v10, 3  ;;  %v4600_v60 = vrot.slane %v4598_v17, 4 }
 0x2eb   : > { %v15888_v41 = vpop.permute.xlu1 %5288  ;;  %v4594_v47 = vor.u32 %v4593_v36, %v4590_v27  ;;  %v5488_v28 = vor.u32 %v5487_v21, %v5484_v53  ;;  %v15898_v61 = vld [vmem:[#allocation3 + $0x88] ss:$0 sps:$4 sm:$0x11]   ;;  %v5503_v54 = vor.u32 %v5502_v25, %v5499_v39  ;;  %v5510_v3 = vor.u32 %v5509_v51, %v5506_v12  ;;  %v15907_v26 = vld [vmem:[#allocation3 + $0xb0] ss:$0 sps:$4 sm:$0x11]  }
 0x2ec   : > { %5318 = vrot.lane.b32.xlu0 %v5259_v55, %s14412_s11  ;;  %v5256_v24 = vrot.slane %v15883_v38, 5  ;;  %v15905_v33 = vcombine.low %v3916_v20, %v3917_v58  ;;  %v4601_v2 = vor.u32 %v4600_v60, %v4597_v31  ;;  %v5495_v1 = vor.u32 %v5494_v4, %v5491_v23  ;;  %v14235_v10 = vld [vmem:[#allocation3 + $0xc] sm:$0xf] }
 0x2ed   : > { %4395 = vrot.lane.b32.xlu1 %v4335_v44, %s14412_s11  ;;  %v12085_v17 = vcombine.low %v14235_v10, %v14235_v10  ;;  %v5261_v53 = vsel %vm4298_vm13, %v5259_v55, %v5260_v0  ;;  %v5257_v21 = vrot.slane %v13928_v57, 5  ;;  %v13931_v39 = vld [vmem:[#allocation3 + $0xec] ss:$0 sps:$4 sm:$0x11]   ;;  %v4558_v25 = vshrl.u32 %v15892_v49, 16 }
 0x2ee   : > { %v15900_v32 = vpop.permute.xlu0 %6699  ;;  %v4602_v12 = vsel %vm4557_vm4, %v4594_v47, %v4601_v2  ;;  %v5496_v51 = vsel %vm4557_vm4, %v5488_v28, %v5495_v1  ;;  %v4187_v23 = vshrl.u32 %v15859_v42, 16  ;;  %v5511_v55 = vsel %vm4557_vm4, %v5503_v54, %v5510_v3  ;;  %v15932_v54 = vld [vmem:[#allocation3 + $0x9c] ss:$0 sps:$4 sm:$0x11]   ;;  %v3922_v31 = vld [vmem:[#allocation3 + $0x10c] sm:$0xf] }
 0x2ef   : > { %19598 = vst [vmem:[#allocation36_spill] sm:$0xff] %v15900_v32  ;;  %v15902_v6 = vpop.permute.xlu1 %6701  ;;  %13165 = vmatprep.mubr.msk.bf16.mxu1 %vm5771_vm3, %v4602_v12  ;;  %13117 = vmatprep.mubr.msk.bf16.mxu0 %vm5771_vm3, %v5496_v51  ;;  %v4332_v36 = vrot.slane %v15905_v33, 5  ;;  %v4336_v58 = vrot.slane %v13930_v9, 5  ;;  %v4190_v0 = vshll.u32 %v15859_v42, 16  ;;  %v5107_v57 = vshrl.u32 %v15853_v40, 16  ;;  %v14236_v9 = vld [vmem:[%s19449_s3] sm:$0xff]  }
 0x2f0   : > { %19599 = vst [vmem:[#allocation37_spill] sm:$0xff] %v15902_v6  ;;  %5314 = vrot.lane.b32.xlu0 %v5256_v24, %s14412_s11  ;;  %13118 = vmatmul.mubr.msk.bf16.vlgmr.msra.gmra.mrb[32].mxu0 %vm5771_vm3, %v5511_v55  ;;  %v5110_v47 = vshll.u32 %v15853_v40, 16  ;;  %v4561_v60 = vshll.u32 %v15892_v49, 16  ;;  %v5258_v28 = vsel %vm4298_vm13, %v5256_v24, %v5257_v21  ;;  %v4333_v20 = vrot.slane %v13931_v39, 5  ;;  %v4851_v12 = vld [vmem:[#allocation3 + $0x124] sm:$0xf] }
 0x2f1   : > { %5320 = vrot.lane.b32.xlu1 %v5261_v53, %s14412_s11  ;;  %13150 = vmatpush3.bf16.msra.mxu0 %v14236_v9  ;;  %v15938_v2 = vrot.slane %v4558_v25, 3  ;;  %v4189_v40 = vrot.slane %v4187_v23, 4  ;;  %v4179_v49 = vshrl.u32 %v15905_v33, 16  ;;  %v4182_v24 = vshll.u32 %v15905_v33, 16  ;;  %v434_v51 = vld [vmem:[#allocation3 + $0x164] sm:$0x1] }
 0x2f2   : > { %v15919_v4 = vpop.permute.xlu0 %5282  ;;  %13151 = vmatprep.subr.bf16.mxu0 %v15577_v37  ;;  %v4416_v1 = vsel %vm4411_vm1, %v12085_v17, %v15755_v15  ;;  %v4337_v21 = vsel %vm4298_vm13, %v4335_v44, %v4336_v58  ;;  %v4192_v39 = vrot.slane %v4190_v0, 5  ;;  %v5099_v25 = vshrl.u32 %v15883_v38, 16  ;;  %v3926_v55 = vld [vmem:[#allocation3 + $0x124] sm:$0xf]  ;;  %v4850_v44 = vld [vmem:[#allocation3 + $0x120] sm:$0xf] }
 0x2f3   : > { %v15921_v27 = vpop.permute.xlu1 %5284  ;;  %v5109_v23 = vrot.slane %v5107_v57, 4  ;;  %v5112_v33 = vrot.slane %v5110_v47, 5  ;;  %v5102_v37 = vshll.u32 %v15883_v38, 16  ;;  %v435_v15 = vsel %vm15286_vm12, 0, %v434_v51  ;;  %v14237_v0 = vld [vmem:[%s19449_s3 + $0x8] sm:$0xff]  }
 0x2f4   : > { %4391 = vrot.lane.b32.xlu0 %v4332_v36, %s14412_s11  ;;  %v15957_v17 = vrot.slane %v4561_v60, 4  ;;  %v4334_v42 = vsel %vm4298_vm13, %v4332_v36, %v4333_v20  ;;  %v15961_v58 = vld [vmem:[#allocation3 + $0x128] ss:$0 sps:$4 sm:$0x11]   ;;  %436 = vst [vmem:[#allocation3 + $0x164] sm:$0x1] %v435_v15  ;;  %v15968_v38 = vsel %vm4492_vm2, %v4416_v1, %v15769_v22  ;;  %v15973_v36 = vcombine.low %v4850_v44, %v4851_v12 }
 0x2f5   : > { %5316 = vrot.lane.b32.xlu1 %v5258_v28, %s14412_s11  ;;  %13152 = vmatpush3.bf16.msra.mxu0 %v14237_v0  ;;  %v4181_v57 = vrot.slane %v4179_v49, 4  ;;  %v4184_v47 = vrot.slane %v4182_v24, 5  ;;  %v3925_v60 = vld [vmem:[#allocation3 + $0x120] sm:$0xf]  ;;  %v4193_v9 = vor.u32 %v4192_v39, %v4189_v40  ;;  %v5113_v15 = vor.u32 %v5112_v33, %v5109_v23  ;;  %v4848_v49 = vld [vmem:[#allocation3 + $0x110] sm:$0xf] }
 0x2f6   : > { %v15946_v10 = vpop.permute.xlu0 %4359  ;;  %13153 = vmatprep.subr.bf16.mxu0 %v15615_v56  ;;  %v15980_v51 = vcombine.low %v3925_v60, %v3926_v55  ;;  %v13944_v22 = vld [vmem:[#allocation3 + $0x128] ss:$0 sps:$4 sm:$0x11]   ;;  %v3923_v24 = vld [vmem:[#allocation3 + $0x110] sm:$0xf]  ;;  %v4565_v40 = vshrl.u32 %v15968_v38, 16 }
 0x2f7   : > { %v15948_v53 = vpop.permute.xlu1 %4361  ;;  %v15986_v12 = vld [vmem:[%s19449_s3 + $0x60] sm:$0xff]   ;;  %v14239_v55 = vld [vmem:[#allocation3 + $0x5c] sm:$0xf]  ;;  %v4185_v60 = vor.u32 %v4184_v47, %v4181_v57  ;;  %v5265_v44 = vrot.slane %v15973_v36, 5  ;;  %v5266_v3 = vrot.slane %v15961_v58, 5  ;;  %v4342_v57 = vrot.slane %v13944_v22, 5 }
 0x2f8   : > { %4397 = vrot.lane.b32.xlu0 %v4337_v21, %s14412_s11  ;;  %v5101_v21 = vrot.slane %v5099_v25, 4  ;;  %v14238_v25 = vld [vmem:[#allocation3 + $0x58] sm:$0xf]  ;;  %v3894_v33 = vld [vmem:[#allocation3 + $0x54] sm:$0x8]  ;;  %v12155_v0 = vcombine.low %v14239_v55, %v14239_v55  ;;  %13193 = vmatprep.subr.bf16.mxu1 %v15986_v12  ;;  %v4203_v50 = vshrl.u32 %v15980_v51, 16 }
 0x2f9   : > { %4393 = vrot.lane.b32.xlu1 %v4334_v42, %s14412_s11  ;;  %v5104_v42 = vrot.slane %v5102_v37, 5  ;;  %v12154_v23 = vcombine.low %v15971_v62, %v14238_v25  ;;  %v4816_v37 = vld [vmem:[#allocation3 + $0x40] sm:$0x8]  ;;  %13154 = vmatpush3.bf16.msra.mxu0 %v15615_v56  ;;  %v4847_v1 = vld [vmem:[#allocation3 + $0x10c] sm:$0xf]  ;;  %v4341_v25 = vrot.slane %v15980_v51, 5 }
 0x2fa   : > { %v15976_v28 = vpop.permute.xlu0 %4365  ;;  %v16002_v39 = vcombine.low %v4847_v1, %v4848_v49  ;;  %v16004_v56 = vld [vmem:[#allocation3 + $0x40] sm:$0x8]  ;;  %13155 = vmatprep.subr.bf16.mxu0 %v15646_v46  ;;  %v14240_v58 = vld [vmem:[#allocation3 + $0x58] sm:$0xf]  ;;  %v4206_v30 = vshll.u32 %v15980_v51, 16  ;;  %v16011_v34 = vrot.slane %v4565_v40, 3  ;;  %v12152_v11 = vcombine.low %v4816_v37, %v14242_v14 }
 0x2fb   : > { %v15978_v20 = vpop.permute.xlu1 %6697  ;;  %v5105_v47 = vor.u32 %v5104_v42, %v5101_v21  ;;  %v12092_v55 = vcombine.low %v3894_v33, %v14240_v58  ;;  %v14241_v1 = vld [vmem:[#allocation3 + $0x5c] sm:$0xf]  ;;  %v5267_v21 = vsel %vm4298_vm13, %v5265_v44, %v5266_v3  ;;  %v16017_v22 = vld [vmem:[#allocation3 + $0x44] sm:$0xf]  ;;  %v16021_v42 = vld [vmem:[#allocation3 + $0x48] sm:$0xf] }
 0x2fc   : > { %19600 = vst [vmem:[#allocation38_spill] sm:$0xff] %v15978_v20  ;;  %4242 = vrot.lane.b32.xlu0 %v4193_v9, %s14411_s30  ;;  %v12093_v49 = vcombine.low %v14241_v1, %v14241_v1  ;;  %v5123_v14 = vshrl.u32 %v15973_v36, 16  ;;  %v5262_v37 = vrot.slane %v16002_v39, 5  ;;  %v5126_v58 = vshll.u32 %v15973_v36, 16 }
 0x2fd   : > { %5168 = vrot.lane.b32.xlu1 %v5113_v15, %s14411_s30  ;;  %v16006_v15 = vcombine.low %v3922_v31, %v3923_v24  ;;  %v14243_v31 = vld [vmem:[#allocation3 + $0x48] sm:$0xf]  ;;  %13156 = vmatpush3.bf16.msra.mxu0 %v15646_v46  ;;  %v16036_v40 = vrot.slane %v4206_v30, 5  ;;  %v13945_v30 = vld [vmem:[#allocation3 + $0x114] ss:$0 sps:$4 sm:$0x11]  }
 0x2fe   : > { %v15999_v9 = vpop.permute.xlu0 %6695  ;;  %v12153_v24 = vcombine.low %v14243_v31, %v14243_v31  ;;  %13157 = vmatprep.subr.bf16.mxu0 %v15663_v7  ;;  %v16034_v31 = vrot.slane %v4203_v50, 4  ;;  %v5115_v7 = vshrl.u32 %v16002_v39, 16  ;;  %v19611_v32 = vrot.slane %v15725_v8, 5 }
 0x2ff   : > { %19601 = vst [vmem:[#allocation39_spill] sm:$0xff] %v15999_v9  ;;  %v5153_v62 = vpop.permute.xlu1 %5152 }
 0x300   : > { %4240 = vrot.lane.b32.xlu0 %v4185_v60, %s14411_s30  ;;  %v13941_v60 = vld [vmem:[#allocation3 + $0x114] ss:$0 sps:$4 sm:$0x11]   ;;  %v5355_v1 = vsel %vm4411_vm1, %v12154_v23, %v5153_v62  ;;  %v5357_v51 = vsel %vm4411_vm1, %v12155_v0, %v5153_v62  ;;  %v16049_v23 = vrot.slane %v5123_v14, 4  ;;  %v5118_v0 = vshll.u32 %v16002_v39, 16  ;;  %v14247_v14 = vld [vmem:[%s19449_s3 + $0x28] sm:$0xff]  }
 0x301   : > { %5166 = vrot.lane.b32.xlu1 %v5105_v47, %s14411_s30  ;;  %v16030_v47 = vsel %vm4298_vm13, %v4341_v25, %v4342_v57  ;;  %v5263_v57 = vrot.slane %v13941_v60, 5  ;;  %v5433_v39 = vsel %vm4492_vm2, %v5357_v51, %v15888_v41 }
 0x302   : > { %v4227_v33 = vpop.permute.xlu0 %4226 }
 0x303   : > { %v5151_v46 = vpop.permute.xlu1 %5150  ;;  %v4434_v35 = vsel %vm4411_vm1, %v12092_v55, %v4227_v33  ;;  %v16056_v55 = vrot.slane %v5126_v58, 5 }
 0x304   : > { %v5350_v5 = vsel %vm4411_vm1, %v12152_v11, %v5151_v46  ;;  %v5352_v3 = vsel %vm4411_vm1, %v12153_v24, %v5151_v46  ;;  %5326 = vrot.lane.b32.xlu0 %v5265_v44, %s14412_s11  ;;  %v4195_v44 = vshrl.u32 %v16006_v15, 16  ;;  %v4510_v24 = vsel %vm4492_vm2, %v4434_v35, %v15873_v45 }
 0x305   : > { %v5427_v36 = vsel %vm4492_vm2, %v5350_v5, %v15919_v4  ;;  %v5429_v50 = vsel %vm4492_vm2, %v5352_v3, %v15921_v27  ;;  %4403 = vrot.lane.b32.xlu1 %v4341_v25, %s14412_s11  ;;  %v4198_v5 = vshll.u32 %v16006_v15, 16  ;;  %v14246_v4 = vld [vmem:[%s19449_s3 + $0x20] sm:$0xff]   ;;  %v5431_v27 = vsel %vm4492_vm2, %v5355_v1, %v15886_v18 }
 0x306   : > { %v16052_v62 = vpop.permute.xlu0 %6567  ;;  %13158 = vmatpush3.bf16.msra.mxu0 %v14246_v4  ;;  %v4436_v25 = vsel %vm4411_vm1, %v12093_v49, %v4227_v33  ;;  %v5512_v46 = vshrl.u32 %v5427_v36, 16  ;;  %v5515_v60 = vshll.u32 %v5427_v36, 16  ;;  %v5519_v3 = vshrl.u32 %v5429_v50, 16  ;;  %v4857_v4 = vld [vmem:[#allocation3 + $0x14c] sm:$0xf] }
 0x307   : > { %v16054_v11 = vpop.permute.xlu1 %6565  ;;  %13159 = vmatprep.subr.bf16.mxu0 %v14247_v14  ;;  %v5522_v58 = vshll.u32 %v5429_v50, 16  ;;  %v4339_v18 = vrot.slane %v13945_v30, 5  ;;  %v16077_v49 = vrot.slane %v5115_v7, 4  ;;  %v16079_v35 = vrot.slane %v5118_v0, 5 }
 0x308   : > { %5322 = vrot.lane.b32.xlu0 %v5262_v37, %s14412_s11  ;;  %v5527_v45 = vshrl.u32 %v5431_v27, 16  ;;  %v5530_v51 = vshll.u32 %v5431_v27, 16  ;;  %v4512_v33 = vsel %vm4492_vm2, %v4436_v25, %v15976_v28  ;;  %v5264_v50 = vsel %vm4298_vm13, %v5262_v37, %v5263_v57  ;;  %v4856_v28 = vld [vmem:[#allocation3 + $0x148] sm:$0xf] }
 0x309   : > { %5328 = vrot.lane.b32.xlu1 %v5267_v21, %s14412_s11  ;;  %v5534_v21 = vshrl.u32 %v5433_v39, 16  ;;  %v5537_v30 = vshll.u32 %v5433_v39, 16  ;;  %v4618_v63 = vshrl.u32 %v4510_v24, 16  ;;  %v4621_v41 = vshll.u32 %v4510_v24, 16 }
 0x30a   : > { %v4225_v1 = vpop.permute.xlu0 %4224  ;;  %13160 = vmatpush3.bf16.msra.mxu0 %v14247_v14  ;;  %v5514_v7 = vrot.slane %v5512_v46, 3  ;;  %v5517_v59 = vrot.slane %v5515_v60, 4  ;;  %v5521_v0 = vrot.slane %v5519_v3, 3  ;;  %v5524_v20 = vrot.slane %v5522_v58, 4 }
 0x30b   : > { %v16083_v36 = vpop.permute.xlu1 %4371  ;;  %v19602_v27 = vrot.slane %v16006_v15, 5  ;;  %v4625_v25 = vshrl.u32 %v4512_v33, 16  ;;  %v4628_v9 = vshll.u32 %v4512_v33, 16  ;;  %v16090_v37 = vrot.slane %v4195_v44, 4 }
 0x30c   : > { %v16092_v57 = vcombine.low %v4856_v28, %v4857_v4  ;;  %v5529_v39 = vrot.slane %v5527_v45, 3  ;;  %v5532_v14 = vrot.slane %v5530_v51, 4  ;;  %v4200_v58 = vrot.slane %v4198_v5, 5 }
 0x30d   : > { %4399 = vrot.lane.b32.xlu0 %v19602_v27, %s14412_s11  ;;  %5324 = vrot.lane.b32.xlu1 %v5264_v50, %s14412_s11  ;;  %v19603_v60 = vmov %v19602_v27  ;;  %v5536_v27 = vrot.slane %v5534_v21, 3  ;;  %v5539_v6 = vrot.slane %v5537_v30, 4  ;;  %v16101_v33 = vrot.slane %v4618_v63, 3 }
 0x30e   : > { %v16094_v24 = vpop.permute.xlu0 %5294  ;;  %v4340_v3 = vsel %vm4298_vm13, %v19603_v60, %v4339_v18  ;;  %v16103_v50 = vrot.slane %v4621_v41, 4  ;;  %v19604_v44 = vcombine.low %v16004_v56, %v16017_v22  ;;  %v19605_v51 = vcombine.low %v16021_v42, %v16021_v42  ;;  %v16120_v22 = vld [vmem:[#allocation3 + $0xc4] ss:$0 sps:$4 sm:$0x11]  }
 0x30f   : > { %v16096_v46 = vpop.permute.xlu1 %5296  ;;  %v5518_v15 = vor.u32 %v5517_v59, %v5514_v7  ;;  %v5525_v28 = vor.u32 %v5524_v20, %v5521_v0  ;;  %v4627_v5 = vrot.slane %v4625_v25, 3  ;;  %v4630_v63 = vrot.slane %v4628_v9, 4  ;;  %v16129_v7 = vld [vmem:[#allocation3 + $0x150] ss:$0 sps:$4 sm:$0x11]  }
 0x310   : > { %v4429_v45 = vsel %vm4411_vm1, %v19604_v44, %v4225_v1  ;;  %v4431_v4 = vsel %vm4411_vm1, %v19605_v51, %v4225_v1  ;;  %v5533_v30 = vor.u32 %v5532_v14, %v5529_v39  ;;  %v4854_v0 = vld [vmem:[#allocation3 + $0x138] sm:$0xf]  ;;  %v3928_v51 = vld [vmem:[#allocation3 + $0x134] sm:$0xf] }
 0x311   : > { %4405 = vrot.lane.b32.xlu0 %v16030_v47, %s14412_s11  ;;  %v4506_v18 = vsel %vm4492_vm2, %v4429_v45, %v15946_v10  ;;  %v4508_v56 = vsel %vm4492_vm2, %v4431_v4, %v15948_v53  ;;  %4401 = vrot.lane.b32.xlu1 %v4340_v3, %s14412_s11  ;;  %v3929_v47 = vld [vmem:[#allocation3 + $0x138] sm:$0xf]  ;;  %v5526_v9 = vsel %vm4557_vm4, %v5518_v15, %v5525_v28  ;;  %v4853_v39 = vld [vmem:[#allocation3 + $0x134] sm:$0xf] }
 0x312   : > { %v4603_v42 = vshrl.u32 %v4506_v18, 16  ;;  %v4606_v41 = vshll.u32 %v4506_v18, 16  ;;  %v4610_v1 = vshrl.u32 %v4508_v56, 16  ;;  %v4613_v59 = vshll.u32 %v4508_v56, 16  ;;  %v16122_v20 = vpop.permute.xlu0 %5290  ;;  %13121 = vmatprep.mubr.msk.bf16.mxu0 %vm5771_vm3, %v5526_v9  ;;  %v16150_v18 = vld [vmem:[#allocation3 + $0x7c] sm:$0x8] }
 0x313   : > { %v16124_v21 = vpop.permute.xlu1 %5292  ;;  %v5540_v10 = vor.u32 %v5539_v6, %v5536_v27  ;;  %v5129_v53 = vor.u32 %v16056_v55, %v16049_v23  ;;  %v19606_v45 = vor.u32 %v16036_v40, %v16034_v31  ;;  %v4624_v23 = vor.u32 %v16103_v50, %v16101_v33  ;;  %v16142_v27 = vld [vmem:[#allocation3 + $0xd8] ss:$0 sps:$4 sm:$0x11]   ;;  %v16154_v33 = vld [vmem:[#allocation3 + $0x7c] sm:$0x8] }
 0x314   : > { %v4605_v25 = vrot.slane %v4603_v42, 3  ;;  %v4608_v60 = vrot.slane %v4606_v41, 4  ;;  %v4612_v3 = vrot.slane %v4610_v1, 3  ;;  %v4615_v44 = vrot.slane %v4613_v59, 4  ;;  %v6247_v41 = vld [vmem:[#allocation3 + $0xac] sm:$0xf] }
 0x315   : > { %4246 = vrot.lane.b32.xlu0 %v19606_v45, %s14411_s30  ;;  %v5541_v6 = vsel %vm4557_vm4, %v5533_v30, %v5540_v10  ;;  %5172 = vrot.lane.b32.xlu1 %v5129_v53, %s14411_s30  ;;  %v4631_v55 = vor.u32 %v4630_v63, %v4627_v5  ;;  %v16140_v14 = vcombine.low %v3928_v51, %v3929_v47  ;;  %v19607_v50 = vshll.u32 %v15968_v38, 16  ;;  %v16170_v59 = vld [vmem:[#allocation3 + $0x13c] ss:$0 sps:$4 sm:$0x11]   ;;  %v16177_v9 = vld [vmem:[#allocation3 + $0x68] sm:$0x8] }
 0x316   : > { %13122 = vmatmul.mubr.msk.bf16.gmra.mrb[36].mxu0 %vm5771_vm3, %v5541_v6  ;;  %v4609_v4 = vor.u32 %v4608_v60, %v4605_v25  ;;  %v4616_v15 = vor.u32 %v4615_v44, %v4612_v3  ;;  %v16145_v40 = vpop.permute.xlu0 %4367  ;;  %v4201_v28 = vor.u32 %v4200_v58, %v16090_v37  ;;  %v16152_v56 = vcombine.low %v4853_v39, %v4854_v0  ;;  %v13988_v37 = vld [vmem:[%s19449_s3 + $0x68] sm:$0xff]   ;;  %v16191_v60 = vld [vmem:[#allocation3 + $0x84] sm:$0xf]  ;;  %v16195_v44 = vld [vmem:[#allocation3 + $0x68] sm:$0x8] }
 0x317   : > { %v16147_v31 = vpop.permute.xlu1 %4369  ;;  %v16158_v5 = vrot.slane %v19607_v50, 4  ;;  %v5121_v63 = vor.u32 %v16079_v35, %v16077_v49  ;;  %v5271_v42 = vrot.slane %v16092_v57, 5  ;;  %v5272_v38 = vrot.slane %v16129_v7, 5  ;;  %v6246_v6 = vld [vmem:[#allocation3 + $0xa8] sm:$0xf] }
 0x318   : > { %v4617_v58 = vsel %vm4557_vm4, %v4609_v4, %v4616_v15  ;;  %v5139_v47 = vshrl.u32 %v16092_v57, 16  ;;  %v5142_v49 = vshll.u32 %v16092_v57, 16  ;;  %v4632_v35 = vsel %vm4557_vm4, %v4624_v23, %v4631_v55  ;;  %v16187_v57 = vld [vmem:[#allocation3 + $0x80] sm:$0xf]  ;;  %v16205_v4 = vld [vmem:[#allocation3 + $0x84] sm:$0xf] }
 0x319   : > { %4244 = vrot.lane.b32.xlu0 %v4201_v28, %s14411_s30  ;;  %13166 = vmatmul.mubr.msk.bf16.vlgmr.msra.gmra.mrb[0].mxu1 %vm5771_vm3, %v4617_v58  ;;  %v4211_v30 = vshrl.u32 %v16140_v14, 16  ;;  %v4214_v10 = vshll.u32 %v16140_v14, 16  ;;  %v12158_v25 = vcombine.low %v16150_v18, %v16187_v57  ;;  %v12159_v3 = vcombine.low %v16191_v60, %v16191_v60  ;;  %v16201_v55 = vld [vmem:[#allocation3 + $0x80] sm:$0xf]  ;;  %v14253_v60 = vld [vmem:[#allocation3 + $0x70] sm:$0xf] }
 0x31a   : > { %5170 = vrot.lane.b32.xlu1 %v5121_v63, %s14411_s30  ;;  %13169 = vmatprep.mubr.msk.bf16.mxu1 %vm5771_vm3, %v4632_v35  ;;  %v16183_v7 = vpop.permute.xlu0 %4373  ;;  %v5131_v45 = vshrl.u32 %v16152_v56, 16  ;;  %v5134_v51 = vshll.u32 %v16152_v56, 16  ;;  %v5268_v23 = vrot.slane %v16152_v56, 5  ;;  %v13951_v28 = vld [vmem:[#allocation3 + $0x13c] ss:$0 sps:$4 sm:$0x11]   ;;  %v16209_v18 = vcombine.low %v6246_v6, %v6247_v41 }
 0x31b   : > { %v16185_v0 = vpop.permute.xlu1 %6705  ;;  %13194 = vmatpush3.bf16.msra.mxu1 %v15986_v12  ;;  %v13992_v12 = vld [vmem:[%s19449_s3 + $0x70] sm:$0xff]   ;;  %v5273_v56 = vsel %vm4298_vm13, %v5271_v42, %v5272_v38  ;;  %v5269_v50 = vrot.slane %v16170_v59, 5  ;;  %v16217_v63 = vrot.slane %v5139_v47, 4  ;;  %v16219_v58 = vrot.slane %v5142_v49, 5  ;;  %v14252_v41 = vld [vmem:[#allocation3 + $0x6c] sm:$0xf] }
 0x31c   : > { %19608 = vst [vmem:[#allocation40_spill] sm:$0xff] %v16185_v0  ;;  %13195 = vmatprep.subr.bf16.mxu1 %v13988_v37  ;;  %v6250_v35 = vld [vmem:[#allocation3 + $0xc0] sm:$0xf]  ;;  %v12156_v57 = vcombine.low %v16177_v9, %v14252_v41  ;;  %v12157_v6 = vcombine.low %v14253_v60, %v14253_v60  ;;  %v16223_v53 = vrot.slane %v4211_v30, 4  ;;  %v16225_v1 = vrot.slane %v4214_v10, 5 }
 0x31d   : > { %5334 = vrot.lane.b32.xlu0 %v5271_v42, %s14412_s11  ;;  %v16227_v15 = vld [vmem:[#allocation3 + $0xa4] sm:$0x8]  ;;  %v4344_v47 = vrot.slane %v16140_v14, 5  ;;  %v16234_v49 = vld [vmem:[#allocation3 + $0x6c] sm:$0xf]  ;;  %v16240_v30 = vrot.slane %v5134_v51, 5  ;;  %v5145_v51 = vor.u32 %v16219_v58, %v16217_v63 }
 0x31e   : > { %5336 = vrot.lane.b32.xlu1 %v5273_v56, %s14412_s11  ;;  %v16229_v42 = vld [vmem:[#allocation3 + $0xa4] sm:$0x8]  ;;  %v16231_v38 = vpop.permute.xlu0 %6703  ;;  %v16238_v56 = vrot.slane %v5131_v45, 4  ;;  %v6249_v10 = vld [vmem:[#allocation3 + $0xbc] sm:$0xf]  ;;  %v4345_v41 = vrot.slane %v13951_v28, 5  ;;  %v5270_v45 = vsel %vm4298_vm13, %v5268_v23, %v5269_v50 }
 0x31f   : > { %19609 = vst [vmem:[#allocation41_spill] sm:$0xff] %v16231_v38  ;;  %v5157_v59 = vpop.permute.xlu1 %5156  ;;  %13196 = vmatpush3.bf16.msra.mxu1 %v13988_v37  ;;  %v6484_v39 = vshrl.u32 %v16209_v18, 16  ;;  %v16244_v0 = vcombine.low %v6249_v10, %v6250_v35  ;;  %v13993_v14 = vld [vmem:[%s19449_s3 + $0x78] sm:$0xff]   ;;  %v16253_v37 = vld [vmem:[#allocation3 + $0x70] sm:$0xf]  ;;  %v4217_v10 = vor.u32 %v16225_v1, %v16223_v53  ;;  %v6487_v53 = vshll.u32 %v16209_v18, 16 }
 0x320   : > { %13197 = vmatprep.subr.bf16.mxu1 %v13992_v12  ;;  %v16257_v9 = vld [vmem:[#allocation3 + $0xa8] sm:$0xf]  ;;  %v16265_v50 = vld [vmem:[#allocation3 + $0xac] sm:$0xf]  ;;  %v5365_v60 = vsel %vm4411_vm1, %v12158_v25, %v5157_v59  ;;  %v5367_v35 = vsel %vm4411_vm1, %v12159_v3, %v5157_v59  ;;  %v19610_v63 = vrot.slane %v15898_v61, 5  ;;  %v13996_v59 = vld [vmem:[%s19449_s3 + $0x80] sm:$0xff]   ;;  %v19613_v61 = vcombine.low %v16205_v4, %v16205_v4 }
 0x321   : > { %5330 = vrot.lane.b32.xlu0 %v5268_v23, %s14412_s11  ;;  %v16269_v58 = vld [vmem:[#allocation3 + $0xa8] sm:$0xf]  ;;  %v4346_v23 = vsel %vm4298_vm13, %v4344_v47, %v4345_v41  ;;  %v16286_v25 = vrot.slane %v6484_v39, 4  ;;  %v5439_v3 = vsel %vm4492_vm2, %v5365_v60, %v16094_v24  ;;  %v5441_v1 = vsel %vm4492_vm2, %v5367_v35, %v16096_v46  ;;  %v6252_v46 = vld [vmem:[#allocation3 + $0xd0] sm:$0xf] }
 0x322   : > { %5332 = vrot.lane.b32.xlu1 %v5270_v45, %s14412_s11  ;;  %v4231_v45 = vpop.permute.xlu0 %4230  ;;  %v16284_v28 = vsel %vm4298_vm13, %v19611_v32, %v19610_v63  ;;  %v5557_v35 = vshrl.u32 %v5439_v3, 16 }
 0x323   : > { %v5155_v38 = vpop.permute.xlu1 %5154  ;;  %13198 = vmatpush3.bf16.msra.mxu1 %v13992_v12  ;;  %v19612_v12 = vcombine.low %v16154_v33, %v16201_v55  ;;  %v4446_v32 = vsel %vm4411_vm1, %v19613_v61, %v4231_v45 }
 0x324   : > { %13199 = vmatprep.subr.bf16.mxu1 %v13993_v14  ;;  %v5360_v39 = vsel %vm4411_vm1, %v12156_v57, %v5155_v38  ;;  %v5362_v63 = vsel %vm4411_vm1, %v12157_v6, %v5155_v38  ;;  %v4520_v57 = vsel %vm4492_vm2, %v4446_v32, %v16183_v7  ;;  %v16320_v38 = vrot.slane %v6487_v53, 5  ;;  %v6253_v7 = vld [vmem:[#allocation3 + $0xd4] sm:$0xf] }
 0x325   : > { %v4444_v41 = vsel %vm4411_vm1, %v19612_v12, %v4231_v45  ;;  %4407 = vrot.lane.b32.xlu0 %v4344_v47, %s14412_s11  ;;  %v5435_v33 = vsel %vm4492_vm2, %v5360_v39, %v16122_v20  ;;  %v5437_v55 = vsel %vm4492_vm2, %v5362_v63, %v16124_v21  ;;  %v5567_v45 = vshll.u32 %v5441_v1, 16 }
 0x326   : > { %4409 = vrot.lane.b32.xlu1 %v4346_v23, %s14412_s11  ;;  %v4518_v4 = vsel %vm4492_vm2, %v4444_v41, %v16083_v36  ;;  %v16316_v6 = vpop.permute.xlu0 %6571  ;;  %v5542_v20 = vshrl.u32 %v5435_v33, 16  ;;  %v5545_v47 = vshll.u32 %v5435_v33, 16  ;;  %v5549_v21 = vshrl.u32 %v5437_v55, 16 }
 0x327   : > { %v16318_v24 = vpop.permute.xlu1 %6569  ;;  %13200 = vmatpush3.bf16.msra.mxu1 %v13993_v14  ;;  %v5552_v60 = vshll.u32 %v5437_v55, 16  ;;  %v5560_v23 = vshll.u32 %v5439_v3, 16  ;;  %v5564_v36 = vshrl.u32 %v5441_v1, 16  ;;  %v4648_v32 = vshrl.u32 %v4518_v4, 16 }
 0x328   : > { %13201 = vmatprep.subr.bf16.mxu1 %v13996_v59  ;;  %v5544_v12 = vrot.slane %v5542_v20, 3  ;;  %v5547_v41 = vrot.slane %v5545_v47, 4  ;;  %v5551_v61 = vrot.slane %v5549_v21, 3  ;;  %v4651_v14 = vshll.u32 %v4518_v4, 16 }
 0x329   : > { %4248 = vrot.lane.b32.xlu0 %v4217_v10, %s14411_s30  ;;  %v5554_v53 = vrot.slane %v5552_v60, 4  ;;  %v4655_v39 = vshrl.u32 %v4520_v57, 16  ;;  %v4658_v63 = vshll.u32 %v4520_v57, 16  ;;  %v19614_v1 = vcombine.low %v16195_v44, %v16234_v49 }
 0x32a   : > { %5176 = vrot.lane.b32.xlu1 %v5145_v51, %s14411_s30  ;;  %v4229_v33 = vpop.permute.xlu0 %4228  ;;  %v19615_v3 = vcombine.low %v16253_v37, %v16253_v37  ;;  %v6490_v51 = vor.u32 %v16320_v38, %v16286_v25  ;;  %v16337_v4 = vcombine.low %v6252_v46, %v6253_v7  ;;  %v5559_v57 = vrot.slane %v5557_v35, 3  ;;  %v6255_v38 = vld [vmem:[#allocation3 + $0xe4] sm:$0xf]  ;;  %v6256_v46 = vld [vmem:[#allocation3 + $0xe8] sm:$0xf] }
 0x32b   : > { %v16325_v55 = vpop.permute.xlu1 %4379  ;;  %13202 = vmatpush3.bf16.msra.mxu1 %v13996_v59  ;;  %v4439_v10 = vsel %vm4411_vm1, %v19614_v1, %v4229_v33  ;;  %v5562_v47 = vrot.slane %v5560_v23, 4  ;;  %v5566_v21 = vrot.slane %v5564_v36, 3  ;;  %v5569_v60 = vrot.slane %v5567_v45, 4 }
 0x32c   : > { %v4441_v20 = vsel %vm4411_vm1, %v19615_v3, %v4229_v33  ;;  %v19616_v59 = vrot.slane %v15725_v8, 5  ;;  %v4514_v44 = vsel %vm4492_vm2, %v4439_v10, %v16145_v40  ;;  %v5548_v37 = vor.u32 %v5547_v41, %v5544_v12  ;;  %v13998_v40 = vld [vmem:[%s19449_s3 + $0x88] sm:$0xff]  }
 0x32d   : > { %v4516_v49 = vsel %vm4492_vm2, %v4441_v20, %v16147_v31  ;;  %v5555_v33 = vor.u32 %v5554_v53, %v5551_v61  ;;  %v19617_v25 = vor.u32 %v16240_v30, %v16238_v56  ;;  %v4650_v35 = vrot.slane %v4648_v32, 3  ;;  %v6259_v56 = vld [vmem:[#allocation3 + $0xfc] sm:$0xf]  ;;  %v6258_v20 = vld [vmem:[#allocation3 + $0xf8] sm:$0xf]  ;;  %13203 = vmatprep.subr.bf16.mxu1 %v13998_v40 }
 0x32e   : > { %6707 = vrot.lane.b32.xlu0 %v19616_v59, %s14412_s11  ;;  %v4653_v23 = vrot.slane %v4651_v14, 4  ;;  %v4657_v36 = vrot.slane %v4655_v39, 3  ;;  %v4660_v8 = vrot.slane %v4658_v63, 4  ;;  %v16350_v45 = vpop.permute.xlu0 %5302  ;;  %v4633_v31 = vshrl.u32 %v4514_v44, 16 }
 0x32f   : > { %5174 = vrot.lane.b32.xlu1 %v19617_v25, %s14411_s30  ;;  %v16352_v7 = vpop.permute.xlu1 %5304  ;;  %v4636_v12 = vshll.u32 %v4514_v44, 16  ;;  %v4640_v41 = vshrl.u32 %v4516_v49, 16  ;;  %v4643_v61 = vshll.u32 %v4516_v49, 16  ;;  %v5556_v30 = vsel %vm4557_vm4, %v5548_v37, %v5555_v33  ;;  %13204 = vmatpush3.bf16.msra.mxu1 %v13998_v40  ;;  %v16391_v40 = vld [vmem:[#allocation3 + $0xac] sm:$0xf] }
 0x330   : > { %v5563_v53 = vor.u32 %v5562_v47, %v5559_v57  ;;  %v5570_v32 = vor.u32 %v5569_v60, %v5566_v21  ;;  %v19618_v14 = vrot.slane %v15762_v16, 5  ;;  %v16361_v39 = vcombine.low %v6255_v38, %v6256_v46  ;;  %13125 = vmatprep.mubr.msk.bf16.mxu0 %vm5771_vm3, %v5556_v30  ;;  %v16378_v46 = vld [vmem:[#allocation3 + $0x90] sm:$0x8]  ;;  %v6261_v30 = vld [vmem:[#allocation3 + $0x10c] sm:$0xf] }
 0x331   : > { %v4635_v63 = vrot.slane %v4633_v31, 3  ;;  %v4638_v1 = vrot.slane %v4636_v12, 4  ;;  %v4642_v10 = vrot.slane %v4640_v41, 3  ;;  %v4645_v3 = vrot.slane %v4643_v61, 4  ;;  %v6262_v31 = vld [vmem:[#allocation3 + $0x110] sm:$0xf] }
 0x332   : > { %6711 = vrot.lane.b32.xlu0 %v19618_v14, %s14412_s11  ;;  %v5571_v59 = vsel %vm4557_vm4, %v5563_v53, %v5570_v32  ;;  %v16367_v57 = vpop.permute.xlu0 %5298  ;;  %v4654_v21 = vor.u32 %v4653_v23, %v4650_v35  ;;  %v4661_v60 = vor.u32 %v4660_v8, %v4657_v36  ;;  %v16371_v44 = vcombine.low %v6258_v20, %v6259_v56  ;;  %v13968_v61 = vld [vmem:[#allocation3 + $0xec] ss:$0 sps:$4 sm:$0x11]   ;;  %v14260_v20 = vld [vmem:[#allocation3 + $0x94] sm:$0xf] }
 0x333   : > { %6709 = vrot.lane.b32.xlu1 %v16284_v28, %s14412_s11  ;;  %v16369_v47 = vpop.permute.xlu1 %5300  ;;  %13126 = vmatmul.mubr.msk.bf16.gmra.mrb[40].mxu0 %vm5771_vm3, %v5571_v59  ;;  %v4639_v49 = vor.u32 %v4638_v1, %v4635_v63  ;;  %v4646_v37 = vor.u32 %v4645_v3, %v4642_v10  ;;  %v19619_v33 = vshrl.u32 %v16244_v0, 16  ;;  %v19620_v28 = vshll.u32 %v16244_v0, 16 }
 0x334   : > { %v19621_v35 = vrot.slane %v15932_v54, 5  ;;  %v19622_v23 = vmov %v19618_v14  ;;  %v6661_v8 = vrot.slane %v16209_v18, 5  ;;  %v6500_v12 = vshrl.u32 %v16337_v4, 16 }
 0x335   : > { %v6494_v25 = vrot.slane %v19619_v33, 4  ;;  %v6497_v38 = vrot.slane %v19620_v28, 5  ;;  %v6503_v41 = vshll.u32 %v16337_v4, 16  ;;  %v4647_v56 = vsel %vm4557_vm4, %v4639_v49, %v4646_v37  ;;  %v14261_v49 = vld [vmem:[#allocation3 + $0x98] sm:$0xf] }
 0x336   : > { %v6660_v36 = vsel %vm4298_vm13, %v19622_v23, %v19621_v35  ;;  %6575 = vrot.lane.b32.xlu0 %v6490_v51, %s14411_s30  ;;  %v12101_v16 = vcombine.low %v16391_v40, %v16391_v40  ;;  %v6508_v54 = vshrl.u32 %v16361_v39, 16  ;;  %v6511_v51 = vshll.u32 %v16361_v39, 16  ;;  %13170 = vmatmul.mubr.msk.bf16.gmra.mrb[4].mxu1 %vm5771_vm3, %v4647_v56  ;;  %v16399_v53 = vpop.permute.xlu0 %4375 }
 0x337   : > { %6713 = vrot.lane.b32.xlu1 %v6660_v36, %s14412_s11  ;;  %v4662_v18 = vsel %vm4557_vm4, %v4654_v21, %v4661_v60  ;;  %v16401_v32 = vpop.permute.xlu1 %4377  ;;  %v6516_v14 = vshrl.u32 %v16371_v44, 16  ;;  %v6519_v63 = vshll.u32 %v16371_v44, 16  ;;  %v16405_v1 = vcombine.low %v6261_v30, %v6262_v31  ;;  %v16414_v31 = vld [vmem:[#allocation3 + $0x90] sm:$0x8] }
 0x338   : > { %13173 = vmatprep.mubr.msk.bf16.mxu1 %vm5771_vm3, %v4662_v18  ;;  %v6498_v10 = vor.u32 %v6497_v38, %v6494_v25  ;;  %v6664_v3 = vrot.slane %v16244_v0, 5  ;;  %v12160_v59 = vcombine.low %v16378_v46, %v14260_v20  ;;  %v12161_v21 = vcombine.low %v14261_v49, %v14261_v49  ;;  %v14262_v18 = vld [vmem:[#allocation3 + $0x94] sm:$0xf] }
 0x339   : > { %v19623_v60 = vrot.slane %v15907_v26, 5  ;;  %v6502_v33 = vrot.slane %v6500_v12, 4  ;;  %v6505_v28 = vrot.slane %v6503_v41, 5  ;;  %v6667_v35 = vrot.slane %v16337_v4, 5 }
 0x33a   : > { %6715 = vrot.lane.b32.xlu0 %v6661_v8, %s14412_s11  ;;  %v16418_v0 = vrot.slane %v6508_v54, 4  ;;  %v16420_v25 = vrot.slane %v6511_v51, 5  ;;  %v6670_v38 = vrot.slane %v16361_v39, 5  ;;  %v6671_v46 = vrot.slane %v13968_v61, 5  ;;  %v4382_v23 = vpop.permute.xlu0 %4381 }
 0x33b   : > { %v6663_v37 = vsel %vm4298_vm13, %v6661_v8, %v19623_v60  ;;  %6577 = vrot.lane.b32.xlu1 %v6498_v10, %s14411_s30  ;;  %v5161_v36 = vpop.permute.xlu1 %5160  ;;  %v16423_v26 = vrot.slane %v6516_v14, 4  ;;  %v16425_v8 = vrot.slane %v6519_v63, 5  ;;  %v6524_v12 = vshrl.u32 %v16405_v1, 16 }
 0x33c   : > { %v6527_v41 = vshll.u32 %v16405_v1, 16  ;;  %v19624_v4 = vcombine.low %v16227_v15, %v16257_v9  ;;  %v19625_v54 = vcombine.low %v16265_v50, %v16265_v50  ;;  %v19626_v51 = vrot.slane %v16120_v22, 5  ;;  %v14263_v9 = vld [vmem:[#allocation3 + $0x98] sm:$0xf] }
 0x33d   : > { %v12098_v14 = vcombine.low %v16414_v31, %v14262_v18  ;;  %v12099_v10 = vcombine.low %v14263_v9, %v14263_v9  ;;  %v19627_v50 = vrot.slane %v16142_v27, 5  ;;  %v6506_v60 = vor.u32 %v6505_v28, %v6502_v33 }
 0x33e   : > { %v5375_v56 = vsel %vm4411_vm1, %v19624_v4, %v5161_v36  ;;  %v5377_v61 = vsel %vm4411_vm1, %v19625_v54, %v5161_v36  ;;  %v6666_v30 = vsel %vm4298_vm13, %v6664_v3, %v19626_v51  ;;  %6719 = vrot.lane.b32.xlu0 %v6664_v3, %s14412_s11  ;;  %v6514_v3 = vor.u32 %v16420_v25, %v16418_v0 }
 0x33f   : > { %v5447_v63 = vsel %vm4492_vm2, %v5375_v56, %v16350_v45  ;;  %v5449_v15 = vsel %vm4492_vm2, %v5377_v61, %v16352_v7  ;;  %v16449_v20 = vsel %vm4298_vm13, %v6667_v35, %v19627_v50  ;;  %6717 = vrot.lane.b32.xlu1 %v6663_v37, %s14412_s11  ;;  %v16455_v45 = vsel %vm4298_vm13, %v6670_v38, %v6671_v46  ;;  %v4235_v7 = vpop.permute.xlu0 %4234  ;;  %v5159_v31 = vpop.permute.xlu1 %5158 }
 0x340   : > { %v5587_v22 = vshrl.u32 %v5447_v63, 16  ;;  %v5590_v49 = vshll.u32 %v5447_v63, 16  ;;  %v6522_v27 = vor.u32 %v16425_v8, %v16423_v26  ;;  %v16461_v36 = vrot.slane %v6524_v12, 4 }
 0x341   : > { %v16463_v4 = vrot.slane %v6527_v41, 5  ;;  %v5594_v33 = vshrl.u32 %v5449_v15, 16  ;;  %v5597_v28 = vshll.u32 %v5449_v15, 16  ;;  %v19628_v46 = vcombine.low %v16229_v42, %v16269_v58 }
 0x342   : > { %v16465_v56 = vrot.slane %v5587_v22, 3  ;;  %v16467_v37 = vrot.slane %v5590_v49, 4  ;;  %v4456_v0 = vsel %vm4411_vm1, %v12101_v16, %v4235_v7  ;;  %v5370_v25 = vsel %vm4411_vm1, %v12160_v59, %v5159_v31  ;;  %6579 = vrot.lane.b32.xlu0 %v6506_v60, %s14411_s30 }
 0x343   : > { %v4454_v54 = vsel %vm4411_vm1, %v19628_v46, %v4235_v7  ;;  %v5372_v12 = vsel %vm4411_vm1, %v12161_v21, %v5159_v31  ;;  %v4528_v61 = vsel %vm4492_vm2, %v4456_v0, %v4382_v23  ;;  %v5443_v42 = vsel %vm4492_vm2, %v5370_v25, %v16367_v57  ;;  %6721 = vrot.lane.b32.xlu1 %v6666_v30, %s14412_s11  ;;  %v16488_v21 = vpop.permute.xlu1 %6573  ;;  %v4233_v18 = vpop.permute.xlu0 %4232  ;;  %v6265_v0 = vld [vmem:[#allocation3 + $0x124] sm:$0xf] }
 0x344   : > { %v4526_v41 = vsel %vm4492_vm2, %v4454_v54, %v16325_v55  ;;  %v5445_v58 = vsel %vm4492_vm2, %v5372_v12, %v16369_v47  ;;  %v4685_v59 = vshrl.u32 %v4528_v61, 16  ;;  %v4688_v51 = vshll.u32 %v4528_v61, 16  ;;  %19629 = vst [vmem:[#allocation42_spill] sm:$0xff] %v16488_v21  ;;  %v6264_v61 = vld [vmem:[#allocation3 + $0x120] sm:$0xf] }
 0x345   : > { %v4678_v40 = vshrl.u32 %v4526_v41, 16  ;;  %v4681_v16 = vshll.u32 %v4526_v41, 16  ;;  %v5572_v63 = vshrl.u32 %v5443_v42, 16  ;;  %v5575_v15 = vshll.u32 %v5443_v42, 16 }
 0x346   : > { %v5579_v55 = vshrl.u32 %v5445_v58, 16  ;;  %v5582_v9 = vshll.u32 %v5445_v58, 16  ;;  %v5596_v23 = vrot.slane %v5594_v33, 3  ;;  %v5599_v50 = vrot.slane %v5597_v28, 4  ;;  %6723 = vrot.lane.b32.xlu0 %v6667_v35, %s14412_s11 }
 0x347   : > { %v16490_v22 = vrot.slane %v4678_v40, 3  ;;  %v16492_v57 = vrot.slane %v4681_v16, 4  ;;  %v5574_v47 = vrot.slane %v5572_v63, 3  ;;  %v5577_v30 = vrot.slane %v5575_v15, 4  ;;  %6581 = vrot.lane.b32.xlu1 %v6514_v3, %s14411_s30  ;;  %v16502_v28 = vpop.permute.xlu0 %5310  ;;  %v16504_v54 = vpop.permute.xlu1 %4387 }
 0x348   : > { %v5581_v49 = vrot.slane %v5579_v55, 3  ;;  %v5584_v60 = vrot.slane %v5582_v9, 4  ;;  %v16496_v7 = vrot.slane %v4685_v59, 3  ;;  %v16498_v31 = vrot.slane %v4688_v51, 4  ;;  %v16518_v59 = vld [vmem:[#allocation3 + $0xcc] sm:$0x8] }
 0x349   : > { %v4449_v46 = vsel %vm4411_vm1, %v12098_v14, %v4233_v18  ;;  %v4451_v33 = vsel %vm4411_vm1, %v12099_v10, %v4233_v18  ;;  %v5578_v3 = vor.u32 %v5577_v30, %v5574_v47  ;;  %v13971_v41 = vld [vmem:[#allocation3 + $0x100] ss:$0 sps:$4 sm:$0x11]   ;;  %v6268_v10 = vld [vmem:[#allocation3 + $0x138] sm:$0xf]  ;;  %v16520_v51 = vcombine.low %v6264_v61, %v6265_v0 }
 0x34a   : > { %v4522_v35 = vsel %vm4492_vm2, %v4449_v46, %v16399_v53  ;;  %v4524_v25 = vsel %vm4492_vm2, %v4451_v33, %v16401_v32  ;;  %v5585_v12 = vor.u32 %v5584_v60, %v5581_v49  ;;  %6727 = vrot.lane.b32.xlu0 %v6670_v38, %s14412_s11  ;;  %v5593_v53 = vor.u32 %v16467_v37, %v16465_v56  ;;  %v6267_v9 = vld [vmem:[#allocation3 + $0x134] sm:$0xf]  ;;  %v6271_v30 = vld [vmem:[#allocation3 + $0x14c] sm:$0xf]  ;;  %v6273_v49 = vld [vmem:[#allocation3 + $0x15c] sm:$0xf] }
 0x34b   : > { %v4663_v42 = vshrl.u32 %v4522_v35, 16  ;;  %v4666_v58 = vshll.u32 %v4522_v35, 16  ;;  %v4670_v14 = vshrl.u32 %v4524_v25, 16  ;;  %v4673_v40 = vshll.u32 %v4524_v25, 16  ;;  %6725 = vrot.lane.b32.xlu1 %v16449_v20, %s14412_s11  ;;  %v16523_v39 = vpop.permute.xlu1 %5312  ;;  %v16525_v38 = vpop.permute.xlu0 %5306  ;;  %v6274_v60 = vld [vmem:[#allocation3 + $0x160] sm:$0xf] }
 0x34c   : > { %v5586_v16 = vsel %vm4557_vm4, %v5578_v3, %v5585_v12  ;;  %v5600_v32 = vor.u32 %v5599_v50, %v5596_v23  ;;  %v4684_v56 = vor.u32 %v16492_v57, %v16490_v22  ;;  %v4691_v37 = vor.u32 %v16498_v31, %v16496_v7  ;;  %v16532_v23 = vld [vmem:[#allocation3 + $0xcc] sm:$0x8]  ;;  %v16534_v50 = vld [vmem:[#allocation3 + $0x128] ss:$0 sps:$4 sm:$0x11]  }
 0x34d   : > { %v4665_v18 = vrot.slane %v4663_v42, 3  ;;  %v4668_v63 = vrot.slane %v4666_v58, 4  ;;  %v4672_v15 = vrot.slane %v4670_v14, 3  ;;  %v4675_v55 = vrot.slane %v4673_v40, 4  ;;  %13129 = vmatprep.mubr.msk.bf16.mxu0 %vm5771_vm3, %v5586_v16  ;;  %v6270_v3 = vld [vmem:[#allocation3 + $0x148] sm:$0xf] }
 0x34e   : > { %v5601_v20 = vsel %vm4557_vm4, %v5593_v53, %v5600_v32  ;;  %v16536_v47 = vcombine.low %v6267_v9, %v6268_v10  ;;  %6583 = vrot.lane.b32.xlu0 %v6522_v27, %s14411_s30  ;;  %v6673_v22 = vrot.slane %v16371_v44, 5  ;;  %v6674_v57 = vrot.slane %v13971_v41, 5  ;;  %v13974_v7 = vld [vmem:[#allocation3 + $0x114] ss:$0 sps:$4 sm:$0x11]  }
 0x34f   : > { %13130 = vmatmul.mubr.msk.bf16.gmra.mrb[44].mxu0 %vm5771_vm3, %v5601_v20  ;;  %v4669_v46 = vor.u32 %v4668_v63, %v4665_v18  ;;  %v4676_v33 = vor.u32 %v4675_v55, %v4672_v15  ;;  %6729 = vrot.lane.b32.xlu1 %v16455_v45, %s14412_s11  ;;  %v6676_v0 = vrot.slane %v16405_v1, 5  ;;  %v6532_v35 = vshrl.u32 %v16520_v51, 16  ;;  %v16552_v8 = vpop.permute.xlu1 %5308  ;;  %v16554_v44 = vpop.permute.xlu0 %4383  ;;  %v14264_v27 = vld [vmem:[#allocation3 + $0xd0] sm:$0xf]  ;;  %v14265_v10 = vld [vmem:[#allocation3 + $0xd4] sm:$0xf] }
 0x350   : > { %v6535_v25 = vshll.u32 %v16520_v51, 16  ;;  %v12104_v12 = vcombine.low %v16518_v59, %v14264_v27  ;;  %v16557_v41 = vcombine.low %v6270_v3, %v6271_v30  ;;  %v16559_v61 = vcombine.low %v6273_v49, %v6274_v60  ;;  %v13979_v42 = vld [vmem:[#allocation3 + $0x13c] ss:$0 sps:$4 sm:$0x11]   ;;  %v14266_v53 = vld [vmem:[#allocation3 + $0xd0] sm:$0xf] }
 0x351   : > { %v4677_v26 = vsel %vm4557_vm4, %v4669_v46, %v4676_v33  ;;  %v4692_v1 = vsel %vm4557_vm4, %v4684_v56, %v4691_v37  ;;  %v6530_v45 = vor.u32 %v16463_v4, %v16461_v36  ;;  %v6540_v58 = vshrl.u32 %v16536_v47, 16  ;;  %v16572_v18 = vld [vmem:[#allocation3 + $0xb8] sm:$0x8]  ;;  %v14288_v31 = vld [vmem:[#allocation3 + $0xe8] sm:$0xf] }
 0x352   : > { %13174 = vmatmul.mubr.msk.bf16.gmra.mrb[8].mxu1 %vm5771_vm3, %v4677_v26  ;;  %v6543_v14 = vshll.u32 %v16536_v47, 16  ;;  %6731 = vrot.lane.b32.xlu0 %v6673_v22, %s14412_s11  ;;  %v6675_v40 = vsel %vm4298_vm13, %v6673_v22, %v6674_v57  ;;  %v12105_v16 = vcombine.low %v14265_v10, %v14265_v10  ;;  %v12166_v32 = vcombine.low %v16532_v23, %v14266_v53  ;;  %v16576_v9 = vld [vmem:[#allocation3 + $0xb8] sm:$0x8]  ;;  %v14268_v57 = vld [vmem:[#allocation3 + $0xbc] sm:$0xf] }
 0x353   : > { %13177 = vmatprep.mubr.msk.bf16.mxu1 %vm5771_vm3, %v4692_v1  ;;  %v6677_v59 = vrot.slane %v13974_v7, 5  ;;  %6585 = vrot.lane.b32.xlu1 %v6530_v45, %s14411_s30  ;;  %v6534_v36 = vrot.slane %v6532_v35, 4  ;;  %v6537_v4 = vrot.slane %v6535_v25, 5  ;;  %v6679_v63 = vrot.slane %v16520_v51, 5  ;;  %v4390_v55 = vpop.permute.xlu0 %4389  ;;  %v16582_v30 = vpop.permute.xlu1 %4385  ;;  %v14269_v35 = vld [vmem:[#allocation3 + $0xc0] sm:$0xf] }
 0x354   : > { %v6680_v15 = vrot.slane %v16534_v50, 5  ;;  %v6548_v20 = vshrl.u32 %v16557_v41, 16  ;;  %v6551_v56 = vshll.u32 %v16557_v41, 16  ;;  %v6556_v37 = vshrl.u32 %v16559_v61, 16  ;;  %v14267_v50 = vld [vmem:[#allocation3 + $0xd4] sm:$0xf] }
 0x355   : > { %v6559_v23 = vshll.u32 %v16559_v61, 16  ;;  %v6682_v49 = vrot.slane %v16536_v47, 5  ;;  %v6683_v60 = vrot.slane %v13979_v42, 5  ;;  %v16585_v46 = vrot.slane %v6540_v58, 4  ;;  %v14270_v26 = vld [vmem:[#allocation3 + $0xbc] sm:$0xf] }
 0x356   : > { %v16587_v51 = vrot.slane %v6543_v14, 5  ;;  %6735 = vrot.lane.b32.xlu0 %v6676_v0, %s14412_s11  ;;  %v12167_v33 = vcombine.low %v14267_v50, %v14267_v50  ;;  %v6678_v22 = vsel %vm4298_vm13, %v6676_v0, %v6677_v59  ;;  %v12164_v7 = vcombine.low %v16572_v18, %v14268_v57  ;;  %v14271_v1 = vld [vmem:[#allocation3 + $0xc0] sm:$0xf] }
 0x357   : > { %v12165_v25 = vcombine.low %v14269_v35, %v14269_v35  ;;  %6733 = vrot.lane.b32.xlu1 %v6675_v40, %s14412_s11  ;;  %v6538_v3 = vor.u32 %v6537_v4, %v6534_v36  ;;  %v12102_v27 = vcombine.low %v16576_v9, %v14270_v26  ;;  %v12103_v45 = vcombine.low %v14271_v1, %v14271_v1  ;;  %v4239_v58 = vpop.permute.xlu0 %4238  ;;  %v5165_v36 = vpop.permute.xlu1 %5164 }
 0x358   : > { %v6681_v42 = vsel %vm4298_vm13, %v6679_v63, %v6680_v15  ;;  %v16595_v14 = vrot.slane %v6548_v20, 4  ;;  %v16597_v10 = vrot.slane %v6551_v56, 5  ;;  %v16599_v0 = vrot.slane %v6556_v37, 4 }
 0x359   : > { %v16601_v53 = vrot.slane %v6559_v23, 5  ;;  %v4464_v59 = vsel %vm4411_vm1, %v12104_v12, %v4239_v58  ;;  %v4466_v40 = vsel %vm4411_vm1, %v12105_v16, %v4239_v58  ;;  %v6684_v4 = vsel %vm4298_vm13, %v6682_v49, %v6683_v60 }
 0x35a   : > { %v6546_v18 = vor.u32 %v16587_v51, %v16585_v46  ;;  %v4534_v15 = vsel %vm4492_vm2, %v4464_v59, %v16504_v54  ;;  %v4536_v9 = vsel %vm4492_vm2, %v4466_v40, %v4390_v55  ;;  %v5385_v20 = vsel %vm4411_vm1, %v12166_v32, %v5165_v36  ;;  %6587 = vrot.lane.b32.xlu0 %v6538_v3, %s14411_s30  ;;  %v16696_v51 = vld [vmem:[#allocation3 + $0x7c] sm:$0x8]  ;;  %v14289_v46 = vld [vmem:[#allocation3 + $0xe8] sm:$0xf] }
 0x35b   : > { %v5387_v56 = vsel %vm4411_vm1, %v12167_v33, %v5165_v36  ;;  %v4708_v12 = vshrl.u32 %v4534_v15, 16  ;;  %v4711_v16 = vshll.u32 %v4534_v15, 16  ;;  %v4715_v37 = vshrl.u32 %v4536_v9, 16  ;;  %6737 = vrot.lane.b32.xlu1 %v6678_v22, %s14412_s11  ;;  %v4237_v50 = vpop.permute.xlu0 %4236  ;;  %v5163_v3 = vpop.permute.xlu1 %5162  ;;  %19630 = vst [vmem:[#allocation43_spill] sm:$0xff] %v16696_v51 }
 0x35c   : > { %v4718_v23 = vshll.u32 %v4536_v9, 16  ;;  %v5455_v60 = vsel %vm4492_vm2, %v5385_v20, %v16502_v28  ;;  %v5457_v54 = vsel %vm4492_vm2, %v5387_v56, %v16523_v39  ;;  %v6554_v32 = vor.u32 %v16597_v10, %v16595_v14 }
 0x35d   : > { %v6562_v55 = vor.u32 %v16601_v53, %v16599_v0  ;;  %v16625_v33 = vrot.slane %v4708_v12, 3  ;;  %v16627_v57 = vrot.slane %v4711_v16, 4  ;;  %v16629_v35 = vrot.slane %v4715_v37, 3  ;;  %v16757_v0 = vld [vmem:[#allocation3 + $0x70] sm:$0xf] }
 0x35e   : > { %v16631_v22 = vrot.slane %v4718_v23, 4  ;;  %v5617_v28 = vshrl.u32 %v5455_v60, 16  ;;  %v5620_v26 = vshll.u32 %v5455_v60, 16  ;;  %v5624_v1 = vshrl.u32 %v5457_v54, 16  ;;  %6739 = vrot.lane.b32.xlu0 %v6679_v63, %s14412_s11  ;;  %v14287_v53 = vld [vmem:[#allocation3 + $0xfc] sm:$0xf] }
 0x35f   : > { %v5627_v39 = vshll.u32 %v5457_v54, 16  ;;  %v5380_v58 = vsel %vm4411_vm1, %v12164_v7, %v5163_v3  ;;  %v5382_v14 = vsel %vm4411_vm1, %v12165_v25, %v5163_v3  ;;  %v4459_v10 = vsel %vm4411_vm1, %v12102_v27, %v4237_v50  ;;  %6741 = vrot.lane.b32.xlu1 %v6681_v42, %s14412_s11  ;;  %v16643_v20 = vpop.permute.xlu0 %5318 }
 0x360   : > { %v4461_v59 = vsel %vm4411_vm1, %v12103_v45, %v4237_v50  ;;  %v16639_v40 = vrot.slane %v5617_v28, 3  ;;  %v16641_v36 = vrot.slane %v5620_v26, 4  ;;  %v5626_v15 = vrot.slane %v5624_v1, 3  ;;  %v16653_v45 = vpop.permute.xlu1 %4395  ;;  %v16663_v28 = vld [vmem:[#allocation3 + $0x18] sm:$0x8] }
 0x361   : > { %v5629_v9 = vrot.slane %v5627_v39, 4  ;;  %v5451_v63 = vsel %vm4492_vm2, %v5380_v58, %v16525_v38  ;;  %v5453_v7 = vsel %vm4492_vm2, %v5382_v14, %v16552_v8  ;;  %v4530_v25 = vsel %vm4492_vm2, %v4459_v10, %v16554_v44  ;;  %v16659_v44 = vld [vmem:[#allocation3 + $0x2c] sm:$0x8]  ;;  %v16667_v58 = vld [vmem:[#allocation3 + $0x54] sm:$0x8] }
 0x362   : > { %v4532_v27 = vsel %vm4492_vm2, %v4461_v59, %v16582_v30  ;;  %v5602_v42 = vshrl.u32 %v5451_v63, 16  ;;  %v5605_v56 = vshll.u32 %v5451_v63, 16  ;;  %v5609_v12 = vshrl.u32 %v5453_v7, 16  ;;  %6743 = vrot.lane.b32.xlu0 %v6682_v49, %s14412_s11  ;;  %v16672_v63 = vld [vmem:[#allocation3 + $0x150] ss:$0 sps:$4 sm:$0x11]  }
 0x363   : > { %v5612_v16 = vshll.u32 %v5453_v7, 16  ;;  %v4693_v38 = vshrl.u32 %v4530_v25, 16  ;;  %v4696_v37 = vshll.u32 %v4530_v25, 16  ;;  %v4700_v23 = vshrl.u32 %v4532_v27, 16  ;;  %6745 = vrot.lane.b32.xlu1 %v6684_v4, %s14412_s11  ;;  %v16661_v3 = vpop.permute.xlu0 %5314  ;;  %v16674_v7 = vld [vmem:[#allocation3 + $0x40] sm:$0x8] }
 0x364   : > { %v4703_v8 = vshll.u32 %v4532_v27, 16  ;;  %v5604_v60 = vrot.slane %v5602_v42, 3  ;;  %v5607_v30 = vrot.slane %v5605_v56, 4  ;;  %v5611_v54 = vrot.slane %v5609_v12, 3  ;;  %v16665_v39 = vpop.permute.xlu1 %5320  ;;  %v16684_v56 = vld [vmem:[#allocation3 + $0x30] sm:$0xf] }
 0x365   : > { %v5614_v50 = vrot.slane %v5612_v16, 4  ;;  %v4695_v26 = vrot.slane %v4693_v38, 3  ;;  %v4698_v1 = vrot.slane %v4696_v37, 4  ;;  %v4702_v47 = vrot.slane %v4700_v23, 3  ;;  %v16707_v12 = vld [vmem:[#allocation3 + $0x58] sm:$0xf] }
 0x366   : > { %v4705_v49 = vrot.slane %v4703_v8, 4  ;;  %v5608_v14 = vor.u32 %v5607_v30, %v5604_v60  ;;  %6591 = vrot.lane.b32.xlu0 %v6554_v32, %s14411_s30  ;;  %v5623_v10 = vor.u32 %v16641_v36, %v16639_v40  ;;  %v5630_v59 = vor.u32 %v5629_v9, %v5626_v15  ;;  %v16688_v36 = vld [vmem:[#allocation3 + $0x34] sm:$0xf]  ;;  %v16692_v9 = vld [vmem:[#allocation3 + $0x1c] sm:$0xf] }
 0x367   : > { %v5615_v4 = vor.u32 %v5614_v50, %v5611_v54  ;;  %v4699_v25 = vor.u32 %v4698_v1, %v4695_v26  ;;  %6589 = vrot.lane.b32.xlu1 %v6546_v18, %s14411_s30  ;;  %v4714_v42 = vor.u32 %v16627_v57, %v16625_v33  ;;  %v4721_v32 = vor.u32 %v16631_v22, %v16629_v35  ;;  %v16699_v33 = vpop.permute.xlu0 %4391  ;;  %v16701_v57 = vld [vmem:[#allocation3 + $0x164] ss:$0 sps:$4 sm:$0x11]   ;;  %v16703_v35 = vld [vmem:[#allocation3 + $0x20] sm:$0xf] }
 0x368   : > { %v4706_v27 = vor.u32 %v4705_v49, %v4702_v47  ;;  %v16711_v38 = vld [vmem:[#allocation3 + $0x68] sm:$0x8]  ;;  %v5631_v23 = vsel %vm4557_vm4, %v5623_v10, %v5630_v59  ;;  %v16716_v8 = vpop.permute.xlu1 %5316  ;;  %v16718_v60 = vld [vmem:[#allocation3 + $0x5c] sm:$0xf]  ;;  %v16722_v54 = vld [vmem:[#allocation3 + $0x90] sm:$0x8]  ;;  %v12171_v16 = vcombine.low %v14287_v53, %v14287_v53  ;;  %v12169_v22 = vcombine.low %v14288_v31, %v14288_v31 }
 0x369   : > { %v5616_v18 = vsel %vm4557_vm4, %v5608_v14, %v5615_v4  ;;  %19631 = vst [vmem:[#allocation44_spill] sm:$0xff] %v16722_v54  ;;  %v4722_v50 = vsel %vm4557_vm4, %v4714_v42, %v4721_v32  ;;  %v6685_v26 = vrot.slane %v16557_v41, 5  ;;  %v6686_v1 = vrot.slane %v16672_v63, 5  ;;  %v16729_v47 = vld [vmem:[#allocation3 + $0x44] sm:$0xf] }
 0x36a   : > { %13133 = vmatprep.mubr.msk.bf16.mxu0 %vm5771_vm3, %v5616_v18  ;;  %v4707_v37 = vsel %vm4557_vm4, %v4699_v25, %v4706_v27  ;;  %v16733_v14 = vld [vmem:[#allocation3 + $0x48] sm:$0xf]  ;;  %v16737_v10 = vld [vmem:[#allocation3 + $0x80] sm:$0xf]  ;;  %v16746_v41 = vld [vmem:[#allocation3 + $0x84] sm:$0xf]  ;;  %v19636_v31 = vcombine.low %v16688_v36, %v16688_v36 }
 0x36b   : > { %13178 = vmatmul.mubr.msk.bf16.gmra.mrb[12].mxu1 %vm5771_vm3, %v4707_v37  ;;  %13134 = vmatmul.mubr.msk.bf16.gmra.mrb[48].mxu0 %vm5771_vm3, %v5631_v23  ;;  %19632 = vst [vmem:[#allocation45_spill] sm:$0xff] %v16737_v10  ;;  %v16750_v25 = vld [vmem:[#allocation3 + $0x6c] sm:$0xf]  ;;  %v4398_v42 = vpop.permute.xlu0 %4397  ;;  %v3918_v32 = vld [vmem:[#allocation3 + $0xf4] sm:$0x8]  ;;  %v6688_v18 = vrot.slane %v16559_v61, 5  ;;  %v6687_v30 = vsel %vm4298_vm13, %v6685_v26, %v6686_v1  ;;  %v12107_v23 = vcombine.low %v14289_v46, %v14289_v46 }
 0x36c   : > { %13181 = vmatprep.mubr.msk.bf16.mxu1 %vm5771_vm3, %v4722_v50  ;;  %6593 = vrot.lane.b32.xlu1 %v6562_v55, %s14411_s30  ;;  %v6689_v37 = vrot.slane %v16701_v57, 5  ;;  %v16761_v55 = vld [vmem:[#allocation3 + $0x94] sm:$0xf]  ;;  %v16765_v50 = vld [vmem:[#allocation3 + $0x98] sm:$0xf]  ;;  %v16769_v63 = vpop.permute.xlu1 %4393 }
 0x36d   : > { %6747 = vrot.lane.b32.xlu0 %v6685_v26, %s14412_s11  ;;  %19633 = vst [vmem:[#allocation46_spill] sm:$0xff] %v16761_v55  ;;  %19634 = vst [vmem:[#allocation47_spill] sm:$0xff] %v16765_v50  ;;  %v14286_v61 = vld [vmem:[#allocation3 + $0xfc] sm:$0xf]  ;;  %v4843_v57 = vld [vmem:[#allocation3 + $0xf4] sm:$0x8]  ;;  %v19635_v26 = vcombine.low %v16659_v44, %v16684_v56 }
 0x36e   : > { %v12109_v27 = vcombine.low %v14286_v61, %v14286_v61  ;;  %v4840_v4 = vld [vmem:[#allocation3 + $0xe0] sm:$0x8]  ;;  %v14290_v15 = vld [vmem:[#allocation3 + $0xf8] sm:$0xf]  ;;  %v16773_v59 = vld [vmem:[#allocation3 + $0x124] sm:$0xf] }
 0x36f   : > { %v3915_v49 = vld [vmem:[#allocation3 + $0xe0] sm:$0x8]  ;;  %v12108_v40 = vcombine.low %v3918_v32, %v14290_v15  ;;  %v16777_v50 = vld [vmem:[#allocation3 + $0x124] sm:$0xf]  ;;  %v16781_v1 = vld [vmem:[#allocation3 + $0x110] sm:$0xf]  ;;  %v4243_v46 = vpop.permute.xlu0 %4242  ;;  %v6690_v15 = vsel %vm4298_vm13, %v6688_v18, %v6689_v37  ;;  %v16792_v21 = vsel %vm4411_vm1, %v19635_v26, %v15851_v48 }
 0x370   : > { %6749 = vrot.lane.b32.xlu1 %v6687_v30, %s14412_s11  ;;  %v14294_v53 = vld [vmem:[#allocation3 + $0xf8] sm:$0xf]  ;;  %v14295_v32 = vld [vmem:[#allocation3 + $0xe4] sm:$0xf]  ;;  %v5169_v37 = vpop.permute.xlu1 %5168 }
 0x371   : > { %v12170_v30 = vcombine.low %v4843_v57, %v14294_v53  ;;  %6751 = vrot.lane.b32.xlu0 %v6688_v18, %s14412_s11  ;;  %v12168_v55 = vcombine.low %v4840_v4, %v14295_v32  ;;  %v14296_v61 = vld [vmem:[#allocation3 + $0xe4] sm:$0xf]  ;;  %v16799_v57 = vsel %vm4411_vm1, %v19636_v31, %v15851_v48  ;;  %v4474_v18 = vsel %vm4411_vm1, %v12108_v40, %v4243_v46 }
 0x372   : > { %v12106_v54 = vcombine.low %v3915_v49, %v14296_v61  ;;  %v4476_v4 = vsel %vm4411_vm1, %v12109_v27, %v4243_v46  ;;  %v4542_v49 = vsel %vm4492_vm2, %v4474_v18, %v16653_v45  ;;  %v5397_v61 = vsel %vm4411_vm1, %v12171_v16, %v5169_v37 }
 0x373   : > { %v4544_v44 = vsel %vm4492_vm2, %v4476_v4, %v4398_v42  ;;  %v5395_v56 = vsel %vm4411_vm1, %v12170_v30, %v5169_v37  ;;  %v4738_v26 = vshrl.u32 %v4542_v49, 16  ;;  %v4741_v53 = vshll.u32 %v4542_v49, 16  ;;  %v4241_v31 = vpop.permute.xlu0 %4240 }
 0x374   : > { %v4745_v36 = vshrl.u32 %v4544_v44, 16  ;;  %v4748_v32 = vshll.u32 %v4544_v44, 16  ;;  %6753 = vrot.lane.b32.xlu1 %v6690_v15, %s14412_s11  ;;  %v19637_v48 = vcombine.low %v16663_v28, %v16692_v9  ;;  %v19638_v45 = vcombine.low %v16703_v35, %v16703_v35  ;;  %v5167_v15 = vpop.permute.xlu1 %5166 }
 0x375   : > { %v5463_v16 = vsel %vm4492_vm2, %v5395_v56, %v16643_v20  ;;  %v5465_v42 = vsel %vm4492_vm2, %v5397_v61, %v16665_v39  ;;  %v16827_v46 = vrot.slane %v4738_v26, 3  ;;  %v16829_v28 = vrot.slane %v4741_v53, 4 }
 0x376   : > { %v16814_v40 = vsel %vm4411_vm1, %v19637_v48, %v15871_v52  ;;  %v16821_v27 = vsel %vm4411_vm1, %v19638_v45, %v15871_v52  ;;  %v16831_v9 = vrot.slane %v4745_v36, 3  ;;  %v16833_v30 = vrot.slane %v4748_v32, 4 }
 0x377   : > { %v5647_v35 = vshrl.u32 %v5463_v16, 16  ;;  %v5650_v18 = vshll.u32 %v5463_v16, 16  ;;  %v5654_v52 = vshrl.u32 %v5465_v42, 16  ;;  %v5657_v4 = vshll.u32 %v5465_v42, 16  ;;  %v16839_v53 = vpop.permute.xlu0 %5326 }
 0x378   : > { %v5390_v37 = vsel %vm4411_vm1, %v12168_v55, %v5167_v15  ;;  %v5392_v20 = vsel %vm4411_vm1, %v12169_v22, %v5167_v15  ;;  %v4469_v39 = vsel %vm4411_vm1, %v12106_v54, %v4241_v31  ;;  %v4471_v49 = vsel %vm4411_vm1, %v12107_v23, %v4241_v31  ;;  %v16849_v54 = vpop.permute.xlu1 %4403 }
 0x379   : > { %v5649_v44 = vrot.slane %v5647_v35, 3  ;;  %v5652_v56 = vrot.slane %v5650_v18, 4  ;;  %v5656_v61 = vrot.slane %v5654_v52, 3  ;;  %v5659_v26 = vrot.slane %v5657_v4, 4 }
 0x37a   : > { %v5459_v36 = vsel %vm4492_vm2, %v5390_v37, %v16661_v3  ;;  %v5461_v32 = vsel %vm4492_vm2, %v5392_v20, %v16716_v8  ;;  %v4538_v55 = vsel %vm4492_vm2, %v4469_v39, %v16699_v33  ;;  %v4540_v22 = vsel %vm4492_vm2, %v4471_v49, %v16769_v63 }
 0x37b   : > { %v5632_v23 = vshrl.u32 %v5459_v36, 16  ;;  %v5635_v48 = vshll.u32 %v5459_v36, 16  ;;  %v5639_v45 = vshrl.u32 %v5461_v32, 16  ;;  %v5642_v16 = vshll.u32 %v5461_v32, 16  ;;  %v16851_v4 = vpop.permute.xlu0 %5322 }
 0x37c   : > { %v4723_v42 = vshrl.u32 %v4538_v55, 16  ;;  %v4726_v31 = vshll.u32 %v4538_v55, 16  ;;  %v4730_v15 = vshrl.u32 %v4540_v22, 16  ;;  %v4733_v35 = vshll.u32 %v4540_v22, 16  ;;  %v16853_v39 = vpop.permute.xlu1 %5328 }
 0x37d   : > { %v5634_v3 = vrot.slane %v5632_v23, 3  ;;  %v5637_v18 = vrot.slane %v5635_v48, 4  ;;  %v5641_v52 = vrot.slane %v5639_v45, 3  ;;  %v5644_v8 = vrot.slane %v5642_v16, 4 }
 0x37e   : > { %v4725_v33 = vrot.slane %v4723_v42, 3  ;;  %v4728_v37 = vrot.slane %v4726_v31, 4  ;;  %v4732_v20 = vrot.slane %v4730_v15, 3  ;;  %v4735_v63 = vrot.slane %v4733_v35, 4  ;;  %v16865_v42 = vld [vmem:[#allocation3 + $0x110] sm:$0xf] }
 0x37f   : > { %v5638_v49 = vor.u32 %v5637_v18, %v5634_v3  ;;  %v5645_v36 = vor.u32 %v5644_v8, %v5641_v52  ;;  %v5653_v10 = vor.u32 %v5652_v56, %v5649_v44  ;;  %v5660_v32 = vor.u32 %v5659_v26, %v5656_v61  ;;  %v16863_v16 = vpop.permute.xlu0 %4399  ;;  %v16869_v56 = vld [vmem:[#allocation3 + $0x14c] sm:$0xf]  ;;  %v16903_v35 = vld [vmem:[#allocation3 + $0x138] sm:$0xf]  ;;  %v16907_v18 = vld [vmem:[#allocation3 + $0xa8] sm:$0xf] }
 0x380   : > { %v4729_v51 = vor.u32 %v4728_v37, %v4725_v33  ;;  %v4736_v55 = vor.u32 %v4735_v63, %v4732_v20  ;;  %v4744_v22 = vor.u32 %v16829_v28, %v16827_v46  ;;  %v4751_v23 = vor.u32 %v16833_v30, %v16831_v9  ;;  %v16873_v28 = vld [vmem:[#allocation3 + $0xa4] sm:$0x8]  ;;  %v16884_v61 = vpop.permute.xlu1 %5324  ;;  %v16929_v3 = vld [vmem:[#allocation3 + $0xbc] sm:$0xf] }
 0x381   : > { %v6836_v48 = vsel %vm4492_vm2, %v16792_v21, %v15786_v29  ;;  %v5646_v45 = vsel %vm4557_vm4, %v5638_v49, %v5645_v36  ;;  %v12111_v44 = vcombine.low %v16865_v42, %v16865_v42  ;;  %v6838_v29 = vsel %vm4492_vm2, %v16799_v57, %v15804_v13  ;;  %v3924_v57 = vld [vmem:[#allocation3 + $0x11c] sm:$0x8]  ;;  %v16911_v49 = vld [vmem:[#allocation3 + $0x144] sm:$0x8]  ;;  %19642 = vst [vmem:[#allocation49_spill] sm:$0xff] %v16929_v3 }
 0x382   : > { %v4498_v21 = vsel %vm4492_vm2, %v16814_v40, %v15824_v43  ;;  %13137 = vmatprep.mubr.msk.bf16.mxu0 %vm5771_vm3, %v5646_v45  ;;  %v4737_v9 = vsel %vm4557_vm4, %v4729_v51, %v4736_v55  ;;  %v5661_v30 = vsel %vm4557_vm4, %v5653_v10, %v5660_v32  ;;  %v4500_v26 = vsel %vm4492_vm2, %v16821_v27, %v15826_v19  ;;  %v4849_v43 = vld [vmem:[#allocation3 + $0x11c] sm:$0x8]  ;;  %v16892_v40 = vld [vmem:[#allocation3 + $0x138] sm:$0xf]  ;;  %v16899_v19 = vld [vmem:[#allocation3 + $0x108] sm:$0x8] }
 0x383   : > { %13182 = vmatmul.mubr.msk.bf16.gmra.mrb[16].mxu1 %vm5771_vm3, %v4737_v9  ;;  %13138 = vmatmul.mubr.msk.bf16.gmra.mrb[52].mxu0 %vm5771_vm3, %v5661_v30  ;;  %v4752_v13 = vsel %vm4557_vm4, %v4744_v22, %v4751_v23  ;;  %v16896_v10 = vld [vmem:[#allocation3 + $0xb8] sm:$0x8]  ;;  %v6899_v31 = vshrl.u32 %v6836_v48, 16  ;;  %v6902_v15 = vshll.u32 %v6836_v48, 16  ;;  %v16901_v27 = vld [vmem:[#allocation3 + $0x108] sm:$0x8]  ;;  %v4406_v63 = vpop.permute.xlu0 %4405  ;;  %v19640_v48 = vor.u32 %v16158_v5, %v16011_v34 }
 0x384   : > { %19639 = vst [vmem:[#allocation48_spill] sm:$0xff] %v16896_v10  ;;  %13185 = vmatprep.mubr.msk.bf16.mxu1 %vm5771_vm3, %v4752_v13  ;;  %v6906_v8 = vshrl.u32 %v6838_v29, 16  ;;  %v6909_v33 = vshll.u32 %v6838_v29, 16  ;;  %v4573_v37 = vshrl.u32 %v4498_v21, 16  ;;  %v4576_v20 = vshll.u32 %v4498_v21, 16  ;;  %v16913_v55 = vpop.permute.xlu1 %4401 }
 0x385   : > { %v4580_v36 = vshrl.u32 %v4500_v26, 16  ;;  %v4583_v32 = vshll.u32 %v4500_v26, 16  ;;  %v16915_v22 = vld [vmem:[#allocation3 + $0xac] sm:$0xf]  ;;  %v19641_v45 = vor.u32 %v15957_v17, %v15938_v2  ;;  %v14303_v21 = vld [vmem:[#allocation3 + $0x120] sm:$0xf] }
 0x386   : > { %v12112_v9 = vcombine.low %v3924_v57, %v14303_v21  ;;  %v14304_v30 = vld [vmem:[#allocation3 + $0x120] sm:$0xf]  ;;  %v14305_v13 = vld [vmem:[#allocation3 + $0x10c] sm:$0xf]  ;;  %v16933_v46 = vrot.slane %v6899_v31, 3  ;;  %v16935_v34 = vrot.slane %v6902_v15, 4 }
 0x387   : > { %v16926_v29 = vsel %vm4557_vm4, %v19641_v45, %v19640_v48  ;;  %v12174_v26 = vcombine.low %v4849_v43, %v14304_v30  ;;  %v12172_v52 = vcombine.low %v16899_v19, %v14305_v13  ;;  %v14307_v2 = vld [vmem:[#allocation3 + $0x10c] sm:$0xf]  ;;  %v16938_v5 = vld [vmem:[#allocation3 + $0x148] sm:$0xf]  ;;  %v16942_v43 = vrot.slane %v6906_v8, 3  ;;  %v4247_v31 = vpop.permute.xlu0 %4246 }
 0x388   : > { %v12110_v17 = vcombine.low %v16901_v27, %v14307_v2  ;;  %v16944_v19 = vrot.slane %v6909_v33, 4  ;;  %v16946_v48 = vrot.slane %v4573_v37, 3  ;;  %v16948_v45 = vrot.slane %v4576_v20, 4  ;;  %v5173_v8 = vpop.permute.xlu1 %5172 }
 0x389   : > { %v16950_v21 = vrot.slane %v4580_v36, 3  ;;  %v16952_v15 = vrot.slane %v4583_v32, 4  ;;  %v4484_v27 = vsel %vm4411_vm1, %v12112_v9, %v4247_v31  ;;  %v19643_v30 = vcombine.low %v16773_v59, %v16773_v59 }
 0x38a   : > { %v4550_v33 = vsel %vm4492_vm2, %v4484_v27, %v16849_v54  ;;  %v5405_v20 = vsel %vm4411_vm1, %v12174_v26, %v5173_v8  ;;  %v19644_v36 = vcombine.low %v16777_v50, %v16777_v50  ;;  %v19645_v59 = vcombine.low %v16667_v58, %v16707_v12 }
 0x38b   : > { %v4486_v13 = vsel %vm4411_vm1, %v19643_v30, %v4247_v31  ;;  %v4768_v2 = vshrl.u32 %v4550_v33, 16  ;;  %v4771_v9 = vshll.u32 %v4550_v33, 16  ;;  %v19646_v54 = vcombine.low %v16718_v60, %v16718_v60  ;;  %v4245_v27 = vpop.permute.xlu0 %4244 }
 0x38c   : > { %v4552_v37 = vsel %vm4492_vm2, %v4486_v13, %v4406_v63  ;;  %v5407_v32 = vsel %vm4411_vm1, %v19644_v36, %v5173_v8  ;;  %v6767_v31 = vsel %vm4411_vm1, %v19645_v59, %v16052_v62  ;;  %v5471_v50 = vsel %vm4492_vm2, %v5405_v20, %v16839_v53  ;;  %v5171_v8 = vpop.permute.xlu1 %5170 }
 0x38d   : > { %v4775_v23 = vshrl.u32 %v4552_v37, 16  ;;  %v4778_v57 = vshll.u32 %v4552_v37, 16  ;;  %v16977_v63 = vsel %vm4411_vm1, %v19646_v54, %v16052_v62  ;;  %v5473_v26 = vsel %vm4492_vm2, %v5407_v32, %v16853_v39 }
 0x38e   : > { %v16983_v30 = vrot.slane %v4768_v2, 3  ;;  %v16985_v13 = vrot.slane %v4771_v9, 4  ;;  %v5677_v60 = vshrl.u32 %v5471_v50, 16  ;;  %v5680_v33 = vshll.u32 %v5471_v50, 16 }
 0x38f   : > { %v16987_v58 = vrot.slane %v4775_v23, 3  ;;  %v16989_v12 = vrot.slane %v4778_v57, 4  ;;  %v5684_v62 = vshrl.u32 %v5473_v26, 16  ;;  %v5687_v37 = vshll.u32 %v5473_v26, 16  ;;  %v17001_v59 = vpop.permute.xlu0 %5334 }
 0x390   : > { %v5400_v36 = vsel %vm4411_vm1, %v12172_v52, %v5171_v8  ;;  %v19647_v53 = vcombine.low %v16781_v1, %v16781_v1  ;;  %v4479_v20 = vsel %vm4411_vm1, %v12110_v17, %v4245_v27  ;;  %v4481_v23 = vsel %vm4411_vm1, %v12111_v44, %v4245_v27  ;;  %v17011_v54 = vpop.permute.xlu1 %5336 }
 0x391   : > { %v5679_v57 = vrot.slane %v5677_v60, 3  ;;  %v5682_v32 = vrot.slane %v5680_v33, 4  ;;  %v5686_v2 = vrot.slane %v5684_v62, 3  ;;  %v5689_v9 = vrot.slane %v5687_v37, 4 }
 0x392   : > { %v5402_v39 = vsel %vm4411_vm1, %v19647_v53, %v5171_v8  ;;  %v5467_v52 = vsel %vm4492_vm2, %v5400_v36, %v16851_v4  ;;  %v4546_v17 = vsel %vm4492_vm2, %v4479_v20, %v16863_v16  ;;  %v4548_v42 = vsel %vm4492_vm2, %v4481_v23, %v16913_v55 }
 0x393   : > { %v5469_v1 = vsel %vm4492_vm2, %v5402_v39, %v16884_v61  ;;  %v5662_v44 = vshrl.u32 %v5467_v52, 16  ;;  %v5665_v50 = vshll.u32 %v5467_v52, 16  ;;  %v4753_v8 = vshrl.u32 %v4546_v17, 16  ;;  %v17013_v53 = vpop.permute.xlu0 %5330 }
 0x394   : > { %v5669_v26 = vshrl.u32 %v5469_v1, 16  ;;  %v5672_v27 = vshll.u32 %v5469_v1, 16  ;;  %v4756_v60 = vshll.u32 %v4546_v17, 16  ;;  %v4760_v33 = vshrl.u32 %v4548_v42, 16  ;;  %v17015_v23 = vpop.permute.xlu1 %5332 }
 0x395   : > { %v4763_v62 = vshll.u32 %v4548_v42, 16  ;;  %v5664_v4 = vrot.slane %v5662_v44, 3  ;;  %v5667_v37 = vrot.slane %v5665_v50, 4  ;;  %v4755_v16 = vrot.slane %v4753_v8, 3  ;;  %v3927_v50 = vld [vmem:[#allocation3 + $0x130] sm:$0x8] }
 0x396   : > { %v5671_v36 = vrot.slane %v5669_v26, 3  ;;  %v5674_v61 = vrot.slane %v5672_v27, 4  ;;  %v4758_v39 = vrot.slane %v4756_v60, 4  ;;  %v4762_v20 = vrot.slane %v4760_v33, 3 }
 0x397   : > { %v4765_v55 = vrot.slane %v4763_v62, 4  ;;  %v5668_v51 = vor.u32 %v5667_v37, %v5664_v4  ;;  %v5683_v3 = vor.u32 %v5682_v32, %v5679_v57  ;;  %v5690_v1 = vor.u32 %v5689_v9, %v5686_v2  ;;  %v4408_v60 = vpop.permute.xlu0 %4407  ;;  %v4852_v57 = vld [vmem:[#allocation3 + $0x130] sm:$0x8]  ;;  %v19653_v4 = vld [vmem:[#allocation38_spill] sm:$0xff] }
 0x398   : > { %v5675_v52 = vor.u32 %v5674_v61, %v5671_v36  ;;  %v4759_v10 = vor.u32 %v4758_v39, %v4755_v16  ;;  %v4774_v42 = vor.u32 %v16985_v13, %v16983_v30  ;;  %v4781_v44 = vor.u32 %v16989_v12, %v16987_v58  ;;  %v19649_v13 = vld [vmem:[#allocation36_spill] sm:$0xff]  ;;  %v4410_v2 = vpop.permute.xlu1 %4409 }
 0x399   : > { %v4766_v17 = vor.u32 %v4765_v55, %v4762_v20  ;;  %v19648_v26 = vcombine.low %v16674_v7, %v16729_v47  ;;  %v6905_v32 = vor.u32 %v16935_v34, %v16933_v46  ;;  %v6912_v30 = vor.u32 %v16944_v19, %v16942_v43  ;;  %v19651_v46 = vld [vmem:[#allocation37_spill] sm:$0xff] }
 0x39a   : > { %v5676_v8 = vsel %vm4557_vm4, %v5668_v51, %v5675_v52  ;;  %v6844_v58 = vsel %vm4492_vm2, %v6767_v31, %v19649_v13  ;;  %v19650_v12 = vcombine.low %v16733_v14, %v16733_v14  ;;  %v5691_v51 = vsel %vm4557_vm4, %v5683_v3, %v5690_v1  ;;  %v14309_v14 = vld [vmem:[#allocation3 + $0x134] sm:$0xf]  ;;  %v19652_v3 = vld [vmem:[#allocation39_spill] sm:$0xff] }
 0x39b   : > { %v6762_v27 = vsel %vm4411_vm1, %v19648_v26, %v16054_v11  ;;  %13141 = vmatprep.mubr.msk.bf16.mxu0 %vm5771_vm3, %v5676_v8  ;;  %v4767_v47 = vsel %vm4557_vm4, %v4759_v10, %v4766_v17  ;;  %v6846_v34 = vsel %vm4492_vm2, %v16977_v63, %v19651_v46  ;;  %v4782_v43 = vsel %vm4557_vm4, %v4774_v42, %v4781_v44  ;;  %v14310_v63 = vld [vmem:[#allocation3 + $0x134] sm:$0xf]  ;;  %v4249_v36 = vpop.permute.xlu0 %4248 }
 0x39c   : > { %v6764_v7 = vsel %vm4411_vm1, %v19650_v12, %v16054_v11  ;;  %13186 = vmatmul.mubr.msk.bf16.gmra.mrb[20].mxu1 %vm5771_vm3, %v4767_v47  ;;  %13142 = vmatmul.mubr.msk.bf16.gmra.mrb[56].mxu0 %vm5771_vm3, %v5691_v51  ;;  %v12114_v19 = vcombine.low %v3927_v50, %v14309_v14  ;;  %v4579_v11 = vor.u32 %v16948_v45, %v16946_v48  ;;  %v6929_v33 = vshrl.u32 %v6844_v58, 16  ;;  %v5177_v20 = vpop.permute.xlu1 %5176  ;;  %v14312_v45 = vld [vmem:[#allocation3 + $0xd0] sm:$0xf] }
 0x39d   : > { %v4586_v10 = vor.u32 %v16952_v15, %v16950_v21  ;;  %v6840_v31 = vsel %vm4492_vm2, %v6762_v27, %v19652_v3  ;;  %13189 = vmatprep.mubr.msk.bf16.mxu1 %vm5771_vm3, %v4782_v43  ;;  %v12176_v9 = vcombine.low %v4852_v57, %v14310_v63  ;;  %v6932_v62 = vshll.u32 %v6844_v58, 16 }
 0x39e   : > { %v6842_v37 = vsel %vm4492_vm2, %v6764_v7, %v19653_v4  ;;  %v17057_v61 = vsel %vm4557_vm4, %v6905_v32, %v6912_v30  ;;  %v6936_v16 = vshrl.u32 %v6846_v34, 16  ;;  %v6939_v39 = vshll.u32 %v6846_v34, 16 }
 0x39f   : > { %v4489_v55 = vsel %vm4411_vm1, %v12114_v19, %v4249_v36  ;;  %v19654_v52 = vcombine.low %v16892_v40, %v16892_v40  ;;  %v6914_v17 = vshrl.u32 %v6840_v31, 16  ;;  %v19655_v42 = vcombine.low %v16911_v49, %v16938_v5 }
 0x3a0   : > { %v4554_v50 = vsel %vm4492_vm2, %v4489_v55, %v4408_v60  ;;  %v19656_v27 = vcombine.low %v16869_v56, %v16869_v56  ;;  %v17076_v30 = vrot.slane %v6929_v33, 3  ;;  %v6917_v13 = vshll.u32 %v6840_v31, 16  ;;  %v17078_v58 = vpop.permute.xlu0 %6707 }
 0x3a1   : > { %v4491_v1 = vsel %vm4411_vm1, %v19654_v52, %v4249_v36  ;;  %v5415_v44 = vsel %vm4411_vm1, %v19655_v42, %v5177_v20  ;;  %v4783_v57 = vshrl.u32 %v4554_v50, 16  ;;  %v4786_v32 = vshll.u32 %v4554_v50, 16  ;;  %v5175_v47 = vpop.permute.xlu1 %5174 }
 0x3a2   : > { %v4556_v26 = vsel %vm4492_vm2, %v4491_v1, %v4410_v2  ;;  %v5417_v8 = vsel %vm4411_vm1, %v19656_v27, %v5177_v20  ;;  %v5479_v40 = vsel %vm4492_vm2, %v5415_v44, %v17001_v59  ;;  %v6921_v49 = vshrl.u32 %v6842_v37, 16 }
 0x3a3   : > { %v6924_v5 = vshll.u32 %v6842_v37, 16  ;;  %v17080_v60 = vrot.slane %v6932_v62, 4  ;;  %v17082_v12 = vrot.slane %v6936_v16, 3  ;;  %v4790_v7 = vshrl.u32 %v4556_v26, 16 }
 0x3a4   : > { %v4793_v56 = vshll.u32 %v4556_v26, 16  ;;  %v17084_v51 = vrot.slane %v6939_v39, 4  ;;  %v5481_v59 = vsel %vm4492_vm2, %v5417_v8, %v17011_v54  ;;  %v5707_v2 = vshrl.u32 %v5479_v40, 16  ;;  %v6712_v54 = vpop.permute.xlu0 %6711 }
 0x3a5   : > { %v5710_v46 = vshll.u32 %v5479_v40, 16  ;;  %v4785_v34 = vrot.slane %v4783_v57, 3  ;;  %v4788_v43 = vrot.slane %v4786_v32, 4  ;;  %v5410_v14 = vsel %vm4411_vm1, %v12176_v9, %v5175_v47  ;;  %v6710_v39 = vpop.permute.xlu1 %6709 }
 0x3a6   : > { %v19657_v19 = vcombine.low %v16903_v35, %v16903_v35  ;;  %v4792_v31 = vrot.slane %v4790_v7, 3  ;;  %v4795_v63 = vrot.slane %v4793_v56, 4  ;;  %v5475_v33 = vsel %vm4492_vm2, %v5410_v14, %v17013_v53 }
 0x3a7   : > { %v5692_v4 = vshrl.u32 %v5475_v33, 16  ;;  %v5695_v37 = vshll.u32 %v5475_v33, 16  ;;  %v6916_v9 = vrot.slane %v6914_v17, 3  ;;  %v6919_v20 = vrot.slane %v6917_v13, 4 }
 0x3a8   : > { %v5412_v3 = vsel %vm4411_vm1, %v19657_v19, %v5175_v47  ;;  %v5714_v55 = vshrl.u32 %v5481_v59, 16  ;;  %v5717_v35 = vshll.u32 %v5481_v59, 16  ;;  %v6923_v52 = vrot.slane %v6921_v49, 3  ;;  %v6576_v8 = vpop.permute.xlu0 %6575  ;;  %v19662_v59 = vld [vmem:[#allocation40_spill] sm:$0xff] }
 0x3a9   : > { %v5477_v62 = vsel %vm4492_vm2, %v5412_v3, %v17015_v23  ;;  %v6926_v1 = vrot.slane %v6924_v5, 4  ;;  %v19658_v42 = vcombine.low %v16711_v38, %v16750_v25  ;;  %v4789_v44 = vor.u32 %v4788_v43, %v4785_v34  ;;  %v6714_v49 = vpop.permute.xlu1 %6713  ;;  %v19660_v38 = vld [vmem:[#allocation41_spill] sm:$0xff]  ;;  %v19663_v34 = vld [vmem:[#allocation43_spill] sm:$0xff] }
 0x3aa   : > { %v5699_v36 = vshrl.u32 %v5477_v62, 16  ;;  %v5702_v16 = vshll.u32 %v5477_v62, 16  ;;  %v19659_v23 = vcombine.low %v16757_v0, %v16757_v0  ;;  %v5709_v26 = vrot.slane %v5707_v2, 3  ;;  %v19664_v43 = vld [vmem:[#allocation45_spill] sm:$0xff] }
 0x3ab   : > { %v6772_v53 = vsel %vm4411_vm1, %v19658_v42, %v16318_v24  ;;  %v5694_v17 = vrot.slane %v5692_v4, 3  ;;  %v5697_v27 = vrot.slane %v5695_v37, 4  ;;  %v5712_v40 = vrot.slane %v5710_v46, 4  ;;  %v19670_v42 = vld [vmem:[#allocation47_spill] sm:$0xff] }
 0x3ac   : > { %v6774_v50 = vsel %vm4411_vm1, %v19659_v23, %v16318_v24  ;;  %v5701_v57 = vrot.slane %v5699_v36, 3  ;;  %v5704_v32 = vrot.slane %v5702_v16, 4  ;;  %v4796_v13 = vor.u32 %v4795_v63, %v4792_v31  ;;  %v6716_v63 = vpop.permute.xlu0 %6715 }
 0x3ad   : > { %v6920_v5 = vor.u32 %v6919_v20, %v6916_v9  ;;  %v6848_v25 = vsel %vm4492_vm2, %v6772_v53, %v19660_v38  ;;  %v5716_v7 = vrot.slane %v5714_v55, 3  ;;  %v5719_v56 = vrot.slane %v5717_v35, 4  ;;  %v17128_v36 = vpop.permute.xlu1 %6577  ;;  %v19666_v9 = vld [vmem:[#allocation42_spill] sm:$0xff] }
 0x3ae   : > { %v6927_v47 = vor.u32 %v6926_v1, %v6923_v52  ;;  %v19661_v24 = vcombine.low %v16746_v41, %v16746_v41  ;;  %v6850_v2 = vsel %vm4492_vm2, %v6774_v50, %v19662_v59  ;;  %v4797_v46 = vsel %vm4557_vm4, %v4789_v44, %v4796_v13  ;;  %v19668_v20 = vld [vmem:[#allocation46_spill] sm:$0xff] }
 0x3af   : > { %v19665_v14 = vcombine.low %v19663_v34, %v19664_v43  ;;  %13190 = vmatmul.mubr.msk.bf16.gmra.mrb[24].mxu1 %vm5771_vm3, %v4797_v46  ;;  %v5698_v31 = vor.u32 %v5697_v27, %v5694_v17  ;;  %v6935_v41 = vor.u32 %v17080_v60, %v17076_v30  ;;  %v6944_v33 = vshrl.u32 %v6848_v25, 16  ;;  %v14311_v46 = vld [vmem:[#allocation3 + $0xc0] sm:$0xf] }
 0x3b0   : > { %v6779_v0 = vsel %vm4411_vm1, %v19661_v24, %v16316_v6  ;;  %v6947_v62 = vshll.u32 %v6848_v25, 16  ;;  %13205 = vmatprep.mubr.msk.bf16.mxu1 %vm5771_vm3, %v17057_v61  ;;  %v5705_v4 = vor.u32 %v5704_v32, %v5701_v57  ;;  %v5713_v37 = vor.u32 %v5712_v40, %v5709_v26 }
 0x3b1   : > { %v6777_v19 = vsel %vm4411_vm1, %v19665_v14, %v16316_v6  ;;  %v6854_v3 = vsel %vm4492_vm2, %v6779_v0, %v6710_v39  ;;  %v6951_v16 = vshrl.u32 %v6850_v2, 16  ;;  %v6954_v6 = vshll.u32 %v6850_v2, 16  ;;  %v19667_v39 = vld [vmem:[#allocation44_spill] sm:$0xff]  ;;  %v6718_v32 = vpop.permute.xlu1 %6717 }
 0x3b2   : > { %v19669_v55 = vcombine.low %v19667_v39, %v19668_v20  ;;  %v5720_v52 = vor.u32 %v5719_v56, %v5716_v7  ;;  %v6852_v30 = vsel %vm4492_vm2, %v6777_v19, %v17078_v58  ;;  %v6966_v60 = vshrl.u32 %v6854_v3, 16  ;;  %v6720_v58 = vpop.permute.xlu0 %6719  ;;  %v19674_v20 = vld [vmem:[#allocation48_spill] sm:$0xff] }
 0x3b3   : > { %v6969_v1 = vshll.u32 %v6854_v3, 16  ;;  %v5706_v61 = vsel %vm4557_vm4, %v5698_v31, %v5705_v4  ;;  %v19671_v53 = vcombine.low %v19670_v42, %v19670_v42  ;;  %v6942_v26 = vor.u32 %v17084_v51, %v17082_v12 }
 0x3b4   : > { %v6782_v35 = vsel %vm4411_vm1, %v19669_v55, %v19666_v9  ;;  %13145 = vmatprep.mubr.msk.bf16.mxu0 %vm5771_vm3, %v5706_v61  ;;  %v5721_v50 = vsel %vm4557_vm4, %v5713_v37, %v5720_v52  ;;  %v6946_v17 = vrot.slane %v6944_v33, 3  ;;  %v6949_v27 = vrot.slane %v6947_v62, 4  ;;  %v19675_v55 = vld [vmem:[#allocation49_spill] sm:$0xff] }
 0x3b5   : > { %v6784_v44 = vsel %vm4411_vm1, %v19671_v53, %v19666_v9  ;;  %v6856_v23 = vsel %vm4492_vm2, %v6782_v35, %v6712_v54  ;;  %13146 = vmatmul.mubr.msk.bf16.gmra.mrb[60].mxu0 %vm5771_vm3, %v5721_v50  ;;  %v6928_v57 = vsel %vm4557_vm4, %v6920_v5, %v6927_v47  ;;  %v6953_v13 = vrot.slane %v6951_v16, 3  ;;  %v6722_v14 = vpop.permute.xlu1 %6721 }
 0x3b6   : > { %v6858_v40 = vsel %vm4492_vm2, %v6784_v44, %v6714_v49  ;;  %v6956_v38 = vrot.slane %v6954_v6, 4  ;;  %v6959_v54 = vshrl.u32 %v6852_v30, 16  ;;  %v6962_v25 = vshll.u32 %v6852_v30, 16  ;;  %13161 = vmatprep.mubr.msk.bf16.mxu0 %vm5771_vm3, %v16926_v29  ;;  %v6580_v47 = vpop.permute.xlu0 %6579 }
 0x3b7   : > { %v6968_v7 = vrot.slane %v6966_v60, 3  ;;  %v6971_v56 = vrot.slane %v6969_v1, 4  ;;  %v6974_v12 = vshrl.u32 %v6856_v23, 16  ;;  %v6977_v51 = vshll.u32 %v6856_v23, 16  ;;  %13206 = vmatmul.mubr.msk.bf16.vlgmr.msra.gmra.mrb[28].mxu1 %vm5771_vm3, %v6928_v57  ;;  %v14314_v60 = vld [vmem:[#allocation3 + $0xe8] sm:$0xf] }
 0x3b8   : > { %v6981_v24 = vshrl.u32 %v6858_v40, 16  ;;  %v6984_v0 = vshll.u32 %v6858_v40, 16  ;;  %v19672_v49 = vcombine.low %v16915_v22, %v16915_v22  ;;  %v6943_v5 = vsel %vm4557_vm4, %v6935_v41, %v6942_v26  ;;  %v6257_v40 = vld [vmem:[#allocation3 + $0xf4] sm:$0x8] }
 0x3b9   : > { %v19673_v2 = vcombine.low %v16873_v28, %v16907_v18  ;;  %v12283_v34 = vcombine.low %v14311_v46, %v14311_v46  ;;  %13209 = vmatprep.mubr.msk.bf16.mxu1 %vm5771_vm3, %v6943_v5  ;;  %v4587_v22 = vsel %vm4557_vm4, %v4579_v11, %v4586_v10  ;;  %v6961_v19 = vrot.slane %v6959_v54, 3  ;;  %v6251_v18 = vld [vmem:[#allocation3 + $0xcc] sm:$0x8]  ;;  %v14313_v10 = vld [vmem:[#allocation3 + $0xd4] sm:$0xf] }
 0x3ba   : > { %v6789_v59 = vsel %vm4411_vm1, %v19672_v49, %v6576_v8  ;;  %v6964_v3 = vrot.slane %v6962_v25, 4  ;;  %v6972_v31 = vor.u32 %v6971_v56, %v6968_v7  ;;  %v6976_v41 = vrot.slane %v6974_v12, 3  ;;  %v6724_v15 = vpop.permute.xlu0 %6723 }
 0x3bb   : > { %v6787_v29 = vsel %vm4411_vm1, %v19673_v2, %v6576_v8  ;;  %v6862_v43 = vsel %vm4492_vm2, %v6789_v59, %v6718_v32  ;;  %v6950_v8 = vor.u32 %v6949_v27, %v6946_v17  ;;  %v6979_v33 = vrot.slane %v6977_v51, 4  ;;  %v14316_v2 = vld [vmem:[#allocation3 + $0xe4] sm:$0xf] }
 0x3bc   : > { %v6860_v28 = vsel %vm4492_vm2, %v6787_v29, %v6716_v63  ;;  %v6957_v62 = vor.u32 %v6956_v38, %v6953_v13  ;;  %v6983_v4 = vrot.slane %v6981_v24, 3  ;;  %v6986_v37 = vrot.slane %v6984_v0, 4  ;;  %v6582_v63 = vpop.permute.xlu1 %6581  ;;  %v14315_v0 = vld [vmem:[#allocation3 + $0xf8] sm:$0xf] }
 0x3bd   : > { %v6996_v16 = vshrl.u32 %v6862_v43, 16  ;;  %v6999_v21 = vshll.u32 %v6862_v43, 16  ;;  %v6989_v6 = vshrl.u32 %v6860_v28, 16  ;;  %v6992_v48 = vshll.u32 %v6860_v28, 16  ;;  %13162 = vmatmul.mubr.msk.bf16.vlgmr.msra.gmra.mrb[32].mxu0 %vm5771_vm3, %v4587_v22 }
 0x3be   : > { %v12284_v11 = vcombine.low %v6251_v18, %v14312_v45  ;;  %v12285_v9 = vcombine.low %v14313_v10, %v14313_v10  ;;  %v6965_v39 = vor.u32 %v6964_v3, %v6961_v19  ;;  %v19676_v35 = vcombine.low %v19674_v20, %v19675_v55  ;;  %v6728_v27 = vpop.permute.xlu0 %6727 }
 0x3bf   : > { %v6794_v30 = vsel %vm4411_vm1, %v12283_v34, %v17128_v36  ;;  %v12287_v1 = vcombine.low %v14314_v60, %v14314_v60  ;;  %v6980_v61 = vor.u32 %v6979_v33, %v6976_v41  ;;  %v6958_v44 = vsel %vm4557_vm4, %v6950_v8, %v6957_v62 }
 0x3c0   : > { %v6792_v52 = vsel %vm4411_vm1, %v19676_v35, %v17128_v36  ;;  %v6866_v53 = vsel %vm4492_vm2, %v6794_v30, %v6722_v14  ;;  %v6987_v23 = vor.u32 %v6986_v37, %v6983_v4  ;;  %v6998_v50 = vrot.slane %v6996_v16, 3  ;;  %13210 = vmatmul.mubr.msk.bf16.gmra.mrb[0].mxu1 %vm5771_vm3, %v6958_v44  ;;  %v6726_v38 = vpop.permute.xlu1 %6725  ;;  %v14317_v35 = vld [vmem:[#allocation3 + $0xfc] sm:$0xf]  ;;  %v14318_v30 = vld [vmem:[#allocation3 + $0x10c] sm:$0xf] }
 0x3c1   : > { %v6864_v42 = vsel %vm4492_vm2, %v6792_v52, %v6720_v58  ;;  %v7001_v26 = vrot.slane %v6999_v21, 4  ;;  %v6973_v17 = vsel %vm4557_vm4, %v6965_v39, %v6972_v31  ;;  %v6991_v57 = vrot.slane %v6989_v6, 3  ;;  %v6254_v58 = vld [vmem:[#allocation3 + $0xe0] sm:$0x8] }
 0x3c2   : > { %v6994_v36 = vrot.slane %v6992_v48, 4  ;;  %v6797_v32 = vsel %vm4411_vm1, %v12284_v11, %v6580_v47  ;;  %v6799_v13 = vsel %vm4411_vm1, %v12285_v9, %v6580_v47  ;;  %13213 = vmatprep.mubr.msk.bf16.mxu1 %vm5771_vm3, %v6973_v17  ;;  %v7004_v54 = vshrl.u32 %v6864_v42, 16  ;;  %v6584_v46 = vpop.permute.xlu0 %6583  ;;  %v14319_v17 = vld [vmem:[#allocation3 + $0x110] sm:$0xf] }
 0x3c3   : > { %v7011_v25 = vshrl.u32 %v6866_v53, 16  ;;  %v6868_v7 = vsel %vm4492_vm2, %v6797_v32, %v6724_v15  ;;  %v6870_v56 = vsel %vm4492_vm2, %v6799_v13, %v6726_v38  ;;  %v7014_v12 = vshll.u32 %v6866_v53, 16  ;;  %v6260_v15 = vld [vmem:[#allocation3 + $0x108] sm:$0x8] }
 0x3c4   : > { %v7026_v51 = vshrl.u32 %v6870_v56, 16  ;;  %v7029_v24 = vshll.u32 %v6870_v56, 16  ;;  %v12288_v49 = vcombine.low %v6257_v40, %v14315_v0  ;;  %v7002_v59 = vor.u32 %v7001_v26, %v6998_v50  ;;  %v6730_v19 = vpop.permute.xlu1 %6729 }
 0x3c5   : > { %v7007_v5 = vshll.u32 %v6864_v42, 16  ;;  %v12286_v29 = vcombine.low %v6254_v58, %v14316_v2  ;;  %v6988_v47 = vsel %vm4557_vm4, %v6980_v61, %v6987_v23  ;;  %v6995_v34 = vor.u32 %v6994_v36, %v6991_v57 }
 0x3c6   : > { %v6804_v43 = vsel %vm4411_vm1, %v12287_v1, %v6582_v63  ;;  %v7019_v22 = vshrl.u32 %v6868_v7, 16  ;;  %v7022_v14 = vshll.u32 %v6868_v7, 16  ;;  %v7006_v3 = vrot.slane %v7004_v54, 3  ;;  %v6732_v6 = vpop.permute.xlu0 %6731  ;;  %v6263_v7 = vld [vmem:[#allocation3 + $0x11c] sm:$0x8] }
 0x3c7   : > { %v7013_v28 = vrot.slane %v7011_v25, 3  ;;  %v6802_v18 = vsel %vm4411_vm1, %v12286_v29, %v6582_v63  ;;  %v6874_v8 = vsel %vm4492_vm2, %v6804_v43, %v6730_v19  ;;  %v7016_v31 = vrot.slane %v7014_v12, 4  ;;  %v14320_v29 = vld [vmem:[#allocation3 + $0x124] sm:$0xf] }
 0x3c8   : > { %v7028_v41 = vrot.slane %v7026_v51, 3  ;;  %v7031_v33 = vrot.slane %v7029_v24, 4  ;;  %v6872_v62 = vsel %vm4492_vm2, %v6802_v18, %v6728_v27  ;;  %13214 = vmatmul.mubr.msk.bf16.gmra.mrb[4].mxu1 %vm5771_vm3, %v6988_v47  ;;  %v7003_v4 = vsel %vm4557_vm4, %v6995_v34, %v7002_v59  ;;  %v6586_v10 = vpop.permute.xlu1 %6585 }
 0x3c9   : > { %v7041_v37 = vshrl.u32 %v6874_v8, 16  ;;  %v7044_v16 = vshll.u32 %v6874_v8, 16  ;;  %v6807_v21 = vsel %vm4411_vm1, %v12288_v49, %v6584_v46  ;;  %v7009_v48 = vrot.slane %v7007_v5, 4  ;;  %13217 = vmatprep.mubr.msk.bf16.mxu1 %vm5771_vm3, %v7003_v4 }
 0x3ca   : > { %v7021_v45 = vrot.slane %v7019_v22, 3  ;;  %v7024_v11 = vrot.slane %v7022_v14, 4  ;;  %v6876_v9 = vsel %vm4492_vm2, %v6807_v21, %v6732_v6  ;;  %v7034_v63 = vshrl.u32 %v6872_v62, 16  ;;  %v6736_v44 = vpop.permute.xlu0 %6735  ;;  %v14321_v22 = vld [vmem:[#allocation3 + $0x120] sm:$0xf] }
 0x3cb   : > { %v7037_v39 = vshll.u32 %v6872_v62, 16  ;;  %v7017_v20 = vor.u32 %v7016_v31, %v7013_v28  ;;  %v7032_v55 = vor.u32 %v7031_v33, %v7028_v41  ;;  %v12289_v52 = vcombine.low %v14317_v35, %v14317_v35 }
 0x3cc   : > { %v12290_v60 = vcombine.low %v6260_v15, %v14318_v30  ;;  %v7043_v1 = vrot.slane %v7041_v37, 3  ;;  %v7046_v61 = vrot.slane %v7044_v16, 4  ;;  %v7049_v42 = vshrl.u32 %v6876_v9, 16  ;;  %v6734_v40 = vpop.permute.xlu1 %6733 }
 0x3cd   : > { %v7052_v53 = vshll.u32 %v6876_v9, 16  ;;  %v7010_v23 = vor.u32 %v7009_v48, %v7006_v3  ;;  %v7025_v50 = vor.u32 %v7024_v11, %v7021_v45  ;;  %v6809_v26 = vsel %vm4411_vm1, %v12289_v52, %v6584_v46 }
 0x3ce   : > { %v12291_v27 = vcombine.low %v14319_v17, %v14319_v17  ;;  %v7036_v57 = vrot.slane %v7034_v63, 3  ;;  %v7039_v36 = vrot.slane %v7037_v39, 4  ;;  %v6812_v32 = vsel %vm4411_vm1, %v12290_v60, %v6586_v10  ;;  %v6588_v0 = vpop.permute.xlu0 %6587  ;;  %v6269_v17 = vld [vmem:[#allocation3 + $0x144] sm:$0x8] }
 0x3cf   : > { %v6878_v13 = vsel %vm4492_vm2, %v6809_v26, %v6734_v40  ;;  %v7018_v58 = vsel %vm4557_vm4, %v7010_v23, %v7017_v20  ;;  %v6880_v25 = vsel %vm4492_vm2, %v6812_v32, %v6736_v44  ;;  %v7047_v56 = vor.u32 %v7046_v61, %v7043_v1  ;;  %v6266_v1 = vld [vmem:[#allocation3 + $0x130] sm:$0x8]  ;;  %v14322_v44 = vld [vmem:[#allocation3 + $0x134] sm:$0xf]  ;;  %v6272_v40 = vld [vmem:[#allocation3 + $0x158] sm:$0x8] }
 0x3d0   : > { %v7056_v38 = vshrl.u32 %v6878_v13, 16  ;;  %v7059_v54 = vshll.u32 %v6878_v13, 16  ;;  %v7051_v12 = vrot.slane %v7049_v42, 3  ;;  %v7054_v51 = vrot.slane %v7052_v53, 4  ;;  %13218 = vmatmul.mubr.msk.bf16.gmra.mrb[8].mxu1 %vm5771_vm3, %v7018_v58  ;;  %v6738_v2 = vpop.permute.xlu1 %6737 }
 0x3d1   : > { %v7033_v24 = vsel %vm4557_vm4, %v7025_v50, %v7032_v55  ;;  %v6814_v49 = vsel %vm4411_vm1, %v12291_v27, %v6586_v10  ;;  %v12293_v47 = vcombine.low %v14320_v29, %v14320_v29  ;;  %v7040_v46 = vor.u32 %v7039_v36, %v7036_v57  ;;  %v14323_v50 = vld [vmem:[#allocation3 + $0x138] sm:$0xf] }
 0x3d2   : > { %13221 = vmatprep.mubr.msk.bf16.mxu1 %vm5771_vm3, %v7033_v24  ;;  %v7058_v59 = vrot.slane %v7056_v38, 3  ;;  %v7061_v5 = vrot.slane %v7059_v54, 4  ;;  %v7064_v34 = vshrl.u32 %v6880_v25, 16  ;;  %v6882_v43 = vsel %vm4492_vm2, %v6814_v49, %v6738_v2  ;;  %v6740_v33 = vpop.permute.xlu0 %6739 }
 0x3d3   : > { %v12292_v14 = vcombine.low %v6263_v7, %v14321_v22  ;;  %v7067_v3 = vshll.u32 %v6880_v25, 16  ;;  %v7071_v28 = vshrl.u32 %v6882_v43, 16  ;;  %v7074_v18 = vshll.u32 %v6882_v43, 16  ;;  %v14324_v25 = vld [vmem:[#allocation3 + $0x148] sm:$0xf] }
 0x3d4   : > { %v7062_v19 = vor.u32 %v7061_v5, %v7058_v59  ;;  %v7055_v8 = vor.u32 %v7054_v51, %v7051_v12  ;;  %v7048_v41 = vsel %vm4557_vm4, %v7040_v46, %v7047_v56  ;;  %v6819_v37 = vsel %vm4411_vm1, %v12293_v47, %v6588_v0  ;;  %v6742_v16 = vpop.permute.xlu1 %6741  ;;  %v14325_v56 = vld [vmem:[#allocation3 + $0x15c] sm:$0xf]  ;;  %v14326_v5 = vld [vmem:[#allocation3 + $0x160] sm:$0xf] }
 0x3d5   : > { %v6817_v31 = vsel %vm4411_vm1, %v12292_v14, %v6588_v0  ;;  %v7073_v62 = vrot.slane %v7071_v28, 3  ;;  %v7076_v4 = vrot.slane %v7074_v18, 4  ;;  %v6886_v15 = vsel %vm4492_vm2, %v6819_v37, %v6742_v16  ;;  %v14327_v14 = vld [vmem:[#allocation3 + $0x14c] sm:$0xf] }
 0x3d6   : > { %v6884_v21 = vsel %vm4492_vm2, %v6817_v31, %v6740_v33  ;;  %v7063_v45 = vsel %vm4557_vm4, %v7055_v8, %v7062_v19  ;;  %v7066_v11 = vrot.slane %v7064_v34, 3  ;;  %v7069_v10 = vrot.slane %v7067_v3, 4  ;;  %v6744_v55 = vpop.permute.xlu0 %6743 }
 0x3d7   : > { %v7079_v6 = vshrl.u32 %v6884_v21, 16  ;;  %v7082_v48 = vshll.u32 %v6884_v21, 16  ;;  %v7086_v9 = vshrl.u32 %v6886_v15, 16  ;;  %v7089_v63 = vshll.u32 %v6886_v15, 16 }
 0x3d8   : > { %13222 = vmatmul.mubr.msk.bf16.gmra.mrb[12].mxu1 %vm5771_vm3, %v7048_v41  ;;  %v7077_v35 = vor.u32 %v7076_v4, %v7073_v62  ;;  %v6746_v60 = vpop.permute.xlu1 %6745  ;;  %v7070_v42 = vor.u32 %v7069_v10, %v7066_v11  ;;  %v12294_v23 = vcombine.low %v6266_v1, %v14322_v44  ;;  %v12295_v26 = vcombine.low %v14323_v50, %v14323_v50 }
 0x3d9   : > { %v7081_v39 = vrot.slane %v7079_v6, 3  ;;  %v7084_v20 = vrot.slane %v7082_v48, 4  ;;  %v7088_v52 = vrot.slane %v7086_v9, 3  ;;  %v7091_v30 = vrot.slane %v7089_v63, 4  ;;  %13225 = vmatprep.mubr.msk.bf16.mxu1 %vm5771_vm3, %v7063_v45 }
 0x3da   : > { %v6592_v27 = vpop.permute.xlu0 %6591  ;;  %v7078_v57 = vsel %vm4557_vm4, %v7070_v42, %v7077_v35  ;;  %v12296_v7 = vcombine.low %v6269_v17, %v14324_v25  ;;  %v12298_v12 = vcombine.low %v6272_v40, %v14325_v56  ;;  %v12299_v2 = vcombine.low %v14326_v5, %v14326_v5 }
 0x3db   : > { %v7085_v61 = vor.u32 %v7084_v20, %v7081_v39  ;;  %v7092_v53 = vor.u32 %v7091_v30, %v7088_v52  ;;  %v12297_v19 = vcombine.low %v14327_v14, %v14327_v14 }
 0x3dc   : > { %v6590_v36 = vpop.permute.xlu1 %6589  ;;  %v6827_v59 = vsel %vm4411_vm1, %v12296_v7, %v6592_v27 }
 0x3dd   : > { %v6822_v32 = vsel %vm4411_vm1, %v12294_v23, %v6590_v36  ;;  %v6824_v13 = vsel %vm4411_vm1, %v12295_v26, %v6590_v36  ;;  %v7093_v58 = vsel %vm4557_vm4, %v7085_v61, %v7092_v53  ;;  %v6829_v33 = vsel %vm4411_vm1, %v12297_v19, %v6592_v27 }
 0x3de   : > { %v6888_v38 = vsel %vm4492_vm2, %v6822_v32, %v6744_v55  ;;  %v6890_v54 = vsel %vm4492_vm2, %v6824_v13, %v6746_v60 }
 0x3df   : > { %v7094_v51 = vshrl.u32 %v6888_v38, 16  ;;  %v7097_v24 = vshll.u32 %v6888_v38, 16  ;;  %v7101_v0 = vshrl.u32 %v6890_v54, 16  ;;  %v7104_v49 = vshll.u32 %v6890_v54, 16  ;;  %v6748_v22 = vpop.permute.xlu0 %6747  ;;  %v14008_v38 = vld [vmem:[%s19452_s6] sm:$0xff]   ;;  %v14009_v54 = vld [vmem:[%s19452_s6 + $0x8] sm:$0xff]  }
 0x3e0   : > { %13226 = vmatmul.mubr.msk.bf16.gmra.mrb[16].mxu1 %vm5771_vm3, %v7078_v57  ;;  %v6594_v29 = vpop.permute.xlu1 %6593  ;;  %v6892_v28 = vsel %vm4492_vm2, %v6827_v59, %v6748_v22  ;;  %13237 = vmatprep.subr.bf16.mxu0 %v14008_v38 }
 0x3e1   : > { %13229 = vmatprep.mubr.msk.bf16.mxu1 %vm5771_vm3, %v7093_v58  ;;  %v7096_v47 = vrot.slane %v7094_v51, 3  ;;  %v7099_v46 = vrot.slane %v7097_v24, 4  ;;  %v7103_v34 = vrot.slane %v7101_v0, 3  ;;  %v7106_v43 = vrot.slane %v7104_v49, 4  ;;  %13238 = vmatpush3.bf16.msra.mxu0 %v14008_v38 }
 0x3e2   : > { %v6832_v3 = vsel %vm4411_vm1, %v12298_v12, %v6594_v29  ;;  %v7109_v18 = vshrl.u32 %v6892_v28, 16  ;;  %v7112_v8 = vshll.u32 %v6892_v28, 16  ;;  %v6834_v4 = vsel %vm4411_vm1, %v12299_v2, %v6594_v29  ;;  %13239 = vmatprep.subr.bf16.mxu0 %v14009_v54 }
 0x3e3   : > { %v7100_v31 = vor.u32 %v7099_v46, %v7096_v47  ;;  %v7107_v41 = vor.u32 %v7106_v43, %v7103_v34  ;;  %v6752_v15 = vpop.permute.xlu0 %6751 }
 0x3e4   : > { %v6750_v62 = vpop.permute.xlu1 %6749  ;;  %v7111_v37 = vrot.slane %v7109_v18, 3  ;;  %v7114_v6 = vrot.slane %v7112_v8, 4  ;;  %v6896_v11 = vsel %vm4492_vm2, %v6832_v3, %v6752_v15 }
 0x3e5   : > { %v6894_v16 = vsel %vm4492_vm2, %v6829_v33, %v6750_v62  ;;  %v7108_v21 = vsel %vm4557_vm4, %v7100_v31, %v7107_v41  ;;  %v7124_v10 = vshrl.u32 %v6896_v11, 16  ;;  %v7127_v9 = vshll.u32 %v6896_v11, 16  ;;  %13240 = vmatpush3.bf16.msra.mxu0 %v14009_v54  ;;  %v17302_v33 = vld [vmem:[%s19450_s4] ss:$0 sm:$0xff] }
 0x3e6   : > { %v7116_v48 = vshrl.u32 %v6894_v16, 16  ;;  %v7119_v45 = vshll.u32 %v6894_v16, 16  ;;  %v7115_v30 = vor.u32 %v7114_v6, %v7111_v37  ;;  %v17307_v37 = vld [vmem:[%s19451_s5] ss:$0 sm:$0xff] }
 0x3e7   : > { %v7126_v35 = vrot.slane %v7124_v10, 3  ;;  %v7129_v52 = vrot.slane %v7127_v9, 4 }
 0x3e8   : > { %13230 = vmatmul.mubr.msk.bf16.gmra.mrb[20].mxu1 %vm5771_vm3, %v7108_v21  ;;  %v7118_v63 = vrot.slane %v7116_v48, 3  ;;  %v7121_v39 = vrot.slane %v7119_v45, 4  ;;  %v6754_v20 = vpop.permute.xlu1 %6753 }
 0x3e9   : > { %v6898_v55 = vsel %vm4492_vm2, %v6834_v4, %v6754_v20  ;;  %v7130_v44 = vor.u32 %v7129_v52, %v7126_v35  ;;  %v13123_v50 = vpop.f32.mrb[36].mxu0 }
 0x3ea   : > { %v7122_v60 = vor.u32 %v7121_v39, %v7118_v63  ;;  %v7131_v1 = vshrl.u32 %v6898_v55, 16  ;;  %v7134_v61 = vshll.u32 %v6898_v55, 16  ;;  %v5870_v17 = vpop.f32.mrb[37].mxu0 }
 0x3eb   : > { %v17239_v27 = vpop.f32.mrb[38].mxu0 }
 0x3ec   : > { %v7133_v42 = vrot.slane %v7131_v1, 3  ;;  %v7136_v53 = vrot.slane %v7134_v61, 4  ;;  %v7123_v23 = vsel %vm4557_vm4, %v7115_v30, %v7122_v60  ;;  %v17242_v57 = vpop.f32.mrb[39].mxu0 }
 0x3ed   : > { %13233 = vmatprep.mubr.msk.bf16.mxu1 %vm5771_vm3, %v7123_v23 }
 0x3ee   : > { %v7137_v26 = vor.u32 %v7136_v53, %v7133_v42 }
 0x3f0   : > { %v7138_v40 = vsel %vm4557_vm4, %v7130_v44, %v7137_v26 }
 0x3f1   : > { %13234 = vmatmul.mubr.msk.bf16.gmra.mrb[24].mxu1 %vm5771_vm3, %v7138_v40 }
 0x406   : > { %v17245_v36 = vpop.f32.mrb[40].mxu0 }
 0x407   : > { %v17247_v32 = vpop.f32.mrb[41].mxu0 }
 0x408   : > { %v17249_v13 = vpop.f32.mrb[42].mxu0 }
 0x409   : > { %v17251_v58 = vpop.f32.mrb[43].mxu0 }
 0x422   : > { %v17259_v25 = vpop.f32.mrb[44].mxu0 }
 0x423   : > { %v17261_v7 = vpop.f32.mrb[45].mxu0 }
 0x424   : > { %v17263_v56 = vpop.f32.mrb[46].mxu0 }
 0x425   : > { %v17265_v12 = vpop.f32.mrb[47].mxu0 }
 0x43e   : > { %v17267_v51 = vpop.f32.mrb[48].mxu0 }
 0x43f   : > { %v17269_v24 = vpop.f32.mrb[49].mxu0 }
 0x440   : > { %v17271_v0 = vpop.f32.mrb[50].mxu0 }
 0x441   : > { %v17273_v49 = vpop.f32.mrb[51].mxu0 }
 0x456   : > { %v17275_v59 = vpop.f32.mrb[52].mxu0 }
 0x457   : > { %v17277_v5 = vpop.f32.mrb[53].mxu0 }
 0x458   : > { %v17279_v2 = vpop.f32.mrb[54].mxu0 }
 0x459   : > { %v17281_v29 = vpop.f32.mrb[55].mxu0 }
 0x46f   : > { %v17283_v47 = vpop.f32.mrb[56].mxu0 }
 0x470   : > { %v17285_v46 = vpop.f32.mrb[57].mxu0 }
 0x471   : > { %v17287_v34 = vpop.f32.mrb[58].mxu0 }
 0x472   : > { %v17289_v43 = vpop.f32.mrb[59].mxu0 }
 0x488   : > { %v17291_v22 = vpop.f32.mrb[60].mxu0 }
 0x489   : > { %v17293_v14 = vpop.f32.mrb[61].mxu0 }
 0x48a   : > { %v17295_v19 = vpop.f32.mrb[62].mxu0  ;;  %v13207_v28 = vpop.f32.mrb[28].mxu1 }
 0x48b   : > { %v17297_v3 = vpop.f32.mrb[63].mxu0  ;;  %v7270_v18 = vpop.f32.mrb[29].mxu1 }
 0x48c   : > { %v13208_v8 = vpop.f32.mrb[30].mxu1 }
 0x48d   : > { %v7273_v31 = vpop.f32.mrb[31].mxu1 }
 0x490   : > { %v13163_v41 = vpop.f32.mrb[32].mxu0 }
 0x491   : > { %v13417_v62 = vadd.f32 %v13207_v28, %v13163_v41  ;;  %v6099_v4 = vpop.f32.mrb[33].mxu0 }
 0x492   : > { %v13418_v16 = vadd.f32 %v7270_v18, %v6099_v4  ;;  %v13164_v21 = vpop.f32.mrb[34].mxu0 }
 0x493   : > { %v7438_v15 = vadd.f32 %v13417_v62, %v17302_v33  ;;  %v13419_v6 = vadd.f32 %v13208_v8, %v13164_v21  ;;  %v6102_v48 = vpop.f32.mrb[35].mxu0  ;;  %v13211_v45 = vpop.f32.mrb[0].mxu1 }
 0x494   : > { %v7436_v11 = vadd.f32 %v13418_v16, %v17302_v33  ;;  %v13420_v10 = vadd.f32 %v7273_v31, %v6102_v48  ;;  %v13421_v9 = vadd.f32 %v13211_v45, %v13123_v50  ;;  %v7286_v63 = vpop.f32.mrb[1].mxu1 }
 0x495   : > { %v7509_v39 = vmul.f32 %v17307_v37, %v7438_v15  ;;  %v7439_v20 = vadd.f32 %v13419_v6, %v17302_v33  ;;  %v13422_v55 = vadd.f32 %v7286_v63, %v5870_v17  ;;  %v13212_v35 = vpop.f32.mrb[2].mxu1  ;;  %vm7471_vm5 = vcmp.ge.f32.partialorder %v7438_v15, 0.0 }
 0x496   : > { %vm7469_vm6 = vcmp.ge.f32.partialorder %v7436_v11, 0.0  ;;  %v7507_v52 = vmul.f32 %v17307_v37, %v7436_v11  ;;  %v7437_v30 = vadd.f32 %v13420_v10, %v17302_v33  ;;  %v7289_v60 = vpop.f32.mrb[3].mxu1  ;;  %v7442_v42 = vadd.f32 %v13421_v9, %v17302_v33 }
 0x497   : > { %vm7472_vm7 = vcmp.ge.f32.partialorder %v7439_v20, 0.0  ;;  %v7510_v1 = vmul.f32 %v17307_v37, %v7439_v20  ;;  %v7541_v53 = vsel %vm7471_vm5, %v7438_v15, %v7509_v39  ;;  %v7440_v50 = vadd.f32 %v13422_v55, %v17302_v33 }
 0x498   : > { %vm7470_vm8 = vcmp.ge.f32.partialorder %v7437_v30, 0.0  ;;  %v7508_v61 = vmul.f32 %v17307_v37, %v7437_v30  ;;  %v7539_v44 = vsel %vm7469_vm6, %v7436_v11, %v7507_v52  ;;  %v13423_v40 = vadd.f32 %v13212_v35, %v17239_v27 }
 0x499   : > { %v7542_v23 = vsel %vm7472_vm7, %v7439_v20, %v7510_v1  ;;  %v13424_v38 = vadd.f32 %v7289_v60, %v17242_v57  ;;  %v7513_v18 = vmul.f32 %v17307_v37, %v7442_v42  ;;  %vm7475_vm10 = vcmp.ge.f32.partialorder %v7442_v42, 0.0 }
 0x49a   : > { %v7572_v26 = vpack.c.bf16 %v7542_v23, %v7541_v53  ;;  %v7540_v17 = vsel %vm7470_vm8, %v7437_v30, %v7508_v61  ;;  %v7443_v8 = vadd.f32 %v13423_v40, %v17302_v33  ;;  %vm7473_vm11 = vcmp.ge.f32.partialorder %v7440_v50, 0.0 }
 0x49b   : > { %v13215_v54 = vpop.f32.mrb[4].mxu1  ;;  %v7571_v28 = vpack.c.bf16 %v7540_v17, %v7539_v44  ;;  %v7441_v31 = vadd.f32 %v13424_v38, %v17302_v33  ;;  %v7511_v4 = vmul.f32 %v17307_v37, %v7440_v50  ;;  %v7545_v45 = vsel %vm7475_vm10, %v7442_v42, %v7513_v18 }
 0x49c   : > { %v13425_v41 = vadd.f32 %v13215_v54, %v17245_v36  ;;  %v7302_v62 = vpop.f32.mrb[5].mxu1  ;;  %vm7476_vm12 = vcmp.ge.f32.partialorder %v7443_v8, 0.0  ;;  %v7514_v57 = vmul.f32 %v17307_v37, %v7443_v8 }
 0x49d   : > { %v13426_v16 = vadd.f32 %v7302_v62, %v17247_v32  ;;  %v13216_v27 = vpop.f32.mrb[6].mxu1  ;;  %13241 = vmatprep.mubr.msk.bf16.mxu0 %vm4411_vm1, %v7571_v28  ;;  %vm7474_vm14 = vcmp.ge.f32.partialorder %v7441_v31, 0.0  ;;  %v7512_v21 = vmul.f32 %v17307_v37, %v7441_v31  ;;  %v7543_v9 = vsel %vm7473_vm11, %v7440_v50, %v7511_v4 }
 0x49e   : > { %v7305_v15 = vpop.f32.mrb[7].mxu1  ;;  %13242 = vmatmul.mubr.msk.bf16.vlgmr.msra.gmra.mrb[64].mxu0 %vm4411_vm1, %v7572_v26  ;;  %v7446_v36 = vadd.f32 %v13425_v41, %v17302_v33  ;;  %v13427_v48 = vadd.f32 %v13216_v27, %v17249_v13  ;;  %v7546_v11 = vsel %vm7476_vm12, %v7443_v8, %v7514_v57 }
 0x49f   : > { %v7444_v6 = vadd.f32 %v13426_v16, %v17302_v33  ;;  %v13428_v32 = vadd.f32 %v7305_v15, %v17251_v58  ;;  %v7544_v10 = vsel %vm7474_vm14, %v7441_v31, %v7512_v21  ;;  %v7574_v52 = vpack.c.bf16 %v7546_v11, %v7545_v45 }
 0x4a0   : > { %vm7479_vm15 = vcmp.ge.f32.partialorder %v7446_v36, 0.0  ;;  %v7517_v63 = vmul.f32 %v17307_v37, %v7446_v36  ;;  %v7447_v20 = vadd.f32 %v13427_v48, %v17302_v33  ;;  %v7573_v35 = vpack.c.bf16 %v7544_v10, %v7543_v9 }
 0x4a1   : > { %v7515_v39 = vmul.f32 %v17307_v37, %v7444_v6  ;;  %v7445_v55 = vadd.f32 %v13428_v32, %v17302_v33  ;;  %vm7477_vm0 = vcmp.ge.f32.partialorder %v7444_v6, 0.0 }
 0x4a2   : > { %vm7480_vm5 = vcmp.ge.f32.partialorder %v7447_v20, 0.0  ;;  %v7518_v58 = vmul.f32 %v17307_v37, %v7447_v20  ;;  %13245 = vmatprep.mubr.msk.bf16.mxu0 %vm4411_vm1, %v7573_v35  ;;  %v7549_v1 = vsel %vm7479_vm15, %v7446_v36, %v7517_v63 }
 0x4a3   : > { %v13219_v13 = vpop.f32.mrb[8].mxu1  ;;  %vm7478_vm6 = vcmp.ge.f32.partialorder %v7445_v55, 0.0  ;;  %v7516_v30 = vmul.f32 %v17307_v37, %v7445_v55  ;;  %v7547_v44 = vsel %vm7477_vm0, %v7444_v6, %v7515_v39 }
 0x4a4   : > { %v7318_v60 = vpop.f32.mrb[9].mxu1  ;;  %v13429_v61 = vadd.f32 %v13219_v13, %v17259_v25  ;;  %v7550_v23 = vsel %vm7480_vm5, %v7447_v20, %v7518_v58 }
 0x4a5   : > { %v13430_v42 = vadd.f32 %v7318_v60, %v17261_v7  ;;  %v13220_v53 = vpop.f32.mrb[10].mxu1  ;;  %v7548_v50 = vsel %vm7478_vm6, %v7445_v55, %v7516_v30  ;;  %v7576_v18 = vpack.c.bf16 %v7550_v23, %v7549_v1 }
 0x4a6   : > { %v13431_v26 = vadd.f32 %v13220_v53, %v17263_v56  ;;  %v7321_v17 = vpop.f32.mrb[11].mxu1  ;;  %13246 = vmatmul.mubr.msk.bf16.gmra.mrb[68].mxu0 %vm4411_vm1, %v7574_v52  ;;  %v7450_v40 = vadd.f32 %v13429_v61, %v17302_v33  ;;  %v7575_v28 = vpack.c.bf16 %v7548_v50, %v7547_v44 }
 0x4a7   : > { %v7448_v38 = vadd.f32 %v13430_v42, %v17302_v33  ;;  %v13432_v54 = vadd.f32 %v7321_v17, %v17265_v12 }
 0x4a8   : > { %v7451_v25 = vadd.f32 %v13431_v26, %v17302_v33  ;;  %vm7483_vm7 = vcmp.ge.f32.partialorder %v7450_v40, 0.0  ;;  %v7521_v7 = vmul.f32 %v17307_v37, %v7450_v40  ;;  %13249 = vmatprep.mubr.msk.bf16.mxu0 %vm4411_vm1, %v7575_v28 }
 0x4a9   : > { %v7519_v56 = vmul.f32 %v17307_v37, %v7448_v38  ;;  %v7449_v31 = vadd.f32 %v13432_v54, %v17302_v33  ;;  %vm7481_vm10 = vcmp.ge.f32.partialorder %v7448_v38, 0.0 }
 0x4aa   : > { %vm7484_vm8 = vcmp.ge.f32.partialorder %v7451_v25, 0.0  ;;  %v7522_v8 = vmul.f32 %v17307_v37, %v7451_v25  ;;  %v7553_v41 = vsel %vm7483_vm7, %v7450_v40, %v7521_v7 }
 0x4ab   : > { %v13223_v62 = vpop.f32.mrb[12].mxu1  ;;  %vm7482_vm11 = vcmp.ge.f32.partialorder %v7449_v31, 0.0  ;;  %v7520_v4 = vmul.f32 %v17307_v37, %v7449_v31  ;;  %v7551_v36 = vsel %vm7481_vm10, %v7448_v38, %v7519_v56 }
 0x4ac   : > { %v7554_v12 = vsel %vm7484_vm8, %v7451_v25, %v7522_v8  ;;  %v13433_v16 = vadd.f32 %v13223_v62, %v17267_v51  ;;  %v7334_v27 = vpop.f32.mrb[13].mxu1 }
 0x4ad   : > { %v13434_v57 = vadd.f32 %v7334_v27, %v17269_v24  ;;  %v13224_v21 = vpop.f32.mrb[14].mxu1  ;;  %v7578_v15 = vpack.c.bf16 %v7554_v12, %v7553_v41  ;;  %v7552_v6 = vsel %vm7482_vm11, %v7449_v31, %v7520_v4 }
 0x4ae   : > { %v7454_v48 = vadd.f32 %v13433_v16, %v17302_v33  ;;  %v13435_v32 = vadd.f32 %v13224_v21, %v17271_v0  ;;  %v7337_v45 = vpop.f32.mrb[15].mxu1  ;;  %13250 = vmatmul.mubr.msk.bf16.gmra.mrb[72].mxu0 %vm4411_vm1, %v7576_v18  ;;  %v7577_v9 = vpack.c.bf16 %v7552_v6, %v7551_v36 }
 0x4af   : > { %v7452_v11 = vadd.f32 %v13434_v57, %v17302_v33  ;;  %v13436_v10 = vadd.f32 %v7337_v45, %v17273_v49 }
 0x4b0   : > { %v7525_v51 = vmul.f32 %v17307_v37, %v7454_v48  ;;  %v7455_v24 = vadd.f32 %v13435_v32, %v17302_v33  ;;  %vm7487_vm12 = vcmp.ge.f32.partialorder %v7454_v48, 0.0  ;;  %13253 = vmatprep.mubr.msk.bf16.mxu0 %vm4411_vm1, %v7577_v9 }
 0x4b1   : > { %v7523_v63 = vmul.f32 %v17307_v37, %v7452_v11  ;;  %v7453_v39 = vadd.f32 %v13436_v10, %v17302_v33  ;;  %vm7485_vm14 = vcmp.ge.f32.partialorder %v7452_v11, 0.0 }
 0x4b2   : > { %vm7488_vm15 = vcmp.ge.f32.partialorder %v7455_v24, 0.0  ;;  %v7526_v0 = vmul.f32 %v17307_v37, %v7455_v24  ;;  %v7557_v55 = vsel %vm7487_vm12, %v7454_v48, %v7525_v51 }
 0x4b3   : > { %vm7486_vm0 = vcmp.ge.f32.partialorder %v7453_v39, 0.0  ;;  %v7524_v20 = vmul.f32 %v17307_v37, %v7453_v39  ;;  %v13227_v49 = vpop.f32.mrb[16].mxu1  ;;  %v7555_v58 = vsel %vm7485_vm14, %v7452_v11, %v7523_v63 }
 0x4b4   : > { %v7558_v35 = vsel %vm7488_vm15, %v7455_v24, %v7526_v0  ;;  %v13437_v52 = vadd.f32 %v13227_v49, %v17275_v59  ;;  %v7350_v13 = vpop.f32.mrb[17].mxu1 }
 0x4b5   : > { %v7556_v30 = vsel %vm7486_vm0, %v7453_v39, %v7524_v20  ;;  %v13438_v60 = vadd.f32 %v7350_v13, %v17277_v5  ;;  %v13228_v1 = vpop.f32.mrb[18].mxu1  ;;  %v7580_v61 = vpack.c.bf16 %v7558_v35, %v7557_v55 }
 0x4b6   : > { %v7458_v42 = vadd.f32 %v13437_v52, %v17302_v33  ;;  %v13439_v53 = vadd.f32 %v13228_v1, %v17279_v2  ;;  %v7353_v44 = vpop.f32.mrb[19].mxu1  ;;  %13254 = vmatmul.mubr.msk.bf16.gmra.mrb[76].mxu0 %vm4411_vm1, %v7578_v15  ;;  %v7579_v23 = vpack.c.bf16 %v7556_v30, %v7555_v58 }
 0x4b7   : > { %v7456_v50 = vadd.f32 %v13438_v60, %v17302_v33  ;;  %v13440_v26 = vadd.f32 %v7353_v44, %v17281_v29 }
 0x4b8   : > { %v7529_v59 = vmul.f32 %v17307_v37, %v7458_v42  ;;  %v7459_v17 = vadd.f32 %v13439_v53, %v17302_v33  ;;  %13257 = vmatprep.mubr.msk.bf16.mxu0 %vm4411_vm1, %v7579_v23  ;;  %vm7491_vm5 = vcmp.ge.f32.partialorder %v7458_v42, 0.0 }
 0x4b9   : > { %v7527_v5 = vmul.f32 %v17307_v37, %v7456_v50  ;;  %v7457_v40 = vadd.f32 %v13440_v26, %v17302_v33  ;;  %vm7489_vm6 = vcmp.ge.f32.partialorder %v7456_v50, 0.0 }
 0x4ba   : > { %vm7492_vm7 = vcmp.ge.f32.partialorder %v7459_v17, 0.0  ;;  %v7530_v2 = vmul.f32 %v17307_v37, %v7459_v17  ;;  %v7561_v29 = vsel %vm7491_vm5, %v7458_v42, %v7529_v59  ;;  %v17419_v42 = vld [vmem:[#allocation3 + $0xc] sm:$0xf]  ;;  %v14011_v59 = vld [vmem:[#allocation3 + $0x10] ss:$0 sps:$4 sm:$0x11]  }
 0x4bb   : > { %vm7490_vm8 = vcmp.ge.f32.partialorder %v7457_v40, 0.0  ;;  %v7528_v38 = vmul.f32 %v17307_v37, %v7457_v40  ;;  %v13231_v54 = vpop.f32.mrb[20].mxu1  ;;  %v7559_v7 = vsel %vm7489_vm6, %v7456_v50, %v7527_v5  ;;  %v8428_v5 = vrot.slane %v14011_v59, 5  ;;  %v19685_v59 = vld [vmem:[#allocation12_spill] sm:$0xff] }
 0x4bc   : > { %v7562_v28 = vsel %vm7492_vm7, %v7459_v17, %v7530_v2  ;;  %v13441_v25 = vadd.f32 %v13231_v54, %v17283_v47  ;;  %v7366_v18 = vpop.f32.mrb[21].mxu1  ;;  %v17430_v2 = vld [vmem:[%s19453_s7] ss:$0 sm:$0xff] }
 0x4bd   : > { %v7560_v56 = vsel %vm7490_vm8, %v7457_v40, %v7528_v38  ;;  %v13442_v8 = vadd.f32 %v7366_v18, %v17285_v46  ;;  %v13232_v31 = vpop.f32.mrb[22].mxu1  ;;  %v7582_v41 = vpack.c.bf16 %v7562_v28, %v7561_v29  ;;  %v19677_v18 = vld [vmem:[#allocation4_spill] sm:$0xff] }
 0x4be   : > { %13258 = vmatmul.mubr.msk.bf16.gmra.mrb[80].mxu0 %vm4411_vm1, %v7580_v61  ;;  %v7462_v62 = vadd.f32 %v13441_v25, %v17302_v33  ;;  %v7581_v12 = vpack.c.bf16 %v7560_v56, %v7559_v7  ;;  %v13443_v4 = vadd.f32 %v13232_v31, %v17287_v34  ;;  %v7369_v16 = vpop.f32.mrb[23].mxu1  ;;  %v19678_v31 = vld [vmem:[#allocation5_spill] sm:$0xff] }
 0x4bf   : > { %v7460_v27 = vadd.f32 %v13442_v8, %v17302_v33  ;;  %v13444_v57 = vadd.f32 %v7369_v16, %v17289_v43 }
 0x4c0   : > { %v7533_v47 = vmul.f32 %v17307_v37, %v7462_v62  ;;  %13261 = vmatprep.mubr.msk.bf16.mxu0 %vm4411_vm1, %v7581_v12  ;;  %v7463_v46 = vadd.f32 %v13443_v4, %v17302_v33  ;;  %vm7495_vm10 = vcmp.ge.f32.partialorder %v7462_v62, 0.0  ;;  %v19679_v4 = vld [vmem:[#allocation6_spill] sm:$0xff] }
 0x4c1   : > { %v7531_v21 = vmul.f32 %v17307_v37, %v7460_v27  ;;  %v7461_v15 = vadd.f32 %v13444_v57, %v17302_v33  ;;  %vm7493_vm11 = vcmp.ge.f32.partialorder %v7460_v27, 0.0  ;;  %v19680_v57 = vld [vmem:[#allocation7_spill] sm:$0xff] }
 0x4c2   : > { %vm7496_vm12 = vcmp.ge.f32.partialorder %v7463_v46, 0.0  ;;  %v7534_v34 = vmul.f32 %v17307_v37, %v7463_v46  ;;  %v7565_v6 = vsel %vm7495_vm10, %v7462_v62, %v7533_v47 }
 0x4c3   : > { %vm7494_vm14 = vcmp.ge.f32.partialorder %v7461_v15, 0.0  ;;  %v7532_v36 = vmul.f32 %v17307_v37, %v7461_v15  ;;  %v7563_v48 = vsel %vm7493_vm11, %v7460_v27, %v7531_v21 }
 0x4c4   : > { %v7566_v43 = vsel %vm7496_vm12, %v7463_v46, %v7534_v34  ;;  %v13235_v45 = vpop.f32.mrb[24].mxu1 }
 0x4c5   : > { %v7564_v32 = vsel %vm7494_vm14, %v7461_v15, %v7532_v36  ;;  %v7584_v11 = vpack.c.bf16 %v7566_v43, %v7565_v6  ;;  %v13445_v10 = vadd.f32 %v13235_v45, %v17291_v22  ;;  %v7382_v9 = vpop.f32.mrb[25].mxu1 }
 0x4c6   : > { %13262 = vmatmul.mubr.msk.bf16.gmra.mrb[84].mxu0 %vm4411_vm1, %v7582_v41  ;;  %v7583_v51 = vpack.c.bf16 %v7564_v32, %v7563_v48  ;;  %v13446_v24 = vadd.f32 %v7382_v9, %v17293_v14  ;;  %v13236_v63 = vpop.f32.mrb[26].mxu1  ;;  %v19681_v48 = vld [vmem:[#allocation8_spill] sm:$0xff] }
 0x4c7   : > { %v7466_v39 = vadd.f32 %v13445_v10, %v17302_v33  ;;  %v13447_v0 = vadd.f32 %v13236_v63, %v17295_v19  ;;  %v7385_v20 = vpop.f32.mrb[27].mxu1  ;;  %v19682_v10 = vld [vmem:[#allocation9_spill] sm:$0xff]  ;;  %v19683_v63 = vld [vmem:[#allocation10_spill] sm:$0xff] }
 0x4c8   : > { %13265 = vmatprep.mubr.msk.bf16.mxu0 %vm4411_vm1, %v7583_v51  ;;  %v7464_v49 = vadd.f32 %v13446_v24, %v17302_v33  ;;  %v13448_v55 = vadd.f32 %v7385_v20, %v17297_v3  ;;  %v14053_v20 = vld [vmem:[%s19454_s8 + $0x30] sm:$0xff]  }
 0x4c9   : > { %v7537_v35 = vmul.f32 %v17307_v37, %v7466_v39  ;;  %v7467_v22 = vadd.f32 %v13447_v0, %v17302_v33  ;;  %vm7499_vm15 = vcmp.ge.f32.partialorder %v7466_v39, 0.0  ;;  %v14013_v0 = vld [vmem:[#allocation3 + $0x38] ss:$0 sps:$4 sm:$0x11]   ;;  %13273 = vmatprep.subr.bf16.mxu1 %v14053_v20 }
 0x4ca   : > { %v7535_v52 = vmul.f32 %v17307_v37, %v7464_v49  ;;  %v7465_v14 = vadd.f32 %v13448_v55, %v17302_v33  ;;  %vm7497_vm0 = vcmp.ge.f32.partialorder %v7464_v49, 0.0  ;;  %v17417_v33 = vld [vmem:[#allocation3 + $0x8] sm:$0xf]  ;;  %v19684_v55 = vld [vmem:[#allocation11_spill] sm:$0xff]  ;;  %13274 = vmatpush3.bf16.msra.mxu1 %v14053_v20 }
 0x4cb   : > { %vm7500_vm5 = vcmp.ge.f32.partialorder %v7467_v22, 0.0  ;;  %v7538_v19 = vmul.f32 %v17307_v37, %v7467_v22  ;;  %v7569_v58 = vsel %vm7499_vm15, %v7466_v39, %v7537_v35  ;;  %v12451_v53 = vcombine.low %v17417_v33, %v17419_v42 }
 0x4cc   : > { %vm7498_vm6 = vcmp.ge.f32.partialorder %v7465_v14, 0.0  ;;  %v7536_v13 = vmul.f32 %v17307_v37, %v7465_v14  ;;  %v7567_v3 = vsel %vm7497_vm0, %v7464_v49, %v7535_v52 }
 0x4cd   : > { %v7570_v30 = vsel %vm7500_vm5, %v7467_v22, %v7538_v19  ;;  %v8220_v37 = vshrl.u32 %v12451_v53, 16  ;;  %v8223_v44 = vshll.u32 %v12451_v53, 16  ;;  %v8427_v26 = vrot.slane %v12451_v53, 5  ;;  %v14015_v22 = vld [vmem:[#allocation3 + $0x38] ss:$0 sps:$4 sm:$0x11]  }
 0x4ce   : > { %13266 = vmatmul.mubr.msk.bf16.gmra.mrb[88].mxu0 %vm4411_vm1, %v7584_v11  ;;  %v7568_v60 = vsel %vm7498_vm6, %v7465_v14, %v7536_v13  ;;  %v7586_v1 = vpack.c.bf16 %v7570_v30, %v7569_v58  ;;  %v9355_v53 = vrot.slane %v14013_v0, 5 }
 0x4cf   : > { %v7585_v61 = vpack.c.bf16 %v7568_v60, %v7567_v3  ;;  %v8222_v23 = vrot.slane %v8220_v37, 4  ;;  %v8225_v50 = vrot.slane %v8223_v44, 5  ;;  %v8429_v40 = vsel %vm4298_vm13, %v8427_v26, %v8428_v5 }
 0x4d0   : > { %8477 = vrot.lane.b32.xlu1 %v8429_v40, %s14412_s11 }
 0x4d1   : > { %13269 = vmatprep.mubr.msk.bf16.mxu0 %vm4411_vm1, %v7585_v61  ;;  %v8226_v17 = vor.u32 %v8225_v50, %v8222_v23 }
 0x4d3   : > { %8347 = vrot.lane.b32.xlu0 %v8226_v17, %s14411_s30 }
 0x4d6   : > { %13270 = vmatmul.mubr.msk.bf16.gmra.mrb[92].mxu0 %vm4411_vm1, %v7586_v1 }
 0x4d7   : > { %8475 = vrot.lane.b32.xlu0 %v8427_v26, %s14412_s11  ;;  %v14056_v26 = vld [vmem:[%s19454_s8 + $0x38] sm:$0xff]  }
 0x4d8   : > { %13275 = vmatprep.subr.bf16.mxu1 %v14056_v26 }
 0x4d9   : > { %13276 = vmatpush3.bf16.msra.mxu1 %v14056_v26 }
 0x571   : > { %v13243_v38 = vpop.f32.mrb[64].mxu0 }
 0x572   : > { %v7701_v54 = vadd.f32 %v13243_v38, %v17430_v2  ;;  %v7692_v29 = vpop.f32.mrb[65].mxu0 }
 0x573   : > { %v7693_v28 = vadd.f32 %v17430_v2, %v7692_v29  ;;  %v13244_v25 = vpop.f32.mrb[66].mxu0  ;;  %v19686_v29 = vld [vmem:[#allocation13_spill] sm:$0xff] }
 0x574   : > { %v7821_v7 = vadd.f32 %v7701_v54, %v19677_v18  ;;  %v7704_v56 = vadd.f32 %v13244_v25, %v17430_v2  ;;  %v7695_v8 = vpop.f32.mrb[67].mxu0  ;;  %v8434_v18 = vrot.slane %v14015_v22, 5 }
 0x575   : > { %v7819_v41 = vadd.f32 %v7693_v28, %v19678_v31  ;;  %v7696_v62 = vadd.f32 %v17430_v2, %v7695_v8  ;;  %v19687_v31 = vld [vmem:[#allocation14_spill] sm:$0xff] }
 0x576   : > { %v12772_v12 = vpack.c.bf16 %v7821_v7, %v7821_v7  ;;  %v7822_v16 = vadd.f32 %v7704_v56, %v19679_v4  ;;  %v14017_v56 = vld [vmem:[#allocation3 + $0x24] ss:$0 sps:$4 sm:$0x11]  }
 0x577   : > { %v12770_v27 = vpack.c.bf16 %v7819_v41, %v7819_v41  ;;  %v7820_v47 = vadd.f32 %v7696_v62, %v19680_v57  ;;  %v19688_v57 = vld [vmem:[#allocation15_spill] sm:$0xff] }
 0x578   : > { %7981 = vst.msk [vmem:[#allocation3 + $0x30] sm:$0xf] %vm418_vm9, %v12772_v12  ;;  %v12773_v46 = vpack.c.bf16 %v7822_v16, %v7822_v16  ;;  %v14058_v16 = vld [vmem:[%s19454_s8 + $0x40] sm:$0xff]  }
 0x579   : > { %7979 = vst.msk [vmem:[#allocation3 + $0x1c] sm:$0xf] %vm418_vm9, %v12770_v27  ;;  %v12771_v21 = vpack.c.bf16 %v7820_v47, %v7820_v47  ;;  %v13247_v15 = vpop.f32.mrb[68].mxu0  ;;  %13277 = vmatprep.subr.bf16.mxu1 %v14058_v16 }
 0x57a   : > { %7982 = vst.msk [vmem:[#allocation3 + $0x34] sm:$0xf] %vm418_vm9, %v12773_v46  ;;  %v7717_v34 = vadd.f32 %v13247_v15, %v17430_v2  ;;  %v7708_v36 = vpop.f32.mrb[69].mxu0  ;;  %13278 = vmatpush3.bf16.msra.mxu1 %v14058_v16 }
 0x57b   : > { %7980 = vst.msk [vmem:[#allocation3 + $0x20] sm:$0xf] %vm418_vm9, %v12771_v21  ;;  %v7709_v6 = vadd.f32 %v17430_v2, %v7708_v36  ;;  %v13248_v43 = vpop.f32.mrb[70].mxu0 }
 0x57c   : > { %v7825_v32 = vadd.f32 %v7717_v34, %v19681_v48  ;;  %v7720_v45 = vadd.f32 %v13248_v43, %v17430_v2  ;;  %v7711_v11 = vpop.f32.mrb[71].mxu0 }
 0x57d   : > { %v7823_v9 = vadd.f32 %v7709_v6, %v19682_v10  ;;  %v7712_v51 = vadd.f32 %v17430_v2, %v7711_v11  ;;  %v14019_v6 = vld [vmem:[#allocation3 + $0x24] ss:$0 sps:$4 sm:$0x11]   ;;  %v9352_v11 = vrot.slane %v14017_v56, 5 }
 0x57e   : > { %v12776_v24 = vpack.c.bf16 %v7825_v32, %v7825_v32  ;;  %v7826_v39 = vadd.f32 %v7720_v45, %v19683_v63  ;;  %v19689_v63 = vld [vmem:[#allocation16_spill] sm:$0xff] }
 0x57f   : > { %v12774_v49 = vpack.c.bf16 %v7823_v9, %v7823_v9  ;;  %v7824_v35 = vadd.f32 %v7712_v51, %v19684_v55  ;;  %v17456_v14 = vld [vmem:[#allocation3 + $0x30] sm:$0xf] }
 0x580   : > { %7985 = vst.msk [vmem:[#allocation3 + $0x58] sm:$0xf] %vm418_vm9, %v12776_v24  ;;  %v12777_v52 = vpack.c.bf16 %v7826_v39, %v7826_v39  ;;  %v17458_v19 = vld [vmem:[#allocation3 + $0x30] sm:$0xf]  ;;  %v17483_v54 = vld [vmem:[#allocation3 + $0x1c] sm:$0xf] }
 0x581   : > { %7983 = vst.msk [vmem:[#allocation3 + $0x44] sm:$0xf] %vm418_vm9, %v12774_v49  ;;  %v12775_v13 = vpack.c.bf16 %v7824_v35, %v7824_v35  ;;  %v13251_v58 = vpop.f32.mrb[72].mxu0  ;;  %v17461_v30 = vld [vmem:[#allocation3 + $0x34] sm:$0xf] }
 0x582   : > { %v17463_v3 = vld [vmem:[#allocation3 + $0x34] sm:$0xf]  ;;  %7986 = vst.msk [vmem:[#allocation3 + $0x5c] sm:$0xf] %vm418_vm9, %v12777_v52  ;;  %v7733_v60 = vadd.f32 %v13251_v58, %v17430_v2  ;;  %v7724_v1 = vpop.f32.mrb[73].mxu0  ;;  %v17469_v61 = vcombine.low %v17456_v14, %v17461_v30  ;;  %v8431_v58 = vrot.slane %v14019_v6, 5 }
 0x583   : > { %v17473_v37 = vcombine.low %v17458_v19, %v17463_v3  ;;  %v8937_v44 = vld [vmem:[#allocation3 + $0x20] sm:$0xf]  ;;  %7984 = vst.msk [vmem:[#allocation3 + $0x48] sm:$0xf] %vm418_vm9, %v12775_v13  ;;  %v7725_v23 = vadd.f32 %v17430_v2, %v7724_v1  ;;  %v13252_v50 = vpop.f32.mrb[74].mxu0  ;;  %v19690_v35 = vld [vmem:[#allocation17_spill] sm:$0xff] }
 0x584   : > { %v7829_v17 = vadd.f32 %v7733_v60, %v19685_v59  ;;  %v7736_v5 = vadd.f32 %v13252_v50, %v17430_v2  ;;  %v7727_v40 = vpop.f32.mrb[75].mxu0  ;;  %v9354_v38 = vrot.slane %v17469_v61, 5  ;;  %v17488_v7 = vcombine.low %v17483_v54, %v8937_v44  ;;  %v8016_v4 = vld [vmem:[#allocation3 + $0x20] sm:$0xf]  ;;  %v17500_v21 = vld [vmem:[#allocation3 + $0x1c] sm:$0xf] }
 0x585   : > { %v7827_v28 = vadd.f32 %v7725_v23, %v19686_v29  ;;  %v7728_v25 = vadd.f32 %v17430_v2, %v7727_v40  ;;  %v8433_v12 = vrot.slane %v17473_v37, 5  ;;  %v17504_v36 = vcombine.low %v17500_v21, %v8016_v4  ;;  %v19691_v1 = vld [vmem:[#allocation18_spill] sm:$0xff]  ;;  %v19692_v50 = vld [vmem:[#allocation19_spill] sm:$0xff] }
 0x586   : > { %v12780_v8 = vpack.c.bf16 %v7829_v17, %v7829_v17  ;;  %v7830_v41 = vadd.f32 %v7736_v5, %v19687_v31  ;;  %9403 = vrot.lane.b32.xlu0 %v9354_v38, %s14412_s11  ;;  %v9356_v62 = vsel %vm4298_vm13, %v9354_v38, %v9355_v53  ;;  %v9351_v45 = vrot.slane %v17488_v7, 5  ;;  %v14060_v31 = vld [vmem:[%s19454_s8 + $0x48] sm:$0xff]  }
 0x587   : > { %v12778_v27 = vpack.c.bf16 %v7827_v28, %v7827_v28  ;;  %v7828_v47 = vadd.f32 %v7728_v25, %v19688_v57  ;;  %9405 = vrot.lane.b32.xlu1 %v9356_v62, %s14412_s11  ;;  %v8435_v32 = vsel %vm4298_vm13, %v8433_v12, %v8434_v18  ;;  %v8236_v51 = vshrl.u32 %v17473_v37, 16  ;;  %13279 = vmatprep.subr.bf16.mxu1 %v14060_v31 }
 0x588   : > { %7989 = vst.msk [vmem:[#allocation3 + $0x80] sm:$0xf] %vm418_vm9, %v12780_v8  ;;  %v12781_v46 = vpack.c.bf16 %v7830_v41, %v7830_v41  ;;  %v8239_v24 = vshll.u32 %v17473_v37, 16  ;;  %v9152_v49 = vshrl.u32 %v17469_v61, 16  ;;  %v9155_v55 = vshll.u32 %v17469_v61, 16  ;;  %13280 = vmatpush3.bf16.msra.mxu1 %v14060_v31 }
 0x589   : > { %7987 = vst.msk [vmem:[#allocation3 + $0x6c] sm:$0xf] %vm418_vm9, %v12778_v27  ;;  %v12779_v15 = vpack.c.bf16 %v7828_v47, %v7828_v47  ;;  %v13255_v34 = vpop.f32.mrb[76].mxu0  ;;  %v8430_v13 = vrot.slane %v17504_v36, 5  ;;  %v9353_v37 = vsel %vm4298_vm13, %v9351_v45, %v9352_v11  ;;  %v9144_v44 = vshrl.u32 %v17488_v7, 16  ;;  %v19694_v27 = vld [vmem:[#allocation20_spill] sm:$0xff] }
 0x58a   : > { %7990 = vst.msk [vmem:[#allocation3 + $0x84] sm:$0xf] %vm418_vm9, %v12781_v46  ;;  %v7749_v43 = vadd.f32 %v13255_v34, %v17430_v2  ;;  %8483 = vrot.lane.b32.xlu0 %v8433_v12, %s14412_s11  ;;  %v7740_v48 = vpop.f32.mrb[77].mxu0  ;;  %v8238_v26 = vrot.slane %v8236_v51, 4  ;;  %v9147_v59 = vshll.u32 %v17488_v7, 16  ;;  %v8241_v5 = vrot.slane %v8239_v24, 5 }
 0x58b   : > { %7988 = vst.msk [vmem:[#allocation3 + $0x70] sm:$0xf] %vm418_vm9, %v12779_v15  ;;  %v7741_v10 = vadd.f32 %v17430_v2, %v7740_v48  ;;  %8485 = vrot.lane.b32.xlu1 %v8435_v32, %s14412_s11  ;;  %v13256_v9 = vpop.f32.mrb[78].mxu0  ;;  %v9154_v40 = vrot.slane %v9152_v49, 4  ;;  %v9157_v38 = vrot.slane %v9155_v55, 5  ;;  %v8228_v25 = vshrl.u32 %v17504_v36, 16 }
 0x58c   : > { %v7833_v39 = vadd.f32 %v7749_v43, %v19689_v63  ;;  %v7752_v0 = vadd.f32 %v13256_v9, %v17430_v2  ;;  %v7743_v20 = vpop.f32.mrb[79].mxu0  ;;  %v8231_v18 = vshll.u32 %v17504_v36, 16  ;;  %v8432_v8 = vsel %vm4298_vm13, %v8430_v13, %v8431_v58  ;;  %v17544_v16 = vld [vmem:[#allocation3 + $0x5c] sm:$0xf]  ;;  %v19695_v36 = vld [vmem:[#allocation21_spill] sm:$0xff] }
 0x58d   : > { %v7831_v22 = vadd.f32 %v7741_v10, %v19690_v35  ;;  %v7744_v52 = vadd.f32 %v17430_v2, %v7743_v20  ;;  %v9146_v12 = vrot.slane %v9144_v44, 4  ;;  %v9149_v4 = vrot.slane %v9147_v59, 5  ;;  %19693 = vst [vmem:[#allocation36_spill] sm:$0xff] %v17544_v16  ;;  %v19697_v10 = vld [vmem:[#allocation22_spill] sm:$0xff] }
 0x58e   : > { %v12784_v60 = vpack.c.bf16 %v7833_v39, %v7833_v39  ;;  %v7834_v53 = vadd.f32 %v7752_v0, %v19691_v1  ;;  %9399 = vrot.lane.b32.xlu0 %v9351_v45, %s14412_s11  ;;  %v8242_v15 = vor.u32 %v8241_v5, %v8238_v26  ;;  %v9158_v34 = vor.u32 %v9157_v38, %v9154_v40  ;;  %v17550_v45 = vld [vmem:[#allocation3 + $0x58] sm:$0xf]  ;;  %v14021_v24 = vld [vmem:[#allocation3 + $0x60] ss:$0 sps:$4 sm:$0x11]   ;;  %v14065_v1 = vld [vmem:[%s19454_s8 + $0x58] sm:$0xff]  }
 0x58f   : > { %v12782_v23 = vpack.c.bf16 %v7831_v22, %v7831_v22  ;;  %v7832_v61 = vadd.f32 %v7744_v52, %v19692_v50  ;;  %9401 = vrot.lane.b32.xlu1 %v9353_v37, %s14412_s11  ;;  %v8230_v48 = vrot.slane %v8228_v25, 4  ;;  %v8233_v32 = vrot.slane %v8231_v18, 5  ;;  %19696 = vst [vmem:[#allocation37_spill] sm:$0xff] %v17550_v45  ;;  %v19698_v39 = vld [vmem:[#allocation23_spill] sm:$0xff]  ;;  %v17560_v20 = vld [vmem:[#allocation3 + $0x5c] sm:$0xf] }
 0x590   : > { %7993 = vst.msk [vmem:[#allocation3 + $0xa8] sm:$0xf] %vm418_vm9, %v12784_v60  ;;  %v12785_v17 = vpack.c.bf16 %v7834_v53, %v7834_v53  ;;  %v17556_v51 = vcombine.low %v17550_v45, %v17544_v16  ;;  %19699 = vst [vmem:[#allocation39_spill] sm:$0xff] %v17560_v20  ;;  %v9150_v55 = vor.u32 %v9149_v4, %v9146_v12  ;;  %v14023_v35 = vld [vmem:[#allocation3 + $0x60] ss:$0 sps:$4 sm:$0x11]  }
 0x591   : > { %7991 = vst.msk [vmem:[#allocation3 + $0x94] sm:$0xf] %vm418_vm9, %v12782_v23  ;;  %v12783_v29 = vpack.c.bf16 %v7832_v61, %v7832_v61  ;;  %v13259_v28 = vpop.f32.mrb[80].mxu0  ;;  %v14063_v22 = vld [vmem:[%s19454_s8 + $0x50] sm:$0xff]   ;;  %v8234_v58 = vor.u32 %v8233_v32, %v8230_v48  ;;  %v17567_v60 = vld [vmem:[#allocation3 + $0x58] sm:$0xf] }
 0x592   : > { %7994 = vst.msk [vmem:[#allocation3 + $0xac] sm:$0xf] %vm418_vm9, %v12785_v17  ;;  %v7765_v56 = vadd.f32 %v13259_v28, %v17430_v2  ;;  %8479 = vrot.lane.b32.xlu0 %v8430_v13, %s14412_s11  ;;  %v7756_v7 = vpop.f32.mrb[81].mxu0  ;;  %19700 = vst [vmem:[#allocation38_spill] sm:$0xff] %v17567_v60  ;;  %v9360_v44 = vrot.slane %v17556_v51, 5  ;;  %v9361_v23 = vrot.slane %v14021_v24, 5  ;;  %v17578_v50 = vcombine.low %v17567_v60, %v17560_v20 }
 0x593   : > { %7992 = vst.msk [vmem:[#allocation3 + $0x98] sm:$0xf] %vm418_vm9, %v12783_v29  ;;  %v7757_v41 = vadd.f32 %v17430_v2, %v7756_v7  ;;  %8481 = vrot.lane.b32.xlu1 %v8432_v8, %s14412_s11  ;;  %v13260_v62 = vpop.f32.mrb[82].mxu0  ;;  %v17580_v61 = vld [vmem:[#allocation3 + $0x48] sm:$0xf]  ;;  %13281 = vmatprep.subr.bf16.mxu1 %v14063_v22  ;;  %v19702_v28 = vld [vmem:[#allocation25_spill] sm:$0xff] }
 0x594   : > { %v7837_v57 = vadd.f32 %v7765_v56, %v19694_v27  ;;  %v7768_v47 = vadd.f32 %v13260_v62, %v17430_v2  ;;  %v7759_v46 = vpop.f32.mrb[83].mxu0  ;;  %13282 = vmatpush3.bf16.msra.mxu1 %v14063_v22  ;;  %v19701_v17 = vld [vmem:[#allocation24_spill] sm:$0xff]  ;;  %v17587_v29 = vld [vmem:[#allocation3 + $0x44] sm:$0xf]  ;;  %v8440_v56 = vrot.slane %v14023_v35, 5  ;;  %v9362_v12 = vsel %vm4298_vm13, %v9360_v44, %v9361_v23 }
 0x595   : > { %v7835_v6 = vadd.f32 %v7757_v41, %v19695_v36  ;;  %v7760_v43 = vadd.f32 %v17430_v2, %v7759_v46  ;;  %13283 = vmatprep.subr.bf16.mxu1 %v14065_v1  ;;  %v17593_v7 = vcombine.low %v17587_v29, %v17580_v61  ;;  %v14025_v8 = vld [vmem:[#allocation3 + $0x4c] ss:$0 sps:$4 sm:$0x11]   ;;  %v19703_v41 = vld [vmem:[#allocation26_spill] sm:$0xff]  ;;  %v8439_v4 = vrot.slane %v17578_v50, 5 }
 0x596   : > { %v12788_v11 = vpack.c.bf16 %v7837_v57, %v7837_v57  ;;  %v7838_v9 = vadd.f32 %v7768_v47, %v19697_v10  ;;  %8351 = vrot.lane.b32.xlu0 %v8242_v15, %s14411_s30  ;;  %v17599_v27 = vld [vmem:[#allocation3 + $0x48] sm:$0xf]  ;;  %v19705_v47 = vld [vmem:[#allocation27_spill] sm:$0xff]  ;;  %v14027_v32 = vld [vmem:[#allocation3 + $0x4c] ss:$0 sps:$4 sm:$0x11]  }
 0x597   : > { %v12786_v63 = vpack.c.bf16 %v7835_v6, %v7835_v6  ;;  %v7836_v0 = vadd.f32 %v7760_v43, %v19698_v39  ;;  %9273 = vrot.lane.b32.xlu1 %v9158_v34, %s14411_s30  ;;  %19704 = vst [vmem:[#allocation41_spill] sm:$0xff] %v17599_v27  ;;  %v17604_v34 = vld [vmem:[#allocation3 + $0x44] sm:$0xf]  ;;  %v9358_v43 = vrot.slane %v14025_v8, 5  ;;  %v9357_v24 = vrot.slane %v17593_v7, 5 }
 0x598   : > { %7997 = vst.msk [vmem:[#allocation3 + $0xd0] sm:$0xf] %vm418_vm9, %v12788_v11  ;;  %v12789_v49 = vpack.c.bf16 %v7838_v9, %v7838_v9  ;;  %13284 = vmatpush3.bf16.msra.mxu1 %v14065_v1  ;;  %v17609_v48 = vcombine.low %v17604_v34, %v17599_v27  ;;  %v8441_v9 = vsel %vm4298_vm13, %v8439_v4, %v8440_v56  ;;  %v19707_v1 = vld [vmem:[#allocation29_spill] sm:$0xff]  ;;  %v8437_v23 = vrot.slane %v14027_v32, 5 }
 0x599   : > { %7995 = vst.msk [vmem:[#allocation3 + $0xbc] sm:$0xf] %vm418_vm9, %v12786_v63  ;;  %v12787_v52 = vpack.c.bf16 %v7836_v0, %v7836_v0  ;;  %v13263_v13 = vpop.f32.mrb[84].mxu0  ;;  %v8252_v63 = vshrl.u32 %v17578_v50, 16 }
 0x59a   : > { %7998 = vst.msk [vmem:[#allocation3 + $0xd4] sm:$0xf] %vm418_vm9, %v12789_v49  ;;  %v7781_v53 = vadd.f32 %v13263_v13, %v17430_v2  ;;  %9271 = vrot.lane.b32.xlu0 %v9150_v55, %s14411_s30  ;;  %v7772_v37 = vpop.f32.mrb[85].mxu0  ;;  %v8255_v49 = vshll.u32 %v17578_v50, 16  ;;  %v19706_v55 = vld [vmem:[#allocation28_spill] sm:$0xff]  ;;  %v9168_v13 = vshrl.u32 %v17556_v51, 16  ;;  %v9359_v50 = vsel %vm4298_vm13, %v9357_v24, %v9358_v43 }
 0x59b   : > { %7996 = vst.msk [vmem:[#allocation3 + $0xc0] sm:$0xf] %vm418_vm9, %v12787_v52  ;;  %v7773_v26 = vadd.f32 %v17430_v2, %v7772_v37  ;;  %8349 = vrot.lane.b32.xlu1 %v8234_v58, %s14411_s30  ;;  %v13264_v59 = vpop.f32.mrb[86].mxu0  ;;  %v9171_v58 = vshll.u32 %v17556_v51, 16  ;;  %v8952_v43 = vld [vmem:[#allocation3 + $0x84] sm:$0xf] }
 0x59c   : > { %v7841_v5 = vadd.f32 %v7781_v53, %v19701_v17  ;;  %v7784_v40 = vadd.f32 %v13264_v59, %v17430_v2  ;;  %v7775_v38 = vpop.f32.mrb[87].mxu0  ;;  %v19708_v59 = vld [vmem:[#allocation30_spill] sm:$0xff]  ;;  %v8257_v51 = vrot.slane %v8255_v49, 5  ;;  %v9170_v56 = vrot.slane %v9168_v13, 4 }
 0x59d   : > { %v7839_v25 = vadd.f32 %v7773_v26, %v19702_v28  ;;  %v7776_v18 = vadd.f32 %v17430_v2, %v7775_v38  ;;  %v19709_v38 = vld [vmem:[#allocation31_spill] sm:$0xff]  ;;  %v9173_v8 = vrot.slane %v9171_v58, 5 }
 0x59e   : > { %v12792_v31 = vpack.c.bf16 %v7841_v5, %v7841_v5  ;;  %v7842_v62 = vadd.f32 %v7784_v40, %v19703_v41  ;;  %9411 = vrot.lane.b32.xlu0 %v9360_v44, %s14412_s11  ;;  %v8436_v44 = vrot.slane %v17609_v48, 5  ;;  %v8254_v5 = vrot.slane %v8252_v63, 4  ;;  %v19711_v63 = vld [vmem:[#allocation33_spill] sm:$0xff] }
 0x59f   : > { %v12790_v57 = vpack.c.bf16 %v7839_v25, %v7839_v25  ;;  %v7840_v46 = vadd.f32 %v7776_v18, %v19705_v47  ;;  %9413 = vrot.lane.b32.xlu1 %v9362_v12, %s14412_s11  ;;  %v9160_v25 = vshrl.u32 %v17593_v7, 16  ;;  %v8244_v12 = vshrl.u32 %v17609_v48, 16 }
 0x5a0   : > { %8001 = vst.msk [vmem:[#allocation3 + $0xf8] sm:$0xf] %vm418_vm9, %v12792_v31  ;;  %v12793_v15 = vpack.c.bf16 %v7842_v62, %v7842_v62  ;;  %v9163_v31 = vshll.u32 %v17593_v7, 16 }
 0x5a1   : > { %7999 = vst.msk [vmem:[#allocation3 + $0xe4] sm:$0xf] %vm418_vm9, %v12790_v57  ;;  %v12791_v36 = vpack.c.bf16 %v7840_v46, %v7840_v46  ;;  %v13267_v6 = vpop.f32.mrb[88].mxu0  ;;  %v8438_v57 = vsel %vm4298_vm13, %v8436_v44, %v8437_v23  ;;  %v8246_v49 = vrot.slane %v8244_v12, 4  ;;  %v17657_v23 = vld [vmem:[#allocation3 + $0x84] sm:$0xf] }
 0x5a2   : > { %8002 = vst.msk [vmem:[#allocation3 + $0xfc] sm:$0xf] %vm418_vm9, %v12793_v15  ;;  %v7797_v11 = vadd.f32 %v13267_v6, %v17430_v2  ;;  %8491 = vrot.lane.b32.xlu0 %v8439_v4, %s14412_s11  ;;  %v7788_v10 = vpop.f32.mrb[89].mxu0  ;;  %v8247_v4 = vshll.u32 %v17609_v48, 16  ;;  %v9162_v6 = vrot.slane %v9160_v25, 4  ;;  %v19710_v48 = vld [vmem:[#allocation32_spill] sm:$0xff] }
 0x5a3   : > { %8000 = vst.msk [vmem:[#allocation3 + $0xe8] sm:$0xf] %vm418_vm9, %v12791_v36  ;;  %v7789_v39 = vadd.f32 %v17430_v2, %v7788_v10  ;;  %8493 = vrot.lane.b32.xlu1 %v8441_v9, %s14412_s11  ;;  %v13268_v0 = vpop.f32.mrb[90].mxu0  ;;  %v8258_v36 = vor.u32 %v8257_v51, %v8254_v5  ;;  %v9174_v9 = vor.u32 %v9173_v8, %v9170_v56  ;;  %v17669_v51 = vld [vmem:[#allocation3 + $0x70] sm:$0xf] }
 0x5a4   : > { %v7845_v35 = vadd.f32 %v7797_v11, %v19706_v55  ;;  %v7800_v22 = vadd.f32 %v13268_v0, %v17430_v2  ;;  %v7791_v52 = vpop.f32.mrb[91].mxu0  ;;  %v8249_v55 = vrot.slane %v8247_v4, 5  ;;  %19715 = vst [vmem:[#allocation43_spill] sm:$0xff] %v17669_v51  ;;  %v17671_v25 = vld [vmem:[#allocation3 + $0x6c] sm:$0xf] }
 0x5a5   : > { %v7843_v53 = vadd.f32 %v7789_v39, %v19707_v1  ;;  %v7792_v37 = vadd.f32 %v17430_v2, %v7791_v52  ;;  %v19713_v52 = vld [vmem:[#allocation34_spill] sm:$0xff]  ;;  %v14029_v1 = vld [vmem:[#allocation3 + $0x88] ss:$0 sps:$4 sm:$0x11]   ;;  %19716 = vst [vmem:[#allocation45_spill] sm:$0xff] %v17671_v25 }
 0x5a6   : > { %v12796_v26 = vpack.c.bf16 %v7845_v35, %v7845_v35  ;;  %v7846_v17 = vadd.f32 %v7800_v22, %v19708_v59  ;;  %9407 = vrot.lane.b32.xlu0 %v9357_v24, %s14412_s11  ;;  %v9165_v24 = vrot.slane %v9163_v31, 5  ;;  %v17650_v35 = vld [vmem:[#allocation3 + $0x80] sm:$0xf]  ;;  %v12519_v31 = vcombine.low %v17671_v25, %v17669_v51  ;;  %v17680_v12 = vld [vmem:[#allocation3 + $0x6c] sm:$0xf] }
 0x5a7   : > { %v12794_v40 = vpack.c.bf16 %v7843_v53, %v7843_v53  ;;  %v7844_v28 = vadd.f32 %v7792_v37, %v19709_v38  ;;  %9409 = vrot.lane.b32.xlu1 %v9359_v50, %s14412_s11  ;;  %19712 = vst [vmem:[#allocation40_spill] sm:$0xff] %v17650_v35  ;;  %v12520_v58 = vcombine.low %v17650_v35, %v8952_v43  ;;  %v19714_v37 = vld [vmem:[#allocation35_spill] sm:$0xff]  ;;  %19718 = vst [vmem:[#allocation44_spill] sm:$0xff] %v17680_v12 }
 0x5a8   : > { %8005 = vst.msk [vmem:[#allocation3 + $0x120] sm:$0xf] %vm418_vm9, %v12796_v26  ;;  %v12797_v18 = vpack.c.bf16 %v7846_v17, %v7846_v17  ;;  %v9166_v26 = vor.u32 %v9165_v24, %v9162_v6  ;;  %v8250_v17 = vor.u32 %v8249_v55, %v8246_v49  ;;  %v17661_v50 = vld [vmem:[#allocation3 + $0x80] sm:$0xf]  ;;  %v9176_v24 = vshrl.u32 %v12519_v31, 16 }
 0x5a9   : > { %8003 = vst.msk [vmem:[#allocation3 + $0x10c] sm:$0xf] %vm418_vm9, %v12794_v40  ;;  %v12795_v41 = vpack.c.bf16 %v7844_v28, %v7844_v28  ;;  %v13271_v62 = vpop.f32.mrb[92].mxu0  ;;  %v9366_v5 = vrot.slane %v12520_v58, 5  ;;  %v9367_v40 = vrot.slane %v14029_v1, 5  ;;  %v12457_v38 = vcombine.low %v17661_v50, %v17657_v23 }
 0x5aa   : > { %8006 = vst.msk [vmem:[#allocation3 + $0x124] sm:$0xf] %vm418_vm9, %v12797_v18  ;;  %8487 = vrot.lane.b32.xlu0 %v8436_v44, %s14412_s11  ;;  %v7813_v47 = vadd.f32 %v13271_v62, %v17430_v2  ;;  %v7804_v46 = vpop.f32.mrb[93].mxu0  ;;  %v14031_v28 = vld [vmem:[#allocation3 + $0x88] ss:$0 sps:$4 sm:$0x11]  }
 0x5ab   : > { %8004 = vst.msk [vmem:[#allocation3 + $0x110] sm:$0xf] %vm418_vm9, %v12795_v41  ;;  %8489 = vrot.lane.b32.xlu1 %v8438_v57, %s14412_s11  ;;  %v7805_v7 = vadd.f32 %v17430_v2, %v7804_v46  ;;  %v13272_v15 = vpop.f32.mrb[94].mxu0  ;;  %v9368_v18 = vsel %vm4298_vm13, %v9366_v5, %v9367_v40  ;;  %v8445_v56 = vrot.slane %v12457_v38, 5  ;;  %v8446_v8 = vrot.slane %v14031_v28, 5 }
 0x5ac   : > { %v7849_v32 = vadd.f32 %v7813_v47, %v19710_v48  ;;  %v7816_v11 = vadd.f32 %v13272_v15, %v17430_v2  ;;  %v7807_v10 = vpop.f32.mrb[95].mxu0  ;;  %v14033_v41 = vld [vmem:[#allocation3 + $0x74] ss:$0 sps:$4 sm:$0x11]   ;;  %v17678_v62 = vld [vmem:[#allocation3 + $0x70] sm:$0xf] }
 0x5ad   : > { %v7847_v39 = vadd.f32 %v7805_v7, %v19711_v63  ;;  %v7808_v0 = vadd.f32 %v17430_v2, %v7807_v10  ;;  %19717 = vst [vmem:[#allocation42_spill] sm:$0xff] %v17678_v62  ;;  %v8447_v4 = vsel %vm4298_vm13, %v8445_v56, %v8446_v8  ;;  %v9363_v57 = vrot.slane %v12519_v31, 5  ;;  %v14035_v7 = vld [vmem:[#allocation3 + $0x74] ss:$0 sps:$4 sm:$0x11]  }
 0x5ae   : > { %v12800_v22 = vpack.c.bf16 %v7849_v32, %v7849_v32  ;;  %v7850_v13 = vadd.f32 %v7816_v11, %v19713_v52  ;;  %8355 = vrot.lane.b32.xlu0 %v8258_v36, %s14411_s30  ;;  %v9364_v47 = vrot.slane %v14033_v41, 5  ;;  %v12456_v46 = vcombine.low %v17680_v12, %v17678_v62  ;;  %v8958_v52 = vld [vmem:[#allocation3 + $0xac] sm:$0xf]  ;;  %v14039_v8 = vld [vmem:[#allocation3 + $0xb0] ss:$0 sps:$4 sm:$0x11]  }
 0x5af   : > { %v12798_v53 = vpack.c.bf16 %v7847_v39, %v7847_v39  ;;  %v7848_v44 = vadd.f32 %v7808_v0, %v19714_v37  ;;  %9277 = vrot.lane.b32.xlu1 %v9174_v9, %s14411_s30  ;;  %v8268_v15 = vshrl.u32 %v12457_v38, 16  ;;  %v8271_v36 = vshll.u32 %v12457_v38, 16  ;;  %v17697_v38 = vld [vmem:[#allocation3 + $0xa8] sm:$0xf]  ;;  %v8954_v41 = vld [vmem:[#allocation3 + $0x94] sm:$0xf] }
 0x5b0   : > { %8009 = vst.msk [vmem:[#allocation3 + $0x148] sm:$0xf] %vm418_vm9, %v12800_v22  ;;  %v12801_v2 = vpack.c.bf16 %v7850_v13, %v7850_v13  ;;  %v9184_v6 = vshrl.u32 %v12520_v58, 16  ;;  %v9187_v43 = vshll.u32 %v12520_v58, 16  ;;  %v9365_v48 = vsel %vm4298_vm13, %v9363_v57, %v9364_v47  ;;  %19720 = vst [vmem:[#allocation47_spill] sm:$0xff] %v17697_v38 }
 0x5b1   : > { %8007 = vst.msk [vmem:[#allocation3 + $0x134] sm:$0xf] %vm418_vm9, %v12798_v53  ;;  %v12799_v59 = vpack.c.bf16 %v7848_v44, %v7848_v44  ;;  %v8442_v32 = vrot.slane %v12456_v46, 5  ;;  %v8443_v11 = vrot.slane %v14035_v7, 5  ;;  %v8270_v10 = vrot.slane %v8268_v15, 4 }
 0x5b2   : > { %8010 = vst.msk [vmem:[#allocation3 + $0x14c] sm:$0xf] %vm418_vm9, %v12801_v2  ;;  %9275 = vrot.lane.b32.xlu0 %v9166_v26, %s14411_s30  ;;  %v8273_v9 = vrot.slane %v8271_v36, 5  ;;  %v9179_v63 = vshll.u32 %v12519_v31, 16  ;;  %v9186_v39 = vrot.slane %v9184_v6, 4  ;;  %v9189_v0 = vrot.slane %v9187_v43, 5 }
 0x5b3   : > { %8008 = vst.msk [vmem:[#allocation3 + $0x138] sm:$0xf] %vm418_vm9, %v12799_v59  ;;  %8353 = vrot.lane.b32.xlu1 %v8250_v17, %s14411_s30  ;;  %v8260_v49 = vshrl.u32 %v12456_v46, 16  ;;  %v8263_v55 = vshll.u32 %v12456_v46, 16  ;;  %v8444_v22 = vsel %vm4298_vm13, %v8442_v32, %v8443_v11  ;;  %v9178_v58 = vrot.slane %v9176_v24, 4 }
 0x5b4   : > { %v8274_v13 = vor.u32 %v8273_v9, %v8270_v10  ;;  %v9181_v1 = vrot.slane %v9179_v63, 5  ;;  %v9190_v53 = vor.u32 %v9189_v0, %v9186_v39  ;;  %v8957_v2 = vld [vmem:[#allocation3 + $0xa8] sm:$0xf]  ;;  %v14037_v59 = vld [vmem:[#allocation3 + $0xb0] ss:$0 sps:$4 sm:$0x11]  }
 0x5b5   : > { %v8262_v37 = vrot.slane %v8260_v49, 4  ;;  %v8265_v44 = vrot.slane %v8263_v55, 5  ;;  %v12522_v26 = vcombine.low %v8957_v2, %v8958_v52  ;;  %v17695_v17 = vld [vmem:[#allocation3 + $0xac] sm:$0xf]  ;;  %v8955_v31 = vld [vmem:[#allocation3 + $0x98] sm:$0xf] }
 0x5b6   : > { %9419 = vrot.lane.b32.xlu0 %v9366_v5, %s14412_s11  ;;  %19719 = vst [vmem:[#allocation46_spill] sm:$0xff] %v17695_v17  ;;  %v9182_v5 = vor.u32 %v9181_v1, %v9178_v58  ;;  %v8452_v47 = vrot.slane %v14039_v8, 5  ;;  %v12521_v46 = vcombine.low %v8954_v41, %v8955_v31  ;;  %v14041_v7 = vld [vmem:[#allocation3 + $0x9c] ss:$0 sps:$4 sm:$0x11]  }
 0x5b7   : > { %9421 = vrot.lane.b32.xlu1 %v9368_v18, %s14412_s11  ;;  %v8266_v40 = vor.u32 %v8265_v44, %v8262_v37  ;;  %v9372_v28 = vrot.slane %v12522_v26, 5  ;;  %v9373_v18 = vrot.slane %v14037_v59, 5  ;;  %v8034_v15 = vld [vmem:[#allocation3 + $0x98] sm:$0xf]  ;;  %v8033_v36 = vld [vmem:[#allocation3 + $0x94] sm:$0xf] }
 0x5b8   : > { %v9369_v43 = vrot.slane %v12521_v46, 5  ;;  %v14043_v11 = vld [vmem:[#allocation3 + $0x9c] ss:$0 sps:$4 sm:$0x11]   ;;  %v9200_v24 = vshrl.u32 %v12522_v26, 16  ;;  %v9203_v63 = vshll.u32 %v12522_v26, 16 }
 0x5b9   : > { %v8449_v49 = vrot.slane %v14043_v11, 5  ;;  %v17712_v55 = vld [vmem:[#allocation3 + $0x38] ss:$0 sps:$4 sm:$0x11]   ;;  %v9195_v58 = vshll.u32 %v12521_v46, 16 }
 0x5ba   : > { %8499 = vrot.lane.b32.xlu0 %v8445_v56, %s14412_s11  ;;  %v12459_v56 = vcombine.low %v17697_v38, %v17695_v17  ;;  %19721 = vst [vmem:[#allocation48_spill] sm:$0xff] %v17712_v55  ;;  %v9202_v1 = vrot.slane %v9200_v24, 4  ;;  %v8011_v26 = vld [vmem:[#allocation3 + $0x4] sm:$0x8]  ;;  %v8052_v62 = vld [vmem:[#allocation3 + $0x110] sm:$0xf] }
 0x5bb   : > { %8501 = vrot.lane.b32.xlu1 %v8447_v4, %s14412_s11  ;;  %v9374_v4 = vsel %vm4298_vm13, %v9372_v28, %v9373_v18  ;;  %v17716_v59 = vld [vmem:[#allocation3 + $0x60] ss:$0 sps:$4 sm:$0x11]   ;;  %v17720_v18 = vld [vmem:[#allocation3 + $0x4c] ss:$0 sps:$4 sm:$0x11]  }
 0x5bc   : > { %v8284_v10 = vshrl.u32 %v12459_v56, 16  ;;  %v8287_v9 = vshll.u32 %v12459_v56, 16  ;;  %19722 = vst [vmem:[#allocation49_spill] sm:$0xff] %v17716_v59  ;;  %19723 = vst [vmem:[#allocation4_spill] sm:$0xff] %v17720_v18  ;;  %v9197_v31 = vrot.slane %v9195_v58, 5 }
 0x5bd   : > { %v14045_v41 = vld [vmem:[#allocation3 + $0xd8] ss:$0 sps:$4 sm:$0x11]   ;;  %v17742_v24 = vld [vmem:[#allocation3 + $0x100] ss:$0 sps:$4 sm:$0x11]  }
 0x5be   : > { %9415 = vrot.lane.b32.xlu0 %v9363_v57, %s14412_s11  ;;  %v8451_v57 = vrot.slane %v12459_v56, 5  ;;  %v8289_v52 = vrot.slane %v8287_v9, 5  ;;  %v17739_v9 = vld [vmem:[#allocation3 + $0x9c] ss:$0 sps:$4 sm:$0x11]  }
 0x5bf   : > { %9417 = vrot.lane.b32.xlu1 %v9365_v48, %s14412_s11  ;;  %v9370_v48 = vrot.slane %v14041_v7, 5  ;;  %19727 = vst [vmem:[#allocation8_spill] sm:$0xff] %v17739_v9  ;;  %v17825_v59 = vld [vmem:[#allocation3 + $0x114] ss:$0 sps:$4 sm:$0x11]  }
 0x5c0   : > { %v8453_v6 = vsel %vm4298_vm13, %v8451_v57, %v8452_v47  ;;  %v17726_v47 = vld [vmem:[#allocation3 + $0x88] ss:$0 sps:$4 sm:$0x11]   ;;  %v8982_v18 = vld [vmem:[#allocation3 + $0x14c] sm:$0xf] }
 0x5c1   : > { %v9371_v39 = vsel %vm4298_vm13, %v9369_v43, %v9370_v48  ;;  %19724 = vst [vmem:[#allocation5_spill] sm:$0xff] %v17726_v47  ;;  %v17731_v48 = vld [vmem:[#allocation3 + $0x74] ss:$0 sps:$4 sm:$0x11]   ;;  %v8055_v35 = vld [vmem:[#allocation3 + $0x124] sm:$0xf] }
 0x5c2   : > { %8495 = vrot.lane.b32.xlu0 %v8442_v32, %s14412_s11  ;;  %v12458_v32 = vcombine.low %v8033_v36, %v8034_v15  ;;  %v8963_v36 = vld [vmem:[#allocation3 + $0xd0] sm:$0xf]  ;;  %19725 = vst [vmem:[#allocation6_spill] sm:$0xff] %v17731_v48  ;;  %v8058_v27 = vld [vmem:[#allocation3 + $0x138] sm:$0xf] }
 0x5c3   : > { %8497 = vrot.lane.b32.xlu1 %v8444_v22, %s14412_s11  ;;  %v8286_v22 = vrot.slane %v8284_v10, 4  ;;  %v8961_v10 = vld [vmem:[#allocation3 + $0xc0] sm:$0xf] }
 0x5c4   : > { %v8448_v0 = vrot.slane %v12458_v32, 5  ;;  %v8276_v37 = vshrl.u32 %v12458_v32, 16  ;;  %v8279_v44 = vshll.u32 %v12458_v32, 16  ;;  %v17733_v32 = vld [vmem:[#allocation3 + $0xb0] ss:$0 sps:$4 sm:$0x11]  }
 0x5c5   : > { %v8290_v56 = vor.u32 %v8289_v52, %v8286_v22  ;;  %19726 = vst [vmem:[#allocation7_spill] sm:$0xff] %v17733_v32 }
 0x5c6   : > { %8359 = vrot.lane.b32.xlu0 %v8274_v13, %s14411_s30  ;;  %v9192_v13 = vshrl.u32 %v12521_v46, 16  ;;  %v8450_v2 = vsel %vm4298_vm13, %v8448_v0, %v8449_v49  ;;  %v8278_v7 = vrot.slane %v8276_v37, 4  ;;  %v8281_v15 = vrot.slane %v8279_v44, 5  ;;  %v17747_v49 = vld [vmem:[#allocation3 + $0xd8] ss:$0 sps:$4 sm:$0x11]   ;;  %v8478_v37 = vpop.permute.xlu1 %8477 }
 0x5c7   : > { %9281 = vrot.lane.b32.xlu1 %v9190_v53, %s14411_s30  ;;  %v9205_v53 = vrot.slane %v9203_v63, 5  ;;  %v17744_v63 = vld [vmem:[#allocation3 + $0xd8] ss:$0 sps:$4 sm:$0x11]   ;;  %19728 = vst [vmem:[#allocation9_spill] sm:$0xff] %v17747_v49 }
 0x5c8   : > { %v9194_v8 = vrot.slane %v9192_v13, 4  ;;  %v8282_v22 = vor.u32 %v8281_v15, %v8278_v7  ;;  %v8040_v13 = vld [vmem:[#allocation3 + $0xc0] sm:$0xf]  ;;  %v17751_v44 = vld [vmem:[#allocation3 + $0xec] ss:$0 sps:$4 sm:$0x11]  }
 0x5c9   : > { %v9206_v46 = vor.u32 %v9205_v53, %v9202_v1  ;;  %v8975_v49 = vld [vmem:[#allocation3 + $0x120] sm:$0xf] }
 0x5ca   : > { %9279 = vrot.lane.b32.xlu0 %v9182_v5, %s14411_s30  ;;  %v8964_v5 = vld [vmem:[#allocation3 + $0xd4] sm:$0xf] }
 0x5cb   : > { %8357 = vrot.lane.b32.xlu1 %v8266_v40, %s14411_s30  ;;  %v8348_v40 = vpop.permute.xlu0 %8347  ;;  %v17736_v11 = vcombine.low %v8963_v36, %v8964_v5  ;;  %v9379_v5 = vrot.slane %v14045_v41, 5 }
 0x5cd   : > { %v9219_v7 = vshll.u32 %v17736_v11, 16 }
 0x5ce   : > { %9427 = vrot.lane.b32.xlu0 %v9372_v28, %s14412_s11 }
 0x5cf   : > { %9429 = vrot.lane.b32.xlu1 %v9374_v4, %s14412_s11  ;;  %v17722_v4 = vld [vmem:[#allocation3 + $0xc4] ss:$0 sps:$4 sm:$0x11]   ;;  %v8476_v53 = vpop.permute.xlu0 %8475 }
 0x5d2   : > { %8507 = vrot.lane.b32.xlu0 %v8451_v57, %s14412_s11  ;;  %v12420_v57 = vcombine.low %v17419_v42, %v17419_v42 }
 0x5d3   : > { %8509 = vrot.lane.b32.xlu1 %v8453_v6, %s14412_s11  ;;  %v17728_v6 = vld [vmem:[#allocation3 + $0xc4] ss:$0 sps:$4 sm:$0x11]  }
 0x5d4   : > { %v8543_v1 = vsel %vm4411_vm1, %v12420_v57, %v8348_v40 }
 0x5d5   : > { %v8622_v41 = vsel %vm4492_vm2, %v8543_v1, %v8478_v37  ;;  %v9216_v37 = vshrl.u32 %v17736_v11, 16 }
 0x5d6   : > { %9423 = vrot.lane.b32.xlu0 %v9369_v43, %s14412_s11  ;;  %v12419_v43 = vcombine.low %v8011_v26, %v17417_v33  ;;  %v9198_v33 = vor.u32 %v9197_v31, %v9194_v8  ;;  %v9378_v26 = vrot.slane %v17736_v11, 5  ;;  %v8690_v42 = vshrl.u32 %v8622_v41, 16  ;;  %v17791_v11 = vld [vmem:[#allocation3 + $0x18] sm:$0x8] }
 0x5d7   : > { %9425 = vrot.lane.b32.xlu1 %v9371_v39, %s14412_s11  ;;  %v8960_v39 = vld [vmem:[#allocation3 + $0xbc] sm:$0xf]  ;;  %v8693_v28 = vshll.u32 %v8622_v41, 16  ;;  %v9218_v31 = vrot.slane %v9216_v37, 4 }
 0x5d8   : > { %v12523_v52 = vcombine.low %v8960_v39, %v8961_v10  ;;  %v8541_v58 = vsel %vm4411_vm1, %v12419_v43, %v8348_v40  ;;  %v8039_v40 = vld [vmem:[#allocation3 + $0xbc] sm:$0xf]  ;;  %v17769_v43 = vld [vmem:[#allocation3 + $0x2c] sm:$0x8] }
 0x5d9   : > { %v12460_v15 = vcombine.low %v8039_v40, %v8040_v13  ;;  %v8620_v36 = vsel %vm4492_vm2, %v8541_v58, %v8476_v53  ;;  %v8970_v39 = vld [vmem:[#allocation3 + $0xfc] sm:$0xf]  ;;  %v9380_v58 = vsel %vm4298_vm13, %v9378_v26, %v9379_v5  ;;  %v8967_v40 = vld [vmem:[#allocation3 + $0xe8] sm:$0xf]  ;;  %v17804_v32 = vrot.slane %v8693_v28, 4 }
 0x5da   : > { %8503 = vrot.lane.b32.xlu0 %v8448_v0, %s14412_s11  ;;  %v9208_v1 = vshrl.u32 %v12523_v52, 16  ;;  %v9211_v53 = vshll.u32 %v12523_v52, 16  ;;  %v8683_v8 = vshrl.u32 %v8620_v36, 16  ;;  %v8686_v57 = vshll.u32 %v8620_v36, 16  ;;  %v8969_v0 = vld [vmem:[#allocation3 + $0xf8] sm:$0xf] }
 0x5db   : > { %8505 = vrot.lane.b32.xlu1 %v8450_v2, %s14412_s11  ;;  %v17756_v2 = vld [vmem:[%s19454_s8] sm:$0xff]   ;;  %v17783_v10 = vcombine.low %v8969_v0, %v8970_v39  ;;  %v8292_v13 = vshrl.u32 %v12460_v15, 16  ;;  %v17793_v36 = vld [vmem:[#allocation3 + $0x18] sm:$0x8]  ;;  %19733 = vst [vmem:[#allocation14_spill] sm:$0xff] %v17804_v32  ;;  %v19734_v28 = vrot.slane %v17728_v6, 5 }
 0x5dc   : > { %19729 = vst [vmem:[#allocation10_spill] sm:$0xff] %v17756_v2  ;;  %13317 = vmatprep.subr.bf16.mxu1 %v17756_v2  ;;  %v9210_v41 = vrot.slane %v9208_v1, 4  ;;  %v9213_v39 = vrot.slane %v9211_v53, 5  ;;  %v8979_v6 = vld [vmem:[#allocation3 + $0x138] sm:$0xf] }
 0x5dd   : > { %v9384_v9 = vrot.slane %v17783_v10, 5  ;;  %v8294_v47 = vrot.slane %v8292_v13, 4  ;;  %v8972_v13 = vld [vmem:[#allocation3 + $0x10c] sm:$0xf] }
 0x5de   : > { %8363 = vrot.lane.b32.xlu0 %v8290_v56, %s14411_s30  ;;  %v9376_v56 = vrot.slane %v17722_v4, 5  ;;  %v17771_v4 = vld [vmem:[#allocation3 + $0x2c] sm:$0x8] }
 0x5df   : > { %9285 = vrot.lane.b32.xlu1 %v9206_v46, %s14411_s30  ;;  %v8295_v46 = vshll.u32 %v12460_v15, 16 }
 0x5e2   : > { %9283 = vrot.lane.b32.xlu0 %v9198_v33, %s14411_s30  ;;  %v9375_v33 = vrot.slane %v12523_v52, 5  ;;  %v17800_v52 = vrot.slane %v8686_v57, 4  ;;  %v9235_v57 = vshll.u32 %v17783_v10, 16 }
 0x5e3   : > { %8361 = vrot.lane.b32.xlu1 %v8282_v22, %s14411_s30  ;;  %v8966_v22 = vld [vmem:[#allocation3 + $0xe4] sm:$0xf] }
 0x5e4   : > { %v17785_v5 = vcombine.low %v8966_v22, %v8967_v40  ;;  %v9377_v0 = vsel %vm4298_vm13, %v9375_v33, %v9376_v56  ;;  %v9221_v22 = vrot.slane %v9219_v7, 5  ;;  %v17798_v40 = vrot.slane %v8683_v8, 3  ;;  %19731 = vst [vmem:[#allocation12_spill] sm:$0xff] %v17800_v52  ;;  %v14059_v8 = vld [vmem:[#allocation3 + $0x128] ss:$0 sps:$4 sm:$0x11]  }
 0x5e5   : > { %v8297_v56 = vrot.slane %v8295_v46, 5  ;;  %v9214_v7 = vor.u32 %v9213_v39, %v9210_v41  ;;  %v9391_v46 = vrot.slane %v14059_v8, 5  ;;  %v19736_v41 = vrot.slane %v17751_v44, 5  ;;  %v8981_v39 = vld [vmem:[#allocation3 + $0x148] sm:$0xf] }
 0x5e6   : > { %9435 = vrot.lane.b32.xlu0 %v9378_v26, %s14412_s11  ;;  %v8454_v26 = vrot.slane %v12460_v15, 5  ;;  %v8976_v15 = vld [vmem:[#allocation3 + $0x124] sm:$0xf]  ;;  %19730 = vst [vmem:[#allocation11_spill] sm:$0xff] %v17798_v40  ;;  %v9224_v1 = vshrl.u32 %v17785_v5, 16  ;;  %v9227_v53 = vshll.u32 %v17785_v5, 16 }
 0x5e7   : > { %9437 = vrot.lane.b32.xlu1 %v9380_v58, %s14412_s11  ;;  %v17802_v58 = vrot.slane %v8690_v42, 3  ;;  %v17809_v37 = vcombine.low %v8975_v49, %v8976_v15  ;;  %v9222_v49 = vor.u32 %v9221_v22, %v9218_v31  ;;  %v9232_v15 = vshrl.u32 %v17783_v10, 16  ;;  %v8978_v22 = vld [vmem:[#allocation3 + $0x134] sm:$0xf]  ;;  %v8045_v40 = vld [vmem:[#allocation3 + $0xe4] sm:$0xf] }
 0x5e8   : > { %v8456_v42 = vsel %vm4298_vm13, %v8454_v26, %v19734_v28  ;;  %v8298_v28 = vor.u32 %v8297_v56, %v8294_v47  ;;  %v17834_v10 = vrot.slane %v9224_v1, 4  ;;  %v19737_v47 = vrot.slane %v17785_v5, 5 }
 0x5e9   : > { %19732 = vst [vmem:[#allocation13_spill] sm:$0xff] %v17802_v58  ;;  %v17849_v1 = vcombine.low %v8978_v22, %v8979_v6  ;;  %v17854_v8 = vrot.slane %v9232_v15, 4  ;;  %v9248_v6 = vshrl.u32 %v17809_v37, 16  ;;  %v9388_v22 = vrot.slane %v17825_v59, 5 }
 0x5ea   : > { %9431 = vrot.lane.b32.xlu0 %v9375_v33, %s14412_s11  ;;  %v8973_v33 = vld [vmem:[#allocation3 + $0x110] sm:$0xf] }
 0x5eb   : > { %9433 = vrot.lane.b32.xlu1 %v9377_v0, %s14412_s11  ;;  %v17823_v48 = vcombine.low %v8972_v13, %v8973_v33  ;;  %v8042_v0 = vld [vmem:[#allocation3 + $0xd0] sm:$0xf]  ;;  %v17836_v33 = vrot.slane %v9227_v53, 5  ;;  %v19505_v13 = vrot.slane %v17809_v37, 5  ;;  %v17894_v32 = vrot.slane %v9248_v6, 4 }
 0x5ec   : > { %v19741_v6 = vrot.slane %v17785_v5, 5  ;;  %v14072_v5 = vld [vmem:[#allocation3 + $0xec] ss:$0 sps:$4 sm:$0x11]  }
 0x5ed   : > { %v9240_v44 = vshrl.u32 %v17823_v48, 16  ;;  %v17872_v15 = vsel %vm4298_vm13, %v19505_v13, %v9391_v46  ;;  %19738 = vst [vmem:[#allocation15_spill] sm:$0xff] %v17894_v32  ;;  %v8049_v46 = vld [vmem:[#allocation3 + $0xfc] sm:$0xf]  ;;  %v19756_v16 = vrot.slane %v17823_v48, 5 }
 0x5ee   : > { %8511 = vrot.lane.b32.xlu0 %v8454_v26, %s14412_s11  ;;  %v8043_v26 = vld [vmem:[#allocation3 + $0xd4] sm:$0xf] }
 0x5ef   : > { %8513 = vrot.lane.b32.xlu1 %v8456_v42, %s14412_s11  ;;  %v19735_v42 = vrot.slane %v17742_v24, 5  ;;  %v17845_v24 = vsel %vm4298_vm13, %v19737_v47, %v19736_v41  ;;  %v17851_v53 = vcombine.low %v8042_v0, %v8043_v26  ;;  %v17862_v47 = vcombine.low %v8981_v39, %v8982_v18  ;;  %v14066_v26 = vld [vmem:[#allocation3 + $0x150] ss:$0 sps:$4 sm:$0x11]  }
 0x5f0   : > { %v9251_v0 = vshll.u32 %v17809_v37, 16  ;;  %v14067_v41 = vld [vmem:[#allocation3 + $0x13c] ss:$0 sps:$4 sm:$0x11]   ;;  %v9256_v18 = vshrl.u32 %v17849_v1, 16  ;;  %v9259_v39 = vshll.u32 %v17849_v1, 16 }
 0x5f1   : > { %v9386_v31 = vsel %vm4298_vm13, %v9384_v9, %v19735_v42  ;;  %v17856_v42 = vrot.slane %v9235_v57, 5  ;;  %v8300_v56 = vshrl.u32 %v17851_v53, 16  ;;  %v17883_v13 = vrot.slane %v9240_v44, 4  ;;  %v17887_v57 = vld [vmem:[#allocation3 + $0x20] sm:$0xf] }
 0x5f2   : > { %9287 = vrot.lane.b32.xlu0 %v9214_v7, %s14411_s30  ;;  %v9243_v7 = vshll.u32 %v17823_v48, 16  ;;  %v9397_v55 = vrot.slane %v14066_v26, 5  ;;  %v9394_v17 = vrot.slane %v14067_v41, 5  ;;  %v9264_v38 = vshrl.u32 %v17862_v47, 16  ;;  %v8048_v41 = vld [vmem:[#allocation3 + $0xf8] sm:$0xf] }
 0x5f3   : > { %9289 = vrot.lane.b32.xlu1 %v9222_v49, %s14411_s30  ;;  %v9230_v49 = vor.u32 %v17836_v33, %v17834_v10  ;;  %v8303_v10 = vshll.u32 %v17851_v53, 16  ;;  %v8046_v33 = vld [vmem:[#allocation3 + $0xe8] sm:$0xf]  ;;  %v17911_v26 = vrot.slane %v9259_v39, 5  ;;  %v17913_v58 = vrot.slane %v8300_v56, 4 }
 0x5f4   : > { %v17885_v59 = vrot.slane %v9243_v7, 5  ;;  %v17902_v12 = vcombine.low %v8045_v40, %v8046_v33  ;;  %v19745_v40 = vrot.slane %v17823_v48, 5  ;;  %v17923_v7 = vld [vmem:[#allocation3 + $0x20] sm:$0xf]  ;;  %v17928_v39 = vld [vmem:[#allocation3 + $0x54] sm:$0x8]  ;;  %v17930_v56 = vcombine.low %v8048_v41, %v8049_v46 }
 0x5f5   : > { %19743 = vst [vmem:[#allocation19_spill] sm:$0xff] %v17913_v58  ;;  %v17915_v51 = vrot.slane %v8303_v10, 5  ;;  %19746 = vst [vmem:[#allocation21_spill] sm:$0xff] %v17923_v7  ;;  %v8051_v10 = vld [vmem:[#allocation3 + $0x10c] sm:$0xf]  ;;  %v19750_v41 = vrot.slane %v17849_v1, 5 }
 0x5f6   : > { %9443 = vrot.lane.b32.xlu0 %v9384_v9, %s14412_s11  ;;  %v17904_v9 = vld [vmem:[#allocation3 + $0x54] sm:$0x8]  ;;  %v17921_v33 = vsel %vm4298_vm13, %v19745_v40, %v9388_v22  ;;  %19747 = vst [vmem:[#allocation22_spill] sm:$0xff] %v17928_v39  ;;  %v19748_v40 = vrot.slane %v17862_v47, 5  ;;  %v17943_v2 = vcombine.low %v8051_v10, %v8052_v62  ;;  %v8308_v22 = vshrl.u32 %v17902_v12, 16 }
 0x5f7   : > { %8365 = vrot.lane.b32.xlu1 %v8298_v28, %s14411_s30  ;;  %v17896_v28 = vrot.slane %v9251_v0, 5  ;;  %19740 = vst [vmem:[#allocation17_spill] sm:$0xff] %v17904_v9  ;;  %v17909_v0 = vrot.slane %v9256_v18, 4  ;;  %19744 = vst [vmem:[#allocation20_spill] sm:$0xff] %v17915_v51  ;;  %v9267_v18 = vshll.u32 %v17862_v47, 16  ;;  %v17950_v7 = vsel %vm4298_vm13, %v19750_v41, %v9394_v17 }
 0x5f8   : > { %v17891_v52 = vpop.permute.xlu0 %9403  ;;  %v17941_v25 = vsel %vm4298_vm13, %v19748_v40, %v9397_v55  ;;  %19749 = vst [vmem:[#allocation23_spill] sm:$0xff] %v17943_v2  ;;  %19751 = vst [vmem:[#allocation24_spill] sm:$0xff] %v17950_v7  ;;  %v8311_v32 = vshll.u32 %v17902_v12, 16  ;;  %v14076_v40 = vld [vmem:[#allocation3 + $0x114] ss:$0 sps:$4 sm:$0x11]  }
 0x5f9   : > { %19739 = vst [vmem:[#allocation16_spill] sm:$0xff] %v17896_v28  ;;  %v17898_v44 = vpop.permute.xlu1 %9405  ;;  %19742 = vst [vmem:[#allocation18_spill] sm:$0xff] %v17909_v0  ;;  %v14074_v28 = vld [vmem:[#allocation3 + $0x100] ss:$0 sps:$4 sm:$0x11]   ;;  %v17966_v41 = vrot.slane %v9267_v18, 5 }
 0x5fa   : > { %9439 = vrot.lane.b32.xlu0 %v19741_v6, %s14412_s11  ;;  %v8319_v7 = vshll.u32 %v17930_v56, 16  ;;  %v8324_v10 = vshrl.u32 %v17943_v2, 16  ;;  %v17982_v60 = vrot.slane %v8308_v22, 4  ;;  %v17984_v9 = vrot.slane %v8311_v32, 5  ;;  %v17990_v55 = vld [vmem:[#allocation3 + $0x40] sm:$0x8] }
 0x5fb   : > { %9445 = vrot.lane.b32.xlu1 %v9386_v31, %s14412_s11  ;;  %v17952_v31 = vrot.slane %v9264_v38, 4  ;;  %v8054_v38 = vld [vmem:[#allocation3 + $0x120] sm:$0xf]  ;;  %v19752_v58 = vrot.slane %v17809_v37, 5  ;;  %v8464_v39 = vrot.slane %v14074_v28, 5  ;;  %v8467_v20 = vrot.slane %v14076_v40, 5 }
 0x5fc   : > { %v17932_v6 = vpop.permute.xlu0 %8483  ;;  %v17970_v62 = vcombine.low %v8054_v38, %v8055_v35  ;;  %v8461_v38 = vrot.slane %v14072_v5, 5  ;;  %v19753_v32 = vor.u32 %v17856_v42, %v17854_v8  ;;  %v17998_v22 = vld [vmem:[#allocation3 + $0x40] sm:$0x8]  ;;  %v18002_v35 = vrot.slane %v8319_v7, 5  ;;  %v18033_v40 = vld [vmem:[#allocation3 + $0x7c] sm:$0x8] }
 0x5fd   : > { %v17945_v46 = vpop.permute.xlu1 %8485  ;;  %v18012_v8 = vrot.slane %v8324_v10, 4  ;;  %v19755_v45 = vrot.slane %v17851_v53, 5  ;;  %v19758_v10 = vrot.slane %v17930_v56, 5 }
 0x5fe   : > { %9291 = vrot.lane.b32.xlu0 %v9230_v49, %s14411_s30  ;;  %v8316_v49 = vshrl.u32 %v17930_v56, 16  ;;  %v8335_v37 = vshll.u32 %v17970_v62, 16 }
 0x5ff   : > { %9441 = vrot.lane.b32.xlu1 %v17845_v24, %s14412_s11  ;;  %v8327_v24 = vshll.u32 %v17943_v2, 16 }
 0x600   : > { %v17972_v0 = vpop.permute.xlu0 %9399  ;;  %v18000_v5 = vrot.slane %v8316_v49, 4  ;;  %v18016_v49 = vld [vmem:[#allocation3 + $0x128] ss:$0 sps:$4 sm:$0x11]  }
 0x601   : > { %v17980_v18 = vpop.permute.xlu1 %9401  ;;  %v18014_v42 = vrot.slane %v8327_v24, 5  ;;  %v18050_v24 = vsel %vm4298_vm13, %v19758_v10, %v8464_v39 }
 0x602   : > { %9451 = vrot.lane.b32.xlu0 %v19752_v58, %s14412_s11  ;;  %v8332_v58 = vshrl.u32 %v17970_v62, 16  ;;  %19759 = vst [vmem:[#allocation25_spill] sm:$0xff] %v18050_v24 }
 0x603   : > { %9293 = vrot.lane.b32.xlu1 %v19753_v32, %s14411_s30  ;;  %v19754_v32 = vrot.slane %v17744_v63, 5  ;;  %v19760_v63 = vrot.slane %v17943_v2, 5  ;;  %v10355_v2 = vld [vmem:[#allocation3 + $0x48] sm:$0xf] }
 0x604   : > { %v18006_v17 = vpop.permute.xlu0 %8479  ;;  %v18056_v48 = vrot.slane %v8332_v58, 4  ;;  %v8057_v58 = vld [vmem:[#allocation3 + $0x134] sm:$0xf] }
 0x605   : > { %v18018_v7 = vpop.permute.xlu1 %8481  ;;  %v18025_v51 = vsel %vm4298_vm13, %v19755_v45, %v19754_v32  ;;  %v19757_v32 = vrot.slane %v17902_v12, 5  ;;  %v18058_v45 = vrot.slane %v8335_v37, 5  ;;  %v19762_v37 = vcombine.low %v17769_v43, %v17458_v19 }
 0x606   : > { %9447 = vrot.lane.b32.xlu0 %v19756_v16, %s14412_s11  ;;  %v18081_v10 = vcombine.low %v8057_v58, %v8058_v27  ;;  %v19764_v43 = vcombine.low %v17771_v4, %v17456_v14  ;;  %v19766_v27 = vor.u32 %v17885_v59, %v17883_v13  ;;  %v10351_v58 = vld [vmem:[#allocation3 + $0x30] sm:$0xf]  ;;  %v10354_v14 = vld [vmem:[#allocation3 + $0x44] sm:$0xf] }
 0x607   : > { %v18045_v28 = vsel %vm4298_vm13, %v19757_v32, %v8461_v38  ;;  %9453 = vrot.lane.b32.xlu1 %v17872_v15, %s14412_s11  ;;  %v18063_v38 = vsel %vm4298_vm13, %v19760_v63, %v8467_v20  ;;  %v19763_v20 = vcombine.low %v17463_v3, %v17463_v3  ;;  %v10352_v15 = vld [vmem:[#allocation3 + $0x34] sm:$0xf]  ;;  %v18107_v13 = vcombine.low %v10354_v14, %v10355_v2  ;;  %v19774_v14 = vld [vmem:[#allocation16_spill] sm:$0xff] }
 0x608   : > { %19761 = vst [vmem:[#allocation26_spill] sm:$0xff] %v18063_v38  ;;  %v8352_v32 = vpop.permute.xlu0 %8351  ;;  %v19769_v2 = vcombine.low %v17791_v11, %v17483_v54  ;;  %v19775_v54 = vld [vmem:[#allocation15_spill] sm:$0xff] }
 0x609   : > { %v8551_v24 = vsel %vm4411_vm1, %v19762_v37, %v8352_v32  ;;  %v8553_v63 = vsel %vm4411_vm1, %v19763_v20, %v8352_v32  ;;  %v9274_v38 = vpop.permute.xlu1 %9273  ;;  %v19765_v32 = vcombine.low %v17461_v30, %v17461_v30  ;;  %19767 = vst [vmem:[#allocation27_spill] sm:$0xff] %v18107_v13  ;;  %v19776_v11 = vor.u32 %v19774_v14, %v19775_v54 }
 0x60a   : > { %v8628_v16 = vsel %vm4492_vm2, %v8551_v24, %v17932_v6  ;;  %v8630_v19 = vsel %vm4492_vm2, %v8553_v63, %v17945_v46  ;;  %v9470_v3 = vsel %vm4411_vm1, %v19764_v43, %v9274_v38  ;;  %9295 = vrot.lane.b32.xlu0 %v19766_v27, %s14411_s30  ;;  %v18105_v63 = vcombine.low %v10351_v58, %v10352_v15 }
 0x60b   : > { %v9472_v37 = vsel %vm4411_vm1, %v19765_v32, %v9274_v38  ;;  %v8713_v6 = vshrl.u32 %v8628_v16, 16  ;;  %v8716_v24 = vshll.u32 %v8628_v16, 16  ;;  %v8720_v20 = vshrl.u32 %v8630_v19, 16  ;;  %9449 = vrot.lane.b32.xlu1 %v17921_v33, %s14412_s11 }
 0x60c   : > { %v8723_v46 = vshll.u32 %v8630_v19, 16  ;;  %v9548_v4 = vsel %vm4492_vm2, %v9470_v3, %v17891_v52  ;;  %v9550_v30 = vsel %vm4492_vm2, %v9472_v37, %v17898_v44  ;;  %v9272_v38 = vpop.permute.xlu0 %9271  ;;  %v19768_v44 = vrot.slane %v17862_v47, 5 }
 0x60d   : > { %v18109_v59 = vrot.slane %v8713_v6, 3  ;;  %v18111_v16 = vrot.slane %v8716_v24, 4  ;;  %v18113_v19 = vrot.slane %v8720_v20, 3  ;;  %v8350_v33 = vpop.permute.xlu1 %8349  ;;  %v9622_v32 = vshrl.u32 %v9548_v4, 16  ;;  %v19772_v20 = vld [vmem:[#allocation21_spill] sm:$0xff] }
 0x60e   : > { %v18115_v43 = vrot.slane %v8723_v46, 4  ;;  %v9625_v27 = vshll.u32 %v9548_v4, 16  ;;  %v9629_v52 = vshrl.u32 %v9550_v30, 16  ;;  %v9632_v3 = vshll.u32 %v9550_v30, 16  ;;  %9459 = vrot.lane.b32.xlu0 %v19768_v44, %s14412_s11 }
 0x60f   : > { %v9465_v15 = vsel %vm4411_vm1, %v19769_v2, %v9272_v38  ;;  %v19770_v37 = vcombine.low %v17887_v57, %v17887_v57  ;;  %v19771_v6 = vcombine.low %v17793_v36, %v17500_v21  ;;  %v19773_v46 = vcombine.low %v19772_v20, %v19772_v20  ;;  %9297 = vrot.lane.b32.xlu1 %v19776_v11, %s14411_s30 }
 0x610   : > { %v9624_v4 = vrot.slane %v9622_v32, 3  ;;  %v9627_v30 = vrot.slane %v9625_v27, 4  ;;  %v9631_v57 = vrot.slane %v9629_v52, 3  ;;  %v9634_v44 = vrot.slane %v9632_v3, 4 }
 0x611   : > { %v9467_v58 = vsel %vm4411_vm1, %v19770_v37, %v9272_v38  ;;  %v8546_v24 = vsel %vm4411_vm1, %v19771_v6, %v8350_v33  ;;  %v8548_v47 = vsel %vm4411_vm1, %v19773_v46, %v8350_v33  ;;  %v18140_v38 = vpop.permute.xlu0 %9411  ;;  %v9544_v21 = vsel %vm4492_vm2, %v9465_v15, %v17972_v0  ;;  %v18150_v37 = vpop.permute.xlu1 %9413 }
 0x612   : > { %v9546_v36 = vsel %vm4492_vm2, %v9467_v58, %v17980_v18  ;;  %v8624_v33 = vsel %vm4492_vm2, %v8546_v24, %v18006_v17  ;;  %v8626_v2 = vsel %vm4492_vm2, %v8548_v47, %v18018_v7  ;;  %v9628_v32 = vor.u32 %v9627_v30, %v9624_v4  ;;  %v18159_v47 = vld [vmem:[#allocation3 + $0x7c] sm:$0x8] }
 0x613   : > { %v9635_v27 = vor.u32 %v9634_v44, %v9631_v57  ;;  %v9607_v52 = vshrl.u32 %v9544_v21, 16  ;;  %v9610_v3 = vshll.u32 %v9544_v21, 16  ;;  %v19777_v6 = vrot.slane %v17849_v1, 5  ;;  %9461 = vrot.lane.b32.xlu1 %v17941_v25, %s14412_s11  ;;  %v10358_v30 = vld [vmem:[#allocation3 + $0x5c] sm:$0xf] }
 0x614   : > { %v9614_v0 = vshrl.u32 %v9546_v36, 16  ;;  %v9617_v15 = vshll.u32 %v9546_v36, 16  ;;  %v8698_v20 = vshrl.u32 %v8624_v33, 16  ;;  %v8701_v18 = vshll.u32 %v8624_v33, 16  ;;  %v19778_v25 = vld [vmem:[#allocation18_spill] sm:$0xff] }
 0x615   : > { %9455 = vrot.lane.b32.xlu0 %v19777_v6, %s14412_s11  ;;  %v9609_v17 = vrot.slane %v9607_v52, 3  ;;  %v9612_v58 = vrot.slane %v9610_v3, 4  ;;  %v8705_v7 = vshrl.u32 %v8626_v2, 16  ;;  %v8708_v24 = vshll.u32 %v8626_v2, 16  ;;  %v18157_v46 = vpop.permute.xlu0 %8491  ;;  %v18161_v4 = vpop.permute.xlu1 %8493  ;;  %v19780_v6 = vld [vmem:[#allocation24_spill] sm:$0xff] }
 0x616   : > { %v9616_v14 = vrot.slane %v9614_v0, 3  ;;  %v9619_v54 = vrot.slane %v9617_v15, 4  ;;  %v8700_v11 = vrot.slane %v8698_v20, 3  ;;  %v8703_v1 = vrot.slane %v8701_v18, 4  ;;  %v10357_v0 = vld [vmem:[#allocation3 + $0x58] sm:$0xf] }
 0x617   : > { %v8707_v57 = vrot.slane %v8705_v7, 3  ;;  %v8710_v44 = vrot.slane %v8708_v24, 4  ;;  %v9613_v21 = vor.u32 %v9612_v58, %v9609_v17  ;;  %v19779_v36 = vor.u32 %v17911_v26, %v19778_v25  ;;  %v14083_v2 = vld [vmem:[#allocation3 + $0x13c] ss:$0 sps:$4 sm:$0x11]   ;;  %9457 = vrot.lane.b32.xlu1 %v19780_v6, %s14412_s11 }
 0x618   : > { %v9636_v33 = vsel %vm4557_vm4, %v9628_v32, %v9635_v27  ;;  %v8704_v52 = vor.u32 %v8703_v1, %v8700_v11  ;;  %v9620_v3 = vor.u32 %v9619_v54, %v9616_v14  ;;  %v8719_v15 = vor.u32 %v18111_v16, %v18109_v59  ;;  %v19781_v59 = vld [vmem:[#allocation40_spill] sm:$0xff]  ;;  %v19784_v11 = vld [vmem:[#allocation19_spill] sm:$0xff] }
 0x619   : > { %9299 = vrot.lane.b32.xlu0 %v19779_v36, %s14411_s30  ;;  %v8726_v20 = vor.u32 %v18115_v43, %v18113_v19  ;;  %v8711_v18 = vor.u32 %v8710_v44, %v8707_v57  ;;  %v18174_v17 = vpop.permute.xlu0 %9407  ;;  %v10559_v26 = vshrl.u32 %v18105_v63, 16  ;;  %v10562_v32 = vshll.u32 %v18105_v63, 16  ;;  %v18181_v7 = vpop.permute.xlu1 %9409  ;;  %v18187_v19 = vld [vmem:[#allocation3 + $0x68] sm:$0x8]  ;;  %v14115_v43 = vld [vmem:[%s19454_s8 + $0x8] sm:$0xff]   ;;  %v19793_v16 = vld [vmem:[#allocation43_spill] sm:$0xff] }
 0x61a   : > { %v18178_v27 = vcombine.low %v10357_v0, %v10358_v30  ;;  %v9621_v58 = vsel %vm4557_vm4, %v9613_v21, %v9620_v3  ;;  %v19783_v54 = vld [vmem:[#allocation20_spill] sm:$0xff]  ;;  %v19786_v30 = vrot.slane %v18016_v49, 5  ;;  %v19787_v57 = vrot.slane %v17970_v62, 5  ;;  %v10361_v3 = vld [vmem:[#allocation3 + $0x70] sm:$0xf]  ;;  %v19810_v21 = vld [vmem:[#allocation38_spill] sm:$0xff] }
 0x61b   : > { %v18193_v14 = vsel %vm4557_vm4, %v8719_v15, %v8726_v20  ;;  %13285 = vmatprep.mubr.msk.bf16.mxu1 %vm5771_vm3, %v9621_v58  ;;  %v19785_v1 = vor.u32 %v19783_v54, %v19784_v11  ;;  %v8473_v25 = vrot.slane %v14083_v2, 5  ;;  %v18208_v36 = vld [vmem:[#allocation3 + $0x68] sm:$0x8]  ;;  %v18211_v6 = vsel %vm4557_vm4, %v8704_v52, %v8711_v18  ;;  %v18222_v58 = vld [vmem:[#allocation3 + $0xa4] sm:$0x8]  ;;  %v19791_v11 = vld [vmem:[#allocation10_spill] sm:$0xff] }
 0x61c   : > { %19782 = vst [vmem:[#allocation28_spill] sm:$0xff] %v18193_v14  ;;  %v18205_v44 = vsel %vm4298_vm13, %v19787_v57, %v19786_v30  ;;  %19788 = vst [vmem:[#allocation29_spill] sm:$0xff] %v18211_v6  ;;  %13286 = vmatmul.mubr.msk.bf16.vlgmr.msra.gmra.mrb[32].mxu1 %vm5771_vm3, %v9636_v33  ;;  %v19789_v49 = vor.u32 %v17966_v41, %v17952_v31  ;;  %v10567_v0 = vshrl.u32 %v18107_v13, 16  ;;  %v10570_v15 = vshll.u32 %v18107_v13, 16  ;;  %v10360_v41 = vld [vmem:[#allocation3 + $0x6c] sm:$0xf] }
 0x61d   : > { %8367 = vrot.lane.b32.xlu0 %v19785_v1, %s14411_s30  ;;  %19790 = vst [vmem:[#allocation30_spill] sm:$0xff] %v18222_v58  ;;  %v18224_v54 = vpop.permute.xlu0 %8487  ;;  %v18226_v52 = vrot.slane %v10559_v26, 4  ;;  %v18228_v33 = vrot.slane %v10562_v32, 5  ;;  %v10575_v18 = vshrl.u32 %v18178_v27, 16  ;;  %v10578_v31 = vshll.u32 %v18178_v27, 16  ;;  %13318 = vmatpush3.bf16.msra.mxu1 %v19791_v11  ;;  %v18233_v1 = vpop.permute.xlu1 %8489  ;;  %v14124_v11 = vld [vmem:[%s19454_s8 + $0x10] sm:$0xff]  }
 0x61e   : > { %9301 = vrot.lane.b32.xlu1 %v19789_v49, %s14411_s30  ;;  %v18235_v30 = vld [vmem:[#allocation3 + $0x84] sm:$0xf]  ;;  %v19792_v49 = vld [vmem:[#allocation45_spill] sm:$0xff]  ;;  %v18243_v39 = vcombine.low %v10360_v41, %v10361_v3  ;;  %13319 = vmatprep.subr.bf16.mxu1 %v14115_v43  ;;  %v19794_v24 = vrot.slane %v17851_v53, 5  ;;  %v19796_v20 = vld [vmem:[#allocation44_spill] sm:$0xff]  ;;  %v19799_v14 = vor.u32 %v17984_v9, %v17982_v60  ;;  %v19800_v53 = vrot.slane %v18081_v10, 5 }
 0x61f   : > { %v18268_v57 = vrot.slane %v10567_v0, 4  ;;  %v18270_v6 = vrot.slane %v10570_v15, 5  ;;  %v19801_v26 = vld [vmem:[#allocation48_spill] sm:$0xff]  ;;  %v19803_v32 = vrot.slane %v18105_v63, 5  ;;  %v18288_v15 = vrot.slane %v10575_v18, 4  ;;  %v19812_v58 = vld [vmem:[#allocation39_spill] sm:$0xff] }
 0x620   : > { %v19802_v2 = vrot.slane %v19801_v26, 5  ;;  %v19805_v9 = vld [vmem:[#allocation4_spill] sm:$0xff]  ;;  %v19809_v26 = vld [vmem:[#allocation17_spill] sm:$0xff]  ;;  %v19813_v60 = vcombine.low %v19812_v58, %v19812_v58 }
 0x621   : > { %8515 = vrot.lane.b32.xlu0 %v19794_v24, %s14412_s11  ;;  %v18266_v24 = vsel %vm4298_vm13, %v19800_v53, %v8473_v25  ;;  %v8356_v3 = vpop.permute.xlu0 %8355  ;;  %v19807_v25 = vrot.slane %v18107_v13, 5  ;;  %v18290_v53 = vrot.slane %v10578_v31, 5  ;;  %13320 = vmatpush3.bf16.msra.mxu1 %v14115_v43  ;;  %v14132_v43 = vld [vmem:[%s19454_s8 + $0x18] sm:$0xff]   ;;  %v19814_v31 = vld [vmem:[#allocation22_spill] sm:$0xff]  ;;  %v19815_v58 = vld [vmem:[#allocation37_spill] sm:$0xff] }
 0x622   : > { %8369 = vrot.lane.b32.xlu1 %v19799_v14, %s14411_s30  ;;  %v18277_v41 = vsel %vm4298_vm13, %v19803_v32, %v19802_v2  ;;  %v19806_v14 = vrot.slane %v19805_v9, 5  ;;  %v19811_v2 = vcombine.low %v19809_v26, %v19810_v21  ;;  %v8563_v9 = vsel %vm4411_vm1, %v19813_v60, %v8356_v3  ;;  %13321 = vmatprep.subr.bf16.mxu1 %v14124_v11  ;;  %v19817_v60 = vld [vmem:[#allocation36_spill] sm:$0xff] }
 0x623   : > { %19804 = vst [vmem:[#allocation31_spill] sm:$0xff] %v18277_v41  ;;  %v9278_v41 = vpop.permute.xlu1 %9277  ;;  %v8638_v18 = vsel %vm4492_vm2, %v8563_v9, %v18161_v4  ;;  %v19818_v26 = vcombine.low %v19817_v60, %v19817_v60 }
 0x624   : > { %v18286_v0 = vsel %vm4298_vm13, %v19807_v25, %v19806_v14  ;;  %v8561_v32 = vsel %vm4411_vm1, %v19811_v2, %v8356_v3  ;;  %v19816_v25 = vcombine.low %v19814_v31, %v19815_v58  ;;  %v19819_v14 = vrot.slane %v17902_v12, 5 }
 0x625   : > { %19808 = vst [vmem:[#allocation32_spill] sm:$0xff] %v18286_v0  ;;  %v8636_v21 = vsel %vm4492_vm2, %v8561_v32, %v18157_v46  ;;  %v9482_v2 = vsel %vm4411_vm1, %v19818_v26, %v9278_v41  ;;  %v8750_v46 = vshrl.u32 %v8638_v18, 16  ;;  %v8753_v32 = vshll.u32 %v8638_v18, 16  ;;  %v9276_v31 = vpop.permute.xlu0 %9275  ;;  %13322 = vmatpush3.bf16.msra.mxu1 %v14124_v11 }
 0x626   : > { %v9480_v3 = vsel %vm4411_vm1, %v19816_v25, %v9278_v41  ;;  %8519 = vrot.lane.b32.xlu0 %v19819_v14, %s14412_s11  ;;  %v8743_v13 = vshrl.u32 %v8636_v21, 16  ;;  %v8746_v0 = vshll.u32 %v8636_v21, 16  ;;  %8517 = vrot.lane.b32.xlu1 %v18025_v51, %s14412_s11  ;;  %v9558_v9 = vsel %vm4492_vm2, %v9482_v2, %v18150_v37 }
 0x627   : > { %v9556_v4 = vsel %vm4492_vm2, %v9480_v3, %v18140_v38  ;;  %v18333_v18 = vrot.slane %v8750_v46, 3  ;;  %v18335_v51 = vrot.slane %v8753_v32, 4  ;;  %v8354_v58 = vpop.permute.xlu1 %8353  ;;  %13323 = vmatprep.subr.bf16.mxu1 %v14132_v43  ;;  %v14141_v38 = vld [vmem:[%s19454_s8 + $0x20] sm:$0xff]   ;;  %v9659_v3 = vshrl.u32 %v9558_v9, 16 }
 0x628   : > { %v18329_v14 = vrot.slane %v8743_v13, 3  ;;  %v18331_v21 = vrot.slane %v8746_v0, 4  ;;  %v9652_v37 = vshrl.u32 %v9556_v4, 16  ;;  %v9655_v25 = vshll.u32 %v9556_v4, 16  ;;  %v19824_v4 = vld [vmem:[#allocation41_spill] sm:$0xff] }
 0x629   : > { %v9662_v60 = vshll.u32 %v9558_v9, 16  ;;  %v19820_v13 = vor.u32 %v18002_v35, %v18000_v5  ;;  %v19821_v11 = vcombine.low %v17990_v55, %v17587_v29  ;;  %v19822_v26 = vcombine.low %v17580_v61, %v17580_v61  ;;  %v18362_v61 = vpop.permute.xlu0 %9419  ;;  %13324 = vmatpush3.bf16.msra.mxu1 %v14132_v43 }
 0x62a   : > { %v19823_v46 = vcombine.low %v17998_v22, %v17604_v34  ;;  %v19825_v9 = vcombine.low %v19824_v4, %v19824_v4  ;;  %8521 = vrot.lane.b32.xlu1 %v18045_v28, %s14412_s11  ;;  %v9654_v29 = vrot.slane %v9652_v37, 3  ;;  %v9657_v55 = vrot.slane %v9655_v25, 4  ;;  %13325 = vmatprep.subr.bf16.mxu1 %v14141_v38  ;;  %v14152_v37 = vld [vmem:[%s19454_s8 + $0x28] sm:$0xff]  }
 0x62b   : > { %8371 = vrot.lane.b32.xlu0 %v19820_v13, %s14411_s30  ;;  %v9475_v0 = vsel %vm4411_vm1, %v19821_v11, %v9276_v31  ;;  %v9477_v2 = vsel %vm4411_vm1, %v19822_v26, %v9276_v31  ;;  %v9661_v5 = vrot.slane %v9659_v3, 3  ;;  %v9664_v13 = vrot.slane %v9662_v60, 4  ;;  %v18372_v28 = vpop.permute.xlu1 %9421  ;;  %v10364_v26 = vld [vmem:[#allocation3 + $0x84] sm:$0xf] }
 0x62c   : > { %v8556_v32 = vsel %vm4411_vm1, %v19823_v46, %v8354_v58  ;;  %v8558_v35 = vsel %vm4411_vm1, %v19825_v9, %v8354_v58  ;;  %v9552_v34 = vsel %vm4492_vm2, %v9475_v0, %v18174_v17  ;;  %v9554_v22 = vsel %vm4492_vm2, %v9477_v2, %v18181_v7  ;;  %v18384_v2 = vld [vmem:[#allocation3 + $0xc4] ss:$0 sps:$4 sm:$0x11]  }
 0x62d   : > { %v8632_v31 = vsel %vm4492_vm2, %v8556_v32, %v18224_v54  ;;  %v8634_v58 = vsel %vm4492_vm2, %v8558_v35, %v18233_v1  ;;  %v9637_v43 = vshrl.u32 %v9552_v34, 16  ;;  %v9640_v25 = vshll.u32 %v9552_v34, 16  ;;  %v18386_v35 = vpop.permute.xlu0 %8499  ;;  %13326 = vmatpush3.bf16.msra.mxu1 %v14141_v38  ;;  %v18396_v38 = vld [vmem:[#allocation3 + $0xa4] sm:$0x8] }
 0x62e   : > { %v9644_v3 = vshrl.u32 %v9554_v22, 16  ;;  %v9647_v17 = vshll.u32 %v9554_v22, 16  ;;  %v19826_v7 = vrot.slane %v17930_v56, 5  ;;  %v8728_v60 = vshrl.u32 %v8632_v31, 16  ;;  %v10367_v56 = vld [vmem:[#allocation3 + $0x98] sm:$0xf]  ;;  %13327 = vmatprep.subr.bf16.mxu1 %v14152_v37 }
 0x62f   : > { %v8731_v54 = vshll.u32 %v8632_v31, 16  ;;  %v8735_v11 = vshrl.u32 %v8634_v58, 16  ;;  %v8738_v0 = vshll.u32 %v8634_v58, 16  ;;  %v19827_v1 = vor.u32 %v18014_v42, %v18012_v8  ;;  %v14159_v8 = vld [vmem:[%s19454_s8 + $0x60] sm:$0xff]  }
 0x630   : > { %8523 = vrot.lane.b32.xlu0 %v19826_v7, %s14412_s11  ;;  %v9639_v46 = vrot.slane %v9637_v43, 3  ;;  %v9642_v32 = vrot.slane %v9640_v25, 4  ;;  %v9646_v4 = vrot.slane %v9644_v3, 3  ;;  %v9649_v9 = vrot.slane %v9647_v17, 4  ;;  %v18388_v7 = vpop.permute.xlu1 %8501  ;;  %v19828_v25 = vld [vmem:[#allocation23_spill] sm:$0xff] }
 0x631   : > { %8373 = vrot.lane.b32.xlu1 %v19827_v1, %s14411_s30  ;;  %v8730_v34 = vrot.slane %v8728_v60, 3  ;;  %v8733_v22 = vrot.slane %v8731_v54, 4  ;;  %v8737_v31 = vrot.slane %v8735_v11, 3  ;;  %v8740_v58 = vrot.slane %v8738_v0, 4  ;;  %v10363_v60 = vld [vmem:[#allocation3 + $0x80] sm:$0xf]  ;;  %13328 = vmatpush3.bf16.msra.mxu1 %v14152_v37 }
 0x632   : > { %v9643_v42 = vor.u32 %v9642_v32, %v9639_v46  ;;  %v9650_v43 = vor.u32 %v9649_v9, %v9646_v4  ;;  %v19829_v3 = vrot.slane %v19828_v25, 5  ;;  %v9658_v17 = vor.u32 %v9657_v55, %v9654_v29  ;;  %v19830_v54 = vld [vmem:[#allocation25_spill] sm:$0xff]  ;;  %v18406_v29 = vpop.permute.xlu0 %9415  ;;  %13361 = vmatprep.subr.bf16.mxu1 %v14159_v8 }
 0x633   : > { %v9665_v1 = vor.u32 %v9664_v13, %v9661_v5  ;;  %v18400_v11 = vcombine.low %v10363_v60, %v10364_v26  ;;  %v10366_v0 = vld [vmem:[#allocation3 + $0x94] sm:$0xf]  ;;  %v8734_v41 = vor.u32 %v8733_v22, %v8730_v34  ;;  %v8741_v12 = vor.u32 %v8740_v58, %v8737_v31  ;;  %v18415_v26 = vld [vmem:[#allocation3 + $0xa8] sm:$0xf]  ;;  %v18425_v37 = vld [vmem:[#allocation3 + $0x90] sm:$0x8] }
 0x634   : > { %8527 = vrot.lane.b32.xlu0 %v19829_v3, %s14412_s11  ;;  %v8749_v46 = vor.u32 %v18331_v21, %v18329_v14  ;;  %v9651_v32 = vsel %vm4557_vm4, %v9643_v42, %v9650_v43  ;;  %v18408_v55 = vcombine.low %v10366_v0, %v10367_v56  ;;  %v8756_v5 = vor.u32 %v18335_v51, %v18333_v18  ;;  %v18413_v13 = vpop.permute.xlu1 %9417  ;;  %v18419_v21 = vld [vmem:[#allocation3 + $0xac] sm:$0xf]  ;;  %v18423_v56 = vld [vmem:[#allocation3 + $0x90] sm:$0x8] }
 0x635   : > { %8525 = vrot.lane.b32.xlu1 %v19830_v54, %s14412_s11  ;;  %v9666_v4 = vsel %vm4557_vm4, %v9658_v17, %v9665_v1  ;;  %13289 = vmatprep.mubr.msk.bf16.mxu1 %vm5771_vm3, %v9651_v32  ;;  %v18429_v51 = vsel %vm4557_vm4, %v8734_v41, %v8741_v12  ;;  %v19832_v34 = vor.u32 %v18058_v45, %v18056_v48  ;;  %v19833_v22 = vshrl.u32 %v18243_v39, 16  ;;  %v10370_v43 = vld [vmem:[#allocation3 + $0xac] sm:$0xf]  ;;  %v19836_v12 = vld [vmem:[#allocation26_spill] sm:$0xff]  ;;  %v19838_v60 = vld [vmem:[#allocation49_spill] sm:$0xff] }
 0x636   : > { %19831 = vst [vmem:[#allocation33_spill] sm:$0xff] %v18429_v51  ;;  %13290 = vmatmul.mubr.msk.bf16.gmra.mrb[36].mxu1 %vm5771_vm3, %v9666_v4  ;;  %v19834_v58 = vshll.u32 %v18243_v39, 16  ;;  %v19546_v8 = vrot.slane %v18243_v39, 5  ;;  %v18446_v41 = vsel %vm4557_vm4, %v8749_v46, %v8756_v5  ;;  %v10591_v48 = vshrl.u32 %v18400_v11, 16  ;;  %v18455_v17 = vld [vmem:[#allocation3 + $0xb8] sm:$0x8]  ;;  %v18457_v1 = vpop.permute.xlu0 %8495 }
 0x637   : > { %v18438_v31 = vrot.slane %v19833_v22, 4  ;;  %19835 = vst [vmem:[#allocation34_spill] sm:$0xff] %v18446_v41  ;;  %v8340_v25 = vshrl.u32 %v18081_v10, 16  ;;  %v8343_v3 = vshll.u32 %v18081_v10, 16  ;;  %19837 = vst [vmem:[#allocation35_spill] sm:$0xff] %v18455_v17  ;;  %v19839_v54 = vrot.slane %v19838_v60, 5 }
 0x638   : > { %8375 = vrot.lane.b32.xlu0 %v19832_v34, %s14411_s30  ;;  %v18442_v42 = vrot.slane %v19834_v58, 5  ;;  %v19840_v0 = vrot.slane %v18178_v27, 5  ;;  %v10594_v32 = vshll.u32 %v18400_v11, 16  ;;  %v10599_v4 = vshrl.u32 %v18408_v55, 16  ;;  %v10369_v34 = vld [vmem:[#allocation3 + $0xa8] sm:$0xf]  ;;  %v18469_v22 = vpop.permute.xlu1 %8497 }
 0x639   : > { %8529 = vrot.lane.b32.xlu1 %v19836_v12, %s14412_s11  ;;  %v18471_v58 = vld [vmem:[#allocation3 + $0x94] sm:$0xf]  ;;  %v18475_v60 = vld [vmem:[#allocation3 + $0x98] sm:$0xf]  ;;  %v18483_v14 = vcombine.low %v10369_v34, %v10370_v43  ;;  %v19842_v18 = vrot.slane %v17970_v62, 5  ;;  %v18510_v9 = vrot.slane %v8340_v25, 4 }
 0x63a   : > { %v18464_v46 = vsel %vm4298_vm13, %v19840_v0, %v19839_v54  ;;  %v18479_v0 = vld [vmem:[#allocation3 + $0x98] sm:$0xf]  ;;  %v18497_v41 = vld [vmem:[#allocation3 + $0x94] sm:$0xf]  ;;  %v18501_v34 = vld [vmem:[#allocation3 + $0xbc] sm:$0xf] }
 0x63b   : > { %19841 = vst [vmem:[#allocation21_spill] sm:$0xff] %v18479_v0  ;;  %v19843_v12 = vld [vmem:[#allocation6_spill] sm:$0xff]  ;;  %19845 = vst [vmem:[#allocation16_spill] sm:$0xff] %v18501_v34  ;;  %v18514_v45 = vrot.slane %v10594_v32, 5  ;;  %v18516_v43 = vrot.slane %v10599_v4, 4  ;;  %v19846_v0 = vld [vmem:[#allocation5_spill] sm:$0xff] }
 0x63c   : > { %8531 = vrot.lane.b32.xlu0 %v19842_v18, %s14412_s11  ;;  %v19844_v5 = vrot.slane %v19843_v12, 5  ;;  %v18507_v18 = vrot.slane %v10591_v48, 4  ;;  %v19847_v62 = vrot.slane %v19846_v0, 5  ;;  %v19848_v34 = vrot.slane %v18400_v11, 5  ;;  %v9282_v4 = vpop.permute.xlu1 %9281  ;;  %v10373_v12 = vld [vmem:[#allocation3 + $0xc0] sm:$0xf] }
 0x63d   : > { %8533 = vrot.lane.b32.xlu1 %v18205_v44, %s14412_s11  ;;  %v19849_v48 = vcombine.low %v18033_v40, %v17661_v50  ;;  %v10376_v17 = vld [vmem:[#allocation3 + $0xd4] sm:$0xf]  ;;  %v19851_v40 = vcombine.low %v18159_v47, %v19781_v59  ;;  %v10375_v47 = vld [vmem:[#allocation3 + $0xd0] sm:$0xf] }
 0x63e   : > { %v18495_v54 = vsel %vm4298_vm13, %v19546_v8, %v19844_v5  ;;  %v18512_v5 = vrot.slane %v8343_v3, 5  ;;  %v8360_v8 = vpop.permute.xlu0 %8359  ;;  %v18524_v44 = vsel %vm4298_vm13, %v19848_v34, %v19847_v62  ;;  %v19850_v3 = vcombine.low %v17657_v23, %v17657_v23 }
 0x63f   : > { %v8571_v25 = vsel %vm4411_vm1, %v19849_v48, %v8360_v8  ;;  %v9490_v23 = vsel %vm4411_vm1, %v19851_v40, %v9282_v4  ;;  %v19853_v48 = vrot.slane %v18081_v10, 5  ;;  %v18559_v10 = vcombine.low %v10375_v47, %v10376_v17 }
 0x640   : > { %v8573_v32 = vsel %vm4411_vm1, %v19850_v3, %v8360_v8  ;;  %v8644_v34 = vsel %vm4492_vm2, %v8571_v25, %v18386_v35  ;;  %v19852_v8 = vcombine.low %v18235_v30, %v18235_v30  ;;  %v10372_v3 = vld [vmem:[#allocation3 + $0xbc] sm:$0xf]  ;;  %v9564_v59 = vsel %vm4492_vm2, %v9490_v23, %v18362_v61 }
 0x641   : > { %v8646_v50 = vsel %vm4492_vm2, %v8573_v32, %v18388_v7  ;;  %8535 = vrot.lane.b32.xlu0 %v19853_v48, %s14412_s11  ;;  %v8773_v0 = vshrl.u32 %v8644_v34, 16  ;;  %v8776_v35 = vshll.u32 %v8644_v34, 16  ;;  %8537 = vrot.lane.b32.xlu1 %v18266_v24, %s14412_s11  ;;  %v18557_v32 = vcombine.low %v10372_v3, %v10373_v12  ;;  %v8358_v24 = vpop.permute.xlu1 %8357 }
 0x642   : > { %v9492_v62 = vsel %vm4411_vm1, %v19852_v8, %v9282_v4  ;;  %v8780_v25 = vshrl.u32 %v8646_v50, 16  ;;  %v8783_v51 = vshll.u32 %v8646_v50, 16  ;;  %v9280_v7 = vpop.permute.xlu0 %9279  ;;  %v9682_v8 = vshrl.u32 %v9564_v59, 16 }
 0x643   : > { %v9566_v30 = vsel %vm4492_vm2, %v9492_v62, %v18372_v28  ;;  %v18561_v4 = vrot.slane %v8773_v0, 3  ;;  %v18563_v34 = vrot.slane %v8776_v35, 4  ;;  %v9685_v48 = vshll.u32 %v9564_v59, 16  ;;  %v19858_v35 = vld [vmem:[#allocation42_spill] sm:$0xff] }
 0x644   : > { %v18565_v50 = vrot.slane %v8780_v25, 3  ;;  %v18567_v40 = vrot.slane %v8783_v51, 4  ;;  %v9689_v61 = vshrl.u32 %v9566_v30, 16  ;;  %v9692_v23 = vshll.u32 %v9566_v30, 16 }
 0x645   : > { %v19854_v28 = vor.u32 %v18228_v33, %v18226_v52  ;;  %v19855_v17 = vcombine.low %v18187_v19, %v19792_v49  ;;  %v19856_v0 = vcombine.low %v19793_v16, %v19793_v16  ;;  %v19857_v62 = vcombine.low %v18208_v36, %v19796_v20 }
 0x646   : > { %v19859_v25 = vcombine.low %v19858_v35, %v19858_v35  ;;  %v19860_v19 = vor.u32 %v18270_v6, %v18268_v57  ;;  %v9684_v33 = vrot.slane %v9682_v8, 3  ;;  %v9687_v49 = vrot.slane %v9685_v48, 4  ;;  %v18593_v59 = vpop.permute.xlu0 %9427  ;;  %v18603_v6 = vpop.permute.xlu1 %9429 }
 0x647   : > { %10686 = vrot.lane.b32.xlu0 %v19854_v28, %s14411_s30  ;;  %v9485_v12 = vsel %vm4411_vm1, %v19855_v17, %v9280_v7  ;;  %v9487_v51 = vsel %vm4411_vm1, %v19856_v0, %v9280_v7  ;;  %v8566_v3 = vsel %vm4411_vm1, %v19857_v62, %v8358_v24  ;;  %v9691_v16 = vrot.slane %v9689_v61, 3  ;;  %v19862_v17 = vld [vmem:[#allocation31_spill] sm:$0xff] }
 0x648   : > { %v8568_v52 = vsel %vm4411_vm1, %v19859_v25, %v8358_v24  ;;  %10688 = vrot.lane.b32.xlu1 %v19860_v19, %s14411_s30  ;;  %v9694_v47 = vrot.slane %v9692_v23, 4  ;;  %v9560_v36 = vsel %vm4492_vm2, %v9485_v12, %v18406_v29  ;;  %v9562_v20 = vsel %vm4492_vm2, %v9487_v51, %v18413_v13 }
 0x649   : > { %v8640_v30 = vsel %vm4492_vm2, %v8566_v3, %v18457_v1  ;;  %v8642_v7 = vsel %vm4492_vm2, %v8568_v52, %v18469_v22  ;;  %v9667_v57 = vshrl.u32 %v9560_v36, 16  ;;  %v9670_v24 = vshll.u32 %v9560_v36, 16  ;;  %v19863_v36 = vld [vmem:[#allocation27_spill] sm:$0xff] }
 0x64a   : > { %v9674_v8 = vshrl.u32 %v9562_v20, 16  ;;  %v9677_v48 = vshll.u32 %v9562_v20, 16  ;;  %v19861_v61 = vrot.slane %v18105_v63, 5  ;;  %v8758_v29 = vshrl.u32 %v8640_v30, 16  ;;  %v18610_v51 = vpop.permute.xlu0 %8507  ;;  %v18612_v52 = vpop.permute.xlu1 %8509 }
 0x64b   : > { %v8761_v23 = vshll.u32 %v8640_v30, 16  ;;  %v8765_v28 = vshrl.u32 %v8642_v7, 16  ;;  %v8768_v13 = vshll.u32 %v8642_v7, 16  ;;  %v9669_v1 = vrot.slane %v9667_v57, 3  ;;  %v19865_v57 = vld [vmem:[#allocation32_spill] sm:$0xff] }
 0x64c   : > { %10814 = vrot.lane.b32.xlu0 %v19861_v61, %s14412_s11  ;;  %10816 = vrot.lane.b32.xlu1 %v19862_v17, %s14412_s11  ;;  %v9672_v12 = vrot.slane %v9670_v24, 4  ;;  %v9676_v22 = vrot.slane %v9674_v8, 3  ;;  %v9679_v0 = vrot.slane %v9677_v48, 4  ;;  %v8760_v62 = vrot.slane %v8758_v29, 3  ;;  %v18645_v17 = vld [vmem:[#allocation3 + $0xcc] sm:$0x8] }
 0x64d   : > { %v8763_v3 = vrot.slane %v8761_v23, 4  ;;  %v8767_v35 = vrot.slane %v8765_v28, 3  ;;  %v8770_v25 = vrot.slane %v8768_v13, 4  ;;  %v19864_v20 = vrot.slane %v19863_v36, 5 }
 0x64e   : > { %v9673_v63 = vor.u32 %v9672_v12, %v9669_v1  ;;  %v9680_v19 = vor.u32 %v9679_v0, %v9676_v22  ;;  %v9688_v30 = vor.u32 %v9687_v49, %v9684_v33  ;;  %v9695_v7 = vor.u32 %v9694_v47, %v9691_v16  ;;  %v18625_v28 = vpop.permute.xlu0 %9423  ;;  %v18634_v47 = vpop.permute.xlu1 %9425  ;;  %v18647_v1 = vld [vmem:[#allocation3 + $0xb8] sm:$0x8]  ;;  %v10379_v12 = vld [vmem:[#allocation3 + $0xe8] sm:$0xf]  ;;  %v18726_v16 = vld [vmem:[#allocation3 + $0xe4] sm:$0xf] }
 0x64f   : > { %v8764_v24 = vor.u32 %v8763_v3, %v8760_v62  ;;  %v8771_v8 = vor.u32 %v8770_v25, %v8767_v35  ;;  %v8779_v48 = vor.u32 %v18563_v34, %v18561_v4  ;;  %v8786_v61 = vor.u32 %v18567_v40, %v18565_v50  ;;  %v19867_v34 = vld [vmem:[#allocation8_spill] sm:$0xff]  ;;  %19881 = vst [vmem:[#allocation20_spill] sm:$0xff] %v18726_v16  ;;  %v18749_v4 = vld [vmem:[#allocation3 + $0xf8] sm:$0xf] }
 0x650   : > { %10818 = vrot.lane.b32.xlu0 %v19864_v20, %s14412_s11  ;;  %10820 = vrot.lane.b32.xlu1 %v19865_v57, %s14412_s11  ;;  %v9681_v29 = vsel %vm4557_vm4, %v9673_v63, %v9680_v19  ;;  %v9696_v23 = vsel %vm4557_vm4, %v9688_v30, %v9695_v7  ;;  %v19866_v33 = vshll.u32 %v18408_v55, 16  ;;  %v19868_v50 = vrot.slane %v19867_v34, 5  ;;  %v18668_v19 = vld [vmem:[#allocation3 + $0xc0] sm:$0xf]  ;;  %v18696_v34 = vld [vmem:[#allocation3 + $0xd4] sm:$0xf] }
 0x651   : > { %13293 = vmatprep.mubr.msk.bf16.mxu1 %vm5771_vm3, %v9681_v29  ;;  %v19869_v40 = vrot.slane %v18408_v55, 5  ;;  %v18650_v22 = vsel %vm4557_vm4, %v8764_v24, %v8771_v8  ;;  %v18653_v0 = vsel %vm4557_vm4, %v8779_v48, %v8786_v61  ;;  %v19872_v62 = vor.u32 %v18290_v53, %v18288_v15  ;;  %v18673_v30 = vld [vmem:[#allocation3 + $0xe0] sm:$0x8]  ;;  %v10378_v8 = vld [vmem:[#allocation3 + $0xe4] sm:$0xf]  ;;  %19883 = vst [vmem:[#allocation19_spill] sm:$0xff] %v18749_v4 }
 0x652   : > { %v18629_v49 = vrot.slane %v19866_v33, 5  ;;  %19870 = vst [vmem:[#allocation15_spill] sm:$0xff] %v18650_v22  ;;  %19871 = vst [vmem:[#allocation18_spill] sm:$0xff] %v18653_v0  ;;  %13294 = vmatmul.mubr.msk.bf16.gmra.mrb[40].mxu1 %vm5771_vm3, %v9696_v23  ;;  %v19873_v3 = vshrl.u32 %v18483_v14, 16  ;;  %v19874_v25 = vshll.u32 %v18483_v14, 16  ;;  %v19551_v20 = vrot.slane %v18483_v14, 5  ;;  %v18683_v48 = vpop.permute.xlu0 %8503  ;;  %v18694_v33 = vpop.permute.xlu1 %8505 }
 0x653   : > { %v18643_v13 = vsel %vm4298_vm13, %v19869_v40, %v19868_v50  ;;  %v19875_v15 = vor.u32 %v18442_v42, %v18438_v31  ;;  %v10615_v53 = vshrl.u32 %v18557_v32, 16  ;;  %v10618_v7 = vshll.u32 %v18557_v32, 16  ;;  %v18687_v29 = vld [vmem:[#allocation3 + $0xd0] sm:$0xf]  ;;  %v18700_v40 = vld [vmem:[#allocation3 + $0xc0] sm:$0xf] }
 0x654   : > { %10690 = vrot.lane.b32.xlu0 %v19872_v62, %s14411_s30  ;;  %v18662_v35 = vrot.slane %v19873_v3, 4  ;;  %v18666_v63 = vrot.slane %v19874_v25, 5  ;;  %v19552_v57 = vrot.slane %v18557_v32, 5  ;;  %v10623_v24 = vshrl.u32 %v18559_v10, 16  ;;  %v18704_v3 = vld [vmem:[#allocation3 + $0xbc] sm:$0xf] }
 0x655   : > { %10692 = vrot.lane.b32.xlu1 %v19875_v15, %s14411_s30  ;;  %v10626_v42 = vshll.u32 %v18559_v10, 16  ;;  %v18692_v23 = vcombine.low %v10378_v8, %v10379_v12  ;;  %v18708_v15 = vld [vmem:[#allocation3 + $0xe8] sm:$0xf]  ;;  %v18712_v8 = vld [vmem:[#allocation3 + $0xf4] sm:$0x8]  ;;  %v19878_v50 = vrot.slane %v18178_v27, 5 }
 0x656   : > { %19876 = vst [vmem:[#allocation24_spill] sm:$0xff] %v18708_v15  ;;  %19877 = vst [vmem:[#allocation40_spill] sm:$0xff] %v18712_v8  ;;  %v19879_v62 = vld [vmem:[#allocation7_spill] sm:$0xff]  ;;  %v18733_v27 = vrot.slane %v10615_v53, 4  ;;  %v19882_v31 = vrot.slane %v18384_v2, 5  ;;  %v19888_v0 = vld [vmem:[#allocation46_spill] sm:$0xff]  ;;  %v9286_v15 = vpop.permute.xlu1 %9285 }
 0x657   : > { %v19880_v36 = vrot.slane %v19879_v62, 5  ;;  %v18737_v62 = vrot.slane %v10623_v24, 4  ;;  %v18746_v12 = vrot.slane %v10626_v42, 5  ;;  %v18753_v53 = vld [vmem:[#allocation3 + $0xfc] sm:$0xf]  ;;  %v19889_v61 = vcombine.low %v19888_v0, %v19888_v0 }
 0x658   : > { %10822 = vrot.lane.b32.xlu0 %v19878_v50, %s14412_s11  ;;  %v18735_v50 = vrot.slane %v10618_v7, 5  ;;  %19884 = vst [vmem:[#allocation10_spill] sm:$0xff] %v18753_v53  ;;  %v18757_v7 = vld [vmem:[#allocation3 + $0xec] ss:$0 sps:$4 sm:$0x11]   ;;  %v19885_v24 = vld [vmem:[#allocation30_spill] sm:$0xff]  ;;  %v19891_v0 = vcombine.low %v18419_v21, %v18419_v21 }
 0x659   : > { %v18724_v25 = vsel %vm4298_vm13, %v19551_v20, %v19880_v36  ;;  %10824 = vrot.lane.b32.xlu1 %v18464_v46, %s14412_s11  ;;  %v18744_v36 = vsel %vm4298_vm13, %v19552_v57, %v19882_v31  ;;  %v8364_v20 = vpop.permute.xlu0 %8363  ;;  %v19886_v31 = vld [vmem:[#allocation47_spill] sm:$0xff]  ;;  %v10382_v8 = vld [vmem:[#allocation3 + $0xfc] sm:$0xf] }
 0x65a   : > { %v19887_v57 = vcombine.low %v19885_v24, %v19886_v31  ;;  %v8583_v22 = vsel %vm4411_vm1, %v19889_v61, %v8364_v20  ;;  %v19892_v61 = vrot.slane %v18243_v39, 5  ;;  %v10794_v39 = vrot.slane %v18757_v7, 5 }
 0x65b   : > { %v8654_v53 = vsel %vm4492_vm2, %v8583_v22, %v18612_v52  ;;  %v10381_v52 = vld [vmem:[#allocation3 + $0xf8] sm:$0xf] }
 0x65c   : > { %v8581_v42 = vsel %vm4411_vm1, %v19887_v57, %v8364_v20  ;;  %v19890_v57 = vcombine.low %v18396_v38, %v18415_v26  ;;  %v9502_v20 = vsel %vm4411_vm1, %v19891_v0, %v9286_v15  ;;  %10826 = vrot.lane.b32.xlu0 %v19892_v61, %s14412_s11  ;;  %v18790_v22 = vcombine.low %v10381_v52, %v10382_v8 }
 0x65d   : > { %v8652_v2 = vsel %vm4492_vm2, %v8581_v42, %v18610_v51  ;;  %v8810_v51 = vshrl.u32 %v8654_v53, 16  ;;  %v8813_v42 = vshll.u32 %v8654_v53, 16  ;;  %10828 = vrot.lane.b32.xlu1 %v18495_v54, %s14412_s11  ;;  %v9574_v26 = vsel %vm4492_vm2, %v9502_v20, %v18603_v6  ;;  %v9284_v21 = vpop.permute.xlu0 %9283  ;;  %v8362_v53 = vpop.permute.xlu1 %8361 }
 0x65e   : > { %v9500_v24 = vsel %vm4411_vm1, %v19890_v57, %v9286_v15  ;;  %v8803_v31 = vshrl.u32 %v8652_v2, 16  ;;  %v8806_v4 = vshll.u32 %v8652_v2, 16  ;;  %v9719_v54 = vshrl.u32 %v9574_v26, 16 }
 0x65f   : > { %v9572_v38 = vsel %vm4492_vm2, %v9500_v24, %v18593_v59  ;;  %v8812_v2 = vrot.slane %v8810_v51, 3  ;;  %v8815_v0 = vrot.slane %v8813_v42, 4  ;;  %v9722_v16 = vshll.u32 %v9574_v26, 16 }
 0x660   : > { %v8805_v15 = vrot.slane %v8803_v31, 3  ;;  %v8808_v57 = vrot.slane %v8806_v4, 4  ;;  %v9712_v61 = vshrl.u32 %v9572_v38, 16  ;;  %v9715_v46 = vshll.u32 %v9572_v38, 16 }
 0x661   : > { %v19893_v59 = vor.u32 %v18514_v45, %v18507_v18  ;;  %v8816_v24 = vor.u32 %v8815_v0, %v8812_v2  ;;  %v19894_v8 = vcombine.low %v18423_v56, %v18471_v58  ;;  %v19895_v4 = vcombine.low %v18475_v60, %v18475_v60  ;;  %v18809_v38 = vpop.permute.xlu0 %9435 }
 0x662   : > { %v8809_v6 = vor.u32 %v8808_v57, %v8805_v15  ;;  %v19896_v51 = vor.u32 %v18629_v49, %v18516_v43  ;;  %v9714_v42 = vrot.slane %v9712_v61, 3  ;;  %v9717_v45 = vrot.slane %v9715_v46, 4  ;;  %v18823_v46 = vpop.permute.xlu1 %9437 }
 0x663   : > { %10694 = vrot.lane.b32.xlu0 %v19893_v59, %s14411_s30  ;;  %v9495_v20 = vsel %vm4411_vm1, %v19894_v8, %v9284_v21  ;;  %v9497_v31 = vsel %vm4411_vm1, %v19895_v4, %v9284_v21  ;;  %v9721_v18 = vrot.slane %v9719_v54, 3  ;;  %v9724_v52 = vrot.slane %v9722_v16, 4  ;;  %v19898_v21 = vld [vmem:[#allocation21_spill] sm:$0xff] }
 0x664   : > { %10696 = vrot.lane.b32.xlu1 %v19896_v51, %s14411_s30  ;;  %v9568_v56 = vsel %vm4492_vm2, %v9495_v20, %v18625_v28  ;;  %v9570_v58 = vsel %vm4492_vm2, %v9497_v31, %v18634_v47  ;;  %v19897_v60 = vcombine.low %v18425_v37, %v18497_v41  ;;  %v19899_v43 = vcombine.low %v19898_v21, %v19898_v21 }
 0x665   : > { %v9697_v16 = vshrl.u32 %v9568_v56, 16  ;;  %v9700_v15 = vshll.u32 %v9568_v56, 16  ;;  %v9704_v57 = vshrl.u32 %v9570_v58, 16  ;;  %v9707_v2 = vshll.u32 %v9570_v58, 16  ;;  %v9432_v20 = vpop.permute.xlu0 %9431 }
 0x666   : > { %v8576_v26 = vsel %vm4411_vm1, %v19897_v60, %v8362_v53  ;;  %v8578_v49 = vsel %vm4411_vm1, %v19899_v43, %v8362_v53  ;;  %v19900_v28 = vrot.slane %v18400_v11, 5  ;;  %v19901_v47 = vor.u32 %v18512_v5, %v18510_v9 }
 0x667   : > { %v8648_v37 = vsel %vm4492_vm2, %v8576_v26, %v18683_v48  ;;  %v8650_v41 = vsel %vm4492_vm2, %v8578_v49, %v18694_v33  ;;  %v9718_v0 = vor.u32 %v9717_v45, %v9714_v42  ;;  %v9725_v53 = vor.u32 %v9724_v52, %v9721_v18  ;;  %v9434_v48 = vpop.permute.xlu1 %9433  ;;  %v18858_v49 = vld [vmem:[#allocation3 + $0x108] sm:$0x8] }
 0x668   : > { %10830 = vrot.lane.b32.xlu0 %v19900_v28, %s14412_s11  ;;  %8377 = vrot.lane.b32.xlu1 %v19901_v47, %s14411_s30  ;;  %v9699_v61 = vrot.slane %v9697_v16, 3  ;;  %v9702_v54 = vrot.slane %v9700_v15, 4  ;;  %v9706_v59 = vrot.slane %v9704_v57, 3  ;;  %v9709_v8 = vrot.slane %v9707_v2, 4  ;;  %v18865_v2 = vld [vmem:[#allocation3 + $0x11c] sm:$0x8] }
 0x669   : > { %v8788_v11 = vshrl.u32 %v8648_v37, 16  ;;  %v8791_v4 = vshll.u32 %v8648_v37, 16  ;;  %v8795_v31 = vshrl.u32 %v8650_v41, 16  ;;  %v8798_v51 = vshll.u32 %v8650_v41, 16  ;;  %v18846_v26 = vpop.permute.xlu0 %8511  ;;  %v19906_v41 = vld [vmem:[#allocation9_spill] sm:$0xff] }
 0x66a   : > { %v9703_v56 = vor.u32 %v9702_v54, %v9699_v61  ;;  %v9710_v58 = vor.u32 %v9709_v8, %v9706_v59  ;;  %v19902_v33 = vrot.slane %v18408_v55, 5  ;;  %v9726_v9 = vsel %vm4557_vm4, %v9718_v0, %v9725_v53  ;;  %v18881_v61 = vld [vmem:[#allocation3 + $0x110] sm:$0xf]  ;;  %v18894_v59 = vld [vmem:[#allocation3 + $0x10c] sm:$0xf] }
 0x66b   : > { %v18841_v5 = vsel %vm4557_vm4, %v8809_v6, %v8816_v24  ;;  %v8790_v42 = vrot.slane %v8788_v11, 3  ;;  %v8793_v45 = vrot.slane %v8791_v4, 4  ;;  %v8797_v18 = vrot.slane %v8795_v31, 3  ;;  %v10384_v4 = vld [vmem:[#allocation3 + $0x10c] sm:$0xf] }
 0x66c   : > { %10834 = vrot.lane.b32.xlu0 %v19902_v33, %s14412_s11  ;;  %v8800_v52 = vrot.slane %v8798_v51, 4  ;;  %10832 = vrot.lane.b32.xlu1 %v18524_v44, %s14412_s11  ;;  %v9711_v60 = vsel %vm4557_vm4, %v9703_v56, %v9710_v58  ;;  %v10621_v55 = vor.u32 %v18735_v50, %v18733_v27  ;;  %v19903_v21 = vshrl.u32 %v18692_v23, 16  ;;  %v18861_v44 = vpop.permute.xlu1 %8513  ;;  %v10385_v50 = vld [vmem:[#allocation3 + $0x110] sm:$0xf]  ;;  %v18906_v56 = vld [vmem:[#allocation3 + $0x120] sm:$0xf] }
 0x66d   : > { %v19904_v6 = vshll.u32 %v18692_v23, 16  ;;  %v8794_v16 = vor.u32 %v8793_v45, %v8790_v42  ;;  %13297 = vmatprep.mubr.msk.bf16.mxu1 %vm5771_vm3, %v9711_v60  ;;  %v10639_v57 = vshrl.u32 %v18790_v22, 16  ;;  %v10642_v27 = vshll.u32 %v18790_v22, 16  ;;  %v9288_v51 = vpop.permute.xlu0 %9287  ;;  %v18910_v58 = vld [vmem:[#allocation3 + $0x124] sm:$0xf]  ;;  %v19911_v45 = vld [vmem:[#allocation16_spill] sm:$0xff] }
 0x66e   : > { %v18852_v43 = vrot.slane %v19903_v21, 4  ;;  %v8801_v15 = vor.u32 %v8800_v52, %v8797_v18  ;;  %13298 = vmatmul.mubr.msk.bf16.gmra.mrb[44].mxu1 %vm5771_vm3, %v9726_v9  ;;  %v19905_v28 = vor.u32 %v18666_v63, %v18662_v35  ;;  %v10629_v37 = vor.u32 %v18746_v12, %v18737_v62  ;;  %v18914_v9 = vld [vmem:[#allocation3 + $0x100] ss:$0 sps:$4 sm:$0x11]   ;;  %v19920_v12 = vld [vmem:[#allocation20_spill] sm:$0xff] }
 0x66f   : > { %v18856_v24 = vrot.slane %v19904_v6, 5  ;;  %v19907_v47 = vrot.slane %v19906_v41, 5  ;;  %v19908_v0 = vrot.slane %v18559_v10, 5  ;;  %v12508_v54 = vcombine.low %v18881_v61, %v18881_v61  ;;  %v19910_v42 = vld [vmem:[#allocation35_spill] sm:$0xff] }
 0x670   : > { %10698 = vrot.lane.b32.xlu0 %v19905_v28, %s14411_s30  ;;  %10836 = vrot.lane.b32.xlu1 %v18643_v13, %s14412_s11  ;;  %v19909_v35 = vrot.slane %v18692_v23, 5  ;;  %v12507_v8 = vcombine.low %v18858_v49, %v18894_v59  ;;  %v10796_v11 = vrot.slane %v18790_v22, 5  ;;  %v18900_v31 = vsel %vm4557_vm4, %v8794_v16, %v8801_v15  ;;  %v9290_v6 = vpop.permute.xlu1 %9289 }
 0x671   : > { %v18879_v53 = vsel %vm4298_vm13, %v19908_v0, %v19907_v47  ;;  %v10637_v13 = vor.u32 %v18856_v24, %v18852_v43  ;;  %v18904_v7 = vcombine.low %v10384_v4, %v10385_v50  ;;  %v12510_v33 = vcombine.low %v18910_v58, %v18910_v58  ;;  %v10388_v50 = vld [vmem:[#allocation3 + $0x124] sm:$0xf] }
 0x672   : > { %v18892_v63 = vsel %vm4298_vm13, %v19909_v35, %v10794_v39  ;;  %v12509_v39 = vcombine.low %v18865_v2, %v18906_v56  ;;  %v19912_v18 = vcombine.low %v19910_v42, %v19911_v45  ;;  %v19913_v60 = vcombine.low %v18668_v19, %v18668_v19 }
 0x673   : > { %v18924_v16 = vrot.slane %v10639_v57, 4  ;;  %v18926_v15 = vrot.slane %v10642_v27, 5  ;;  %v19914_v47 = vcombine.low %v18645_v17, %v18687_v29  ;;  %v19915_v19 = vcombine.low %v18696_v34, %v18696_v34  ;;  %v18946_v34 = vpop.permute.xlu0 %9443 }
 0x674   : > { %v9505_v52 = vsel %vm4411_vm1, %v19912_v18, %v9288_v51  ;;  %v9507_v21 = vsel %vm4411_vm1, %v19913_v60, %v9288_v51  ;;  %v19916_v57 = vrot.slane %v18483_v14, 5  ;;  %10700 = vrot.lane.b32.xlu1 %v10621_v55, %s14411_s30  ;;  %v10797_v42 = vrot.slane %v18914_v9, 5 }
 0x675   : > { %v9576_v28 = vsel %vm4492_vm2, %v9505_v52, %v9432_v20  ;;  %v9578_v41 = vsel %vm4492_vm2, %v9507_v21, %v9434_v48  ;;  %v9510_v0 = vsel %vm4411_vm1, %v19914_v47, %v9290_v6  ;;  %v9512_v35 = vsel %vm4411_vm1, %v19915_v19, %v9290_v6  ;;  %v10387_v48 = vld [vmem:[#allocation3 + $0x120] sm:$0xf]  ;;  %v8366_v21 = vpop.permute.xlu1 %8365 }
 0x676   : > { %10838 = vrot.lane.b32.xlu0 %v19916_v57, %s14412_s11  ;;  %v9727_v27 = vshrl.u32 %v9576_v28, 16  ;;  %v9730_v4 = vshll.u32 %v9576_v28, 16  ;;  %v9734_v51 = vshrl.u32 %v9578_v41, 16  ;;  %v9737_v20 = vshll.u32 %v9578_v41, 16 }
 0x677   : > { %v9580_v17 = vsel %vm4492_vm2, %v9510_v0, %v18809_v38  ;;  %v9582_v29 = vsel %vm4492_vm2, %v9512_v35, %v18823_v46  ;;  %v18949_v45 = vcombine.low %v10387_v48, %v10388_v50  ;;  %v19917_v38 = vrot.slane %v18557_v32, 5  ;;  %v18964_v57 = vld [vmem:[#allocation3 + $0x114] ss:$0 sps:$4 sm:$0x11]  }
 0x678   : > { %v9729_v14 = vrot.slane %v9727_v27, 3  ;;  %v9732_v18 = vrot.slane %v9730_v4, 4  ;;  %v9736_v52 = vrot.slane %v9734_v51, 3  ;;  %v9739_v60 = vrot.slane %v9737_v20, 4  ;;  %10840 = vrot.lane.b32.xlu1 %v18724_v25, %s14412_s11  ;;  %v9440_v20 = vpop.permute.xlu0 %9439 }
 0x679   : > { %v9742_v6 = vshrl.u32 %v9580_v17, 16  ;;  %v9745_v55 = vshll.u32 %v9580_v17, 16  ;;  %v9749_v28 = vshrl.u32 %v9582_v29, 16  ;;  %v9752_v41 = vshll.u32 %v9582_v29, 16  ;;  %v9446_v48 = vpop.permute.xlu1 %9445 }
 0x67a   : > { %10842 = vrot.lane.b32.xlu0 %v19917_v38, %s14412_s11  ;;  %v9733_v46 = vor.u32 %v9732_v18, %v9729_v14  ;;  %v9740_v47 = vor.u32 %v9739_v60, %v9736_v52  ;;  %v19918_v0 = vcombine.low %v18647_v1, %v18704_v3  ;;  %v19919_v19 = vcombine.low %v18700_v40, %v18700_v40 }
 0x67b   : > { %v9744_v27 = vrot.slane %v9742_v6, 3  ;;  %v9747_v32 = vrot.slane %v9745_v55, 4  ;;  %v9751_v4 = vrot.slane %v9749_v28, 3  ;;  %v9754_v51 = vrot.slane %v9752_v41, 4 }
 0x67c   : > { %v8586_v50 = vsel %vm4411_vm1, %v19918_v0, %v8366_v21  ;;  %v8588_v35 = vsel %vm4411_vm1, %v19919_v19, %v8366_v21  ;;  %v9741_v40 = vsel %vm4557_vm4, %v9733_v46, %v9740_v47  ;;  %v10647_v17 = vshrl.u32 %v18904_v7, 16  ;;  %10844 = vrot.lane.b32.xlu1 %v18744_v36, %s14412_s11  ;;  %v9292_v28 = vpop.permute.xlu0 %9291 }
 0x67d   : > { %v8656_v1 = vsel %vm4492_vm2, %v8586_v50, %v18846_v26  ;;  %v8658_v3 = vsel %vm4492_vm2, %v8588_v35, %v18861_v44  ;;  %v9748_v29 = vor.u32 %v9747_v32, %v9744_v27  ;;  %v9755_v25 = vor.u32 %v9754_v51, %v9751_v4  ;;  %13301 = vmatprep.mubr.msk.bf16.mxu1 %vm5771_vm3, %v9741_v40  ;;  %v9442_v50 = vpop.permute.xlu1 %9441 }
 0x67e   : > { %v8818_v14 = vshrl.u32 %v8656_v1, 16  ;;  %v8821_v18 = vshll.u32 %v8656_v1, 16  ;;  %10702 = vrot.lane.b32.xlu0 %v10629_v37, %s14411_s30  ;;  %v8825_v26 = vshrl.u32 %v8658_v3, 16  ;;  %v8828_v52 = vshll.u32 %v8658_v3, 16  ;;  %v19922_v37 = vld [vmem:[#allocation24_spill] sm:$0xff] }
 0x67f   : > { %v10650_v44 = vshll.u32 %v18904_v7, 16  ;;  %v10799_v60 = vrot.slane %v18904_v7, 5  ;;  %v9756_v55 = vsel %vm4557_vm4, %v9748_v29, %v9755_v25  ;;  %v10800_v41 = vrot.slane %v18964_v57, 5 }
 0x680   : > { %v8820_v21 = vrot.slane %v8818_v14, 3  ;;  %v8823_v6 = vrot.slane %v8821_v18, 4  ;;  %v8827_v38 = vrot.slane %v8825_v26, 3  ;;  %v8830_v46 = vrot.slane %v8828_v52, 4  ;;  %13302 = vmatmul.mubr.msk.bf16.gmra.mrb[48].mxu1 %vm5771_vm3, %v9756_v55  ;;  %10704 = vrot.lane.b32.xlu1 %v10637_v13, %s14411_s30  ;;  %v19925_v13 = vld [vmem:[#allocation40_spill] sm:$0xff]  ;;  %v19926_v18 = vld [vmem:[#allocation19_spill] sm:$0xff] }
 0x681   : > { %v19921_v62 = vcombine.low %v18673_v30, %v19920_v12  ;;  %v19923_v47 = vcombine.low %v19922_v37, %v19922_v37  ;;  %v19924_v27 = vrot.slane %v18559_v10, 5  ;;  %v10645_v30 = vor.u32 %v18926_v15, %v18924_v16  ;;  %v9294_v14 = vpop.permute.xlu1 %9293  ;;  %v19928_v52 = vld [vmem:[#allocation10_spill] sm:$0xff] }
 0x682   : > { %v8824_v19 = vor.u32 %v8823_v6, %v8820_v21  ;;  %v8831_v32 = vor.u32 %v8830_v46, %v8827_v38  ;;  %v19010_v10 = vsel %vm4298_vm13, %v10796_v11, %v10797_v42  ;;  %v10655_v16 = vshrl.u32 %v18949_v45, 16 }
 0x683   : > { %v9515_v36 = vsel %vm4411_vm1, %v19921_v62, %v9292_v28  ;;  %v9517_v0 = vsel %vm4411_vm1, %v19923_v47, %v9292_v28  ;;  %10846 = vrot.lane.b32.xlu0 %v19924_v27, %s14412_s11  ;;  %v10658_v15 = vshll.u32 %v18949_v45, 16  ;;  %v19927_v9 = vcombine.low %v19925_v13, %v19926_v18  ;;  %v19033_v62 = vld [vmem:[#allocation3 + $0x130] sm:$0x8] }
 0x684   : > { %v9584_v35 = vsel %vm4492_vm2, %v9515_v36, %v9440_v20  ;;  %v9586_v57 = vsel %vm4492_vm2, %v9517_v0, %v9442_v50  ;;  %v19003_v20 = vpop.permute.xlu0 %9451  ;;  %v19015_v43 = vsel %vm4557_vm4, %v8824_v19, %v8831_v32  ;;  %v19929_v42 = vcombine.low %v19928_v52, %v19928_v52  ;;  %10848 = vrot.lane.b32.xlu1 %v18879_v53, %s14412_s11 }
 0x685   : > { %v9757_v4 = vshrl.u32 %v9584_v35, 16  ;;  %v9760_v51 = vshll.u32 %v9584_v35, 16  ;;  %v9764_v1 = vshrl.u32 %v9586_v57, 16  ;;  %v9767_v3 = vshll.u32 %v9586_v57, 16  ;;  %v19037_v19 = vpop.permute.xlu1 %9453 }
 0x686   : > { %v9520_v26 = vsel %vm4411_vm1, %v19927_v9, %v9294_v14  ;;  %v9522_v21 = vsel %vm4411_vm1, %v19929_v42, %v9294_v14  ;;  %v19930_v6 = vrot.slane %v18692_v23, 5  ;;  %v10649_v55 = vrot.slane %v10647_v17, 4  ;;  %v19035_v23 = vld [vmem:[#allocation3 + $0x128] ss:$0 sps:$4 sm:$0x11]  }
 0x687   : > { %v9759_v40 = vrot.slane %v9757_v4, 3  ;;  %v9762_v29 = vrot.slane %v9760_v51, 4  ;;  %v9766_v25 = vrot.slane %v9764_v1, 3  ;;  %v9769_v24 = vrot.slane %v9767_v3, 4  ;;  %v19050_v4 = vld [vmem:[#allocation3 + $0xcc] sm:$0x8] }
 0x688   : > { %10850 = vrot.lane.b32.xlu0 %v19930_v6, %s14412_s11  ;;  %v9588_v38 = vsel %vm4492_vm2, %v9520_v26, %v18946_v34  ;;  %v9590_v46 = vsel %vm4492_vm2, %v9522_v21, %v9446_v48  ;;  %v10652_v12 = vrot.slane %v10650_v44, 5  ;;  %v9448_v50 = vpop.permute.xlu0 %9447  ;;  %v19039_v35 = vrot.slane %v10655_v16, 4  ;;  %v10394_v48 = vld [vmem:[#allocation3 + $0x14c] sm:$0xf]  ;;  %10852 = vrot.lane.b32.xlu1 %v18892_v63, %s14412_s11  ;;  %v19055_v1 = vld [vmem:[#allocation3 + $0x138] sm:$0xf] }
 0x689   : > { %v9763_v28 = vor.u32 %v9762_v29, %v9759_v40  ;;  %v9770_v36 = vor.u32 %v9769_v24, %v9766_v25  ;;  %v9772_v37 = vshrl.u32 %v9588_v38, 16  ;;  %v9775_v47 = vshll.u32 %v9588_v38, 16  ;;  %v19059_v3 = vld [vmem:[#allocation3 + $0x134] sm:$0xf]  ;;  %v9450_v9 = vpop.permute.xlu1 %9449  ;;  %v19075_v26 = vld [vmem:[#allocation3 + $0xd0] sm:$0xf] }
 0x68a   : > { %v9779_v0 = vshrl.u32 %v9590_v46, 16  ;;  %v9782_v17 = vshll.u32 %v9590_v46, 16  ;;  %v19041_v34 = vrot.slane %v10658_v15, 5  ;;  %v19046_v53 = vsel %vm4298_vm13, %v10799_v60, %v10800_v41  ;;  %v10393_v15 = vld [vmem:[#allocation3 + $0x148] sm:$0xf] }
 0x68b   : > { %v9774_v44 = vrot.slane %v9772_v37, 3  ;;  %v9777_v57 = vrot.slane %v9775_v47, 4  ;;  %v9771_v32 = vsel %vm4557_vm4, %v9763_v28, %v9770_v36  ;;  %v12512_v41 = vcombine.low %v19055_v1, %v19055_v1  ;;  %v19079_v42 = vld [vmem:[#allocation3 + $0x144] sm:$0x8]  ;;  %v10391_v21 = vld [vmem:[#allocation3 + $0x138] sm:$0xf] }
 0x68c   : > { %v9781_v27 = vrot.slane %v9779_v0, 3  ;;  %10706 = vrot.lane.b32.xlu0 %v10645_v30, %s14411_s30  ;;  %v9784_v51 = vrot.slane %v9782_v17, 4  ;;  %13305 = vmatprep.mubr.msk.bf16.mxu1 %vm5771_vm3, %v9771_v32  ;;  %v12511_v16 = vcombine.low %v19033_v62, %v19059_v3  ;;  %v10802_v30 = vrot.slane %v18949_v45, 5  ;;  %v9296_v29 = vpop.permute.xlu0 %9295  ;;  %v10397_v36 = vld [vmem:[#allocation3 + $0x160] sm:$0xf] }
 0x68d   : > { %v9778_v40 = vor.u32 %v9777_v57, %v9774_v44  ;;  %v10653_v25 = vor.u32 %v10652_v12, %v10649_v55  ;;  %v10803_v14 = vrot.slane %v19035_v23, 5  ;;  %v19065_v24 = vcombine.low %v10393_v15, %v10394_v48  ;;  %v10396_v55 = vld [vmem:[#allocation3 + $0x15c] sm:$0xf]  ;;  %v19096_v37 = vld [vmem:[#allocation3 + $0x148] sm:$0xf]  ;;  %v9298_v57 = vpop.permute.xlu1 %9297 }
 0x68e   : > { %v9785_v63 = vor.u32 %v9784_v51, %v9781_v27  ;;  %v9525_v13 = vsel %vm4411_vm1, %v12507_v8, %v9296_v29  ;;  %v9527_v18 = vsel %vm4411_vm1, %v12508_v54, %v9296_v29  ;;  %v12439_v52 = vcombine.low %v19050_v4, %v19075_v26  ;;  %v19088_v54 = vld [vmem:[#allocation3 + $0xd4] sm:$0xf]  ;;  %v14156_v4 = vld [vmem:[#allocation3 + $0x150] ss:$0 sps:$4 sm:$0x11]  }
 0x68f   : > { %v9592_v6 = vsel %vm4492_vm2, %v9525_v13, %v9448_v50  ;;  %v9594_v49 = vsel %vm4492_vm2, %v9527_v18, %v9450_v9  ;;  %v10661_v61 = vor.u32 %v19041_v34, %v19039_v35  ;;  %v12440_v59 = vcombine.low %v19088_v54, %v19088_v54  ;;  %v10390_v8 = vld [vmem:[#allocation3 + $0x134] sm:$0xf]  ;;  %10708 = vrot.lane.b32.xlu1 %v10653_v25, %s14411_s30  ;;  %v14148_v50 = vld [vmem:[#allocation3 + $0x13c] ss:$0 sps:$4 sm:$0x11]  }
 0x690   : > { %10854 = vrot.lane.b32.xlu0 %v10796_v11, %s14412_s11  ;;  %v9787_v28 = vshrl.u32 %v9592_v6, 16  ;;  %v9790_v38 = vshll.u32 %v9592_v6, 16  ;;  %v9794_v46 = vshrl.u32 %v9594_v49, 16  ;;  %v9797_v12 = vshll.u32 %v9594_v49, 16  ;;  %v19094_v11 = vpop.permute.xlu0 %9459  ;;  %v14356_v13 = vld [vmem:[#allocation3 + $0x14c] sm:$0xf] }
 0x691   : > { %v9786_v22 = vsel %vm4557_vm4, %v9778_v40, %v9785_v63  ;;  %v12513_v47 = vcombine.low %v19079_v42, %v19096_v37  ;;  %v19100_v0 = vcombine.low %v10390_v8, %v10391_v21  ;;  %v10671_v17 = vshrl.u32 %v19065_v24, 16  ;;  %v9462_v25 = vpop.permute.xlu1 %9461 }
 0x692   : > { %v9789_v35 = vrot.slane %v9787_v28, 3  ;;  %v9792_v34 = vrot.slane %v9790_v38, 4  ;;  %v9796_v48 = vrot.slane %v9794_v46, 3  ;;  %v9799_v44 = vrot.slane %v9797_v12, 4  ;;  %13306 = vmatmul.mubr.msk.bf16.gmra.mrb[52].mxu1 %vm5771_vm3, %v9786_v22 }
 0x693   : > { %v9530_v27 = vsel %vm4411_vm1, %v12509_v39, %v9298_v57  ;;  %v9532_v32 = vsel %vm4411_vm1, %v12510_v33, %v9298_v57  ;;  %v10674_v51 = vshll.u32 %v19065_v24, 16  ;;  %v19116_v15 = vcombine.low %v10396_v55, %v10397_v36  ;;  %10856 = vrot.lane.b32.xlu1 %v19010_v10, %s14412_s11  ;;  %v19128_v10 = vld [vmem:[#allocation3 + $0xe0] sm:$0x8] }
 0x694   : > { %10858 = vrot.lane.b32.xlu0 %v10799_v60, %s14412_s11  ;;  %v9793_v40 = vor.u32 %v9792_v34, %v9789_v35  ;;  %v9800_v29 = vor.u32 %v9799_v44, %v9796_v48  ;;  %v9596_v2 = vsel %vm4492_vm2, %v9530_v27, %v19003_v20  ;;  %v9598_v56 = vsel %vm4492_vm2, %v9532_v32, %v19037_v19  ;;  %v9456_v60 = vpop.permute.xlu0 %9455 }
 0x695   : > { %v9802_v39 = vshrl.u32 %v9596_v2, 16  ;;  %v9805_v58 = vshll.u32 %v9596_v2, 16  ;;  %v9809_v33 = vshrl.u32 %v9598_v56, 16  ;;  %v9812_v7 = vshll.u32 %v9598_v56, 16 }
 0x696   : > { %v9801_v63 = vsel %vm4557_vm4, %v9793_v40, %v9800_v29  ;;  %v12514_v18 = vcombine.low %v14356_v13, %v14356_v13  ;;  %v10805_v9 = vrot.slane %v19100_v0, 5  ;;  %v10806_v21 = vrot.slane %v14148_v50, 5 }
 0x697   : > { %v9804_v20 = vrot.slane %v9802_v39, 3  ;;  %v9807_v6 = vrot.slane %v9805_v58, 4  ;;  %v9811_v49 = vrot.slane %v9809_v33, 3  ;;  %v9814_v19 = vrot.slane %v9812_v7, 4  ;;  %13309 = vmatprep.mubr.msk.bf16.mxu1 %vm5771_vm3, %v9801_v63  ;;  %10860 = vrot.lane.b32.xlu1 %v19046_v53, %s14412_s11 }
 0x698   : > { %10710 = vrot.lane.b32.xlu0 %v10661_v61, %s14411_s30  ;;  %v10804_v8 = vsel %vm4298_vm13, %v10802_v30, %v10803_v14  ;;  %v10673_v55 = vrot.slane %v10671_v17, 4  ;;  %v10663_v28 = vshrl.u32 %v19100_v0, 16  ;;  %v10666_v38 = vshll.u32 %v19100_v0, 16  ;;  %v9300_v36 = vpop.permute.xlu0 %9299  ;;  %v9458_v14 = vpop.permute.xlu1 %9457  ;;  %v14357_v0 = vld [vmem:[#allocation3 + $0xe4] sm:$0xf] }
 0x699   : > { %v9808_v46 = vor.u32 %v9807_v6, %v9804_v20  ;;  %v9815_v12 = vor.u32 %v9814_v19, %v9811_v49  ;;  %v10676_v61 = vrot.slane %v10674_v51, 5  ;;  %v10679_v22 = vshrl.u32 %v19116_v15, 16 }
 0x69a   : > { %v9535_v23 = vsel %vm4411_vm1, %v12511_v16, %v9300_v36  ;;  %v9537_v53 = vsel %vm4411_vm1, %v12512_v41, %v9300_v36  ;;  %v10807_v50 = vsel %vm4298_vm13, %v10805_v9, %v10806_v21  ;;  %v12441_v17 = vcombine.low %v19128_v10, %v14357_v0  ;;  %v14358_v21 = vld [vmem:[#allocation3 + $0xe8] sm:$0xf] }
 0x69b   : > { %v9600_v35 = vsel %vm4492_vm2, %v9535_v23, %v9456_v60  ;;  %v9602_v34 = vsel %vm4492_vm2, %v9537_v53, %v9458_v14  ;;  %v9816_v62 = vsel %vm4557_vm4, %v9808_v46, %v9815_v12  ;;  %v10682_v1 = vshll.u32 %v19116_v15, 16  ;;  %10864 = vrot.lane.b32.xlu1 %v10804_v8, %s14412_s11  ;;  %v14160_v23 = vld [vmem:[#allocation3 + $0x164] ss:$0 sps:$4 sm:$0x11]  }
 0x69c   : > { %10862 = vrot.lane.b32.xlu0 %v10802_v30, %s14412_s11  ;;  %v9817_v3 = vshrl.u32 %v9600_v35, 16  ;;  %v9820_v41 = vshll.u32 %v9600_v35, 16  ;;  %v9824_v16 = vshrl.u32 %v9602_v34, 16  ;;  %v9827_v48 = vshll.u32 %v9602_v34, 16  ;;  %13310 = vmatmul.mubr.msk.bf16.gmra.mrb[56].mxu1 %vm5771_vm3, %v9816_v62  ;;  %v8368_v44 = vpop.permute.xlu0 %8367  ;;  %v9302_v2 = vpop.permute.xlu1 %9301 }
 0x69d   : > { %v10677_v57 = vor.u32 %v10676_v61, %v10673_v55  ;;  %v10665_v27 = vrot.slane %v10663_v28, 4  ;;  %v10668_v32 = vrot.slane %v10666_v38, 5  ;;  %v10681_v51 = vrot.slane %v10679_v22, 4 }
 0x69e   : > { %v9819_v40 = vrot.slane %v9817_v3, 3  ;;  %v9822_v45 = vrot.slane %v9820_v41, 4  ;;  %v9826_v30 = vrot.slane %v9824_v16, 3  ;;  %v9829_v29 = vrot.slane %v9827_v48, 4  ;;  %v19932_v16 = vld [vmem:[#allocation13_spill] sm:$0xff] }
 0x69f   : > { %v8591_v56 = vsel %vm4411_vm1, %v12439_v52, %v8368_v44  ;;  %v9540_v39 = vsel %vm4411_vm1, %v12513_v47, %v9302_v2  ;;  %v9542_v58 = vsel %vm4411_vm1, %v12514_v18, %v9302_v2  ;;  %v10684_v33 = vrot.slane %v10682_v1, 5  ;;  %10868 = vrot.lane.b32.xlu1 %v10807_v50, %s14412_s11 }
 0x6a0   : > { %10866 = vrot.lane.b32.xlu0 %v10805_v9, %s14412_s11  ;;  %v9823_v7 = vor.u32 %v9822_v45, %v9819_v40  ;;  %v9830_v60 = vor.u32 %v9829_v29, %v9826_v30  ;;  %v9604_v63 = vsel %vm4492_vm2, %v9540_v39, %v19094_v11  ;;  %v9606_v13 = vsel %vm4492_vm2, %v9542_v58, %v9462_v25  ;;  %v8516_v47 = vpop.permute.xlu0 %8515  ;;  %v8370_v20 = vpop.permute.xlu1 %8369  ;;  %v14359_v29 = vld [vmem:[#allocation3 + $0xf8] sm:$0xf] }
 0x6a1   : > { %v9832_v26 = vshrl.u32 %v9604_v63, 16  ;;  %v9835_v52 = vshll.u32 %v9604_v63, 16  ;;  %v9839_v42 = vshrl.u32 %v9606_v13, 16  ;;  %v9842_v37 = vshll.u32 %v9606_v13, 16 }
 0x6a2   : > { %v8660_v18 = vsel %vm4492_vm2, %v8591_v56, %v8516_v47  ;;  %v12442_v9 = vcombine.low %v14358_v21, %v14358_v21  ;;  %v9831_v6 = vsel %vm4557_vm4, %v9823_v7, %v9830_v60  ;;  %v10669_v49 = vor.u32 %v10668_v32, %v10665_v27 }
 0x6a3   : > { %v9834_v19 = vrot.slane %v9832_v26, 3  ;;  %v9837_v11 = vrot.slane %v9835_v52, 4  ;;  %v9841_v10 = vrot.slane %v9839_v42, 3  ;;  %v9844_v25 = vrot.slane %v9842_v37, 4  ;;  %13313 = vmatprep.mubr.msk.bf16.mxu1 %vm5771_vm3, %v9831_v6  ;;  %v8050_v26 = vld [vmem:[#allocation3 + $0x108] sm:$0x8] }
 0x6a4   : > { %10714 = vrot.lane.b32.xlu0 %v10677_v57, %s14411_s30  ;;  %v8833_v8 = vshrl.u32 %v8660_v18, 16  ;;  %v8836_v55 = vshll.u32 %v8660_v18, 16  ;;  %10712 = vrot.lane.b32.xlu1 %v10669_v49, %s14411_s30  ;;  %v10685_v28 = vor.u32 %v10684_v33, %v10681_v51  ;;  %v10809_v38 = vrot.slane %v14156_v4, 5  ;;  %v8520_v61 = vpop.permute.xlu0 %8519  ;;  %v8518_v0 = vpop.permute.xlu1 %8517 }
 0x6a5   : > { %v9838_v46 = vor.u32 %v9837_v11, %v9834_v19  ;;  %v9845_v12 = vor.u32 %v9844_v25, %v9841_v10  ;;  %v8596_v36 = vsel %vm4411_vm1, %v12441_v17, %v8370_v20  ;;  %v10808_v22 = vrot.slane %v19065_v24, 5  ;;  %v8047_v17 = vld [vmem:[#allocation3 + $0xf4] sm:$0x8]  ;;  %v14360_v11 = vld [vmem:[#allocation3 + $0x10c] sm:$0xf] }
 0x6a6   : > { %v8593_v53 = vsel %vm4411_vm1, %v12440_v59, %v8368_v44  ;;  %v8835_v14 = vrot.slane %v8833_v8, 3  ;;  %v8664_v50 = vsel %vm4492_vm2, %v8596_v36, %v8520_v61  ;;  %v10811_v35 = vrot.slane %v19116_v15, 5  ;;  %v19931_v59 = vld [vmem:[#allocation14_spill] sm:$0xff]  ;;  %v19934_v15 = vld [vmem:[#allocation12_spill] sm:$0xff]  ;;  %v19935_v44 = vld [vmem:[#allocation11_spill] sm:$0xff] }
 0x6a7   : > { %v8838_v34 = vrot.slane %v8836_v55, 4  ;;  %v8848_v62 = vshrl.u32 %v8664_v50, 16  ;;  %v8662_v1 = vsel %vm4492_vm2, %v8593_v53, %v8518_v0  ;;  %v9846_v24 = vsel %vm4557_vm4, %v9838_v46, %v9845_v12  ;;  %v14361_v8 = vld [vmem:[#allocation3 + $0xfc] sm:$0xf]  ;;  %v14362_v12 = vld [vmem:[%s19454_s8 + $0x60] sm:$0xff]   ;;  %v19938_v61 = vld [vmem:[#allocation28_spill] sm:$0xff] }
 0x6a8   : > { %10870 = vrot.lane.b32.xlu0 %v10808_v22, %s14412_s11  ;;  %v8851_v3 = vshll.u32 %v8664_v50, 16  ;;  %v8840_v41 = vshrl.u32 %v8662_v1, 16  ;;  %v8843_v54 = vshll.u32 %v8662_v1, 16  ;;  %13314 = vmatmul.mubr.msk.bf16.gmra.mrb[60].mxu1 %vm5771_vm3, %v9846_v24  ;;  %v19933_v48 = vor.u32 %v19931_v59, %v19932_v16  ;;  %v8372_v32 = vpop.permute.xlu0 %8371  ;;  %v8522_v56 = vpop.permute.xlu1 %8521  ;;  %v8053_v1 = vld [vmem:[#allocation3 + $0x11c] sm:$0x8] }
 0x6a9   : > { %10716 = vrot.lane.b32.xlu1 %v10685_v28, %s14411_s30  ;;  %v19936_v57 = vor.u32 %v19934_v15, %v19935_v44  ;;  %v10812_v51 = vrot.slane %v14160_v23, 5  ;;  %v8598_v40 = vsel %vm4411_vm1, %v12442_v9, %v8370_v20  ;;  %v12443_v2 = vcombine.low %v8047_v17, %v14359_v29  ;;  %v14163_v20 = vld [vmem:[%s19454_s8 + $0x68] sm:$0xff]   ;;  %v14363_v24 = vld [vmem:[#allocation3 + $0x110] sm:$0xf]  ;;  %v14364_v44 = vld [vmem:[#allocation3 + $0x120] sm:$0xf] }
 0x6aa   : > { %v8842_v45 = vrot.slane %v8840_v41, 3  ;;  %v8845_v30 = vrot.slane %v8843_v54, 4  ;;  %v8839_v39 = vor.u32 %v8838_v34, %v8835_v14  ;;  %v8850_v58 = vrot.slane %v8848_v62, 3  ;;  %v14168_v14 = vld [vmem:[%s19454_s8 + $0x70] sm:$0xff]  }
 0x6ab   : > { %v8697_v27 = vsel %vm4557_vm4, %v19936_v57, %v19933_v48  ;;  %v8666_v33 = vsel %vm4492_vm2, %v8598_v40, %v8522_v56  ;;  %v10810_v7 = vsel %vm4298_vm13, %v10808_v22, %v10809_v38  ;;  %v8853_v60 = vrot.slane %v8851_v3, 4  ;;  %v19937_v38 = vld [vmem:[#allocation29_spill] sm:$0xff] }
 0x6ac   : > { %13329 = vmatprep.mubr.msk.bf16.mxu1 %vm5771_vm3, %v8697_v27  ;;  %10874 = vrot.lane.b32.xlu0 %v10811_v35, %s14412_s11  ;;  %v8846_v63 = vor.u32 %v8845_v30, %v8842_v45  ;;  %v8855_v13 = vshrl.u32 %v8666_v33, 16  ;;  %v8858_v4 = vshll.u32 %v8666_v33, 16  ;;  %v8601_v52 = vsel %vm4411_vm1, %v12443_v2, %v8372_v32  ;;  %v8524_v42 = vpop.permute.xlu0 %8523  ;;  %v8374_v9 = vpop.permute.xlu1 %8373  ;;  %v14365_v45 = vld [vmem:[#allocation3 + $0x124] sm:$0xf]  ;;  %v19939_v33 = vld [vmem:[#allocation33_spill] sm:$0xff] }
 0x6ad   : > { %10872 = vrot.lane.b32.xlu1 %v10810_v7, %s14412_s11  ;;  %v10813_v37 = vsel %vm4298_vm13, %v10811_v35, %v10812_v51  ;;  %v8668_v21 = vsel %vm4492_vm2, %v8601_v52, %v8524_v42  ;;  %v12445_v10 = vcombine.low %v8050_v26, %v14360_v11  ;;  %v8854_v25 = vor.u32 %v8853_v60, %v8850_v58 }
 0x6ae   : > { %v8857_v47 = vrot.slane %v8855_v13, 3  ;;  %v8860_v18 = vrot.slane %v8858_v4, 4  ;;  %v19211_v6 = vsel %vm4557_vm4, %v8839_v39, %v8846_v63  ;;  %v8863_v49 = vshrl.u32 %v8668_v21, 16  ;;  %v19940_v13 = vld [vmem:[#allocation34_spill] sm:$0xff] }
 0x6af   : > { %v8866_v19 = vshll.u32 %v8668_v21, 16  ;;  %v12444_v55 = vcombine.low %v14361_v8, %v14361_v8  ;;  %v8606_v46 = vsel %vm4411_vm1, %v12445_v10, %v8374_v9  ;;  %v12446_v17 = vcombine.low %v14363_v24, %v14363_v24 }
 0x6b0   : > { %v8861_v28 = vor.u32 %v8860_v18, %v8857_v47  ;;  %13330 = vmatmul.mubr.msk.bf16.vlgmr.msra.gmra.mrb[32].mxu1 %vm5771_vm3, %v19937_v38  ;;  %v8528_v36 = vpop.permute.xlu0 %8527  ;;  %v8526_v53 = vpop.permute.xlu1 %8525  ;;  %v8865_v0 = vrot.slane %v8863_v49, 3  ;;  %v12447_v57 = vcombine.low %v8053_v1, %v14364_v44  ;;  %v12448_v30 = vcombine.low %v14365_v45, %v14365_v45  ;;  %v14176_v47 = vld [vmem:[%s19454_s8 + $0x80] sm:$0xff]  }
 0x6b1   : > { %10876 = vrot.lane.b32.xlu1 %v10813_v37, %s14412_s11  ;;  %13362 = vmatpush3.bf16.msra.mxu1 %v14362_v12  ;;  %v8603_v22 = vsel %vm4411_vm1, %v12444_v55, %v8372_v32  ;;  %v8672_v23 = vsel %vm4492_vm2, %v8606_v46, %v8528_v36  ;;  %v8868_v35 = vrot.slane %v8866_v19, 4  ;;  %v8608_v16 = vsel %vm4411_vm1, %v12446_v17, %v8374_v9  ;;  %v14173_v32 = vld [vmem:[%s19454_s8 + $0x78] sm:$0xff]   ;;  %v14181_v12 = vld [vmem:[%s19454_s8 + $0x88] sm:$0xff]   ;;  %v14367_v1 = vld [vmem:[#allocation3 + $0x34] sm:$0xf] }
 0x6b2   : > { %13333 = vmatprep.mubr.msk.bf16.mxu1 %vm5771_vm3, %v19938_v61  ;;  %13363 = vmatprep.subr.bf16.mxu1 %v14163_v20  ;;  %v19228_v50 = vsel %vm4557_vm4, %v8854_v25, %v8861_v28  ;;  %v8878_v34 = vshrl.u32 %v8672_v23, 16  ;;  %v8670_v62 = vsel %vm4492_vm2, %v8603_v22, %v8526_v53  ;;  %v8881_v3 = vshll.u32 %v8672_v23, 16  ;;  %v19941_v22 = vld [vmem:[#allocation15_spill] sm:$0xff]  ;;  %v10350_v23 = vld [vmem:[#allocation3 + $0x2c] sm:$0x8]  ;;  %v19942_v53 = vld [vmem:[#allocation18_spill] sm:$0xff] }
 0x6b3   : > { %v8870_v41 = vshrl.u32 %v8670_v62, 16  ;;  %v8873_v54 = vshll.u32 %v8670_v62, 16  ;;  %v8869_v51 = vor.u32 %v8868_v35, %v8865_v0  ;;  %v12604_v24 = vcombine.low %v14367_v1, %v14367_v1  ;;  %v10353_v17 = vld [vmem:[#allocation3 + $0x40] sm:$0x8] }
 0x6b4   : > { %v8376_v59 = vpop.permute.xlu0 %8375  ;;  %v8530_v27 = vpop.permute.xlu1 %8529  ;;  %v8880_v40 = vrot.slane %v8878_v34, 3  ;;  %v8883_v2 = vrot.slane %v8881_v3, 4  ;;  %v14366_v34 = vld [vmem:[#allocation3 + $0x30] sm:$0xf] }
 0x6b5   : > { %13364 = vmatpush3.bf16.msra.mxu1 %v14163_v20  ;;  %v8872_v48 = vrot.slane %v8870_v41, 3  ;;  %v8875_v15 = vrot.slane %v8873_v54, 4  ;;  %v8674_v29 = vsel %vm4492_vm2, %v8608_v16, %v8530_v27  ;;  %v8611_v7 = vsel %vm4411_vm1, %v12447_v57, %v8376_v59 }
 0x6b6   : > { %13365 = vmatprep.subr.bf16.mxu1 %v14168_v14  ;;  %v8885_v39 = vshrl.u32 %v8674_v29, 16  ;;  %v8888_v58 = vshll.u32 %v8674_v29, 16  ;;  %v8613_v60 = vsel %vm4411_vm1, %v12448_v30, %v8376_v59  ;;  %v8884_v20 = vor.u32 %v8883_v2, %v8880_v40 }
 0x6b7   : > { %v8876_v56 = vor.u32 %v8875_v15, %v8872_v48  ;;  %v12603_v62 = vcombine.low %v10350_v23, %v14366_v34  ;;  %v14368_v48 = vld [vmem:[#allocation3 + $0x44] sm:$0xf]  ;;  %v14372_v34 = vld [vmem:[#allocation3 + $0x6c] sm:$0xf] }
 0x6b8   : > { %13334 = vmatmul.mubr.msk.bf16.gmra.mrb[36].mxu1 %vm5771_vm3, %v19939_v33  ;;  %v8532_v63 = vpop.permute.xlu0 %8531  ;;  %v8887_v4 = vrot.slane %v8885_v39, 3  ;;  %v8890_v26 = vrot.slane %v8888_v58, 4  ;;  %v8534_v42 = vpop.permute.xlu1 %8533  ;;  %v12605_v15 = vcombine.low %v10353_v17, %v14368_v48  ;;  %v14373_v17 = vld [vmem:[#allocation3 + $0x70] sm:$0xf] }
 0x6b9   : > { %13337 = vmatprep.mubr.msk.bf16.mxu1 %vm5771_vm3, %v19940_v13  ;;  %13366 = vmatpush3.bf16.msra.mxu1 %v14168_v14  ;;  %v8676_v52 = vsel %vm4492_vm2, %v8611_v7, %v8532_v63  ;;  %v19244_v37 = vsel %vm4557_vm4, %v8869_v51, %v8876_v56  ;;  %v8678_v9 = vsel %vm4492_vm2, %v8613_v60, %v8534_v42 }
 0x6ba   : > { %13367 = vmatprep.subr.bf16.mxu1 %v14173_v32  ;;  %v8893_v18 = vshrl.u32 %v8676_v52, 16  ;;  %v8896_v21 = vshll.u32 %v8676_v52, 16  ;;  %v8891_v49 = vor.u32 %v8890_v26, %v8887_v4  ;;  %v8900_v19 = vshrl.u32 %v8678_v9, 16 }
 0x6bb   : > { %v8903_v11 = vshll.u32 %v8678_v9, 16 }
 0x6bc   : > { %v8895_v10 = vrot.slane %v8893_v18, 3  ;;  %v8898_v25 = vrot.slane %v8896_v21, 4  ;;  %v19250_v8 = vpop.permute.xlu0 %8535  ;;  %v8902_v55 = vrot.slane %v8900_v19, 3  ;;  %v19252_v38 = vpop.permute.xlu1 %8537  ;;  %v19255_v46 = vsel %vm4557_vm4, %v8884_v20, %v8891_v49 }
 0x6bd   : > { %13368 = vmatpush3.bf16.msra.mxu1 %v14173_v32  ;;  %v8905_v28 = vrot.slane %v8903_v11, 4  ;;  %v14369_v32 = vld [vmem:[#allocation3 + $0x48] sm:$0xf]  ;;  %v14370_v11 = vld [vmem:[#allocation3 + $0x58] sm:$0xf] }
 0x6be   : > { %13369 = vmatprep.subr.bf16.mxu1 %v14176_v47  ;;  %v8899_v36 = vor.u32 %v8898_v25, %v8895_v10  ;;  %v12606_v51 = vcombine.low %v14369_v32, %v14369_v32 }
 0x6bf   : > { %v8906_v61 = vor.u32 %v8905_v28, %v8902_v55  ;;  %v14371_v28 = vld [vmem:[#allocation3 + $0x5c] sm:$0xf] }
 0x6c0   : > { %13338 = vmatmul.mubr.msk.bf16.gmra.mrb[40].mxu1 %vm5771_vm3, %v19941_v22  ;;  %v10687_v14 = vpop.permute.xlu0 %10686  ;;  %v10689_v0 = vpop.permute.xlu1 %10688 }
 0x6c1   : > { %13341 = vmatprep.mubr.msk.bf16.mxu1 %vm5771_vm3, %v19942_v53  ;;  %13370 = vmatpush3.bf16.msra.mxu1 %v14176_v47  ;;  %v19265_v35 = vsel %vm4557_vm4, %v8899_v36, %v8906_v61  ;;  %v10880_v3 = vsel %vm4411_vm1, %v12603_v62, %v10687_v14  ;;  %v10882_v54 = vsel %vm4411_vm1, %v12604_v24, %v10687_v14  ;;  %v10356_v47 = vld [vmem:[#allocation3 + $0x54] sm:$0x8]  ;;  %v10359_v36 = vld [vmem:[#allocation3 + $0x68] sm:$0x8] }
 0x6c2   : > { %13371 = vmatprep.subr.bf16.mxu1 %v14181_v12  ;;  %v10885_v30 = vsel %vm4411_vm1, %v12605_v15, %v10689_v0  ;;  %v10887_v39 = vsel %vm4411_vm1, %v12606_v51, %v10689_v0  ;;  %v12607_v10 = vcombine.low %v10356_v47, %v14370_v11  ;;  %v12609_v62 = vcombine.low %v10359_v36, %v14372_v34  ;;  %v14378_v36 = vld [vmem:[#allocation3 + $0x84] sm:$0xf] }
 0x6c4   : > { %v10815_v41 = vpop.permute.xlu0 %10814  ;;  %v10817_v16 = vpop.permute.xlu1 %10816 }
 0x6c5   : > { %13372 = vmatpush3.bf16.msra.mxu1 %v14181_v12  ;;  %v10959_v59 = vsel %vm4492_vm2, %v10880_v3, %v10815_v41  ;;  %v10961_v27 = vsel %vm4492_vm2, %v10882_v54, %v10817_v16  ;;  %v12608_v12 = vcombine.low %v14371_v28, %v14371_v28  ;;  %v12610_v3 = vcombine.low %v14373_v17, %v14373_v17 }
 0x6c6   : > { %v11022_v44 = vshrl.u32 %v10959_v59, 16  ;;  %v11025_v57 = vshll.u32 %v10959_v59, 16  ;;  %v11029_v40 = vshrl.u32 %v10961_v27, 16  ;;  %v11032_v45 = vshll.u32 %v10961_v27, 16 }
 0x6c8   : > { %13342 = vmatmul.mubr.msk.bf16.gmra.mrb[44].mxu1 %vm5771_vm3, %v18900_v31  ;;  %v11024_v29 = vrot.slane %v11022_v44, 3  ;;  %v11027_v2 = vrot.slane %v11025_v57, 4  ;;  %v10819_v56 = vpop.permute.xlu0 %10818  ;;  %v11031_v58 = vrot.slane %v11029_v40, 3  ;;  %v11034_v33 = vrot.slane %v11032_v45, 4  ;;  %v10821_v60 = vpop.permute.xlu1 %10820 }
 0x6c9   : > { %13345 = vmatprep.mubr.msk.bf16.mxu1 %vm5771_vm3, %v18841_v5  ;;  %v10963_v7 = vsel %vm4492_vm2, %v10885_v30, %v10819_v56  ;;  %v10965_v31 = vsel %vm4492_vm2, %v10887_v39, %v10821_v60  ;;  %v10362_v39 = vld [vmem:[#allocation3 + $0x7c] sm:$0x8] }
 0x6ca   : > { %v11028_v63 = vor.u32 %v11027_v2, %v11024_v29  ;;  %v11037_v13 = vshrl.u32 %v10963_v7, 16  ;;  %v11040_v4 = vshll.u32 %v10963_v7, 16  ;;  %v11035_v26 = vor.u32 %v11034_v33, %v11031_v58 }
 0x6cb   : > { %v11044_v52 = vshrl.u32 %v10965_v31, 16  ;;  %v11047_v42 = vshll.u32 %v10965_v31, 16 }
 0x6cc   : > { %v11039_v18 = vrot.slane %v11037_v13, 3  ;;  %v11042_v21 = vrot.slane %v11040_v4, 4  ;;  %v10691_v5 = vpop.permute.xlu0 %10690  ;;  %v10693_v49 = vpop.permute.xlu1 %10692  ;;  %v19280_v25 = vsel %vm4557_vm4, %v11028_v63, %v11035_v26  ;;  %v8056_v4 = vld [vmem:[#allocation3 + $0x130] sm:$0x8]  ;;  %v14374_v26 = vld [vmem:[#allocation3 + $0x80] sm:$0xf] }
 0x6cd   : > { %v11046_v9 = vrot.slane %v11044_v52, 3  ;;  %v11049_v20 = vrot.slane %v11047_v42, 4  ;;  %v10890_v61 = vsel %vm4411_vm1, %v12607_v10, %v10691_v5  ;;  %v10892_v23 = vsel %vm4411_vm1, %v12608_v12, %v10691_v5  ;;  %v14375_v5 = vld [vmem:[#allocation3 + $0x138] sm:$0xf]  ;;  %v14377_v10 = vld [vmem:[#allocation3 + $0x94] sm:$0xf] }
 0x6ce   : > { %v11043_v19 = vor.u32 %v11042_v21, %v11039_v18  ;;  %v10897_v15 = vsel %vm4411_vm1, %v12610_v3, %v10693_v49  ;;  %v12611_v52 = vcombine.low %v10362_v39, %v14374_v26  ;;  %v10365_v18 = vld [vmem:[#allocation3 + $0x90] sm:$0x8] }
 0x6cf   : > { %v11050_v55 = vor.u32 %v11049_v20, %v11046_v9  ;;  %v12450_v9 = vcombine.low %v14375_v5, %v14375_v5  ;;  %v14376_v20 = vld [vmem:[#allocation3 + $0x134] sm:$0xf] }
 0x6d0   : > { %13346 = vmatmul.mubr.msk.bf16.gmra.mrb[48].mxu1 %vm5771_vm3, %v19015_v43  ;;  %v10823_v22 = vpop.permute.xlu0 %10822  ;;  %v10825_v14 = vpop.permute.xlu1 %10824 }
 0x6d1   : > { %13349 = vmatprep.mubr.msk.bf16.mxu1 %vm5771_vm3, %v19211_v6  ;;  %v10967_v53 = vsel %vm4492_vm2, %v10890_v61, %v10823_v22  ;;  %v19290_v0 = vsel %vm4557_vm4, %v11043_v19, %v11050_v55  ;;  %v10969_v43 = vsel %vm4492_vm2, %v10892_v23, %v10825_v14  ;;  %v10895_v6 = vsel %vm4411_vm1, %v12609_v62, %v10693_v49  ;;  %v14379_v22 = vld [vmem:[#allocation3 + $0x98] sm:$0xf] }
 0x6d2   : > { %v11052_v1 = vshrl.u32 %v10967_v53, 16  ;;  %v11055_v24 = vshll.u32 %v10967_v53, 16  ;;  %v11059_v41 = vshrl.u32 %v10969_v43, 16  ;;  %v11062_v54 = vshll.u32 %v10969_v43, 16 }
 0x6d3   : > { %v12613_v55 = vcombine.low %v10365_v18, %v14377_v10  ;;  %v12612_v61 = vcombine.low %v14378_v36, %v14378_v36  ;;  %v12614_v23 = vcombine.low %v14379_v22, %v14379_v22 }
 0x6d4   : > { %v11054_v59 = vrot.slane %v11052_v1, 3  ;;  %v11057_v16 = vrot.slane %v11055_v24, 4  ;;  %v10827_v48 = vpop.permute.xlu0 %10826  ;;  %v11061_v44 = vrot.slane %v11059_v41, 3  ;;  %v11064_v57 = vrot.slane %v11062_v54, 4  ;;  %v10829_v32 = vpop.permute.xlu1 %10828 }
 0x6d5   : > { %v10971_v27 = vsel %vm4492_vm2, %v10895_v6, %v10827_v48  ;;  %v10973_v30 = vsel %vm4492_vm2, %v10897_v15, %v10829_v32  ;;  %v10368_v6 = vld [vmem:[#allocation3 + $0xa4] sm:$0x8] }
 0x6d6   : > { %v11058_v51 = vor.u32 %v11057_v16, %v11054_v59  ;;  %v11067_v40 = vshrl.u32 %v10971_v27, 16  ;;  %v11070_v45 = vshll.u32 %v10971_v27, 16  ;;  %v11065_v29 = vor.u32 %v11064_v57, %v11061_v44 }
 0x6d7   : > { %v11074_v2 = vshrl.u32 %v10973_v30, 16  ;;  %v11077_v56 = vshll.u32 %v10973_v30, 16 }
 0x6d8   : > { %13350 = vmatmul.mubr.msk.bf16.gmra.mrb[52].mxu1 %vm5771_vm3, %v19228_v50  ;;  %v11069_v58 = vrot.slane %v11067_v40, 3  ;;  %v11072_v33 = vrot.slane %v11070_v45, 4  ;;  %v10695_v7 = vpop.permute.xlu0 %10694  ;;  %v10697_v13 = vpop.permute.xlu1 %10696  ;;  %v19302_v42 = vsel %vm4557_vm4, %v11058_v51, %v11065_v29  ;;  %v14380_v51 = vld [vmem:[#allocation3 + $0xa8] sm:$0xf] }
 0x6d9   : > { %13353 = vmatprep.mubr.msk.bf16.mxu1 %vm5771_vm3, %v19244_v37  ;;  %v11076_v60 = vrot.slane %v11074_v2, 3  ;;  %v11079_v63 = vrot.slane %v11077_v56, 4  ;;  %v10900_v50 = vsel %vm4411_vm1, %v12611_v52, %v10695_v7  ;;  %v12449_v37 = vcombine.low %v8056_v4, %v14376_v20  ;;  %v10371_v52 = vld [vmem:[#allocation3 + $0xb8] sm:$0x8] }
 0x6da   : > { %v11073_v31 = vor.u32 %v11072_v33, %v11069_v58  ;;  %v10905_v34 = vsel %vm4411_vm1, %v12613_v55, %v10697_v13  ;;  %v12615_v40 = vcombine.low %v10368_v6, %v14380_v51  ;;  %v10907_v30 = vsel %vm4411_vm1, %v12614_v23, %v10697_v13  ;;  %v10374_v6 = vld [vmem:[#allocation3 + $0xcc] sm:$0x8] }
 0x6db   : > { %v11080_v47 = vor.u32 %v11079_v63, %v11076_v60 }
 0x6dc   : > { %v10831_v21 = vpop.permute.xlu0 %10830  ;;  %v8378_v19 = vpop.permute.xlu1 %8377 }
 0x6dd   : > { %v10975_v49 = vsel %vm4492_vm2, %v10900_v50, %v10831_v21  ;;  %v19307_v11 = vsel %vm4557_vm4, %v11073_v31, %v11080_v47  ;;  %v8616_v28 = vsel %vm4411_vm1, %v12449_v37, %v8378_v19  ;;  %v8618_v12 = vsel %vm4411_vm1, %v12450_v9, %v8378_v19  ;;  %v14381_v19 = vld [vmem:[#allocation3 + $0xbc] sm:$0xf] }
 0x6de   : > { %v8680_v53 = vsel %vm4492_vm2, %v8616_v28, %v19250_v8  ;;  %v8682_v14 = vsel %vm4492_vm2, %v8618_v12, %v19252_v38  ;;  %v11082_v62 = vshrl.u32 %v10975_v49, 16  ;;  %v11085_v17 = vshll.u32 %v10975_v49, 16  ;;  %v14382_v28 = vld [vmem:[#allocation3 + $0xac] sm:$0xf] }
 0x6df   : > { %v8908_v1 = vshrl.u32 %v8680_v53, 16  ;;  %v8911_v24 = vshll.u32 %v8680_v53, 16  ;;  %v8915_v3 = vshrl.u32 %v8682_v14, 16  ;;  %v8918_v41 = vshll.u32 %v8682_v14, 16 }
 0x6e0   : > { %13354 = vmatmul.mubr.msk.bf16.gmra.mrb[56].mxu1 %vm5771_vm3, %v19255_v46  ;;  %v10835_v43 = vpop.permute.xlu0 %10834  ;;  %v10833_v54 = vpop.permute.xlu1 %10832  ;;  %v10902_v38 = vsel %vm4411_vm1, %v12612_v61, %v10695_v7  ;;  %v11084_v29 = vrot.slane %v11082_v62, 3  ;;  %v11087_v2 = vrot.slane %v11085_v17, 4  ;;  %v12617_v10 = vcombine.low %v10371_v52, %v14381_v19  ;;  %v14383_v17 = vld [vmem:[#allocation3 + $0xc0] sm:$0xf]  ;;  %v14387_v19 = vld [vmem:[#allocation3 + $0xe8] sm:$0xf] }
 0x6e1   : > { %13357 = vmatprep.mubr.msk.bf16.mxu1 %vm5771_vm3, %v19265_v35  ;;  %v10979_v8 = vsel %vm4492_vm2, %v10905_v34, %v10835_v43  ;;  %v8910_v59 = vrot.slane %v8908_v1, 3  ;;  %v8913_v46 = vrot.slane %v8911_v24, 4  ;;  %v8917_v48 = vrot.slane %v8915_v3, 3 }
 0x6e2   : > { %v11097_v16 = vshrl.u32 %v10979_v8, 16  ;;  %v8920_v15 = vrot.slane %v8918_v41, 4  ;;  %v11100_v44 = vshll.u32 %v10979_v8, 16  ;;  %v10977_v57 = vsel %vm4492_vm2, %v10902_v38, %v10833_v54 }
 0x6e3   : > { %v8914_v27 = vor.u32 %v8913_v46, %v8910_v59  ;;  %v11089_v35 = vshrl.u32 %v10977_v57, 16  ;;  %v11092_v32 = vshll.u32 %v10977_v57, 16  ;;  %v11088_v50 = vor.u32 %v11087_v2, %v11084_v29  ;;  %v14384_v57 = vld [vmem:[#allocation3 + $0xd0] sm:$0xf] }
 0x6e4   : > { %v10699_v45 = vpop.permute.xlu0 %10698  ;;  %v8921_v56 = vor.u32 %v8920_v15, %v8917_v48  ;;  %v10837_v39 = vpop.permute.xlu1 %10836  ;;  %v11099_v58 = vrot.slane %v11097_v16, 3  ;;  %v11102_v63 = vrot.slane %v11100_v44, 4  ;;  %v12616_v12 = vcombine.low %v14382_v28, %v14382_v28 }
 0x6e5   : > { %v11091_v33 = vrot.slane %v11089_v35, 3  ;;  %v11094_v7 = vrot.slane %v11092_v32, 4  ;;  %v10981_v60 = vsel %vm4492_vm2, %v10907_v30, %v10837_v39  ;;  %v10910_v18 = vsel %vm4411_vm1, %v12615_v40, %v10699_v45 }
 0x6e6   : > { %v11104_v4 = vshrl.u32 %v10981_v60, 16  ;;  %v11107_v31 = vshll.u32 %v10981_v60, 16  ;;  %v8922_v26 = vsel %vm4557_vm4, %v8914_v27, %v8921_v56  ;;  %v11103_v55 = vor.u32 %v11102_v63, %v11099_v58  ;;  %v14385_v60 = vld [vmem:[#allocation3 + $0xe4] sm:$0xf] }
 0x6e7   : > { %v11095_v47 = vor.u32 %v11094_v7, %v11091_v33  ;;  %v10912_v53 = vsel %vm4411_vm1, %v12616_v12, %v10699_v45  ;;  %v12618_v3 = vcombine.low %v14383_v17, %v14383_v17  ;;  %v12619_v27 = vcombine.low %v10374_v6, %v14384_v57  ;;  %v10380_v12 = vld [vmem:[#allocation3 + $0xf4] sm:$0x8]  ;;  %v14389_v57 = vld [vmem:[#allocation3 + $0x10c] sm:$0xf] }
 0x6e8   : > { %13358 = vmatmul.mubr.msk.bf16.gmra.mrb[60].mxu1 %vm5771_vm3, %v8922_v26  ;;  %v10839_v13 = vpop.permute.xlu0 %10838  ;;  %v11106_v21 = vrot.slane %v11104_v4, 3  ;;  %v11109_v5 = vrot.slane %v11107_v31, 4  ;;  %v10701_v20 = vpop.permute.xlu1 %10700  ;;  %v14386_v31 = vld [vmem:[#allocation3 + $0xd4] sm:$0xf] }
 0x6e9   : > { %v10983_v9 = vsel %vm4492_vm2, %v10910_v18, %v10839_v13  ;;  %13373 = vmatprep.mubr.msk.bf16.mxu1 %vm5771_vm3, %v19280_v25  ;;  %v11096_v61 = vsel %vm4557_vm4, %v11088_v50, %v11095_v47  ;;  %v10915_v22 = vsel %vm4411_vm1, %v12617_v10, %v10701_v20  ;;  %v10917_v59 = vsel %vm4411_vm1, %v12618_v3, %v10701_v20 }
 0x6ea   : > { %v11112_v37 = vshrl.u32 %v10983_v9, 16  ;;  %v11115_v49 = vshll.u32 %v10983_v9, 16  ;;  %v11110_v36 = vor.u32 %v11109_v5, %v11106_v21  ;;  %v12620_v26 = vcombine.low %v14386_v31, %v14386_v31 }
 0x6eb   : > { %v12622_v10 = vcombine.low %v14387_v19, %v14387_v19 }
 0x6ec   : > { %v10843_v23 = vpop.permute.xlu0 %10842  ;;  %v10841_v34 = vpop.permute.xlu1 %10840  ;;  %v19336_v25 = vsel %vm4557_vm4, %v11103_v55, %v11110_v36  ;;  %v11114_v62 = vrot.slane %v11112_v37, 3  ;;  %v11117_v1 = vrot.slane %v11115_v49, 4 }
 0x6ed   : > { %v10987_v14 = vsel %vm4492_vm2, %v10915_v22, %v10843_v23  ;;  %v10985_v43 = vsel %vm4492_vm2, %v10912_v53, %v10841_v34 }
 0x6ee   : > { %v11127_v24 = vshrl.u32 %v10987_v14, 16  ;;  %v11130_v41 = vshll.u32 %v10987_v14, 16  ;;  %v11119_v8 = vshrl.u32 %v10985_v43, 16  ;;  %v11122_v54 = vshll.u32 %v10985_v43, 16 }
 0x6ef   : > { %v11118_v15 = vor.u32 %v11117_v1, %v11114_v62  ;;  %v14388_v62 = vld [vmem:[#allocation3 + $0xf8] sm:$0xf] }
 0x6f0   : > { %13374 = vmatmul.mubr.msk.bf16.vlgmr.msra.gmra.mrb[32].mxu1 %vm5771_vm3, %v19290_v0  ;;  %v10703_v38 = vpop.permute.xlu0 %10702  ;;  %v11121_v46 = vrot.slane %v11119_v8, 3  ;;  %v11124_v16 = vrot.slane %v11122_v54, 4  ;;  %v10845_v48 = vpop.permute.xlu1 %10844  ;;  %v11129_v44 = vrot.slane %v11127_v24, 3  ;;  %v11132_v32 = vrot.slane %v11130_v41, 4  ;;  %v10377_v0 = vld [vmem:[#allocation3 + $0xe0] sm:$0x8] }
 0x6f1   : > { %13377 = vmatprep.mubr.msk.bf16.mxu1 %vm5771_vm3, %v19302_v42  ;;  %v10989_v35 = vsel %vm4492_vm2, %v10917_v59, %v10845_v48  ;;  %v10920_v30 = vsel %vm4411_vm1, %v12619_v27, %v10703_v38  ;;  %v12621_v63 = vcombine.low %v10377_v0, %v14385_v60  ;;  %v10922_v13 = vsel %vm4411_vm1, %v12620_v26, %v10703_v38  ;;  %v10383_v8 = vld [vmem:[#allocation3 + $0x108] sm:$0x8] }
 0x6f2   : > { %v11125_v51 = vor.u32 %v11124_v16, %v11121_v46  ;;  %v11134_v40 = vshrl.u32 %v10989_v35, 16  ;;  %v11137_v45 = vshll.u32 %v10989_v35, 16  ;;  %v11133_v4 = vor.u32 %v11132_v32, %v11129_v44  ;;  %v14390_v32 = vld [vmem:[#allocation3 + $0xfc] sm:$0xf] }
 0x6f3   : > { %v12623_v1 = vcombine.low %v10380_v12, %v14388_v62  ;;  %v12625_v27 = vcombine.low %v10383_v8, %v14389_v57 }
 0x6f4   : > { %v11136_v2 = vrot.slane %v11134_v40, 3  ;;  %v11139_v56 = vrot.slane %v11137_v45, 4  ;;  %v10705_v42 = vpop.permute.xlu1 %10704  ;;  %v11126_v58 = vsel %vm4557_vm4, %v11118_v15, %v11125_v51  ;;  %v12624_v51 = vcombine.low %v14390_v32, %v14390_v32  ;;  %v14395_v32 = vld [vmem:[#allocation3 + $0x138] sm:$0xf] }
 0x6f5   : > { %v10847_v29 = vpop.permute.xlu0 %10846  ;;  %v10925_v47 = vsel %vm4411_vm1, %v12621_v63, %v10705_v42  ;;  %v10927_v22 = vsel %vm4411_vm1, %v12622_v10, %v10705_v42 }
 0x6f6   : > { %v10991_v39 = vsel %vm4492_vm2, %v10920_v30, %v10847_v29  ;;  %v11140_v52 = vor.u32 %v11139_v56, %v11136_v2 }
 0x6f7   : > { %v11142_v33 = vshrl.u32 %v10991_v39, 16  ;;  %v11145_v7 = vshll.u32 %v10991_v39, 16 }
 0x6f8   : > { %13378 = vmatmul.mubr.msk.bf16.gmra.mrb[36].mxu1 %vm5771_vm3, %v19307_v11  ;;  %v10849_v21 = vpop.permute.xlu1 %10848  ;;  %v11141_v5 = vsel %vm4557_vm4, %v11133_v4, %v11140_v52 }
 0x6f9   : > { %13381 = vmatprep.mubr.msk.bf16.mxu1 %vm5771_vm3, %v11096_v61  ;;  %v11144_v9 = vrot.slane %v11142_v33, 3  ;;  %v11147_v20 = vrot.slane %v11145_v7, 4  ;;  %v10993_v49 = vsel %vm4492_vm2, %v10922_v13, %v10849_v21  ;;  %v10386_v33 = vld [vmem:[#allocation3 + $0x11c] sm:$0x8]  ;;  %v14391_v7 = vld [vmem:[#allocation3 + $0x110] sm:$0xf] }
 0x6fa   : > { %v10851_v18 = vpop.permute.xlu0 %10850  ;;  %v11149_v28 = vshrl.u32 %v10993_v49, 16  ;;  %v11152_v11 = vshll.u32 %v10993_v49, 16  ;;  %v12626_v60 = vcombine.low %v14391_v7, %v14391_v7  ;;  %v14392_v13 = vld [vmem:[#allocation3 + $0x120] sm:$0xf] }
 0x6fb   : > { %v10995_v50 = vsel %vm4492_vm2, %v10925_v47, %v10851_v18  ;;  %v11148_v14 = vor.u32 %v11147_v20, %v11144_v9 }
 0x6fc   : > { %v11157_v37 = vshrl.u32 %v10995_v50, 16  ;;  %v11160_v55 = vshll.u32 %v10995_v50, 16  ;;  %v11151_v23 = vrot.slane %v11149_v28, 3  ;;  %v11154_v53 = vrot.slane %v11152_v11, 4  ;;  %v10853_v61 = vpop.permute.xlu1 %10852 }
 0x6fd   : > { %v10997_v24 = vsel %vm4492_vm2, %v10927_v22, %v10853_v61  ;;  %v12627_v50 = vcombine.low %v10386_v33, %v14392_v13 }
 0x6fe   : > { %v10707_v36 = vpop.permute.xlu0 %10706  ;;  %v11159_v34 = vrot.slane %v11157_v37, 3  ;;  %v11162_v43 = vrot.slane %v11160_v55, 4  ;;  %v11155_v17 = vor.u32 %v11154_v53, %v11151_v23  ;;  %v11164_v3 = vshrl.u32 %v10997_v24, 16  ;;  %v14393_v37 = vld [vmem:[#allocation3 + $0x124] sm:$0xf] }
 0x6ff   : > { %v11167_v41 = vshll.u32 %v10997_v24, 16  ;;  %v10930_v54 = vsel %vm4411_vm1, %v12623_v1, %v10707_v36  ;;  %v10932_v0 = vsel %vm4411_vm1, %v12624_v51, %v10707_v36  ;;  %v12628_v49 = vcombine.low %v14393_v37, %v14393_v37 }
 0x700   : > { %13382 = vmatmul.mubr.msk.bf16.gmra.mrb[40].mxu1 %vm5771_vm3, %v19336_v25  ;;  %v11166_v38 = vrot.slane %v11164_v3, 3  ;;  %v11156_v48 = vsel %vm4557_vm4, %v11148_v14, %v11155_v17  ;;  %v11163_v35 = vor.u32 %v11162_v43, %v11159_v34  ;;  %v12630_v51 = vcombine.low %v14395_v32, %v14395_v32 }
 0x701   : > { %v11169_v59 = vrot.slane %v11167_v41, 4  ;;  %13385 = vmatprep.mubr.msk.bf16.mxu1 %vm5771_vm3, %v11126_v58  ;;  %v10709_v16 = vpop.permute.xlu1 %10708 }
 0x702   : > { %v10855_v6 = vpop.permute.xlu0 %10854  ;;  %v10935_v25 = vsel %vm4411_vm1, %v12625_v27, %v10709_v16  ;;  %v10937_v52 = vsel %vm4411_vm1, %v12626_v60, %v10709_v16  ;;  %v14394_v27 = vld [vmem:[#allocation3 + $0x134] sm:$0xf] }
 0x703   : > { %v10999_v46 = vsel %vm4492_vm2, %v10930_v54, %v10855_v6  ;;  %v11170_v40 = vor.u32 %v11169_v59, %v11166_v38 }
 0x704   : > { %v11172_v15 = vshrl.u32 %v10999_v46, 16  ;;  %v11175_v44 = vshll.u32 %v10999_v46, 16  ;;  %v10389_v46 = vld [vmem:[#allocation3 + $0x130] sm:$0x8] }
 0x705   : > { %v10857_v29 = vpop.permute.xlu1 %10856  ;;  %v11171_v2 = vsel %vm4557_vm4, %v11163_v35, %v11170_v40  ;;  %v12629_v35 = vcombine.low %v10389_v46, %v14394_v27  ;;  %v10395_v40 = vld [vmem:[#allocation3 + $0x158] sm:$0x8] }
 0x706   : > { %v10859_v45 = vpop.permute.xlu0 %10858  ;;  %v11174_v56 = vrot.slane %v11172_v15, 3  ;;  %v11177_v39 = vrot.slane %v11175_v44, 4  ;;  %v11001_v58 = vsel %vm4492_vm2, %v10932_v0, %v10857_v29  ;;  %v10392_v15 = vld [vmem:[#allocation3 + $0x144] sm:$0x8] }
 0x707   : > { %v11003_v30 = vsel %vm4492_vm2, %v10935_v25, %v10859_v45  ;;  %v11179_v4 = vshrl.u32 %v11001_v58, 16  ;;  %v11182_v31 = vshll.u32 %v11001_v58, 16  ;;  %v14396_v25 = vld [vmem:[#allocation3 + $0x148] sm:$0xf]  ;;  %v14397_v58 = vld [vmem:[#allocation3 + $0x15c] sm:$0xf] }
 0x708   : > { %v11187_v42 = vshrl.u32 %v11003_v30, 16  ;;  %v11190_v63 = vshll.u32 %v11003_v30, 16  ;;  %13386 = vmatmul.mubr.msk.bf16.gmra.mrb[44].mxu1 %vm5771_vm3, %v11141_v5  ;;  %v11178_v9 = vor.u32 %v11177_v39, %v11174_v56  ;;  %v12631_v45 = vcombine.low %v10392_v15, %v14396_v25 }
 0x709   : > { %v11181_v47 = vrot.slane %v11179_v4, 3  ;;  %v11184_v18 = vrot.slane %v11182_v31, 4  ;;  %13389 = vmatprep.mubr.msk.bf16.mxu1 %vm5771_vm3, %v11156_v48  ;;  %v10861_v21 = vpop.permute.xlu1 %10860  ;;  %v12633_v33 = vcombine.low %v10395_v40, %v14397_v58 }
 0x70a   : > { %v10711_v26 = vpop.permute.xlu0 %10710  ;;  %v11189_v20 = vrot.slane %v11187_v42, 3  ;;  %v11005_v19 = vsel %vm4492_vm2, %v10937_v52, %v10861_v21  ;;  %v11192_v10 = vrot.slane %v11190_v63, 4  ;;  %v14398_v52 = vld [vmem:[#allocation3 + $0x160] sm:$0xf] }
 0x70b   : > { %v11185_v55 = vor.u32 %v11184_v18, %v11181_v47  ;;  %v11194_v28 = vshrl.u32 %v11005_v19, 16  ;;  %v11197_v5 = vshll.u32 %v11005_v19, 16  ;;  %v10940_v11 = vsel %vm4411_vm1, %v12627_v50, %v10711_v26 }
 0x70c   : > { %v10942_v12 = vsel %vm4411_vm1, %v12628_v49, %v10711_v26  ;;  %v11193_v24 = vor.u32 %v11192_v10, %v11189_v20  ;;  %v12634_v47 = vcombine.low %v14398_v52, %v14398_v52  ;;  %v14399_v20 = vld [vmem:[#allocation3 + $0x14c] sm:$0xf] }
 0x70d   : > { %v11196_v22 = vrot.slane %v11194_v28, 3  ;;  %v11199_v23 = vrot.slane %v11197_v5, 4  ;;  %v10865_v61 = vpop.permute.xlu1 %10864  ;;  %v11186_v14 = vsel %vm4557_vm4, %v11178_v9, %v11185_v55  ;;  %v12632_v37 = vcombine.low %v14399_v20, %v14399_v20 }
 0x70e   : > { %v10863_v36 = vpop.permute.xlu0 %10862  ;;  %v11009_v1 = vsel %vm4492_vm2, %v10942_v12, %v10865_v61 }
 0x70f   : > { %v11007_v53 = vsel %vm4492_vm2, %v10940_v11, %v10863_v36  ;;  %v11200_v43 = vor.u32 %v11199_v23, %v11196_v22  ;;  %v11209_v17 = vshrl.u32 %v11009_v1, 16  ;;  %v11212_v3 = vshll.u32 %v11009_v1, 16 }
 0x710   : > { %v11202_v34 = vshrl.u32 %v11007_v53, 16  ;;  %v11205_v62 = vshll.u32 %v11007_v53, 16  ;;  %13390 = vmatmul.mubr.msk.bf16.gmra.mrb[48].mxu1 %vm5771_vm3, %v11171_v2 }
 0x711   : > { %v11211_v6 = vrot.slane %v11209_v17, 3  ;;  %v11214_v38 = vrot.slane %v11212_v3, 4  ;;  %13393 = vmatprep.mubr.msk.bf16.mxu1 %vm5771_vm3, %v11186_v14  ;;  %v10869_v59 = vpop.permute.xlu1 %10868  ;;  %v11201_v16 = vsel %vm4557_vm4, %v11193_v24, %v11200_v43 }
 0x712   : > { %v11204_v41 = vrot.slane %v11202_v34, 3  ;;  %v11207_v8 = vrot.slane %v11205_v62, 4  ;;  %v10867_v54 = vpop.permute.xlu0 %10866 }
 0x713   : > { %v11215_v44 = vor.u32 %v11214_v38, %v11211_v6 }
 0x714   : > { %v11208_v48 = vor.u32 %v11207_v8, %v11204_v41 }
 0x716   : > { %v10715_v57 = vpop.permute.xlu0 %10714  ;;  %v10713_v0 = vpop.permute.xlu1 %10712  ;;  %v11216_v30 = vsel %vm4557_vm4, %v11208_v48, %v11215_v44 }
 0x717   : > { %v10945_v29 = vsel %vm4411_vm1, %v12629_v35, %v10713_v0  ;;  %v10947_v2 = vsel %vm4411_vm1, %v12630_v51, %v10713_v0  ;;  %v10950_v56 = vsel %vm4411_vm1, %v12631_v45, %v10715_v57  ;;  %v10952_v11 = vsel %vm4411_vm1, %v12632_v37, %v10715_v57  ;;  %v19405_v35 = vld [vmem:[%s19455_s9] ss:$0 sm:$0xff] }
 0x718   : > { %v11011_v39 = vsel %vm4492_vm2, %v10945_v29, %v10867_v54  ;;  %v11013_v42 = vsel %vm4492_vm2, %v10947_v2, %v10869_v59  ;;  %13394 = vmatmul.mubr.msk.bf16.gmra.mrb[52].mxu1 %vm5771_vm3, %v11201_v16 }
 0x719   : > { %v11217_v7 = vshrl.u32 %v11011_v39, 16  ;;  %v11220_v60 = vshll.u32 %v11011_v39, 16  ;;  %v11224_v63 = vshrl.u32 %v11013_v42, 16  ;;  %v11227_v4 = vshll.u32 %v11013_v42, 16  ;;  %13397 = vmatprep.mubr.msk.bf16.mxu1 %vm5771_vm3, %v11216_v30 }
 0x71a   : > { %v10871_v31 = vpop.permute.xlu0 %10870 }
 0x71b   : > { %v11015_v26 = vsel %vm4492_vm2, %v10950_v56, %v10871_v31  ;;  %v10717_v18 = vpop.permute.xlu1 %10716  ;;  %v11219_v13 = vrot.slane %v11217_v7, 3  ;;  %v11222_v50 = vrot.slane %v11220_v60, 4  ;;  %v11226_v21 = vrot.slane %v11224_v63, 3 }
 0x71c   : > { %v11229_v9 = vrot.slane %v11227_v4, 4  ;;  %v11232_v49 = vshrl.u32 %v11015_v26, 16  ;;  %v11235_v19 = vshll.u32 %v11015_v26, 16  ;;  %v10955_v10 = vsel %vm4411_vm1, %v12633_v33, %v10717_v18 }
 0x71d   : > { %v11223_v55 = vor.u32 %v11222_v50, %v11219_v13  ;;  %v10957_v12 = vsel %vm4411_vm1, %v12634_v47, %v10717_v18 }
 0x71e   : > { %v11230_v28 = vor.u32 %v11229_v9, %v11226_v21  ;;  %v10875_v5 = vpop.permute.xlu0 %10874  ;;  %v11234_v34 = vrot.slane %v11232_v49, 3  ;;  %v11237_v62 = vrot.slane %v11235_v19, 4 }
 0x71f   : > { %v10873_v36 = vpop.permute.xlu1 %10872  ;;  %v11019_v22 = vsel %vm4492_vm2, %v10955_v10, %v10875_v5 }
 0x720   : > { %v11017_v23 = vsel %vm4492_vm2, %v10952_v11, %v10873_v36  ;;  %v11231_v53 = vsel %vm4557_vm4, %v11223_v55, %v11230_v28  ;;  %v11247_v61 = vshrl.u32 %v11019_v22, 16  ;;  %v11250_v14 = vshll.u32 %v11019_v22, 16 }
 0x721   : > { %v11239_v1 = vshrl.u32 %v11017_v23, 16  ;;  %v11242_v24 = vshll.u32 %v11017_v23, 16  ;;  %13398 = vmatmul.mubr.msk.bf16.gmra.mrb[56].mxu1 %vm5771_vm3, %v11231_v53  ;;  %v11238_v6 = vor.u32 %v11237_v62, %v11234_v34 }
 0x722   : > { %v11249_v3 = vrot.slane %v11247_v61, 3  ;;  %v11252_v41 = vrot.slane %v11250_v14, 4 }
 0x723   : > { %v11241_v43 = vrot.slane %v11239_v1, 3  ;;  %v11244_v17 = vrot.slane %v11242_v24, 4  ;;  %v10877_v8 = vpop.permute.xlu1 %10876 }
 0x724   : > { %v11021_v54 = vsel %vm4492_vm2, %v10957_v12, %v10877_v8  ;;  %v11253_v16 = vor.u32 %v11252_v41, %v11249_v3 }
 0x725   : > { %v11245_v38 = vor.u32 %v11244_v17, %v11241_v43  ;;  %v11254_v59 = vshrl.u32 %v11021_v54, 16  ;;  %v11257_v46 = vshll.u32 %v11021_v54, 16 }
 0x727   : > { %v11256_v48 = vrot.slane %v11254_v59, 3  ;;  %v11259_v15 = vrot.slane %v11257_v46, 4  ;;  %v11246_v44 = vsel %vm4557_vm4, %v11238_v6, %v11245_v38 }
 0x728   : > { %13401 = vmatprep.mubr.msk.bf16.mxu1 %vm5771_vm3, %v11246_v44 }
 0x729   : > { %v11260_v57 = vor.u32 %v11259_v15, %v11256_v48 }
 0x72b   : > { %v11261_v27 = vsel %vm4557_vm4, %v11253_v16, %v11260_v57 }
 0x72c   : > { %13402 = vmatmul.mubr.msk.bf16.gmra.mrb[60].mxu1 %vm5771_vm3, %v11261_v27 }
 0x7c3   : > { %v13375_v32 = vpop.f32.mrb[32].mxu1 }
 0x7c4   : > { %v11393_v51 = vpop.f32.mrb[33].mxu1  ;;  %v11561_v2 = vadd.f32 %v13375_v32, %v19405_v35 }
 0x7c5   : > { %v11559_v40 = vadd.f32 %v19405_v35, %v11393_v51  ;;  %v13376_v25 = vpop.f32.mrb[34].mxu1 }
 0x7c6   : > { %v11396_v45 = vpop.f32.mrb[35].mxu1  ;;  %v11562_v42 = vadd.f32 %v13376_v25, %v19405_v35 }
 0x7c7   : > { %11591 = vxpose.xlu0.b32.start [1/16] (narrow) %v11559_v40, 8  ;;  %v11560_v0 = vadd.f32 %v19405_v35, %v11396_v45 }
 0x7cb   : > { %11592 = vxpose.xlu0.b32.cont [2/16] (narrow) %v11560_v0, 8  ;;  %v13379_v30 = vpop.f32.mrb[36].mxu1 }
 0x7cc   : > { %v11409_v29 = vpop.f32.mrb[37].mxu1  ;;  %v11565_v52 = vadd.f32 %v13379_v30, %v19405_v35 }
 0x7cd   : > { %v13380_v56 = vpop.f32.mrb[38].mxu1  ;;  %v11563_v7 = vadd.f32 %v19405_v35, %v11409_v29 }
 0x7ce   : > { %v11412_v39 = vpop.f32.mrb[39].mxu1  ;;  %v11566_v13 = vadd.f32 %v13380_v56, %v19405_v35 }
 0x7cf   : > { %11593 = vxpose.xlu0.b32.cont [3/16] (narrow) %v11561_v2, 8  ;;  %v11564_v4 = vadd.f32 %v19405_v35, %v11412_v39 }
 0x7d3   : > { %11594 = vxpose.xlu0.b32.cont [4/16] (narrow) %v11562_v42, 8  ;;  %v13383_v58 = vpop.f32.mrb[40].mxu1 }
 0x7d4   : > { %v11425_v33 = vpop.f32.mrb[41].mxu1  ;;  %v11569_v5 = vadd.f32 %v13383_v58, %v19405_v35 }
 0x7d5   : > { %v13384_v60 = vpop.f32.mrb[42].mxu1  ;;  %v11567_v9 = vadd.f32 %v19405_v35, %v11425_v33 }
 0x7d6   : > { %v11428_v63 = vpop.f32.mrb[43].mxu1  ;;  %v11570_v22 = vadd.f32 %v13384_v60, %v19405_v35 }
 0x7d7   : > { %11595 = vxpose.xlu0.b32.cont [5/16] (narrow) %v11563_v7, 8  ;;  %v11568_v19 = vadd.f32 %v19405_v35, %v11428_v63 }
 0x7db   : > { %11596 = vxpose.xlu0.b32.cont [6/16] (narrow) %v11564_v4, 8  ;;  %v13387_v31 = vpop.f32.mrb[44].mxu1 }
 0x7dc   : > { %v11441_v26 = vpop.f32.mrb[45].mxu1  ;;  %v11573_v54 = vadd.f32 %v13387_v31, %v19405_v35 }
 0x7dd   : > { %v13388_v47 = vpop.f32.mrb[46].mxu1  ;;  %v11571_v34 = vadd.f32 %v19405_v35, %v11441_v26 }
 0x7de   : > { %v11444_v18 = vpop.f32.mrb[47].mxu1  ;;  %v11574_v57 = vadd.f32 %v13388_v47, %v19405_v35 }
 0x7df   : > { %11597 = vxpose.xlu0.b32.cont [7/16] (narrow) %v11565_v52, 8  ;;  %v11572_v41 = vadd.f32 %v19405_v35, %v11444_v18 }
 0x7e3   : > { %11598 = vxpose.xlu0.b32.cont [8/16] (narrow) %v11566_v13, 8  ;;  %v13391_v50 = vpop.f32.mrb[48].mxu1 }
 0x7e4   : > { %v11457_v21 = vpop.f32.mrb[49].mxu1  ;;  %v11577_v11 = vadd.f32 %v13391_v50, %v19405_v35 }
 0x7e5   : > { %v11575_v20 = vadd.f32 %v19405_v35, %v11457_v21  ;;  %v13392_v37 = vpop.f32.mrb[50].mxu1 }
 0x7e6   : > { %v11460_v49 = vpop.f32.mrb[51].mxu1  ;;  %v11578_v23 = vadd.f32 %v13392_v37, %v19405_v35 }
 0x7e7   : > { %11599 = vxpose.xlu0.b32.cont [9/16] (narrow) %v11567_v9, 8  ;;  %11623 = vxpose.xlu1.b32.start [1/16] (narrow) %v11575_v20, 8  ;;  %v11576_v10 = vadd.f32 %v19405_v35, %v11460_v49 }
 0x7eb   : > { %11600 = vxpose.xlu0.b32.cont [10/16] (narrow) %v11568_v19, 8  ;;  %11624 = vxpose.xlu1.b32.cont [2/16] (narrow) %v11576_v10, 8  ;;  %v13395_v55 = vpop.f32.mrb[52].mxu1 }
 0x7ec   : > { %v11473_v28 = vpop.f32.mrb[53].mxu1  ;;  %v11581_v6 = vadd.f32 %v13395_v55, %v19405_v35 }
 0x7ed   : > { %v13396_v12 = vpop.f32.mrb[54].mxu1  ;;  %v11579_v62 = vadd.f32 %v19405_v35, %v11473_v28 }
 0x7ee   : > { %v11476_v36 = vpop.f32.mrb[55].mxu1  ;;  %v11582_v27 = vadd.f32 %v13396_v12, %v19405_v35 }
 0x7ef   : > { %11601 = vxpose.xlu0.b32.cont [11/16] (narrow) %v11569_v5, 8  ;;  %11625 = vxpose.xlu1.b32.cont [3/16] (narrow) %v11577_v11, 8  ;;  %v11580_v8 = vadd.f32 %v19405_v35, %v11476_v36 }
 0x7f3   : > { %11602 = vxpose.xlu0.b32.cont [12/16] (narrow) %v11570_v22, 8  ;;  %11626 = vxpose.xlu1.b32.cont [4/16] (narrow) %v11578_v23, 8 }
 0x7f4   : > { %v13399_v53 = vpop.f32.mrb[56].mxu1 }
 0x7f5   : > { %v11585_v61 = vadd.f32 %v13399_v53, %v19405_v35  ;;  %v11489_v14 = vpop.f32.mrb[57].mxu1 }
 0x7f6   : > { %v11583_v1 = vadd.f32 %v19405_v35, %v11489_v14  ;;  %v13400_v24 = vpop.f32.mrb[58].mxu1 }
 0x7f7   : > { %v11586_v43 = vadd.f32 %v13400_v24, %v19405_v35  ;;  %v11492_v17 = vpop.f32.mrb[59].mxu1  ;;  %11603 = vxpose.xlu0.b32.cont [13/16] (narrow) %v11571_v34, 8  ;;  %11627 = vxpose.xlu1.b32.cont [5/16] (narrow) %v11579_v62, 8 }
 0x7f8   : > { %v11584_v3 = vadd.f32 %v19405_v35, %v11492_v17 }
 0x7fb   : > { %11604 = vxpose.xlu0.b32.cont [14/16] (narrow) %v11572_v41, 8  ;;  %11628 = vxpose.xlu1.b32.cont [6/16] (narrow) %v11580_v8, 8 }
 0x7ff   : > { %v13403_v38 = vpop.f32.mrb[60].mxu1  ;;  %11605 = vxpose.xlu0.b32.cont [15/16] (narrow) %v11573_v54, 8  ;;  %11629 = vxpose.xlu1.b32.cont [7/16] (narrow) %v11581_v6, 8 }
 0x800   : > { %v11589_v59 = vadd.f32 %v13403_v38, %v19405_v35  ;;  %v11505_v46 = vpop.f32.mrb[61].mxu1 }
 0x801   : > { %v11587_v16 = vadd.f32 %v19405_v35, %v11505_v46  ;;  %v13404_v48 = vpop.f32.mrb[62].mxu1 }
 0x802   : > { %v11590_v15 = vadd.f32 %v13404_v48, %v19405_v35  ;;  %v11508_v44 = vpop.f32.mrb[63].mxu1 }
 0x803   : > { %v11588_v32 = vadd.f32 %v19405_v35, %v11508_v44  ;;  %11606 = vxpose.xlu0.b32.end [16/16] (narrow) %v11574_v57, 8  ;;  %11630 = vxpose.xlu1.b32.cont [8/16] (narrow) %v11582_v27, 8 }
 0x807   : > { %11631 = vxpose.xlu1.b32.cont [9/16] (narrow) %v11583_v1, 8 }
 0x80b   : > { %11632 = vxpose.xlu1.b32.cont [10/16] (narrow) %v11584_v3, 8 }
 0x80f   : > { %11633 = vxpose.xlu1.b32.cont [11/16] (narrow) %v11585_v61, 8 }
 0x813   : > { %11634 = vxpose.xlu1.b32.cont [12/16] (narrow) %v11586_v43, 8 }
 0x817   : > { %11635 = vxpose.xlu1.b32.cont [13/16] (narrow) %v11587_v16, 8 }
 0x81b   : > { %11636 = vxpose.xlu1.b32.cont [14/16] (narrow) %v11588_v32, 8 }
 0x81f   : > { %11637 = vxpose.xlu1.b32.cont [15/16] (narrow) %v11589_v59, 8 }
 0x823   : > { %11638 = vxpose.xlu1.b32.end [16/16] (narrow) %v11590_v15, 8 }
 0x847   : > { %v11607_v51 = vpop.trf.xlu0 }
 0x867   : > { %v11639_v40 = vpop.trf.xlu1 }
 0x868   : > { %v11657_v25 = vcombine.low %v11607_v51, %v11639_v40 }
 0x86a   : > { %11659 = vst [vmem:[%s359_s15] sm:$0xff] %v11657_v25 }
 0x86b PF: > { %s20_s13 = sadd.s32 1, %s14406_s13  }
 0x86c   : > { %p17_p4 = scmp.ge.s32.totalorder %s20_s13, 4  }
 0x86e   :  { %19 = sbr.rel (!%p17_p4) target bundleno = 1 (0x1), region = 102 }

</bundles_post_ra>
